<compile_context>
chip_gen: v5e
topology: v5e:2x2
jax: 0.10.0
libtpu: 0.0.40
codegen_flags: <defaults>
</compile_context>

<pallas_src>
import jax
import jax.numpy as jnp
from jax import lax
from jax.experimental import pallas as pl
from jax.experimental.pallas import tpu as pltpu

VMEM_LIMIT = 32 * 1024 * 1024  # well under v7x's 64 MiB physical VMEM


# ----------------------------------------------------------------------------
# Wrapper-side im2col with pool-parity row grouping (layout plumbing only).
# ----------------------------------------------------------------------------
def _im2col_pool_major(x_nhwc, ksize, k_pad):
    """im2col rows ordered (b, hp, wp, h_out, w_out), feature order (dy, dx, c).

    Per image, the 4 parity blocks (hp, wp in {0,1}) of Q=(H/2)*(W/2) rows each
    hold one corner of every 2x2 pooling window, so the in-kernel max-pool is
    three elementwise maxes over 8-aligned contiguous row blocks.
    """
    B, H, W, C = x_nhwc.shape
    pad = ksize // 2
    xp = jnp.pad(x_nhwc, ((0, 0), (pad, pad), (pad, pad), (0, 0)))
    cols = [xp[:, dy:dy + H, dx:dx + W, :]
            for dy in range(ksize) for dx in range(ksize)]
    col = jnp.concatenate(cols, axis=-1)                 # (B, H, W, 9*C)
    K = ksize * ksize * C
    if k_pad != K:
        col = jnp.pad(col, ((0, 0), (0, 0), (0, 0), (0, k_pad - K)))
    col = col.reshape(B, H // 2, 2, W // 2, 2, k_pad)
    col = col.transpose(0, 2, 4, 1, 3, 5)                # (B, hp, wp, h', w', K)
    return col.reshape(B * H * W, k_pad)


# ----------------------------------------------------------------------------
# Kernel 1: fused conv3x3 (as one matmul) + folded BN + ReLU + 2x2 max-pool
# ----------------------------------------------------------------------------
def conv_bn_relu_pool_kernel(col_ref, w_ref, scale_ref, shift_ref, out_ref):
    # col_ref: (4*Q, Kp) im2col rows for one image (4 pool-parity blocks).
    y = jnp.dot(col_ref[...], w_ref[...], preferred_element_type=jnp.float32)
    y = jnp.maximum(y * scale_ref[...] + shift_ref[...], 0.0)
    q = out_ref.shape[0]
    out_ref[...] = jnp.maximum(jnp.maximum(y[0:q], y[q:2 * q]),
                               jnp.maximum(y[2 * q:3 * q], y[3 * q:4 * q]))


def conv_bn_relu_pool(x_nhwc, w2d, scale, shift, *, ksize=3):
    B, H, W, _ = x_nhwc.shape
    Kp, cout = w2d.shape
    col = _im2col_pool_major(x_nhwc, ksize, Kp)          # (B*H*W, Kp)
    Q = (H // 2) * (W // 2)
    out = pl.pallas_call(
        conv_bn_relu_pool_kernel,
        out_shape=jax.ShapeDtypeStruct((B * Q, cout), jnp.float32),
        grid=(B,),
        in_specs=[
            pl.BlockSpec((4 * Q, Kp), lambda b: (b, 0)),
            pl.BlockSpec((Kp, cout), lambda b: (0, 0)),
            pl.BlockSpec((1, cout), lambda b: (0, 0)),
            pl.BlockSpec((1, cout), lambda b: (0, 0)),
        ],
        out_specs=pl.BlockSpec((Q, cout), lambda b: (b, 0)),
        compiler_params=pltpu.CompilerParams(
            dimension_semantics=("parallel",),
            vmem_limit_bytes=VMEM_LIMIT),
    )(col, w2d, scale, shift)
    return out.reshape(B, H // 2, W // 2, cout)


# ----------------------------------------------------------------------------
# Kernel 2: fused dense stack fc1+bn3+relu -> fc2+bn4+relu -> fc3 (+bias)
# ----------------------------------------------------------------------------
def mlp_kernel(x_ref, w1_ref, s1_ref, b1_ref, w2_ref, s2_ref, b2_ref,
               w3_ref, b3_ref, out_ref):
    h = jnp.dot(x_ref[...].astype(jnp.bfloat16), w1_ref[...],
                preferred_element_type=jnp.float32)
    h = jnp.maximum(h * s1_ref[...] + b1_ref[...], 0.0)
    # TODO(synk): dropout is identity in eval mode (no RNG mask here).
    h = jnp.dot(h.astype(jnp.bfloat16), w2_ref[...],
                preferred_element_type=jnp.float32)
    h = jnp.maximum(h * s2_ref[...] + b2_ref[...], 0.0)
    y = jnp.dot(h.astype(jnp.bfloat16), w3_ref[...],
                preferred_element_type=jnp.float32)
    out_ref[...] = y + b3_ref[...]


def mlp(x, w1, s1, b1, w2, s2, b2, w3, b3):
    B = x.shape[0]
    n_out = w3.shape[1]
    vspec = pl.BlockSpec(memory_space=pltpu.MemorySpace.VMEM)
    return pl.pallas_call(
        mlp_kernel,
        out_shape=jax.ShapeDtypeStruct((B, n_out), jnp.float32),
        in_specs=[vspec] * 9,
        out_specs=vspec,
        compiler_params=pltpu.CompilerParams(vmem_limit_bytes=VMEM_LIMIT),
    )(x, w1, s1, b1, w2, s2, b2, w3, b3)


# ----------------------------------------------------------------------------
# Parameter construction (deterministic, synthetic — no checkpoint loading)
# ----------------------------------------------------------------------------
def _fold_bn(bias, gamma, beta, mean, var, eps=1e-5):
    s = gamma / jnp.sqrt(var + eps)
    shift = (bias - mean) * s + beta
    return s.reshape(1, -1).astype(jnp.float32), shift.reshape(1, -1).astype(jnp.float32)


def init_params(key):
    counter = [0]

    def nk():  # fresh key on demand (fixes the previous StopIteration bug)
        counter[0] += 1
        return jax.random.fold_in(key, counter[0])

    def normal(shape, fan_in):
        return jax.random.normal(nk(), shape, jnp.float32) / jnp.sqrt(float(fan_in))

    def bn(c):
        gamma = jax.random.uniform(nk(), (c,), jnp.float32, 0.5, 1.5)
        beta = 0.1 * jax.random.normal(nk(), (c,), jnp.float32)
        mean = 0.1 * jax.random.normal(nk(), (c,), jnp.float32)
        var = jax.random.uniform(nk(), (c,), jnp.float32, 0.5, 1.5)
        return gamma, beta, mean, var

    p = {}
    # conv1: 3 -> 32, 3x3 (torch OIHW); im2col weight rows in (dy, dx, cin) order
    W1 = normal((32, 3, 3, 3), 3 * 9)
    b1 = 0.1 * jax.random.normal(nk(), (32,), jnp.float32)
    p['W1_oihw'] = W1
    w1_2d = jnp.transpose(W1, (2, 3, 1, 0)).reshape(27, 32)
    p['w1_2d'] = jnp.pad(w1_2d, ((0, 32 - 27), (0, 0)))        # K: 27 -> 32
    p['s1'], p['sh1'] = _fold_bn(b1, *bn(32))

    # conv2: 32 -> 64, 3x3
    W2 = normal((64, 32, 3, 3), 32 * 9)
    b2 = 0.1 * jax.random.normal(nk(), (64,), jnp.float32)
    p['W2_oihw'] = W2
    p['w2_2d'] = jnp.transpose(W2, (2, 3, 1, 0)).reshape(288, 64)
    p['s2'], p['sh2'] = _fold_bn(b2, *bn(64))

    # fc1: 4096 -> 512 (+ bn3); store bf16, permute rows (c,h,w) -> (h,w,c)
    Wf1 = normal((512, 64 * 8 * 8), 64 * 8 * 8)                # torch (out, in)
    bf1 = 0.1 * jax.random.normal(nk(), (512,), jnp.float32)
    wf1 = Wf1.T.astype(jnp.bfloat16)                           # rows in torch (c,h,w) order
    p['wf1'] = wf1
    p['wf1_hwc'] = wf1.reshape(64, 8, 8, 512).transpose(1, 2, 0, 3).reshape(4096, 512)
    p['sf1'], p['shf1'] = _fold_bn(bf1, *bn(512))

    # fc2: 512 -> 128 (+ bn4)
    Wf2 = normal((128, 512), 512)
    bf2 = 0.1 * jax.random.normal(nk(), (128,), jnp.float32)
    p['wf2'] = Wf2.T.astype(jnp.bfloat16)
    p['sf2'], p['shf2'] = _fold_bn(bf2, *bn(128))

    # fc3: 128 -> 10 (bias only)
    Wf3 = normal((10, 128), 128)
    bf3 = 0.1 * jax.random.normal(nk(), (10,), jnp.float32)
    p['wf3'] = Wf3.T.astype(jnp.bfloat16)
    p['bf3'] = bf3.reshape(1, -1)
    return p


# ----------------------------------------------------------------------------
# Forward pass (Pallas) and pure-JAX reference
# ----------------------------------------------------------------------------
@jax.jit
def forward(x_nchw, p):
    x = jnp.transpose(x_nchw, (0, 2, 3, 1))                    # NCHW -> NHWC
    x = conv_bn_relu_pool(x, p['w1_2d'], p['s1'], p['sh1'])    # (B,16,16,32)
    x = conv_bn_relu_pool(x, p['w2_2d'], p['s2'], p['sh2'])    # (B, 8, 8,64)
    # NHWC flatten; fc1 weight rows were permuted at init to match torch's view
    x = x.reshape(x.shape[0], -1)
    return mlp(x, p['wf1_hwc'], p['sf1'], p['shf1'],
               p['wf2'], p['sf2'], p['shf2'],
               p['wf3'], p['bf3'])


def reference_forward(x, p):
    def conv_block(x, W, s, sh):
        y = lax.conv_general_dilated(
            x, W, window_strides=(1, 1), padding=((1, 1), (1, 1)),
            dimension_numbers=('NCHW', 'OIHW', 'NCHW'))
        y = jnp.maximum(y * s.reshape(1, -1, 1, 1) + sh.reshape(1, -1, 1, 1), 0.0)
        return lax.reduce_window(y, -jnp.inf, lax.max,
                                 (1, 1, 2, 2), (1, 1, 2, 2), 'VALID')

    x = conv_block(x, p['W1_oihw'], p['s1'], p['sh1'])
    x = conv_block(x, p['W2_oihw'], p['s2'], p['sh2'])
    x = x.reshape(x.shape[0], -1)                              # torch (c,h,w) order
    x = jnp.maximum(x @ p['wf1'].astype(jnp.float32) * p['sf1'] + p['shf1'], 0.0)
    x = jnp.maximum(x @ p['wf2'].astype(jnp.float32) * p['sf2'] + p['shf2'], 0.0)
    x = x @ p['wf3'].astype(jnp.float32) + p['bf3']
    return x


if __name__ == "__main__":
    key = jax.random.PRNGKey(0)
    k_x, k_p = jax.random.split(key)
    # CIFAR-shaped input (spatial 32 is required by fc1 = 64*8*8), small batch.
    x = jax.random.normal(k_x, (2, 3, 32, 32), jnp.float32)
    params = init_params(k_p)

    out = jax.block_until_ready(forward(x, params))
    assert out.shape == (2, 10), out.shape

    ref = reference_forward(x, params)
    assert jnp.allclose(out, ref, rtol=5e-2, atol=5e-2), (
        "Pallas output mismatch vs JAX reference; max abs diff = "
        + str(float(jnp.max(jnp.abs(out - ref)))))

    print("KERNEL_OK")
</pallas_src>

<mosaic_0001>
module attributes {stable_mosaic.version = 11 : i64} {
  func.func @conv_bn_relu_pool_kernel(%arg0: i32, %arg1: memref<1024x32xf32, #tpu.memory_space<vmem>>, %arg2: memref<32x32xf32, #tpu.memory_space<vmem>>, %arg3: memref<1x32xf32, #tpu.memory_space<vmem>>, %arg4: memref<1x32xf32, #tpu.memory_space<vmem>>, %arg5: memref<256x32xf32, #tpu.memory_space<vmem>>) attributes {dimension_semantics = [#tpu.dimension_semantics<parallel>], iteration_bounds = array<i64: 2>, scalar_prefetch = 0 : i64, scratch_operands = 0 : i64, tpu.core_type = #tpu.core_type<tc>, window_params = [{transform_indices = @transform_0, window_bounds = array<i64: 1024, 32>}, {pipeline_mode = #tpu.pipeline_mode<synchronous>, transform_indices = @transform_1, window_bounds = array<i64: 32, 32>}, {pipeline_mode = #tpu.pipeline_mode<synchronous>, transform_indices = @transform_2, window_bounds = array<i64: 1, 32>}, {pipeline_mode = #tpu.pipeline_mode<synchronous>, transform_indices = @transform_3, window_bounds = array<i64: 1, 32>}, {transform_indices = @transform_4, window_bounds = array<i64: 256, 32>}]} {
    %c0 = arith.constant 0 : index
    %c0_0 = arith.constant 0 : index
    %0 = vector.load %arg1[%c0, %c0_0] : memref<1024x32xf32, #tpu.memory_space<vmem>>, vector<1024x32xf32>
    %c0_1 = arith.constant 0 : index
    %c0_2 = arith.constant 0 : index
    %1 = vector.load %arg2[%c0_1, %c0_2] : memref<32x32xf32, #tpu.memory_space<vmem>>, vector<32x32xf32>
    %cst = arith.constant dense<0.000000e+00> : vector<1024x32xf32>
    %2 = tpu.matmul %0, %1, %cst {dimension_numbers = #tpu.dot_dimension_numbers<[1], [0], [0], [1], [0, 0, 1, 1], [], []>} : vector<1024x32xf32>, vector<32x32xf32>, vector<1024x32xf32> -> vector<1024x32xf32>
    %c0_3 = arith.constant 0 : index
    %c0_4 = arith.constant 0 : index
    %3 = vector.load %arg3[%c0_3, %c0_4] : memref<1x32xf32, #tpu.memory_space<vmem>>, vector<1x32xf32>
    %4 = vector.broadcast %3 : vector<1x32xf32> to vector<1024x32xf32>
    %5 = arith.mulf %2, %4 : vector<1024x32xf32>
    %c0_5 = arith.constant 0 : index
    %c0_6 = arith.constant 0 : index
    %6 = vector.load %arg4[%c0_5, %c0_6] : memref<1x32xf32, #tpu.memory_space<vmem>>, vector<1x32xf32>
    %7 = vector.broadcast %6 : vector<1x32xf32> to vector<1024x32xf32>
    %8 = arith.addf %5, %7 : vector<1024x32xf32>
    %cst_7 = arith.constant 0.000000e+00 : f32
    %9 = vector.broadcast %cst_7 : f32 to vector<1024x32xf32>
    %10 = arith.maximumf %8, %9 : vector<1024x32xf32>
    %11 = vector.extract_strided_slice %10 {offsets = [0, 0], sizes = [256, 32], strides = [1, 1]} : vector<1024x32xf32> to vector<256x32xf32>
    %12 = vector.extract_strided_slice %10 {offsets = [256, 0], sizes = [256, 32], strides = [1, 1]} : vector<1024x32xf32> to vector<256x32xf32>
    %13 = arith.maximumf %11, %12 : vector<256x32xf32>
    %14 = vector.extract_strided_slice %10 {offsets = [512, 0], sizes = [256, 32], strides = [1, 1]} : vector<1024x32xf32> to vector<256x32xf32>
    %15 = vector.extract_strided_slice %10 {offsets = [768, 0], sizes = [256, 32], strides = [1, 1]} : vector<1024x32xf32> to vector<256x32xf32>
    %16 = arith.maximumf %14, %15 : vector<256x32xf32>
    %17 = arith.maximumf %13, %16 : vector<256x32xf32>
    %c0_8 = arith.constant 0 : index
    %c0_9 = arith.constant 0 : index
    %18 = vector.load %arg5[%c0_8, %c0_9] : memref<256x32xf32, #tpu.memory_space<vmem>>, vector<256x32xf32>
    tpu.vector_store %arg5[%c0_8, %c0_9], %17 {strides = array<i32>} : memref<256x32xf32, #tpu.memory_space<vmem>>, vector<256x32xf32>,
    return
  }
  func.func @transform_0(%arg0: i32) -> (i32, i32) {
    %c0_i32 = arith.constant 0 : i32
    %c0_i32_0 = arith.constant 0 : i32
    return %arg0, %c0_i32 : i32, i32
  }
  func.func @transform_1(%arg0: i32) -> (i32, i32) {
    %c0_i32 = arith.constant 0 : i32
    %c0_i32_0 = arith.constant 0 : i32
    %c0_i32_1 = arith.constant 0 : i32
    return %c0_i32, %c0_i32_0 : i32, i32
  }
  func.func @transform_2(%arg0: i32) -> (i32, i32) {
    %c0_i32 = arith.constant 0 : i32
    %c0_i32_0 = arith.constant 0 : i32
    %c0_i32_1 = arith.constant 0 : i32
    return %c0_i32, %c0_i32_0 : i32, i32
  }
  func.func @transform_3(%arg0: i32) -> (i32, i32) {
    %c0_i32 = arith.constant 0 : i32
    %c0_i32_0 = arith.constant 0 : i32
    %c0_i32_1 = arith.constant 0 : i32
    return %c0_i32, %c0_i32_0 : i32, i32
  }
  func.func @transform_4(%arg0: i32) -> (i32, i32) {
    %c0_i32 = arith.constant 0 : i32
    %c0_i32_0 = arith.constant 0 : i32
    return %arg0, %c0_i32 : i32, i32
  }
}

module attributes {stable_mosaic.version = 11 : i64} {
  func.func @conv_bn_relu_pool_kernel(%arg0: i32, %arg1: memref<256x288xf32, #tpu.memory_space<vmem>>, %arg2: memref<288x64xf32, #tpu.memory_space<vmem>>, %arg3: memref<1x64xf32, #tpu.memory_space<vmem>>, %arg4: memref<1x64xf32, #tpu.memory_space<vmem>>, %arg5: memref<64x64xf32, #tpu.memory_space<vmem>>) attributes {dimension_semantics = [#tpu.dimension_semantics<parallel>], iteration_bounds = array<i64: 2>, scalar_prefetch = 0 : i64, scratch_operands = 0 : i64, tpu.core_type = #tpu.core_type<tc>, window_params = [{transform_indices = @transform_0, window_bounds = array<i64: 256, 288>}, {pipeline_mode = #tpu.pipeline_mode<synchronous>, transform_indices = @transform_1, window_bounds = array<i64: 288, 64>}, {pipeline_mode = #tpu.pipeline_mode<synchronous>, transform_indices = @transform_2, window_bounds = array<i64: 1, 64>}, {pipeline_mode = #tpu.pipeline_mode<synchronous>, transform_indices = @transform_3, window_bounds = array<i64: 1, 64>}, {transform_indices = @transform_4, window_bounds = array<i64: 64, 64>}]} {
    %c0 = arith.constant 0 : index
    %c0_0 = arith.constant 0 : index
    %0 = vector.load %arg1[%c0, %c0_0] : memref<256x288xf32, #tpu.memory_space<vmem>>, vector<256x288xf32>
    %c0_1 = arith.constant 0 : index
    %c0_2 = arith.constant 0 : index
    %1 = vector.load %arg2[%c0_1, %c0_2] : memref<288x64xf32, #tpu.memory_space<vmem>>, vector<288x64xf32>
    %cst = arith.constant dense<0.000000e+00> : vector<256x64xf32>
    %2 = tpu.matmul %0, %1, %cst {dimension_numbers = #tpu.dot_dimension_numbers<[1], [0], [0], [1], [0, 0, 1, 1], [], []>} : vector<256x288xf32>, vector<288x64xf32>, vector<256x64xf32> -> vector<256x64xf32>
    %c0_3 = arith.constant 0 : index
    %c0_4 = arith.constant 0 : index
    %3 = vector.load %arg3[%c0_3, %c0_4] : memref<1x64xf32, #tpu.memory_space<vmem>>, vector<1x64xf32>
    %4 = vector.broadcast %3 : vector<1x64xf32> to vector<256x64xf32>
    %5 = arith.mulf %2, %4 : vector<256x64xf32>
    %c0_5 = arith.constant 0 : index
    %c0_6 = arith.constant 0 : index
    %6 = vector.load %arg4[%c0_5, %c0_6] : memref<1x64xf32, #tpu.memory_space<vmem>>, vector<1x64xf32>
    %7 = vector.broadcast %6 : vector<1x64xf32> to vector<256x64xf32>
    %8 = arith.addf %5, %7 : vector<256x64xf32>
    %cst_7 = arith.constant 0.000000e+00 : f32
    %9 = vector.broadcast %cst_7 : f32 to vector<256x64xf32>
    %10 = arith.maximumf %8, %9 : vector<256x64xf32>
    %11 = vector.extract_strided_slice %10 {offsets = [0, 0], sizes = [64, 64], strides = [1, 1]} : vector<256x64xf32> to vector<64x64xf32>
    %12 = vector.extract_strided_slice %10 {offsets = [64, 0], sizes = [64, 64], strides = [1, 1]} : vector<256x64xf32> to vector<64x64xf32>
    %13 = arith.maximumf %11, %12 : vector<64x64xf32>
    %14 = vector.extract_strided_slice %10 {offsets = [128, 0], sizes = [64, 64], strides = [1, 1]} : vector<256x64xf32> to vector<64x64xf32>
    %15 = vector.extract_strided_slice %10 {offsets = [192, 0], sizes = [64, 64], strides = [1, 1]} : vector<256x64xf32> to vector<64x64xf32>
    %16 = arith.maximumf %14, %15 : vector<64x64xf32>
    %17 = arith.maximumf %13, %16 : vector<64x64xf32>
    %c0_8 = arith.constant 0 : index
    %c0_9 = arith.constant 0 : index
    %18 = vector.load %arg5[%c0_8, %c0_9] : memref<64x64xf32, #tpu.memory_space<vmem>>, vector<64x64xf32>
    tpu.vector_store %arg5[%c0_8, %c0_9], %17 {strides = array<i32>} : memref<64x64xf32, #tpu.memory_space<vmem>>, vector<64x64xf32>,
    return
  }
  func.func @transform_0(%arg0: i32) -> (i32, i32) {
    %c0_i32 = arith.constant 0 : i32
    %c0_i32_0 = arith.constant 0 : i32
    return %arg0, %c0_i32 : i32, i32
  }
  func.func @transform_1(%arg0: i32) -> (i32, i32) {
    %c0_i32 = arith.constant 0 : i32
    %c0_i32_0 = arith.constant 0 : i32
    %c0_i32_1 = arith.constant 0 : i32
    return %c0_i32, %c0_i32_0 : i32, i32
  }
  func.func @transform_2(%arg0: i32) -> (i32, i32) {
    %c0_i32 = arith.constant 0 : i32
    %c0_i32_0 = arith.constant 0 : i32
    %c0_i32_1 = arith.constant 0 : i32
    return %c0_i32, %c0_i32_0 : i32, i32
  }
  func.func @transform_3(%arg0: i32) -> (i32, i32) {
    %c0_i32 = arith.constant 0 : i32
    %c0_i32_0 = arith.constant 0 : i32
    %c0_i32_1 = arith.constant 0 : i32
    return %c0_i32, %c0_i32_0 : i32, i32
  }
  func.func @transform_4(%arg0: i32) -> (i32, i32) {
    %c0_i32 = arith.constant 0 : i32
    %c0_i32_0 = arith.constant 0 : i32
    return %arg0, %c0_i32 : i32, i32
  }
}

module attributes {stable_mosaic.version = 11 : i64} {
  func.func @mlp_kernel(%arg0: memref<2x4096xf32, #tpu.memory_space<vmem>>, %arg1: memref<4096x512xbf16, #tpu.memory_space<vmem>>, %arg2: memref<1x512xf32, #tpu.memory_space<vmem>>, %arg3: memref<1x512xf32, #tpu.memory_space<vmem>>, %arg4: memref<512x128xbf16, #tpu.memory_space<vmem>>, %arg5: memref<1x128xf32, #tpu.memory_space<vmem>>, %arg6: memref<1x128xf32, #tpu.memory_space<vmem>>, %arg7: memref<128x10xbf16, #tpu.memory_space<vmem>>, %arg8: memref<1x10xf32, #tpu.memory_space<vmem>>, %arg9: memref<2x10xf32, #tpu.memory_space<vmem>>) attributes {dimension_semantics = [], scalar_prefetch = 0 : i64, scratch_operands = 0 : i64, tpu.core_type = #tpu.core_type<tc>} {
    %c0 = arith.constant 0 : index
    %c0_0 = arith.constant 0 : index
    %0 = vector.load %arg0[%c0, %c0_0] : memref<2x4096xf32, #tpu.memory_space<vmem>>, vector<2x4096xf32>
    %1 = arith.truncf %0 : vector<2x4096xf32> to vector<2x4096xbf16>
    %c0_1 = arith.constant 0 : index
    %c0_2 = arith.constant 0 : index
    %2 = vector.load %arg1[%c0_1, %c0_2] : memref<4096x512xbf16, #tpu.memory_space<vmem>>, vector<4096x512xbf16>
    %cst = arith.constant dense<0.000000e+00> : vector<2x512xf32>
    %3 = tpu.matmul %1, %2, %cst {dimension_numbers = #tpu.dot_dimension_numbers<[1], [0], [0], [1], [0, 0, 1, 1], [], []>} : vector<2x4096xbf16>, vector<4096x512xbf16>, vector<2x512xf32> -> vector<2x512xf32>
    %c0_3 = arith.constant 0 : index
    %c0_4 = arith.constant 0 : index
    %4 = vector.load %arg2[%c0_3, %c0_4] : memref<1x512xf32, #tpu.memory_space<vmem>>, vector<1x512xf32>
    %5 = vector.broadcast %4 : vector<1x512xf32> to vector<2x512xf32>
    %6 = arith.mulf %3, %5 : vector<2x512xf32>
    %c0_5 = arith.constant 0 : index
    %c0_6 = arith.constant 0 : index
    %7 = vector.load %arg3[%c0_5, %c0_6] : memref<1x512xf32, #tpu.memory_space<vmem>>, vector<1x512xf32>
    %8 = vector.broadcast %7 : vector<1x512xf32> to vector<2x512xf32>
    %9 = arith.addf %6, %8 : vector<2x512xf32>
    %cst_7 = arith.constant 0.000000e+00 : f32
    %10 = vector.broadcast %cst_7 : f32 to vector<2x512xf32>
    %11 = arith.maximumf %9, %10 : vector<2x512xf32>
    %12 = arith.truncf %11 : vector<2x512xf32> to vector<2x512xbf16>
    %c0_8 = arith.constant 0 : index
    %c0_9 = arith.constant 0 : index
    %13 = vector.load %arg4[%c0_8, %c0_9] : memref<512x128xbf16, #tpu.memory_space<vmem>>, vector<512x128xbf16>
    %cst_10 = arith.constant dense<0.000000e+00> : vector<2x128xf32>
    %14 = tpu.matmul %12, %13, %cst_10 {dimension_numbers = #tpu.dot_dimension_numbers<[1], [0], [0], [1], [0, 0, 1, 1], [], []>} : vector<2x512xbf16>, vector<512x128xbf16>, vector<2x128xf32> -> vector<2x128xf32>
    %c0_11 = arith.constant 0 : index
    %c0_12 = arith.constant 0 : index
    %15 = vector.load %arg5[%c0_11, %c0_12] : memref<1x128xf32, #tpu.memory_space<vmem>>, vector<1x128xf32>
    %16 = vector.broadcast %15 : vector<1x128xf32> to vector<2x128xf32>
    %17 = arith.mulf %14, %16 : vector<2x128xf32>
    %c0_13 = arith.constant 0 : index
    %c0_14 = arith.constant 0 : index
    %18 = vector.load %arg6[%c0_13, %c0_14] : memref<1x128xf32, #tpu.memory_space<vmem>>, vector<1x128xf32>
    %19 = vector.broadcast %18 : vector<1x128xf32> to vector<2x128xf32>
    %20 = arith.addf %17, %19 : vector<2x128xf32>
    %cst_15 = arith.constant 0.000000e+00 : f32
    %21 = vector.broadcast %cst_15 : f32 to vector<2x128xf32>
    %22 = arith.maximumf %20, %21 : vector<2x128xf32>
    %23 = arith.truncf %22 : vector<2x128xf32> to vector<2x128xbf16>
    %c0_16 = arith.constant 0 : index
    %c0_17 = arith.constant 0 : index
    %24 = vector.load %arg7[%c0_16, %c0_17] : memref<128x10xbf16, #tpu.memory_space<vmem>>, vector<128x10xbf16>
    %cst_18 = arith.constant dense<0.000000e+00> : vector<2x10xf32>
    %25 = tpu.matmul %23, %24, %cst_18 {dimension_numbers = #tpu.dot_dimension_numbers<[1], [0], [0], [1], [0, 0, 1, 1], [], []>} : vector<2x128xbf16>, vector<128x10xbf16>, vector<2x10xf32> -> vector<2x10xf32>
    %c0_19 = arith.constant 0 : index
    %c0_20 = arith.constant 0 : index
    %26 = vector.load %arg8[%c0_19, %c0_20] : memref<1x10xf32, #tpu.memory_space<vmem>>, vector<1x10xf32>
    %27 = vector.broadcast %26 : vector<1x10xf32> to vector<2x10xf32>
    %28 = arith.addf %25, %27 : vector<2x10xf32>
    %c0_21 = arith.constant 0 : index
    %c0_22 = arith.constant 0 : index
    %29 = vector.load %arg9[%c0_21, %c0_22] : memref<2x10xf32, #tpu.memory_space<vmem>>, vector<2x10xf32>
    tpu.vector_store %arg9[%c0_21, %c0_22], %28 {strides = array<i32>} : memref<2x10xf32, #tpu.memory_space<vmem>>, vector<2x10xf32>,
    return
  }
}

</mosaic_0001>

<bundles_post_ra>
// kernel: forward.3
= control target key start
LH: loop header
LB: loop body
LE: loop exit
PB: predicated region body
PF: predicated region fallthrough
CT: control target
= control target key end

     0   :  { %s1891_s15 = smov 0   ;;  %s2524_s0 = inlined_call_operand.vmem [shape: f32[2048,32], index: 0, kind: input, shape index: {}]   ;;  %s2525_s1 = inlined_call_operand.vmem [shape: f32[32,32], index: 1, kind: input, shape index: {}]   ;;  %s2526_s2 = inlined_call_operand.vmem [shape: f32[1,32], index: 2, kind: input, shape index: {}]   ;;  %s2527_s3 = inlined_call_operand.vmem [shape: f32[1,32], index: 3, kind: input, shape index: {}]   ;;  %s2528_s4 = inlined_call_operand.vmem [shape: f32[512,32], index: 4, kind: output, shape index: {}]  }
   0x1 LB: > { %s1695_s16 = sadd.s32 4294967295, %s1864_s15   ;;  %p1699_p0 = scmp.ge.s32.totalorder %s1864_s15, 1  ;;  %s1864_s15 = sphi %s1891_s15, %s14_s15  }
   0x2   : > { %p163_p1 = scmp.lt.s32.totalorder %s1864_s15, 3 }
   0x4   : > { %p164_p2 = pnand %p1699_p0, %p163_p1 }
   0x5   : > { %s1700_s21 = sshll.u32 (!%p164_p2), %s1695_s16, 7  ;;  %s1702_s6 = sshll.u32 (!%p164_p2), %s1695_s16, 5 }
   0x6   : > { %167 = sbr.rel (%p164_p2) target bundleno = 411 (0x19b), region = 36  ;;  %p190_p3 = scmp.lt.s32.totalorder (!%p164_p2), %s1700_s21, 255 }
   0x7   : > { %p196_p4 = scmp.lt.s32.totalorder (!%p164_p2), %s1702_s6, 63 }
   0xb   : > { %v332_v0 = vld [vmem:[%s2525_s1 + $0x18] sm:$0xff]  ;;  %v331_v1 = vld [vmem:[%s2525_s1 + $0x10] sm:$0xff]  ;;  %v330_v2 = vld [vmem:[%s2525_s1 + $0x8] sm:$0xff]  ;;  %s2530_s21 = smov (!%p190_p3, %s1700_s21), 255  ;;  %vm333_vm0 = vcmask 261120   ;;  %s2532_s6 = smov (!%p196_p4, %s1702_s6), 63 }
   0xc   : > { %1835 = vmatpush.msra.mxu2 %v332_v0  ;;  %1836 = vmatpush.msra.mxu3 %v332_v0  ;;  %v329_v3 = vld [vmem:[%s2525_s1] sm:$0xff]  ;;  %s1701_s26 = sshll.u32 %s2530_s21, 3  ;;  %s1703_s9 = sshll.u32 %s2532_s6, 3 }
   0xd   : > { %730 = vmatpush.msra.mxu0 %v332_v0  ;;  %1834 = vmatpush.msra.mxu1 %v332_v0  ;;  %s1916_s29 = scalar_lea.vmem %s2524_s0, %s1701_s26  ;;  %s2089_s12 = scalar_lea.vmem %s2528_s4, %s1703_s9 }
   0xe   : > { %1838 = vmatpush.msra.mxu2 %v331_v1  ;;  %1839 = vmatpush.msra.mxu3 %v331_v1  ;;  %v265_v4 = vld [vmem:[%s1916_s29 + $0x200] sm:$0xff]  ;;  %v266_v8 = vld [vmem:[%s1916_s29 + $0x208] sm:$0xff]  ;;  %v267_v12 = vld [vmem:[%s1916_s29 + $0x210] sm:$0xff] }
   0xf   : > { %731 = vmatpush.msra.mxu0 %v331_v1  ;;  %1837 = vmatpush.msra.mxu1 %v331_v1  ;;  %v297_v5 = vld [vmem:[%s1916_s29 + $0x300] sm:$0xff]  ;;  %v298_v9 = vld [vmem:[%s1916_s29 + $0x308] sm:$0xff]  ;;  %v299_v13 = vld [vmem:[%s1916_s29 + $0x310] sm:$0xff] }
  0x10   : > { %1841 = vmatpush.msra.mxu2 %v330_v2  ;;  %1842 = vmatpush.msra.mxu3 %v330_v2  ;;  %v201_v6 = vld [vmem:[%s1916_s29] sm:$0xff]  ;;  %v202_v10 = vld [vmem:[%s1916_s29 + $0x8] sm:$0xff]  ;;  %v203_v14 = vld [vmem:[%s1916_s29 + $0x10] sm:$0xff] }
  0x11   : > { %732 = vmatpush.msra.mxu0 %v330_v2  ;;  %1840 = vmatpush.msra.mxu1 %v330_v2  ;;  %v233_v7 = vld [vmem:[%s1916_s29 + $0x100] sm:$0xff]  ;;  %v234_v11 = vld [vmem:[%s1916_s29 + $0x108] sm:$0xff]  ;;  %v235_v15 = vld [vmem:[%s1916_s29 + $0x110] sm:$0xff] }
  0x12   : > { %1844 = vmatpush.msra.mxu2 %v329_v3  ;;  %1845 = vmatpush.msra.mxu3 %v329_v3  ;;  %v268_v16 = vld [vmem:[%s1916_s29 + $0x218] sm:$0xff]  ;;  %v269_v20 = vld [vmem:[%s1916_s29 + $0x220] sm:$0xff]  ;;  %v270_v24 = vld [vmem:[%s1916_s29 + $0x228] sm:$0xff] }
  0x13   : > { %1768 = vmatmul.msk.f32.vlgmr.msra.gmra.mxu2 %vm333_vm0, %v265_v4  ;;  %1800 = vmatmul.msk.f32.vlgmr.msra.gmra.mxu3 %vm333_vm0, %v297_v5  ;;  %v300_v17 = vld [vmem:[%s1916_s29 + $0x318] sm:$0xff]  ;;  %v301_v21 = vld [vmem:[%s1916_s29 + $0x320] sm:$0xff]  ;;  %v302_v25 = vld [vmem:[%s1916_s29 + $0x328] sm:$0xff] }
  0x14   : > { %733 = vmatpush.msra.mxu0 %v329_v3  ;;  %1843 = vmatpush.msra.mxu1 %v329_v3  ;;  %v204_v18 = vld [vmem:[%s1916_s29 + $0x18] sm:$0xff]  ;;  %v205_v22 = vld [vmem:[%s1916_s29 + $0x20] sm:$0xff]  ;;  %v206_v26 = vld [vmem:[%s1916_s29 + $0x28] sm:$0xff] }
  0x15   : > { %1704 = vmatmul.msk.f32.vlgmr.msra.gmra.mxu0 %vm333_vm0, %v201_v6  ;;  %1736 = vmatmul.msk.f32.vlgmr.msra.gmra.mxu1 %vm333_vm0, %v233_v7  ;;  %v236_v19 = vld [vmem:[%s1916_s29 + $0x118] sm:$0xff]  ;;  %v237_v23 = vld [vmem:[%s1916_s29 + $0x120] sm:$0xff]  ;;  %v238_v27 = vld [vmem:[%s1916_s29 + $0x128] sm:$0xff] }
  0x16   : > { %v271_v28 = vld [vmem:[%s1916_s29 + $0x230] sm:$0xff]  ;;  %v272_v32 = vld [vmem:[%s1916_s29 + $0x238] sm:$0xff]  ;;  %v273_v36 = vld [vmem:[%s1916_s29 + $0x240] sm:$0xff] }
  0x17   : > { %v303_v29 = vld [vmem:[%s1916_s29 + $0x330] sm:$0xff]  ;;  %v304_v33 = vld [vmem:[%s1916_s29 + $0x338] sm:$0xff]  ;;  %v305_v37 = vld [vmem:[%s1916_s29 + $0x340] sm:$0xff] }
  0x18   : > { %v207_v30 = vld [vmem:[%s1916_s29 + $0x30] sm:$0xff]  ;;  %v208_v34 = vld [vmem:[%s1916_s29 + $0x38] sm:$0xff]  ;;  %v209_v38 = vld [vmem:[%s1916_s29 + $0x40] sm:$0xff] }
  0x19   : > { %v239_v31 = vld [vmem:[%s1916_s29 + $0x130] sm:$0xff]  ;;  %v240_v35 = vld [vmem:[%s1916_s29 + $0x138] sm:$0xff]  ;;  %v241_v39 = vld [vmem:[%s1916_s29 + $0x140] sm:$0xff] }
  0x1a   : > { %v274_v40 = vld [vmem:[%s1916_s29 + $0x248] sm:$0xff]  ;;  %v275_v44 = vld [vmem:[%s1916_s29 + $0x250] sm:$0xff]  ;;  %v276_v48 = vld [vmem:[%s1916_s29 + $0x258] sm:$0xff] }
  0x1b   : > { %1769 = vmatmul.msk.f32.gmra.mxu2 %vm333_vm0, %v266_v8  ;;  %1801 = vmatmul.msk.f32.gmra.mxu3 %vm333_vm0, %v298_v9  ;;  %v306_v41 = vld [vmem:[%s1916_s29 + $0x348] sm:$0xff]  ;;  %v307_v45 = vld [vmem:[%s1916_s29 + $0x350] sm:$0xff]  ;;  %v308_v49 = vld [vmem:[%s1916_s29 + $0x358] sm:$0xff] }
  0x1c   : > { %v210_v42 = vld [vmem:[%s1916_s29 + $0x48] sm:$0xff]  ;;  %v211_v46 = vld [vmem:[%s1916_s29 + $0x50] sm:$0xff]  ;;  %v212_v50 = vld [vmem:[%s1916_s29 + $0x58] sm:$0xff] }
  0x1d   : > { %1705 = vmatmul.msk.f32.gmra.mxu0 %vm333_vm0, %v202_v10  ;;  %1737 = vmatmul.msk.f32.gmra.mxu1 %vm333_vm0, %v234_v11  ;;  %v242_v43 = vld [vmem:[%s1916_s29 + $0x148] sm:$0xff]  ;;  %v243_v47 = vld [vmem:[%s1916_s29 + $0x150] sm:$0xff]  ;;  %v244_v51 = vld [vmem:[%s1916_s29 + $0x158] sm:$0xff] }
  0x1e   : > { %v277_v52 = vld [vmem:[%s1916_s29 + $0x260] sm:$0xff]  ;;  %v278_v56 = vld [vmem:[%s1916_s29 + $0x268] sm:$0xff]  ;;  %v279_v60 = vld [vmem:[%s1916_s29 + $0x270] sm:$0xff] }
  0x1f   : > { %v309_v53 = vld [vmem:[%s1916_s29 + $0x360] sm:$0xff]  ;;  %v310_v57 = vld [vmem:[%s1916_s29 + $0x368] sm:$0xff]  ;;  %v311_v61 = vld [vmem:[%s1916_s29 + $0x370] sm:$0xff] }
  0x20   : > { %v213_v54 = vld [vmem:[%s1916_s29 + $0x60] sm:$0xff]  ;;  %v214_v58 = vld [vmem:[%s1916_s29 + $0x68] sm:$0xff]  ;;  %v215_v62 = vld [vmem:[%s1916_s29 + $0x70] sm:$0xff] }
  0x21   : > { %v245_v55 = vld [vmem:[%s1916_s29 + $0x160] sm:$0xff]  ;;  %v246_v59 = vld [vmem:[%s1916_s29 + $0x168] sm:$0xff]  ;;  %v247_v63 = vld [vmem:[%s1916_s29 + $0x170] sm:$0xff] }
  0x22   : > { %v280_v0 = vld [vmem:[%s1916_s29 + $0x278] sm:$0xff]  ;;  %v2049_v4 = vld [vmem:[%s2526_s2] ss:$0 sm:$0xff] }
  0x23   : > { %1770 = vmatmul.msk.f32.gmra.mxu2 %vm333_vm0, %v267_v12  ;;  %1802 = vmatmul.msk.f32.gmra.mxu3 %vm333_vm0, %v299_v13  ;;  %v312_v1 = vld [vmem:[%s1916_s29 + $0x378] sm:$0xff]  ;;  %v281_v5 = vld [vmem:[%s1916_s29 + $0x280] sm:$0xff] }
  0x24   : > { %v216_v2 = vld [vmem:[%s1916_s29 + $0x78] sm:$0xff]  ;;  %v313_v6 = vld [vmem:[%s1916_s29 + $0x380] sm:$0xff] }
  0x25   : > { %1706 = vmatmul.msk.f32.gmra.mxu0 %vm333_vm0, %v203_v14  ;;  %1738 = vmatmul.msk.f32.gmra.mxu1 %vm333_vm0, %v235_v15  ;;  %v248_v3 = vld [vmem:[%s1916_s29 + $0x178] sm:$0xff]  ;;  %v2058_v7 = vld [vmem:[%s2527_s3] ss:$0 sm:$0xff] }
  0x26   : > { %v217_v10 = vld [vmem:[%s1916_s29 + $0x80] sm:$0xff] }
  0x27   : > { %v249_v11 = vld [vmem:[%s1916_s29 + $0x180] sm:$0xff] }
  0x2b   : > { %1771 = vmatmul.msk.f32.gmra.mxu2 %vm333_vm0, %v268_v16  ;;  %1803 = vmatmul.msk.f32.gmra.mxu3 %vm333_vm0, %v300_v17 }
  0x2d   : > { %1707 = vmatmul.msk.f32.gmra.mxu0 %vm333_vm0, %v204_v18  ;;  %1739 = vmatmul.msk.f32.gmra.mxu1 %vm333_vm0, %v236_v19 }
  0x33   : > { %1772 = vmatmul.msk.f32.gmra.mxu2 %vm333_vm0, %v269_v20  ;;  %1804 = vmatmul.msk.f32.gmra.mxu3 %vm333_vm0, %v301_v21 }
  0x35   : > { %1708 = vmatmul.msk.f32.gmra.mxu0 %vm333_vm0, %v205_v22  ;;  %1740 = vmatmul.msk.f32.gmra.mxu1 %vm333_vm0, %v237_v23  ;;  %v282_v22 = vld [vmem:[%s1916_s29 + $0x288] sm:$0xff] }
  0x36   : > { %v314_v23 = vld [vmem:[%s1916_s29 + $0x388] sm:$0xff] }
  0x3b   : > { %1773 = vmatmul.msk.f32.gmra.mxu2 %vm333_vm0, %v270_v24  ;;  %1805 = vmatmul.msk.f32.gmra.mxu3 %vm333_vm0, %v302_v25 }
  0x3d   : > { %1709 = vmatmul.msk.f32.gmra.mxu0 %vm333_vm0, %v206_v26  ;;  %1741 = vmatmul.msk.f32.gmra.mxu1 %vm333_vm0, %v238_v27 }
  0x43   : > { %1774 = vmatmul.msk.f32.gmra.mxu2 %vm333_vm0, %v271_v28  ;;  %1806 = vmatmul.msk.f32.gmra.mxu3 %vm333_vm0, %v303_v29  ;;  %v218_v29 = vld [vmem:[%s1916_s29 + $0x88] sm:$0xff] }
  0x45   : > { %1710 = vmatmul.msk.f32.gmra.mxu0 %vm333_vm0, %v207_v30  ;;  %1742 = vmatmul.msk.f32.gmra.mxu1 %vm333_vm0, %v239_v31  ;;  %v250_v30 = vld [vmem:[%s1916_s29 + $0x188] sm:$0xff] }
  0x4b   : > { %1775 = vmatmul.msk.f32.gmra.mxu2 %vm333_vm0, %v272_v32  ;;  %1807 = vmatmul.msk.f32.gmra.mxu3 %vm333_vm0, %v304_v33 }
  0x4d   : > { %1711 = vmatmul.msk.f32.gmra.mxu0 %vm333_vm0, %v208_v34  ;;  %1743 = vmatmul.msk.f32.gmra.mxu1 %vm333_vm0, %v240_v35 }
  0x53   : > { %1776 = vmatmul.msk.f32.gmra.mxu2 %vm333_vm0, %v273_v36  ;;  %1808 = vmatmul.msk.f32.gmra.mxu3 %vm333_vm0, %v305_v37 }
  0x55   : > { %1712 = vmatmul.msk.f32.gmra.mxu0 %vm333_vm0, %v209_v38  ;;  %1744 = vmatmul.msk.f32.gmra.mxu1 %vm333_vm0, %v241_v39 }
  0x5b   : > { %1777 = vmatmul.msk.f32.gmra.mxu2 %vm333_vm0, %v274_v40  ;;  %1809 = vmatmul.msk.f32.gmra.mxu3 %vm333_vm0, %v306_v41 }
  0x5d   : > { %1713 = vmatmul.msk.f32.gmra.mxu0 %vm333_vm0, %v210_v42  ;;  %1745 = vmatmul.msk.f32.gmra.mxu1 %vm333_vm0, %v242_v43 }
  0x63   : > { %1778 = vmatmul.msk.f32.gmra.mxu2 %vm333_vm0, %v275_v44  ;;  %1810 = vmatmul.msk.f32.gmra.mxu3 %vm333_vm0, %v307_v45  ;;  %v283_v45 = vld [vmem:[%s1916_s29 + $0x290] sm:$0xff] }
  0x65   : > { %1714 = vmatmul.msk.f32.gmra.mxu0 %vm333_vm0, %v211_v46  ;;  %1746 = vmatmul.msk.f32.gmra.mxu1 %vm333_vm0, %v243_v47  ;;  %v315_v46 = vld [vmem:[%s1916_s29 + $0x390] sm:$0xff] }
  0x6b   : > { %1779 = vmatmul.msk.f32.gmra.mxu2 %vm333_vm0, %v276_v48  ;;  %1811 = vmatmul.msk.f32.gmra.mxu3 %vm333_vm0, %v308_v49 }
  0x6d   : > { %1715 = vmatmul.msk.f32.gmra.mxu0 %vm333_vm0, %v212_v50  ;;  %1747 = vmatmul.msk.f32.gmra.mxu1 %vm333_vm0, %v244_v51  ;;  %v219_v51 = vld [vmem:[%s1916_s29 + $0x90] sm:$0xff] }
  0x73   : > { %1780 = vmatmul.msk.f32.gmra.mxu2 %vm333_vm0, %v277_v52  ;;  %1812 = vmatmul.msk.f32.gmra.mxu3 %vm333_vm0, %v309_v53  ;;  %v251_v52 = vld [vmem:[%s1916_s29 + $0x190] sm:$0xff] }
  0x75   : > { %1716 = vmatmul.msk.f32.gmra.mxu0 %vm333_vm0, %v213_v54  ;;  %1748 = vmatmul.msk.f32.gmra.mxu1 %vm333_vm0, %v245_v55 }
  0x7b   : > { %1781 = vmatmul.msk.f32.gmra.mxu2 %vm333_vm0, %v278_v56  ;;  %1813 = vmatmul.msk.f32.gmra.mxu3 %vm333_vm0, %v310_v57 }
  0x7d   : > { %1717 = vmatmul.msk.f32.gmra.mxu0 %vm333_vm0, %v214_v58  ;;  %1749 = vmatmul.msk.f32.gmra.mxu1 %vm333_vm0, %v246_v59 }
  0x83   : > { %1782 = vmatmul.msk.f32.gmra.mxu2 %vm333_vm0, %v279_v60  ;;  %1814 = vmatmul.msk.f32.gmra.mxu3 %vm333_vm0, %v311_v61 }
  0x85   : > { %1718 = vmatmul.msk.f32.gmra.mxu0 %vm333_vm0, %v215_v62  ;;  %1750 = vmatmul.msk.f32.gmra.mxu1 %vm333_vm0, %v247_v63 }
  0x8b   : > { %1783 = vmatmul.msk.f32.gmra.mxu2 %vm333_vm0, %v280_v0  ;;  %1815 = vmatmul.msk.f32.gmra.mxu3 %vm333_vm0, %v312_v1 }
  0x8d   : > { %1719 = vmatmul.msk.f32.gmra.mxu0 %vm333_vm0, %v216_v2  ;;  %1751 = vmatmul.msk.f32.gmra.mxu1 %vm333_vm0, %v248_v3 }
  0x92   : > { %v735_v8 = vpop.f32.mrf.mxu0  ;;  %v831_v9 = vpop.f32.mrf.mxu1 }
  0x93   : > { %1784 = vmatmul.msk.f32.gmra.mxu2 %vm333_vm0, %v281_v5  ;;  %1816 = vmatmul.msk.f32.gmra.mxu3 %vm333_vm0, %v313_v6  ;;  %v1123_v12 = vmul.f32 %v2049_v4, %v735_v8  ;;  %v1155_v13 = vmul.f32 %v2049_v4, %v831_v9  ;;  %v284_v5 = vld [vmem:[%s1916_s29 + $0x298] sm:$0xff] }
  0x94   : > { %v316_v6 = vld [vmem:[%s1916_s29 + $0x398] sm:$0xff] }
  0x95   : > { %v1255_v14 = vadd.f32 %v2058_v7, %v1123_v12  ;;  %v1287_v15 = vadd.f32 %v2058_v7, %v1155_v13  ;;  %1720 = vmatmul.msk.f32.gmra.mxu0 %vm333_vm0, %v217_v10  ;;  %1752 = vmatmul.msk.f32.gmra.mxu1 %vm333_vm0, %v249_v11  ;;  %v220_v13 = vld [vmem:[%s1916_s29 + $0x98] sm:$0xff] }
  0x96   : > { %v927_v16 = vpop.f32.mrf.mxu2  ;;  %v1023_v17 = vpop.f32.mrf.mxu3 }
  0x97   : > { %v1383_v18 = vmax.f32 %v1255_v14, 0.0  ;;  %v1415_v19 = vmax.f32 %v1287_v15, 0.0  ;;  %v1187_v20 = vmul.f32 %v2049_v4, %v927_v16  ;;  %v1219_v21 = vmul.f32 %v2049_v4, %v1023_v17  ;;  %v252_v14 = vld [vmem:[%s1916_s29 + $0x198] sm:$0xff] }
  0x99   : > { %v1319_v24 = vadd.f32 %v2058_v7, %v1187_v20  ;;  %v1351_v25 = vadd.f32 %v2058_v7, %v1219_v21  ;;  %v1511_v26 = vmax.f32 %v1383_v18, %v1415_v19 }
  0x9a   : > { %v738_v27 = vpop.f32.mrf.mxu0  ;;  %v834_v28 = vpop.f32.mrf.mxu1 }
  0x9b   : > { %v1447_v31 = vmax.f32 %v1319_v24, 0.0  ;;  %v1479_v32 = vmax.f32 %v1351_v25, 0.0  ;;  %1785 = vmatmul.msk.f32.gmra.mxu2 %vm333_vm0, %v282_v22  ;;  %1817 = vmatmul.msk.f32.gmra.mxu3 %vm333_vm0, %v314_v23  ;;  %v1124_v33 = vmul.f32 %v2049_v4, %v738_v27  ;;  %v1156_v34 = vmul.f32 %v2049_v4, %v834_v28 }
  0x9d   : > { %v1543_v35 = vmax.f32 %v1447_v31, %v1479_v32  ;;  %v1256_v36 = vadd.f32 %v2058_v7, %v1124_v33  ;;  %v1288_v37 = vadd.f32 %v2058_v7, %v1156_v34  ;;  %1721 = vmatmul.msk.f32.gmra.mxu0 %vm333_vm0, %v218_v29  ;;  %1753 = vmatmul.msk.f32.gmra.mxu1 %vm333_vm0, %v250_v30  ;;  %v285_v29 = vld [vmem:[%s1916_s29 + $0x2a0] sm:$0xff] }
  0x9e   : > { %v930_v38 = vpop.f32.mrf.mxu2  ;;  %v1026_v39 = vpop.f32.mrf.mxu3  ;;  %v317_v30 = vld [vmem:[%s1916_s29 + $0x3a0] sm:$0xff] }
  0x9f   : > { %v1575_v40 = vmax.f32 %v1511_v26, %v1543_v35  ;;  %v1188_v41 = vmul.f32 %v2049_v4, %v930_v38  ;;  %v1384_v42 = vmax.f32 %v1256_v36, 0.0  ;;  %v1416_v43 = vmax.f32 %v1288_v37, 0.0  ;;  %v221_v35 = vld [vmem:[%s1916_s29 + $0xa0] sm:$0xff] }
  0xa0   : > { %v1220_v44 = vmul.f32 %v2049_v4, %v1026_v39  ;;  %v253_v36 = vld [vmem:[%s1916_s29 + $0x1a0] sm:$0xff] }
  0xa1   : > { %1607 = vst.msk [vmem:[%s2089_s12] sm:$0xff] %vm333_vm0, %v1575_v40  ;;  %v1320_v47 = vadd.f32 %v2058_v7, %v1188_v41  ;;  %v1512_v56 = vmax.f32 %v1384_v42, %v1416_v43 }
  0xa2   : > { %v1352_v48 = vadd.f32 %v2058_v7, %v1220_v44  ;;  %v741_v49 = vpop.f32.mrf.mxu0  ;;  %v837_v50 = vpop.f32.mrf.mxu1 }
  0xa3   : > { %v1448_v53 = vmax.f32 %v1320_v47, 0.0  ;;  %1786 = vmatmul.msk.f32.gmra.mxu2 %vm333_vm0, %v283_v45  ;;  %1818 = vmatmul.msk.f32.gmra.mxu3 %vm333_vm0, %v315_v46  ;;  %v1125_v54 = vmul.f32 %v2049_v4, %v741_v49  ;;  %v1157_v55 = vmul.f32 %v2049_v4, %v837_v50 }
  0xa4   : > { %v1480_v57 = vmax.f32 %v1352_v48, 0.0 }
  0xa5   : > { %v1257_v58 = vadd.f32 %v2058_v7, %v1125_v54  ;;  %v1289_v59 = vadd.f32 %v2058_v7, %v1157_v55  ;;  %1722 = vmatmul.msk.f32.gmra.mxu0 %vm333_vm0, %v219_v51  ;;  %1754 = vmatmul.msk.f32.gmra.mxu1 %vm333_vm0, %v251_v52  ;;  %v286_v52 = vld [vmem:[%s1916_s29 + $0x2a8] sm:$0xff] }
  0xa6   : > { %v1544_v60 = vmax.f32 %v1448_v53, %v1480_v57  ;;  %v933_v61 = vpop.f32.mrf.mxu2  ;;  %v1029_v62 = vpop.f32.mrf.mxu3  ;;  %v318_v53 = vld [vmem:[%s1916_s29 + $0x3a8] sm:$0xff] }
  0xa7   : > { %v1385_v63 = vmax.f32 %v1257_v58, 0.0  ;;  %v1417_v0 = vmax.f32 %v1289_v59, 0.0  ;;  %v1189_v1 = vmul.f32 %v2049_v4, %v933_v61  ;;  %v1221_v2 = vmul.f32 %v2049_v4, %v1029_v62  ;;  %v222_v59 = vld [vmem:[%s1916_s29 + $0xa8] sm:$0xff] }
  0xa8   : > { %v1576_v3 = vmax.f32 %v1512_v56, %v1544_v60  ;;  %v254_v60 = vld [vmem:[%s1916_s29 + $0x1a8] sm:$0xff] }
  0xa9   : > { %v1321_v8 = vadd.f32 %v2058_v7, %v1189_v1  ;;  %v1353_v9 = vadd.f32 %v2058_v7, %v1221_v2  ;;  %v1513_v10 = vmax.f32 %v1385_v63, %v1417_v0 }
  0xaa   : > { %1608 = vst.msk [vmem:[%s2089_s12 + $0x8] sm:$0xff] %vm333_vm0, %v1576_v3  ;;  %v744_v11 = vpop.f32.mrf.mxu0  ;;  %v840_v12 = vpop.f32.mrf.mxu1 }
  0xab   : > { %v1449_v15 = vmax.f32 %v1321_v8, 0.0  ;;  %v1481_v16 = vmax.f32 %v1353_v9, 0.0  ;;  %1787 = vmatmul.msk.f32.gmra.mxu2 %vm333_vm0, %v284_v5  ;;  %1819 = vmatmul.msk.f32.gmra.mxu3 %vm333_vm0, %v316_v6  ;;  %v1126_v17 = vmul.f32 %v2049_v4, %v744_v11  ;;  %v1158_v18 = vmul.f32 %v2049_v4, %v840_v12 }
  0xad   : > { %v1545_v19 = vmax.f32 %v1449_v15, %v1481_v16  ;;  %v1258_v20 = vadd.f32 %v2058_v7, %v1126_v17  ;;  %v1290_v21 = vadd.f32 %v2058_v7, %v1158_v18  ;;  %1723 = vmatmul.msk.f32.gmra.mxu0 %vm333_vm0, %v220_v13  ;;  %1755 = vmatmul.msk.f32.gmra.mxu1 %vm333_vm0, %v252_v14  ;;  %v287_v13 = vld [vmem:[%s1916_s29 + $0x2b0] sm:$0xff] }
  0xae   : > { %v936_v22 = vpop.f32.mrf.mxu2  ;;  %v1032_v23 = vpop.f32.mrf.mxu3  ;;  %v319_v14 = vld [vmem:[%s1916_s29 + $0x3b0] sm:$0xff] }
  0xaf   : > { %v1577_v24 = vmax.f32 %v1513_v10, %v1545_v19  ;;  %v1190_v25 = vmul.f32 %v2049_v4, %v936_v22  ;;  %v1386_v26 = vmax.f32 %v1258_v20, 0.0  ;;  %v1418_v27 = vmax.f32 %v1290_v21, 0.0  ;;  %v223_v19 = vld [vmem:[%s1916_s29 + $0xb0] sm:$0xff] }
  0xb0   : > { %v1222_v28 = vmul.f32 %v2049_v4, %v1032_v23  ;;  %v255_v20 = vld [vmem:[%s1916_s29 + $0x1b0] sm:$0xff] }
  0xb1   : > { %1609 = vst.msk [vmem:[%s2089_s12 + $0x10] sm:$0xff] %vm333_vm0, %v1577_v24  ;;  %v1322_v31 = vadd.f32 %v2058_v7, %v1190_v25  ;;  %v1514_v40 = vmax.f32 %v1386_v26, %v1418_v27 }
  0xb2   : > { %v1354_v32 = vadd.f32 %v2058_v7, %v1222_v28  ;;  %v747_v33 = vpop.f32.mrf.mxu0  ;;  %v843_v34 = vpop.f32.mrf.mxu1 }
  0xb3   : > { %v1450_v37 = vmax.f32 %v1322_v31, 0.0  ;;  %1788 = vmatmul.msk.f32.gmra.mxu2 %vm333_vm0, %v285_v29  ;;  %1820 = vmatmul.msk.f32.gmra.mxu3 %vm333_vm0, %v317_v30  ;;  %v1127_v38 = vmul.f32 %v2049_v4, %v747_v33  ;;  %v1159_v39 = vmul.f32 %v2049_v4, %v843_v34 }
  0xb4   : > { %v1482_v41 = vmax.f32 %v1354_v32, 0.0 }
  0xb5   : > { %v1259_v42 = vadd.f32 %v2058_v7, %v1127_v38  ;;  %v1291_v43 = vadd.f32 %v2058_v7, %v1159_v39  ;;  %1724 = vmatmul.msk.f32.gmra.mxu0 %vm333_vm0, %v221_v35  ;;  %1756 = vmatmul.msk.f32.gmra.mxu1 %vm333_vm0, %v253_v36  ;;  %v288_v36 = vld [vmem:[%s1916_s29 + $0x2b8] sm:$0xff] }
  0xb6   : > { %v1546_v44 = vmax.f32 %v1450_v37, %v1482_v41  ;;  %v939_v45 = vpop.f32.mrf.mxu2  ;;  %v1035_v46 = vpop.f32.mrf.mxu3  ;;  %v320_v37 = vld [vmem:[%s1916_s29 + $0x3b8] sm:$0xff] }
  0xb7   : > { %v1387_v47 = vmax.f32 %v1259_v42, 0.0  ;;  %v1419_v48 = vmax.f32 %v1291_v43, 0.0  ;;  %v1191_v49 = vmul.f32 %v2049_v4, %v939_v45  ;;  %v1223_v50 = vmul.f32 %v2049_v4, %v1035_v46  ;;  %v224_v43 = vld [vmem:[%s1916_s29 + $0xb8] sm:$0xff] }
  0xb8   : > { %v1578_v51 = vmax.f32 %v1514_v40, %v1546_v44  ;;  %v256_v44 = vld [vmem:[%s1916_s29 + $0x1b8] sm:$0xff] }
  0xb9   : > { %v1323_v54 = vadd.f32 %v2058_v7, %v1191_v49  ;;  %v1355_v55 = vadd.f32 %v2058_v7, %v1223_v50  ;;  %v1515_v56 = vmax.f32 %v1387_v47, %v1419_v48 }
  0xba   : > { %1610 = vst.msk [vmem:[%s2089_s12 + $0x18] sm:$0xff] %vm333_vm0, %v1578_v51  ;;  %v750_v57 = vpop.f32.mrf.mxu0  ;;  %v846_v58 = vpop.f32.mrf.mxu1 }
  0xbb   : > { %v1451_v61 = vmax.f32 %v1323_v54, 0.0  ;;  %v1483_v62 = vmax.f32 %v1355_v55, 0.0  ;;  %1789 = vmatmul.msk.f32.gmra.mxu2 %vm333_vm0, %v286_v52  ;;  %1821 = vmatmul.msk.f32.gmra.mxu3 %vm333_vm0, %v318_v53  ;;  %v1128_v63 = vmul.f32 %v2049_v4, %v750_v57  ;;  %v1160_v0 = vmul.f32 %v2049_v4, %v846_v58 }
  0xbd   : > { %v1547_v1 = vmax.f32 %v1451_v61, %v1483_v62  ;;  %v1260_v2 = vadd.f32 %v2058_v7, %v1128_v63  ;;  %v1292_v3 = vadd.f32 %v2058_v7, %v1160_v0  ;;  %1725 = vmatmul.msk.f32.gmra.mxu0 %vm333_vm0, %v222_v59  ;;  %1757 = vmatmul.msk.f32.gmra.mxu1 %vm333_vm0, %v254_v60  ;;  %v289_v59 = vld [vmem:[%s1916_s29 + $0x2c0] sm:$0xff] }
  0xbe   : > { %v942_v5 = vpop.f32.mrf.mxu2  ;;  %v1038_v6 = vpop.f32.mrf.mxu3  ;;  %v321_v60 = vld [vmem:[%s1916_s29 + $0x3c0] sm:$0xff] }
  0xbf   : > { %v1579_v8 = vmax.f32 %v1515_v56, %v1547_v1  ;;  %v1192_v9 = vmul.f32 %v2049_v4, %v942_v5  ;;  %v1388_v10 = vmax.f32 %v1260_v2, 0.0  ;;  %v1420_v11 = vmax.f32 %v1292_v3, 0.0  ;;  %v225_v1 = vld [vmem:[%s1916_s29 + $0xc0] sm:$0xff] }
  0xc0   : > { %v1224_v12 = vmul.f32 %v2049_v4, %v1038_v6  ;;  %v257_v2 = vld [vmem:[%s1916_s29 + $0x1c0] sm:$0xff] }
  0xc1   : > { %1611 = vst.msk [vmem:[%s2089_s12 + $0x20] sm:$0xff] %vm333_vm0, %v1579_v8  ;;  %v1324_v15 = vadd.f32 %v2058_v7, %v1192_v9  ;;  %v1516_v24 = vmax.f32 %v1388_v10, %v1420_v11 }
  0xc2   : > { %v1356_v16 = vadd.f32 %v2058_v7, %v1224_v12  ;;  %v753_v17 = vpop.f32.mrf.mxu0  ;;  %v849_v18 = vpop.f32.mrf.mxu1 }
  0xc3   : > { %v1452_v21 = vmax.f32 %v1324_v15, 0.0  ;;  %1790 = vmatmul.msk.f32.gmra.mxu2 %vm333_vm0, %v287_v13  ;;  %1822 = vmatmul.msk.f32.gmra.mxu3 %vm333_vm0, %v319_v14  ;;  %v1129_v22 = vmul.f32 %v2049_v4, %v753_v17  ;;  %v1161_v23 = vmul.f32 %v2049_v4, %v849_v18 }
  0xc4   : > { %v1484_v25 = vmax.f32 %v1356_v16, 0.0 }
  0xc5   : > { %v1261_v26 = vadd.f32 %v2058_v7, %v1129_v22  ;;  %v1293_v27 = vadd.f32 %v2058_v7, %v1161_v23  ;;  %1726 = vmatmul.msk.f32.gmra.mxu0 %vm333_vm0, %v223_v19  ;;  %1758 = vmatmul.msk.f32.gmra.mxu1 %vm333_vm0, %v255_v20  ;;  %v290_v20 = vld [vmem:[%s1916_s29 + $0x2c8] sm:$0xff] }
  0xc6   : > { %v1548_v28 = vmax.f32 %v1452_v21, %v1484_v25  ;;  %v945_v29 = vpop.f32.mrf.mxu2  ;;  %v1041_v30 = vpop.f32.mrf.mxu3  ;;  %v322_v21 = vld [vmem:[%s1916_s29 + $0x3c8] sm:$0xff] }
  0xc7   : > { %v1389_v31 = vmax.f32 %v1261_v26, 0.0  ;;  %v1421_v32 = vmax.f32 %v1293_v27, 0.0  ;;  %v1193_v33 = vmul.f32 %v2049_v4, %v945_v29  ;;  %v1225_v34 = vmul.f32 %v2049_v4, %v1041_v30  ;;  %v226_v27 = vld [vmem:[%s1916_s29 + $0xc8] sm:$0xff] }
  0xc8   : > { %v1580_v35 = vmax.f32 %v1516_v24, %v1548_v28  ;;  %v258_v28 = vld [vmem:[%s1916_s29 + $0x1c8] sm:$0xff] }
  0xc9   : > { %v1325_v38 = vadd.f32 %v2058_v7, %v1193_v33  ;;  %v1357_v39 = vadd.f32 %v2058_v7, %v1225_v34  ;;  %v1517_v40 = vmax.f32 %v1389_v31, %v1421_v32 }
  0xca   : > { %1612 = vst.msk [vmem:[%s2089_s12 + $0x28] sm:$0xff] %vm333_vm0, %v1580_v35  ;;  %v756_v41 = vpop.f32.mrf.mxu0  ;;  %v852_v42 = vpop.f32.mrf.mxu1 }
  0xcb   : > { %v1453_v45 = vmax.f32 %v1325_v38, 0.0  ;;  %v1485_v46 = vmax.f32 %v1357_v39, 0.0  ;;  %1791 = vmatmul.msk.f32.gmra.mxu2 %vm333_vm0, %v288_v36  ;;  %1823 = vmatmul.msk.f32.gmra.mxu3 %vm333_vm0, %v320_v37  ;;  %v1130_v47 = vmul.f32 %v2049_v4, %v756_v41  ;;  %v1162_v48 = vmul.f32 %v2049_v4, %v852_v42 }
  0xcd   : > { %v1549_v49 = vmax.f32 %v1453_v45, %v1485_v46  ;;  %v1262_v50 = vadd.f32 %v2058_v7, %v1130_v47  ;;  %v1294_v51 = vadd.f32 %v2058_v7, %v1162_v48  ;;  %1727 = vmatmul.msk.f32.gmra.mxu0 %vm333_vm0, %v224_v43  ;;  %1759 = vmatmul.msk.f32.gmra.mxu1 %vm333_vm0, %v256_v44  ;;  %v291_v43 = vld [vmem:[%s1916_s29 + $0x2d0] sm:$0xff] }
  0xce   : > { %v948_v52 = vpop.f32.mrf.mxu2  ;;  %v1044_v53 = vpop.f32.mrf.mxu3  ;;  %v323_v44 = vld [vmem:[%s1916_s29 + $0x3d0] sm:$0xff] }
  0xcf   : > { %v1581_v54 = vmax.f32 %v1517_v40, %v1549_v49  ;;  %v1194_v55 = vmul.f32 %v2049_v4, %v948_v52  ;;  %v1390_v56 = vmax.f32 %v1262_v50, 0.0  ;;  %v1422_v57 = vmax.f32 %v1294_v51, 0.0  ;;  %v227_v49 = vld [vmem:[%s1916_s29 + $0xd0] sm:$0xff] }
  0xd0   : > { %v1226_v58 = vmul.f32 %v2049_v4, %v1044_v53  ;;  %v259_v50 = vld [vmem:[%s1916_s29 + $0x1d0] sm:$0xff] }
  0xd1   : > { %1613 = vst.msk [vmem:[%s2089_s12 + $0x30] sm:$0xff] %vm333_vm0, %v1581_v54  ;;  %v1326_v61 = vadd.f32 %v2058_v7, %v1194_v55  ;;  %v1518_v8 = vmax.f32 %v1390_v56, %v1422_v57 }
  0xd2   : > { %v1358_v62 = vadd.f32 %v2058_v7, %v1226_v58  ;;  %v759_v63 = vpop.f32.mrf.mxu0  ;;  %v855_v0 = vpop.f32.mrf.mxu1 }
  0xd3   : > { %v1454_v3 = vmax.f32 %v1326_v61, 0.0  ;;  %1792 = vmatmul.msk.f32.gmra.mxu2 %vm333_vm0, %v289_v59  ;;  %1824 = vmatmul.msk.f32.gmra.mxu3 %vm333_vm0, %v321_v60  ;;  %v1131_v5 = vmul.f32 %v2049_v4, %v759_v63  ;;  %v1163_v6 = vmul.f32 %v2049_v4, %v855_v0 }
  0xd4   : > { %v1486_v9 = vmax.f32 %v1358_v62, 0.0 }
  0xd5   : > { %v1263_v10 = vadd.f32 %v2058_v7, %v1131_v5  ;;  %v1295_v11 = vadd.f32 %v2058_v7, %v1163_v6  ;;  %1728 = vmatmul.msk.f32.gmra.mxu0 %vm333_vm0, %v225_v1  ;;  %1760 = vmatmul.msk.f32.gmra.mxu1 %vm333_vm0, %v257_v2  ;;  %v292_v2 = vld [vmem:[%s1916_s29 + $0x2d8] sm:$0xff] }
  0xd6   : > { %v1550_v12 = vmax.f32 %v1454_v3, %v1486_v9  ;;  %v951_v13 = vpop.f32.mrf.mxu2  ;;  %v1047_v14 = vpop.f32.mrf.mxu3  ;;  %v324_v3 = vld [vmem:[%s1916_s29 + $0x3d8] sm:$0xff] }
  0xd7   : > { %v1391_v15 = vmax.f32 %v1263_v10, 0.0  ;;  %v1423_v16 = vmax.f32 %v1295_v11, 0.0  ;;  %v1195_v17 = vmul.f32 %v2049_v4, %v951_v13  ;;  %v1227_v18 = vmul.f32 %v2049_v4, %v1047_v14  ;;  %v228_v11 = vld [vmem:[%s1916_s29 + $0xd8] sm:$0xff] }
  0xd8   : > { %v1582_v19 = vmax.f32 %v1518_v8, %v1550_v12  ;;  %v260_v12 = vld [vmem:[%s1916_s29 + $0x1d8] sm:$0xff] }
  0xd9   : > { %v1327_v22 = vadd.f32 %v2058_v7, %v1195_v17  ;;  %v1359_v23 = vadd.f32 %v2058_v7, %v1227_v18  ;;  %v1519_v24 = vmax.f32 %v1391_v15, %v1423_v16 }
  0xda   : > { %1614 = vst.msk [vmem:[%s2089_s12 + $0x38] sm:$0xff] %vm333_vm0, %v1582_v19  ;;  %v762_v25 = vpop.f32.mrf.mxu0  ;;  %v858_v26 = vpop.f32.mrf.mxu1 }
  0xdb   : > { %v1455_v29 = vmax.f32 %v1327_v22, 0.0  ;;  %v1487_v30 = vmax.f32 %v1359_v23, 0.0  ;;  %1793 = vmatmul.msk.f32.gmra.mxu2 %vm333_vm0, %v290_v20  ;;  %1825 = vmatmul.msk.f32.gmra.mxu3 %vm333_vm0, %v322_v21  ;;  %v1132_v31 = vmul.f32 %v2049_v4, %v762_v25  ;;  %v1164_v32 = vmul.f32 %v2049_v4, %v858_v26 }
  0xdd   : > { %v1551_v33 = vmax.f32 %v1455_v29, %v1487_v30  ;;  %v1264_v34 = vadd.f32 %v2058_v7, %v1132_v31  ;;  %v1296_v35 = vadd.f32 %v2058_v7, %v1164_v32  ;;  %1729 = vmatmul.msk.f32.gmra.mxu0 %vm333_vm0, %v226_v27  ;;  %1761 = vmatmul.msk.f32.gmra.mxu1 %vm333_vm0, %v258_v28  ;;  %v293_v27 = vld [vmem:[%s1916_s29 + $0x2e0] sm:$0xff] }
  0xde   : > { %v954_v36 = vpop.f32.mrf.mxu2  ;;  %v1050_v37 = vpop.f32.mrf.mxu3  ;;  %v325_v28 = vld [vmem:[%s1916_s29 + $0x3e0] sm:$0xff] }
  0xdf   : > { %v1583_v38 = vmax.f32 %v1519_v24, %v1551_v33  ;;  %v1196_v39 = vmul.f32 %v2049_v4, %v954_v36  ;;  %v1392_v40 = vmax.f32 %v1264_v34, 0.0  ;;  %v1424_v41 = vmax.f32 %v1296_v35, 0.0  ;;  %v229_v33 = vld [vmem:[%s1916_s29 + $0xe0] sm:$0xff] }
  0xe0   : > { %v1228_v42 = vmul.f32 %v2049_v4, %v1050_v37  ;;  %v261_v34 = vld [vmem:[%s1916_s29 + $0x1e0] sm:$0xff] }
  0xe1   : > { %1615 = vst.msk [vmem:[%s2089_s12 + $0x40] sm:$0xff] %vm333_vm0, %v1583_v38  ;;  %v1328_v45 = vadd.f32 %v2058_v7, %v1196_v39  ;;  %v1520_v54 = vmax.f32 %v1392_v40, %v1424_v41 }
  0xe2   : > { %v1360_v46 = vadd.f32 %v2058_v7, %v1228_v42  ;;  %v765_v47 = vpop.f32.mrf.mxu0  ;;  %v861_v48 = vpop.f32.mrf.mxu1 }
  0xe3   : > { %v1456_v51 = vmax.f32 %v1328_v45, 0.0  ;;  %1794 = vmatmul.msk.f32.gmra.mxu2 %vm333_vm0, %v291_v43  ;;  %1826 = vmatmul.msk.f32.gmra.mxu3 %vm333_vm0, %v323_v44  ;;  %v1133_v52 = vmul.f32 %v2049_v4, %v765_v47  ;;  %v1165_v53 = vmul.f32 %v2049_v4, %v861_v48 }
  0xe4   : > { %v1488_v55 = vmax.f32 %v1360_v46, 0.0 }
  0xe5   : > { %v1265_v56 = vadd.f32 %v2058_v7, %v1133_v52  ;;  %v1297_v57 = vadd.f32 %v2058_v7, %v1165_v53  ;;  %1730 = vmatmul.msk.f32.gmra.mxu0 %vm333_vm0, %v227_v49  ;;  %1762 = vmatmul.msk.f32.gmra.mxu1 %vm333_vm0, %v259_v50  ;;  %v294_v50 = vld [vmem:[%s1916_s29 + $0x2e8] sm:$0xff] }
  0xe6   : > { %v1552_v58 = vmax.f32 %v1456_v51, %v1488_v55  ;;  %v957_v59 = vpop.f32.mrf.mxu2  ;;  %v1053_v60 = vpop.f32.mrf.mxu3  ;;  %v326_v51 = vld [vmem:[%s1916_s29 + $0x3e8] sm:$0xff] }
  0xe7   : > { %v1393_v61 = vmax.f32 %v1265_v56, 0.0  ;;  %v1425_v62 = vmax.f32 %v1297_v57, 0.0  ;;  %v1197_v63 = vmul.f32 %v2049_v4, %v957_v59  ;;  %v1229_v0 = vmul.f32 %v2049_v4, %v1053_v60  ;;  %v230_v57 = vld [vmem:[%s1916_s29 + $0xe8] sm:$0xff] }
  0xe8   : > { %v1584_v1 = vmax.f32 %v1520_v54, %v1552_v58  ;;  %v262_v58 = vld [vmem:[%s1916_s29 + $0x1e8] sm:$0xff] }
  0xe9   : > { %v1329_v5 = vadd.f32 %v2058_v7, %v1197_v63  ;;  %v1361_v6 = vadd.f32 %v2058_v7, %v1229_v0  ;;  %v1521_v8 = vmax.f32 %v1393_v61, %v1425_v62 }
  0xea   : > { %1616 = vst.msk [vmem:[%s2089_s12 + $0x48] sm:$0xff] %vm333_vm0, %v1584_v1  ;;  %v768_v9 = vpop.f32.mrf.mxu0  ;;  %v864_v10 = vpop.f32.mrf.mxu1 }
  0xeb   : > { %v1457_v13 = vmax.f32 %v1329_v5, 0.0  ;;  %v1489_v14 = vmax.f32 %v1361_v6, 0.0  ;;  %1795 = vmatmul.msk.f32.gmra.mxu2 %vm333_vm0, %v292_v2  ;;  %1827 = vmatmul.msk.f32.gmra.mxu3 %vm333_vm0, %v324_v3  ;;  %v1134_v15 = vmul.f32 %v2049_v4, %v768_v9  ;;  %v1166_v16 = vmul.f32 %v2049_v4, %v864_v10 }
  0xed   : > { %v1553_v17 = vmax.f32 %v1457_v13, %v1489_v14  ;;  %v1266_v18 = vadd.f32 %v2058_v7, %v1134_v15  ;;  %v1298_v19 = vadd.f32 %v2058_v7, %v1166_v16  ;;  %1731 = vmatmul.msk.f32.gmra.mxu0 %vm333_vm0, %v228_v11  ;;  %1763 = vmatmul.msk.f32.gmra.mxu1 %vm333_vm0, %v260_v12  ;;  %v295_v11 = vld [vmem:[%s1916_s29 + $0x2f0] sm:$0xff] }
  0xee   : > { %v960_v20 = vpop.f32.mrf.mxu2  ;;  %v1056_v21 = vpop.f32.mrf.mxu3  ;;  %v327_v12 = vld [vmem:[%s1916_s29 + $0x3f0] sm:$0xff] }
  0xef   : > { %v1585_v22 = vmax.f32 %v1521_v8, %v1553_v17  ;;  %v1198_v23 = vmul.f32 %v2049_v4, %v960_v20  ;;  %v1394_v24 = vmax.f32 %v1266_v18, 0.0  ;;  %v1426_v25 = vmax.f32 %v1298_v19, 0.0  ;;  %v231_v17 = vld [vmem:[%s1916_s29 + $0xf0] sm:$0xff] }
  0xf0   : > { %v1230_v26 = vmul.f32 %v2049_v4, %v1056_v21  ;;  %v263_v18 = vld [vmem:[%s1916_s29 + $0x1f0] sm:$0xff] }
  0xf1   : > { %1617 = vst.msk [vmem:[%s2089_s12 + $0x50] sm:$0xff] %vm333_vm0, %v1585_v22  ;;  %v1330_v29 = vadd.f32 %v2058_v7, %v1198_v23  ;;  %v1522_v38 = vmax.f32 %v1394_v24, %v1426_v25 }
  0xf2   : > { %v1362_v30 = vadd.f32 %v2058_v7, %v1230_v26  ;;  %v771_v31 = vpop.f32.mrf.mxu0  ;;  %v867_v32 = vpop.f32.mrf.mxu1 }
  0xf3   : > { %v1458_v35 = vmax.f32 %v1330_v29, 0.0  ;;  %1796 = vmatmul.msk.f32.gmra.mxu2 %vm333_vm0, %v293_v27  ;;  %1828 = vmatmul.msk.f32.gmra.mxu3 %vm333_vm0, %v325_v28  ;;  %v1135_v36 = vmul.f32 %v2049_v4, %v771_v31  ;;  %v1167_v37 = vmul.f32 %v2049_v4, %v867_v32 }
  0xf4   : > { %v1490_v39 = vmax.f32 %v1362_v30, 0.0 }
  0xf5   : > { %v1267_v40 = vadd.f32 %v2058_v7, %v1135_v36  ;;  %v1299_v41 = vadd.f32 %v2058_v7, %v1167_v37  ;;  %1732 = vmatmul.msk.f32.gmra.mxu0 %vm333_vm0, %v229_v33  ;;  %1764 = vmatmul.msk.f32.gmra.mxu1 %vm333_vm0, %v261_v34  ;;  %v296_v34 = vld [vmem:[%s1916_s29 + $0x2f8] sm:$0xff] }
  0xf6   : > { %v1554_v42 = vmax.f32 %v1458_v35, %v1490_v39  ;;  %v963_v43 = vpop.f32.mrf.mxu2  ;;  %v1059_v44 = vpop.f32.mrf.mxu3  ;;  %v328_v35 = vld [vmem:[%s1916_s29 + $0x3f8] sm:$0xff] }
  0xf7   : > { %v1395_v45 = vmax.f32 %v1267_v40, 0.0  ;;  %v1427_v46 = vmax.f32 %v1299_v41, 0.0  ;;  %v1199_v47 = vmul.f32 %v2049_v4, %v963_v43  ;;  %v1231_v48 = vmul.f32 %v2049_v4, %v1059_v44  ;;  %v232_v41 = vld [vmem:[%s1916_s29 + $0xf8] sm:$0xff] }
  0xf8   : > { %v1586_v49 = vmax.f32 %v1522_v38, %v1554_v42  ;;  %v264_v42 = vld [vmem:[%s1916_s29 + $0x1f8] sm:$0xff] }
  0xf9   : > { %v1331_v52 = vadd.f32 %v2058_v7, %v1199_v47  ;;  %v1363_v53 = vadd.f32 %v2058_v7, %v1231_v48  ;;  %v1523_v54 = vmax.f32 %v1395_v45, %v1427_v46 }
  0xfa   : > { %1618 = vst.msk [vmem:[%s2089_s12 + $0x58] sm:$0xff] %vm333_vm0, %v1586_v49  ;;  %v774_v55 = vpop.f32.mrf.mxu0  ;;  %v870_v56 = vpop.f32.mrf.mxu1 }
  0xfb   : > { %v1459_v59 = vmax.f32 %v1331_v52, 0.0  ;;  %v1491_v60 = vmax.f32 %v1363_v53, 0.0  ;;  %1797 = vmatmul.msk.f32.gmra.mxu2 %vm333_vm0, %v294_v50  ;;  %1829 = vmatmul.msk.f32.gmra.mxu3 %vm333_vm0, %v326_v51  ;;  %v1136_v61 = vmul.f32 %v2049_v4, %v774_v55  ;;  %v1168_v62 = vmul.f32 %v2049_v4, %v870_v56 }
  0xfd   : > { %v1555_v63 = vmax.f32 %v1459_v59, %v1491_v60  ;;  %v1268_v0 = vadd.f32 %v2058_v7, %v1136_v61  ;;  %v1300_v1 = vadd.f32 %v2058_v7, %v1168_v62  ;;  %1733 = vmatmul.msk.f32.gmra.mxu0 %vm333_vm0, %v230_v57  ;;  %1765 = vmatmul.msk.f32.gmra.mxu1 %vm333_vm0, %v262_v58 }
  0xfe   : > { %v966_v2 = vpop.f32.mrf.mxu2  ;;  %v1062_v3 = vpop.f32.mrf.mxu3 }
  0xff   : > { %v1587_v5 = vmax.f32 %v1523_v54, %v1555_v63  ;;  %v1200_v6 = vmul.f32 %v2049_v4, %v966_v2  ;;  %v1396_v8 = vmax.f32 %v1268_v0, 0.0  ;;  %v1428_v9 = vmax.f32 %v1300_v1, 0.0 }
 0x100   : > { %v1232_v10 = vmul.f32 %v2049_v4, %v1062_v3 }
 0x101   : > { %1619 = vst.msk [vmem:[%s2089_s12 + $0x60] sm:$0xff] %vm333_vm0, %v1587_v5  ;;  %v1332_v13 = vadd.f32 %v2058_v7, %v1200_v6  ;;  %v1524_v22 = vmax.f32 %v1396_v8, %v1428_v9 }
 0x102   : > { %v1364_v14 = vadd.f32 %v2058_v7, %v1232_v10  ;;  %v777_v15 = vpop.f32.mrf.mxu0  ;;  %v873_v16 = vpop.f32.mrf.mxu1 }
 0x103   : > { %v1460_v19 = vmax.f32 %v1332_v13, 0.0  ;;  %1798 = vmatmul.msk.f32.gmra.mxu2 %vm333_vm0, %v295_v11  ;;  %1830 = vmatmul.msk.f32.gmra.mxu3 %vm333_vm0, %v327_v12  ;;  %v1137_v20 = vmul.f32 %v2049_v4, %v777_v15  ;;  %v1169_v21 = vmul.f32 %v2049_v4, %v873_v16 }
 0x104   : > { %v1492_v23 = vmax.f32 %v1364_v14, 0.0 }
 0x105   : > { %v1269_v24 = vadd.f32 %v2058_v7, %v1137_v20  ;;  %v1301_v25 = vadd.f32 %v2058_v7, %v1169_v21  ;;  %1734 = vmatmul.msk.f32.gmra.mxu0 %vm333_vm0, %v231_v17  ;;  %1766 = vmatmul.msk.f32.gmra.mxu1 %vm333_vm0, %v263_v18 }
 0x106   : > { %v1556_v26 = vmax.f32 %v1460_v19, %v1492_v23  ;;  %v969_v27 = vpop.f32.mrf.mxu2  ;;  %v1065_v28 = vpop.f32.mrf.mxu3 }
 0x107   : > { %v1397_v29 = vmax.f32 %v1269_v24, 0.0  ;;  %v1429_v30 = vmax.f32 %v1301_v25, 0.0  ;;  %v1201_v31 = vmul.f32 %v2049_v4, %v969_v27  ;;  %v1233_v32 = vmul.f32 %v2049_v4, %v1065_v28 }
 0x108   : > { %v1588_v33 = vmax.f32 %v1524_v22, %v1556_v26 }
 0x109   : > { %v1333_v36 = vadd.f32 %v2058_v7, %v1201_v31  ;;  %v1365_v37 = vadd.f32 %v2058_v7, %v1233_v32  ;;  %v1525_v38 = vmax.f32 %v1397_v29, %v1429_v30 }
 0x10a   : > { %1620 = vst.msk [vmem:[%s2089_s12 + $0x68] sm:$0xff] %vm333_vm0, %v1588_v33  ;;  %v780_v39 = vpop.f32.mrf.mxu0  ;;  %v876_v40 = vpop.f32.mrf.mxu1 }
 0x10b   : > { %v1461_v43 = vmax.f32 %v1333_v36, 0.0  ;;  %v1493_v44 = vmax.f32 %v1365_v37, 0.0  ;;  %1799 = vmatmul.msk.f32.gmra.mxu2 %vm333_vm0, %v296_v34  ;;  %1831 = vmatmul.msk.f32.gmra.mxu3 %vm333_vm0, %v328_v35  ;;  %v1138_v45 = vmul.f32 %v2049_v4, %v780_v39  ;;  %v1170_v46 = vmul.f32 %v2049_v4, %v876_v40 }
 0x10d   : > { %v1557_v47 = vmax.f32 %v1461_v43, %v1493_v44  ;;  %v1270_v48 = vadd.f32 %v2058_v7, %v1138_v45  ;;  %v1302_v49 = vadd.f32 %v2058_v7, %v1170_v46  ;;  %1735 = vmatmul.msk.f32.gmra.mxu0 %vm333_vm0, %v232_v41  ;;  %1767 = vmatmul.msk.f32.gmra.mxu1 %vm333_vm0, %v264_v42 }
 0x10e   : > { %v972_v50 = vpop.f32.mrf.mxu2  ;;  %v1068_v51 = vpop.f32.mrf.mxu3 }
 0x10f   : > { %v1589_v52 = vmax.f32 %v1525_v38, %v1557_v47  ;;  %v1202_v53 = vmul.f32 %v2049_v4, %v972_v50  ;;  %v1398_v54 = vmax.f32 %v1270_v48, 0.0  ;;  %v1430_v55 = vmax.f32 %v1302_v49, 0.0 }
 0x110   : > { %v1234_v56 = vmul.f32 %v2049_v4, %v1068_v51 }
 0x111   : > { %1621 = vst.msk [vmem:[%s2089_s12 + $0x70] sm:$0xff] %vm333_vm0, %v1589_v52  ;;  %v1334_v57 = vadd.f32 %v2058_v7, %v1202_v53  ;;  %v1526_v0 = vmax.f32 %v1398_v54, %v1430_v55 }
 0x112   : > { %v1366_v58 = vadd.f32 %v2058_v7, %v1234_v56  ;;  %v783_v59 = vpop.f32.mrf.mxu0  ;;  %v879_v60 = vpop.f32.mrf.mxu1 }
 0x113   : > { %v1462_v61 = vmax.f32 %v1334_v57, 0.0  ;;  %v1139_v62 = vmul.f32 %v2049_v4, %v783_v59  ;;  %v1171_v63 = vmul.f32 %v2049_v4, %v879_v60  ;;  %v2382_v59 = vld [vmem:[%s2526_s2] ss:$0 sm:$0xff] }
 0x114   : > { %v1494_v1 = vmax.f32 %v1366_v58, 0.0 }
 0x115   : > { %v1271_v2 = vadd.f32 %v2058_v7, %v1139_v62  ;;  %v1303_v3 = vadd.f32 %v2058_v7, %v1171_v63 }
 0x116   : > { %v1558_v5 = vmax.f32 %v1462_v61, %v1494_v1  ;;  %v975_v6 = vpop.f32.mrf.mxu2  ;;  %v1071_v8 = vpop.f32.mrf.mxu3 }
 0x117   : > { %v1399_v9 = vmax.f32 %v1271_v2, 0.0  ;;  %v1431_v10 = vmax.f32 %v1303_v3, 0.0  ;;  %v1203_v11 = vmul.f32 %v2049_v4, %v975_v6  ;;  %v1235_v12 = vmul.f32 %v2049_v4, %v1071_v8 }
 0x118   : > { %v1590_v13 = vmax.f32 %v1526_v0, %v1558_v5 }
 0x119   : > { %v1335_v14 = vadd.f32 %v2058_v7, %v1203_v11  ;;  %v1367_v15 = vadd.f32 %v2058_v7, %v1235_v12  ;;  %v1527_v16 = vmax.f32 %v1399_v9, %v1431_v10 }
 0x11a   : > { %1622 = vst.msk [vmem:[%s2089_s12 + $0x78] sm:$0xff] %vm333_vm0, %v1590_v13  ;;  %v786_v17 = vpop.f32.mrf.mxu0  ;;  %v882_v18 = vpop.f32.mrf.mxu1 }
 0x11b   : > { %v1463_v19 = vmax.f32 %v1335_v14, 0.0  ;;  %v1495_v20 = vmax.f32 %v1367_v15, 0.0  ;;  %v1140_v21 = vmul.f32 %v2049_v4, %v786_v17  ;;  %v1172_v22 = vmul.f32 %v2049_v4, %v882_v18 }
 0x11d   : > { %v1559_v23 = vmax.f32 %v1463_v19, %v1495_v20  ;;  %v1272_v24 = vadd.f32 %v2058_v7, %v1140_v21  ;;  %v1304_v25 = vadd.f32 %v2058_v7, %v1172_v22 }
 0x11e   : > { %v978_v26 = vpop.f32.mrf.mxu2  ;;  %v1074_v27 = vpop.f32.mrf.mxu3 }
 0x11f   : > { %v1591_v28 = vmax.f32 %v1527_v16, %v1559_v23  ;;  %v1204_v29 = vmul.f32 %v2049_v4, %v978_v26  ;;  %v1400_v30 = vmax.f32 %v1272_v24, 0.0  ;;  %v1432_v31 = vmax.f32 %v1304_v25, 0.0 }
 0x120   : > { %v1236_v32 = vmul.f32 %v2049_v4, %v1074_v27 }
 0x121   : > { %1623 = vst.msk [vmem:[%s2089_s12 + $0x80] sm:$0xff] %vm333_vm0, %v1591_v28  ;;  %v1336_v33 = vadd.f32 %v2058_v7, %v1204_v29  ;;  %v1528_v40 = vmax.f32 %v1400_v30, %v1432_v31 }
 0x122   : > { %v1368_v34 = vadd.f32 %v2058_v7, %v1236_v32  ;;  %v789_v35 = vpop.f32.mrf.mxu0  ;;  %v885_v36 = vpop.f32.mrf.mxu1 }
 0x123   : > { %v1464_v37 = vmax.f32 %v1336_v33, 0.0  ;;  %v1141_v38 = vmul.f32 %v2049_v4, %v789_v35  ;;  %v1173_v39 = vmul.f32 %v2049_v4, %v885_v36 }
 0x124   : > { %v1496_v41 = vmax.f32 %v1368_v34, 0.0 }
 0x125   : > { %v1273_v42 = vadd.f32 %v2058_v7, %v1141_v38  ;;  %v1305_v43 = vadd.f32 %v2058_v7, %v1173_v39 }
 0x126   : > { %v1560_v44 = vmax.f32 %v1464_v37, %v1496_v41  ;;  %v981_v45 = vpop.f32.mrf.mxu2  ;;  %v1077_v46 = vpop.f32.mrf.mxu3 }
 0x127   : > { %v1401_v47 = vmax.f32 %v1273_v42, 0.0  ;;  %v1433_v48 = vmax.f32 %v1305_v43, 0.0  ;;  %v1205_v49 = vmul.f32 %v2049_v4, %v981_v45  ;;  %v1237_v50 = vmul.f32 %v2049_v4, %v1077_v46 }
 0x128   : > { %v1592_v51 = vmax.f32 %v1528_v40, %v1560_v44 }
 0x129   : > { %v1337_v52 = vadd.f32 %v2058_v7, %v1205_v49  ;;  %v1369_v53 = vadd.f32 %v2058_v7, %v1237_v50  ;;  %v1529_v54 = vmax.f32 %v1401_v47, %v1433_v48  ;;  %v2389_v7 = vld [vmem:[%s2527_s3] ss:$0 sm:$0xff] }
 0x12a   : > { %1624 = vst.msk [vmem:[%s2089_s12 + $0x88] sm:$0xff] %vm333_vm0, %v1592_v51  ;;  %v792_v55 = vpop.f32.mrf.mxu0  ;;  %v888_v56 = vpop.f32.mrf.mxu1 }
 0x12b   : > { %v1465_v57 = vmax.f32 %v1337_v52, 0.0  ;;  %v1497_v58 = vmax.f32 %v1369_v53, 0.0  ;;  %v1142_v4 = vmul.f32 %v2382_v59, %v792_v55  ;;  %v1174_v60 = vmul.f32 %v2382_v59, %v888_v56 }
 0x12d   : > { %v1561_v61 = vmax.f32 %v1465_v57, %v1497_v58  ;;  %v1274_v62 = vadd.f32 %v2389_v7, %v1142_v4  ;;  %v1306_v63 = vadd.f32 %v2389_v7, %v1174_v60 }
 0x12e   : > { %v984_v0 = vpop.f32.mrf.mxu2  ;;  %v1080_v1 = vpop.f32.mrf.mxu3 }
 0x12f   : > { %v1593_v2 = vmax.f32 %v1529_v54, %v1561_v61  ;;  %v1206_v3 = vmul.f32 %v2382_v59, %v984_v0  ;;  %v1402_v5 = vmax.f32 %v1274_v62, 0.0  ;;  %v1434_v6 = vmax.f32 %v1306_v63, 0.0 }
 0x130   : > { %v1238_v8 = vmul.f32 %v2382_v59, %v1080_v1 }
 0x131   : > { %1625 = vst.msk [vmem:[%s2089_s12 + $0x90] sm:$0xff] %vm333_vm0, %v1593_v2  ;;  %v1338_v9 = vadd.f32 %v2389_v7, %v1206_v3  ;;  %v1530_v16 = vmax.f32 %v1402_v5, %v1434_v6 }
 0x132   : > { %v1370_v10 = vadd.f32 %v2389_v7, %v1238_v8  ;;  %v795_v11 = vpop.f32.mrf.mxu0  ;;  %v891_v12 = vpop.f32.mrf.mxu1 }
 0x133   : > { %v1466_v13 = vmax.f32 %v1338_v9, 0.0  ;;  %v1143_v14 = vmul.f32 %v2382_v59, %v795_v11  ;;  %v1175_v15 = vmul.f32 %v2382_v59, %v891_v12 }
 0x134   : > { %v1498_v17 = vmax.f32 %v1370_v10, 0.0 }
 0x135   : > { %v1275_v18 = vadd.f32 %v2389_v7, %v1143_v14  ;;  %v1307_v19 = vadd.f32 %v2389_v7, %v1175_v15 }
 0x136   : > { %v1562_v20 = vmax.f32 %v1466_v13, %v1498_v17  ;;  %v987_v21 = vpop.f32.mrf.mxu2  ;;  %v1083_v22 = vpop.f32.mrf.mxu3 }
 0x137   : > { %v1403_v23 = vmax.f32 %v1275_v18, 0.0  ;;  %v1435_v24 = vmax.f32 %v1307_v19, 0.0  ;;  %v1207_v25 = vmul.f32 %v2382_v59, %v987_v21  ;;  %v1239_v26 = vmul.f32 %v2382_v59, %v1083_v22 }
 0x138   : > { %v1594_v27 = vmax.f32 %v1530_v16, %v1562_v20 }
 0x139   : > { %v1339_v28 = vadd.f32 %v2389_v7, %v1207_v25  ;;  %v1371_v29 = vadd.f32 %v2389_v7, %v1239_v26  ;;  %v1531_v30 = vmax.f32 %v1403_v23, %v1435_v24 }
 0x13a   : > { %1626 = vst.msk [vmem:[%s2089_s12 + $0x98] sm:$0xff] %vm333_vm0, %v1594_v27  ;;  %v798_v31 = vpop.f32.mrf.mxu0  ;;  %v894_v32 = vpop.f32.mrf.mxu1 }
 0x13b   : > { %v1467_v33 = vmax.f32 %v1339_v28, 0.0  ;;  %v1499_v34 = vmax.f32 %v1371_v29, 0.0  ;;  %v1144_v35 = vmul.f32 %v2382_v59, %v798_v31  ;;  %v1176_v36 = vmul.f32 %v2382_v59, %v894_v32 }
 0x13d   : > { %v1563_v37 = vmax.f32 %v1467_v33, %v1499_v34  ;;  %v1276_v38 = vadd.f32 %v2389_v7, %v1144_v35  ;;  %v1308_v39 = vadd.f32 %v2389_v7, %v1176_v36 }
 0x13e   : > { %v990_v40 = vpop.f32.mrf.mxu2  ;;  %v1086_v41 = vpop.f32.mrf.mxu3 }
 0x13f   : > { %v1595_v42 = vmax.f32 %v1531_v30, %v1563_v37  ;;  %v1208_v43 = vmul.f32 %v2382_v59, %v990_v40  ;;  %v1404_v44 = vmax.f32 %v1276_v38, 0.0  ;;  %v1436_v45 = vmax.f32 %v1308_v39, 0.0 }
 0x140   : > { %v1240_v46 = vmul.f32 %v2382_v59, %v1086_v41 }
 0x141   : > { %1627 = vst.msk [vmem:[%s2089_s12 + $0xa0] sm:$0xff] %vm333_vm0, %v1595_v42  ;;  %v1340_v47 = vadd.f32 %v2389_v7, %v1208_v43  ;;  %v1532_v54 = vmax.f32 %v1404_v44, %v1436_v45 }
 0x142   : > { %v1372_v48 = vadd.f32 %v2389_v7, %v1240_v46  ;;  %v801_v49 = vpop.f32.mrf.mxu0  ;;  %v897_v50 = vpop.f32.mrf.mxu1 }
 0x143   : > { %v1468_v51 = vmax.f32 %v1340_v47, 0.0  ;;  %v1145_v52 = vmul.f32 %v2382_v59, %v801_v49  ;;  %v1177_v53 = vmul.f32 %v2382_v59, %v897_v50 }
 0x144   : > { %v1500_v55 = vmax.f32 %v1372_v48, 0.0 }
 0x145   : > { %v1277_v56 = vadd.f32 %v2389_v7, %v1145_v52  ;;  %v1309_v57 = vadd.f32 %v2389_v7, %v1177_v53 }
 0x146   : > { %v1564_v58 = vmax.f32 %v1468_v51, %v1500_v55  ;;  %v993_v4 = vpop.f32.mrf.mxu2  ;;  %v1089_v60 = vpop.f32.mrf.mxu3 }
 0x147   : > { %v1405_v61 = vmax.f32 %v1277_v56, 0.0  ;;  %v1437_v62 = vmax.f32 %v1309_v57, 0.0  ;;  %v1209_v63 = vmul.f32 %v2382_v59, %v993_v4  ;;  %v1241_v0 = vmul.f32 %v2382_v59, %v1089_v60 }
 0x148   : > { %v1596_v1 = vmax.f32 %v1532_v54, %v1564_v58 }
 0x149   : > { %v1341_v2 = vadd.f32 %v2389_v7, %v1209_v63  ;;  %v1373_v3 = vadd.f32 %v2389_v7, %v1241_v0  ;;  %v1533_v5 = vmax.f32 %v1405_v61, %v1437_v62 }
 0x14a   : > { %1628 = vst.msk [vmem:[%s2089_s12 + $0xa8] sm:$0xff] %vm333_vm0, %v1596_v1  ;;  %v804_v6 = vpop.f32.mrf.mxu0  ;;  %v900_v8 = vpop.f32.mrf.mxu1 }
 0x14b   : > { %v1469_v9 = vmax.f32 %v1341_v2, 0.0  ;;  %v1501_v10 = vmax.f32 %v1373_v3, 0.0  ;;  %v1146_v11 = vmul.f32 %v2382_v59, %v804_v6  ;;  %v1178_v12 = vmul.f32 %v2382_v59, %v900_v8 }
 0x14d   : > { %v1565_v13 = vmax.f32 %v1469_v9, %v1501_v10  ;;  %v1278_v14 = vadd.f32 %v2389_v7, %v1146_v11  ;;  %v1310_v15 = vadd.f32 %v2389_v7, %v1178_v12 }
 0x14e   : > { %v996_v16 = vpop.f32.mrf.mxu2  ;;  %v1092_v17 = vpop.f32.mrf.mxu3 }
 0x14f   : > { %v1597_v18 = vmax.f32 %v1533_v5, %v1565_v13  ;;  %v1210_v19 = vmul.f32 %v2382_v59, %v996_v16  ;;  %v1406_v20 = vmax.f32 %v1278_v14, 0.0  ;;  %v1438_v21 = vmax.f32 %v1310_v15, 0.0 }
 0x150   : > { %v1242_v22 = vmul.f32 %v2382_v59, %v1092_v17 }
 0x151   : > { %1629 = vst.msk [vmem:[%s2089_s12 + $0xb0] sm:$0xff] %vm333_vm0, %v1597_v18  ;;  %v1342_v23 = vadd.f32 %v2389_v7, %v1210_v19  ;;  %v1534_v30 = vmax.f32 %v1406_v20, %v1438_v21 }
 0x152   : > { %v1374_v24 = vadd.f32 %v2389_v7, %v1242_v22  ;;  %v807_v25 = vpop.f32.mrf.mxu0  ;;  %v903_v26 = vpop.f32.mrf.mxu1 }
 0x153   : > { %v1470_v27 = vmax.f32 %v1342_v23, 0.0  ;;  %v1147_v28 = vmul.f32 %v2382_v59, %v807_v25  ;;  %v1179_v29 = vmul.f32 %v2382_v59, %v903_v26 }
 0x154   : > { %v1502_v31 = vmax.f32 %v1374_v24, 0.0 }
 0x155   : > { %v1279_v32 = vadd.f32 %v2389_v7, %v1147_v28  ;;  %v1311_v33 = vadd.f32 %v2389_v7, %v1179_v29 }
 0x156   : > { %v1566_v34 = vmax.f32 %v1470_v27, %v1502_v31  ;;  %v999_v35 = vpop.f32.mrf.mxu2  ;;  %v1095_v36 = vpop.f32.mrf.mxu3 }
 0x157   : > { %v1407_v37 = vmax.f32 %v1279_v32, 0.0  ;;  %v1439_v38 = vmax.f32 %v1311_v33, 0.0  ;;  %v1211_v39 = vmul.f32 %v2382_v59, %v999_v35  ;;  %v1243_v40 = vmul.f32 %v2382_v59, %v1095_v36 }
 0x158   : > { %v1598_v41 = vmax.f32 %v1534_v30, %v1566_v34 }
 0x159   : > { %v1343_v42 = vadd.f32 %v2389_v7, %v1211_v39  ;;  %v1375_v43 = vadd.f32 %v2389_v7, %v1243_v40  ;;  %v1535_v44 = vmax.f32 %v1407_v37, %v1439_v38 }
 0x15a   : > { %1630 = vst.msk [vmem:[%s2089_s12 + $0xb8] sm:$0xff] %vm333_vm0, %v1598_v41  ;;  %v810_v45 = vpop.f32.mrf.mxu0  ;;  %v906_v46 = vpop.f32.mrf.mxu1 }
 0x15b   : > { %v1471_v47 = vmax.f32 %v1343_v42, 0.0  ;;  %v1503_v48 = vmax.f32 %v1375_v43, 0.0  ;;  %v1148_v49 = vmul.f32 %v2382_v59, %v810_v45  ;;  %v1180_v50 = vmul.f32 %v2382_v59, %v906_v46 }
 0x15d   : > { %v1567_v51 = vmax.f32 %v1471_v47, %v1503_v48  ;;  %v1280_v52 = vadd.f32 %v2389_v7, %v1148_v49  ;;  %v1312_v53 = vadd.f32 %v2389_v7, %v1180_v50 }
 0x15e   : > { %v1002_v54 = vpop.f32.mrf.mxu2  ;;  %v1098_v55 = vpop.f32.mrf.mxu3 }
 0x15f   : > { %v1599_v56 = vmax.f32 %v1535_v44, %v1567_v51  ;;  %v1212_v57 = vmul.f32 %v2382_v59, %v1002_v54  ;;  %v1408_v58 = vmax.f32 %v1280_v52, 0.0  ;;  %v1440_v4 = vmax.f32 %v1312_v53, 0.0 }
 0x160   : > { %v1244_v60 = vmul.f32 %v2382_v59, %v1098_v55 }
 0x161   : > { %1631 = vst.msk [vmem:[%s2089_s12 + $0xc0] sm:$0xff] %vm333_vm0, %v1599_v56  ;;  %v1344_v61 = vadd.f32 %v2389_v7, %v1212_v57  ;;  %v1536_v5 = vmax.f32 %v1408_v58, %v1440_v4 }
 0x162   : > { %v1376_v62 = vadd.f32 %v2389_v7, %v1244_v60  ;;  %v813_v63 = vpop.f32.mrf.mxu0  ;;  %v909_v0 = vpop.f32.mrf.mxu1 }
 0x163   : > { %v1472_v1 = vmax.f32 %v1344_v61, 0.0  ;;  %v1149_v2 = vmul.f32 %v2382_v59, %v813_v63  ;;  %v1181_v3 = vmul.f32 %v2382_v59, %v909_v0 }
 0x164   : > { %v1504_v6 = vmax.f32 %v1376_v62, 0.0 }
 0x165   : > { %v1281_v8 = vadd.f32 %v2389_v7, %v1149_v2  ;;  %v1313_v9 = vadd.f32 %v2389_v7, %v1181_v3 }
 0x166   : > { %v1568_v10 = vmax.f32 %v1472_v1, %v1504_v6  ;;  %v1005_v11 = vpop.f32.mrf.mxu2  ;;  %v1101_v12 = vpop.f32.mrf.mxu3 }
 0x167   : > { %v1409_v13 = vmax.f32 %v1281_v8, 0.0  ;;  %v1441_v14 = vmax.f32 %v1313_v9, 0.0  ;;  %v1213_v15 = vmul.f32 %v2382_v59, %v1005_v11  ;;  %v1245_v16 = vmul.f32 %v2382_v59, %v1101_v12 }
 0x168   : > { %v1600_v17 = vmax.f32 %v1536_v5, %v1568_v10 }
 0x169   : > { %v1345_v18 = vadd.f32 %v2389_v7, %v1213_v15  ;;  %v1377_v19 = vadd.f32 %v2389_v7, %v1245_v16  ;;  %v1537_v20 = vmax.f32 %v1409_v13, %v1441_v14 }
 0x16a   : > { %1632 = vst.msk [vmem:[%s2089_s12 + $0xc8] sm:$0xff] %vm333_vm0, %v1600_v17  ;;  %v816_v21 = vpop.f32.mrf.mxu0  ;;  %v912_v22 = vpop.f32.mrf.mxu1 }
 0x16b   : > { %v1473_v23 = vmax.f32 %v1345_v18, 0.0  ;;  %v1505_v24 = vmax.f32 %v1377_v19, 0.0  ;;  %v1150_v25 = vmul.f32 %v2382_v59, %v816_v21  ;;  %v1182_v26 = vmul.f32 %v2382_v59, %v912_v22 }
 0x16d   : > { %v1569_v27 = vmax.f32 %v1473_v23, %v1505_v24  ;;  %v1282_v28 = vadd.f32 %v2389_v7, %v1150_v25  ;;  %v1314_v29 = vadd.f32 %v2389_v7, %v1182_v26 }
 0x16e   : > { %v1008_v30 = vpop.f32.mrf.mxu2  ;;  %v1104_v31 = vpop.f32.mrf.mxu3 }
 0x16f   : > { %v1601_v32 = vmax.f32 %v1537_v20, %v1569_v27  ;;  %v1214_v33 = vmul.f32 %v2382_v59, %v1008_v30  ;;  %v1410_v34 = vmax.f32 %v1282_v28, 0.0  ;;  %v1442_v35 = vmax.f32 %v1314_v29, 0.0 }
 0x170   : > { %v1246_v36 = vmul.f32 %v2382_v59, %v1104_v31 }
 0x171   : > { %1633 = vst.msk [vmem:[%s2089_s12 + $0xd0] sm:$0xff] %vm333_vm0, %v1601_v32  ;;  %v1346_v37 = vadd.f32 %v2389_v7, %v1214_v33  ;;  %v1538_v44 = vmax.f32 %v1410_v34, %v1442_v35 }
 0x172   : > { %v1378_v38 = vadd.f32 %v2389_v7, %v1246_v36  ;;  %v819_v39 = vpop.f32.mrf.mxu0  ;;  %v915_v40 = vpop.f32.mrf.mxu1 }
 0x173   : > { %v1474_v41 = vmax.f32 %v1346_v37, 0.0  ;;  %v1151_v42 = vmul.f32 %v2382_v59, %v819_v39  ;;  %v1183_v43 = vmul.f32 %v2382_v59, %v915_v40 }
 0x174   : > { %v1506_v45 = vmax.f32 %v1378_v38, 0.0 }
 0x175   : > { %v1283_v46 = vadd.f32 %v2389_v7, %v1151_v42  ;;  %v1315_v47 = vadd.f32 %v2389_v7, %v1183_v43 }
 0x176   : > { %v1570_v48 = vmax.f32 %v1474_v41, %v1506_v45  ;;  %v1011_v49 = vpop.f32.mrf.mxu2  ;;  %v1107_v50 = vpop.f32.mrf.mxu3 }
 0x177   : > { %v1411_v51 = vmax.f32 %v1283_v46, 0.0  ;;  %v1443_v52 = vmax.f32 %v1315_v47, 0.0  ;;  %v1215_v53 = vmul.f32 %v2382_v59, %v1011_v49  ;;  %v1247_v54 = vmul.f32 %v2382_v59, %v1107_v50 }
 0x178   : > { %v1602_v55 = vmax.f32 %v1538_v44, %v1570_v48 }
 0x179   : > { %v1347_v56 = vadd.f32 %v2389_v7, %v1215_v53  ;;  %v1379_v57 = vadd.f32 %v2389_v7, %v1247_v54  ;;  %v1539_v58 = vmax.f32 %v1411_v51, %v1443_v52 }
 0x17a   : > { %1634 = vst.msk [vmem:[%s2089_s12 + $0xd8] sm:$0xff] %vm333_vm0, %v1602_v55  ;;  %v822_v4 = vpop.f32.mrf.mxu0  ;;  %v918_v60 = vpop.f32.mrf.mxu1 }
 0x17b   : > { %v1475_v61 = vmax.f32 %v1347_v56, 0.0  ;;  %v1507_v62 = vmax.f32 %v1379_v57, 0.0  ;;  %v1152_v63 = vmul.f32 %v2382_v59, %v822_v4  ;;  %v1184_v0 = vmul.f32 %v2382_v59, %v918_v60 }
 0x17d   : > { %v1571_v1 = vmax.f32 %v1475_v61, %v1507_v62  ;;  %v1284_v2 = vadd.f32 %v2389_v7, %v1152_v63  ;;  %v1316_v3 = vadd.f32 %v2389_v7, %v1184_v0 }
 0x17e   : > { %v1014_v5 = vpop.f32.mrf.mxu2  ;;  %v1110_v6 = vpop.f32.mrf.mxu3 }
 0x17f   : > { %v1603_v8 = vmax.f32 %v1539_v58, %v1571_v1  ;;  %v1216_v9 = vmul.f32 %v2382_v59, %v1014_v5  ;;  %v1412_v10 = vmax.f32 %v1284_v2, 0.0  ;;  %v1444_v11 = vmax.f32 %v1316_v3, 0.0 }
 0x180   : > { %v1248_v12 = vmul.f32 %v2382_v59, %v1110_v6 }
 0x181   : > { %1635 = vst.msk [vmem:[%s2089_s12 + $0xe0] sm:$0xff] %vm333_vm0, %v1603_v8  ;;  %v1348_v13 = vadd.f32 %v2389_v7, %v1216_v9  ;;  %v1540_v20 = vmax.f32 %v1412_v10, %v1444_v11 }
 0x182   : > { %v1380_v14 = vadd.f32 %v2389_v7, %v1248_v12  ;;  %v825_v15 = vpop.f32.mrf.mxu0  ;;  %v921_v16 = vpop.f32.mrf.mxu1 }
 0x183   : > { %v1476_v17 = vmax.f32 %v1348_v13, 0.0  ;;  %v1153_v18 = vmul.f32 %v2382_v59, %v825_v15  ;;  %v1185_v19 = vmul.f32 %v2382_v59, %v921_v16 }
 0x184   : > { %v1508_v21 = vmax.f32 %v1380_v14, 0.0 }
 0x185   : > { %v1285_v22 = vadd.f32 %v2389_v7, %v1153_v18  ;;  %v1317_v23 = vadd.f32 %v2389_v7, %v1185_v19 }
 0x186   : > { %v1572_v24 = vmax.f32 %v1476_v17, %v1508_v21  ;;  %v1017_v25 = vpop.f32.mrf.mxu2  ;;  %v1113_v26 = vpop.f32.mrf.mxu3 }
 0x187   : > { %v1413_v27 = vmax.f32 %v1285_v22, 0.0  ;;  %v1445_v28 = vmax.f32 %v1317_v23, 0.0  ;;  %v1217_v29 = vmul.f32 %v2382_v59, %v1017_v25  ;;  %v1249_v30 = vmul.f32 %v2382_v59, %v1113_v26 }
 0x188   : > { %v1604_v31 = vmax.f32 %v1540_v20, %v1572_v24 }
 0x189   : > { %v1349_v32 = vadd.f32 %v2389_v7, %v1217_v29  ;;  %v1381_v33 = vadd.f32 %v2389_v7, %v1249_v30  ;;  %v1541_v34 = vmax.f32 %v1413_v27, %v1445_v28 }
 0x18a   : > { %1636 = vst.msk [vmem:[%s2089_s12 + $0xe8] sm:$0xff] %vm333_vm0, %v1604_v31  ;;  %v828_v35 = vpop.f32.mrf.mxu0  ;;  %v924_v36 = vpop.f32.mrf.mxu1 }
 0x18b   : > { %v1477_v37 = vmax.f32 %v1349_v32, 0.0  ;;  %v1509_v38 = vmax.f32 %v1381_v33, 0.0  ;;  %v1154_v39 = vmul.f32 %v2382_v59, %v828_v35  ;;  %v1186_v40 = vmul.f32 %v2382_v59, %v924_v36 }
 0x18d   : > { %v1573_v41 = vmax.f32 %v1477_v37, %v1509_v38  ;;  %v1286_v42 = vadd.f32 %v2389_v7, %v1154_v39  ;;  %v1318_v43 = vadd.f32 %v2389_v7, %v1186_v40 }
 0x18e   : > { %v1020_v44 = vpop.f32.mrf.mxu2  ;;  %v1116_v45 = vpop.f32.mrf.mxu3 }
 0x18f   : > { %v1605_v46 = vmax.f32 %v1541_v34, %v1573_v41  ;;  %v1218_v47 = vmul.f32 %v2382_v59, %v1020_v44  ;;  %v1414_v48 = vmax.f32 %v1286_v42, 0.0  ;;  %v1446_v49 = vmax.f32 %v1318_v43, 0.0 }
 0x190   : > { %v1250_v50 = vmul.f32 %v2382_v59, %v1116_v45 }
 0x191   : > { %1637 = vst.msk [vmem:[%s2089_s12 + $0xf0] sm:$0xff] %vm333_vm0, %v1605_v46  ;;  %v1350_v51 = vadd.f32 %v2389_v7, %v1218_v47  ;;  %v1542_v54 = vmax.f32 %v1414_v48, %v1446_v49 }
 0x192   : > { %v1382_v52 = vadd.f32 %v2389_v7, %v1250_v50 }
 0x193   : > { %v1478_v53 = vmax.f32 %v1350_v51, 0.0 }
 0x194   : > { %v1510_v55 = vmax.f32 %v1382_v52, 0.0 }
 0x196   : > { %v1574_v56 = vmax.f32 %v1478_v53, %v1510_v55 }
 0x198   : > { %v1606_v57 = vmax.f32 %v1542_v54, %v1574_v56 }
 0x19a   : > { %1638 = vst.msk [vmem:[%s2089_s12 + $0xf8] sm:$0xff] %vm333_vm0, %v1606_v57 }
 0x19b PF: > { %s14_s15 = sadd.s32 1, %s1864_s15  }
 0x19c   : > { %p11_p5 = scmp.ge.s32.totalorder %s14_s15, 4  }
 0x19e   :  { %13 = sbr.rel (!%p11_p5) target bundleno = 1 (0x1), region = 66 }

// kernel: forward.4
= control target key start
LH: loop header
LB: loop body
LE: loop exit
PB: predicated region body
PF: predicated region fallthrough
CT: control target
= control target key end

     0   :  { %s1088_s15 = smov 0   ;;  %s1618_s0 = inlined_call_operand.vmem [shape: f32[512,288], index: 0, kind: input, shape index: {}]   ;;  %s1619_s1 = inlined_call_operand.vmem [shape: f32[288,64], index: 1, kind: input, shape index: {}]   ;;  %s1620_s2 = inlined_call_operand.vmem [shape: f32[1,64], index: 2, kind: input, shape index: {}]   ;;  %s1621_s3 = inlined_call_operand.vmem [shape: f32[1,64], index: 3, kind: input, shape index: {}]   ;;  %s1622_s4 = inlined_call_operand.vmem [shape: f32[128,64], index: 4, kind: output, shape index: {}]  }
   0x1 LB: > { %s965_s16 = sadd.s32 4294967295, %s1061_s15   ;;  %p969_p0 = scmp.ge.s32.totalorder %s1061_s15, 1  ;;  %s1061_s15 = sphi %s1088_s15, %s14_s15  }
   0x2   : > { %p164_p1 = scmp.lt.s32.totalorder %s1061_s15, 3 }
   0x4   : > { %p165_p2 = pnand %p969_p0, %p164_p1 }
   0x5   : > { %s970_s23 = sshll.u32 (!%p165_p2), %s965_s16, 5  ;;  %s972_s27 = sshll.u32 (!%p165_p2), %s965_s16, 3 }
   0x6   : > { %168 = sbr.rel (%p165_p2) target bundleno = 375 (0x177), region = 36  ;;  %p192_p3 = scmp.lt.s32.totalorder (!%p165_p2), %s970_s23, 63 }
   0x7   : > { %p199_p4 = scmp.lt.s32.totalorder (!%p165_p2), %s972_s27, 15 }
   0xb   : > { %v315_v0 = vld [vmem:[%s1619_s1 + $0x78] sm:$0xff]  ;;  %v314_v3 = vld [vmem:[%s1619_s1 + $0x70] sm:$0xff]  ;;  %v313_v6 = vld [vmem:[%s1619_s1 + $0x68] sm:$0xff]  ;;  %s1624_s23 = smov (!%p192_p3, %s970_s23), 63  ;;  %vm336_vm0 = vcmask 261120   ;;  %s1626_s27 = smov (!%p199_p4, %s972_s27), 15 }
   0xc   : > { %v1102_v1 = vld [vmem:[%s1619_s1 + $0xf8] sm:$0xff]  ;;  %433 = vmatpush.msra.mxu0 %v315_v0  ;;  %1008 = vmatpush.msra.mxu3 %v315_v0  ;;  %v1117_v4 = vld [vmem:[%s1619_s1 + $0xf0] sm:$0xff]  ;;  %v1132_v7 = vld [vmem:[%s1619_s1 + $0xe8] sm:$0xff]  ;;  %s1044_s18 = smul.u32 24, %s1624_s23  ;;  %s973_s16 = sshll.u32 %s1626_s27, 3  ;;  %vm900_vm1 = vcmask 523264  }
   0xd   : > { %v1107_v2 = vld [vmem:[%s1619_s1 + $0x118] sm:$0xff]  ;;  %v1122_v5 = vld [vmem:[%s1619_s1 + $0x110] sm:$0xff]  ;;  %546 = vmatpush.msra.mxu1 %v1102_v1  ;;  %v1137_v8 = vld [vmem:[%s1619_s1 + $0x108] sm:$0xff]  ;;  %s1550_s30 = scalar_lea.vmem %s1622_s4, %s973_s16 }
   0xe   : > { %671 = vmatpush.msra.mxu2 %v1107_v2  ;;  %434 = vmatpush.msra.mxu0 %v314_v3  ;;  %v312_v9 = vld [vmem:[%s1619_s1 + $0x60] sm:$0xff]  ;;  %v311_v12 = vld [vmem:[%s1619_s1 + $0x58] sm:$0xff]  ;;  %s1167_s26 = scalar_lea.vmem %s1618_s0, %s1044_s18  ;;  %v310_v15 = vld [vmem:[%s1619_s1 + $0x50] sm:$0xff] }
   0xf   : > { %1009 = vmatpush.msra.mxu3 %v314_v3  ;;  %547 = vmatpush.msra.mxu1 %v1117_v4  ;;  %v1147_v10 = vld [vmem:[%s1619_s1 + $0xe0] sm:$0xff]  ;;  %v1162_v13 = vld [vmem:[%s1619_s1 + $0xd8] sm:$0xff]  ;;  %v206_v14 = vld [vmem:[%s1167_s26 + $0x10] sm:$0xff] }
  0x10   : > { %672 = vmatpush.msra.mxu2 %v1122_v5  ;;  %435 = vmatpush.msra.mxu0 %v313_v6  ;;  %v1152_v11 = vld [vmem:[%s1619_s1 + $0x100] sm:$0xff]  ;;  %v1178_v16 = vld [vmem:[%s1619_s1 + $0xd0] sm:$0xff]  ;;  %v309_v17 = vld [vmem:[%s1619_s1 + $0x48] sm:$0xff] }
  0x11   : > { %1010 = vmatpush.msra.mxu3 %v313_v6  ;;  %548 = vmatpush.msra.mxu1 %v1132_v7  ;;  %v1188_v18 = vld [vmem:[%s1619_s1 + $0xc8] sm:$0xff]  ;;  %v308_v19 = vld [vmem:[%s1619_s1 + $0x40] sm:$0xff]  ;;  %v307_v21 = vld [vmem:[%s1619_s1 + $0x38] sm:$0xff] }
  0x12   : > { %673 = vmatpush.msra.mxu2 %v1137_v8  ;;  %436 = vmatpush.msra.mxu0 %v312_v9  ;;  %v1197_v20 = vld [vmem:[%s1619_s1 + $0xc0] sm:$0xff]  ;;  %v1206_v22 = vld [vmem:[%s1619_s1 + $0xb8] sm:$0xff]  ;;  %v209_v23 = vld [vmem:[%s1167_s26 + $0x28] sm:$0xff] }
  0x13   : > { %1011 = vmatpush.msra.mxu3 %v312_v9  ;;  %549 = vmatpush.msra.mxu1 %v1147_v10  ;;  %v306_v24 = vld [vmem:[%s1619_s1 + $0x30] sm:$0xff]  ;;  %v305_v26 = vld [vmem:[%s1619_s1 + $0x28] sm:$0xff]  ;;  %v304_v28 = vld [vmem:[%s1619_s1 + $0x20] sm:$0xff] }
  0x14   : > { %674 = vmatpush.msra.mxu2 %v1152_v11  ;;  %437 = vmatpush.msra.mxu0 %v311_v12  ;;  %v1216_v25 = vld [vmem:[%s1619_s1 + $0xb0] sm:$0xff]  ;;  %v1226_v27 = vld [vmem:[%s1619_s1 + $0xa8] sm:$0xff]  ;;  %v1235_v29 = vld [vmem:[%s1619_s1 + $0xa0] sm:$0xff] }
  0x15   : > { %1012 = vmatpush.msra.mxu3 %v311_v12  ;;  %550 = vmatpush.msra.mxu1 %v1162_v13  ;;  %v303_v30 = vld [vmem:[%s1619_s1 + $0x18] sm:$0xff]  ;;  %v212_v32 = vld [vmem:[%s1167_s26 + $0x40] sm:$0xff]  ;;  %v302_v33 = vld [vmem:[%s1619_s1 + $0x10] sm:$0xff] }
  0x16   : > { %974 = vmatmul.msk.f32.vlgmr.msra.gmra.mxu2 %vm336_vm0, %v206_v14  ;;  %438 = vmatpush.msra.mxu0 %v310_v15  ;;  %v1244_v31 = vld [vmem:[%s1619_s1 + $0x98] sm:$0xff]  ;;  %v318_v34 = vld [vmem:[%s1619_s1 + $0x90] sm:$0xff]  ;;  %v301_v35 = vld [vmem:[%s1619_s1 + $0x8] sm:$0xff] }
  0x17   : > { %1013 = vmatpush.msra.mxu3 %v310_v15  ;;  %551 = vmatpush.msra.mxu1 %v1178_v16  ;;  %v317_v36 = vld [vmem:[%s1619_s1 + $0x88] sm:$0xff]  ;;  %v300_v37 = vld [vmem:[%s1619_s1] sm:$0xff]  ;;  %v215_v42 = vld [vmem:[%s1167_s26 + $0x58] sm:$0xff] }
  0x18   : > { %439 = vmatpush.msra.mxu0 %v309_v17  ;;  %v316_v38 = vld [vmem:[%s1619_s1 + $0x80] sm:$0xff]  ;;  %v205_v41 = vld [vmem:[%s1167_s26 + $0x8] sm:$0xff]  ;;  %v207_v43 = vld [vmem:[%s1167_s26 + $0x18] sm:$0xff] }
  0x19   : > { %1014 = vmatpush.msra.mxu3 %v309_v17  ;;  %552 = vmatpush.msra.mxu1 %v1188_v18  ;;  %v204_v39 = vld [vmem:[%s1167_s26] sm:$0xff]  ;;  %v279_v44 = vld [vmem:[%s1167_s26 + $0x258] sm:$0xff]  ;;  %v218_v46 = vld [vmem:[%s1167_s26 + $0x70] sm:$0xff] }
  0x1a   : > { %440 = vmatpush.msra.mxu0 %v308_v19  ;;  %v276_v40 = vld [vmem:[%s1167_s26 + $0x240] sm:$0xff]  ;;  %v210_v47 = vld [vmem:[%s1167_s26 + $0x30] sm:$0xff]  ;;  %v211_v49 = vld [vmem:[%s1167_s26 + $0x38] sm:$0xff] }
  0x1b   : > { %1015 = vmatpush.msra.mxu3 %v308_v19  ;;  %553 = vmatpush.msra.mxu1 %v1197_v20  ;;  %v208_v45 = vld [vmem:[%s1167_s26 + $0x20] sm:$0xff]  ;;  %v282_v48 = vld [vmem:[%s1167_s26 + $0x270] sm:$0xff]  ;;  %v221_v50 = vld [vmem:[%s1167_s26 + $0x88] sm:$0xff] }
  0x1c   : > { %441 = vmatpush.msra.mxu0 %v307_v21  ;;  %v213_v51 = vld [vmem:[%s1167_s26 + $0x48] sm:$0xff]  ;;  %v214_v53 = vld [vmem:[%s1167_s26 + $0x50] sm:$0xff]  ;;  %v224_v54 = vld [vmem:[%s1167_s26 + $0xa0] sm:$0xff] }
  0x1d   : > { %1016 = vmatpush.msra.mxu3 %v307_v21  ;;  %554 = vmatpush.msra.mxu1 %v1206_v22  ;;  %v285_v52 = vld [vmem:[%s1167_s26 + $0x288] sm:$0xff]  ;;  %v216_v55 = vld [vmem:[%s1167_s26 + $0x60] sm:$0xff]  ;;  %v227_v58 = vld [vmem:[%s1167_s26 + $0xb8] sm:$0xff] }
  0x1e   : > { %975 = vmatmul.msk.f32.gmra.mxu2 %vm336_vm0, %v209_v23  ;;  %442 = vmatpush.msra.mxu0 %v306_v24  ;;  %v288_v56 = vld [vmem:[%s1167_s26 + $0x2a0] sm:$0xff]  ;;  %v217_v57 = vld [vmem:[%s1167_s26 + $0x68] sm:$0xff]  ;;  %v219_v59 = vld [vmem:[%s1167_s26 + $0x78] sm:$0xff] }
  0x1f   : > { %1017 = vmatpush.msra.mxu3 %v306_v24  ;;  %555 = vmatpush.msra.mxu1 %v1216_v25  ;;  %v291_v60 = vld [vmem:[%s1167_s26 + $0x2b8] sm:$0xff]  ;;  %v220_v61 = vld [vmem:[%s1167_s26 + $0x80] sm:$0xff]  ;;  %v230_v62 = vld [vmem:[%s1167_s26 + $0xd0] sm:$0xff] }
  0x20   : > { %443 = vmatpush.msra.mxu0 %v305_v26  ;;  %v222_v63 = vld [vmem:[%s1167_s26 + $0x90] sm:$0xff]  ;;  %v225_v3 = vld [vmem:[%s1167_s26 + $0xa8] sm:$0xff]  ;;  %v236_v6 = vld [vmem:[%s1167_s26 + $0x100] sm:$0xff] }
  0x21   : > { %1018 = vmatpush.msra.mxu3 %v305_v26  ;;  %556 = vmatpush.msra.mxu1 %v1226_v27  ;;  %v294_v0 = vld [vmem:[%s1167_s26 + $0x2d0] sm:$0xff]  ;;  %v277_v9 = vld [vmem:[%s1167_s26 + $0x248] sm:$0xff]  ;;  %v232_v12 = vld [vmem:[%s1167_s26 + $0xe0] sm:$0xff] }
  0x22   : > { %444 = vmatpush.msra.mxu0 %v304_v28  ;;  %v242_v14 = vld [vmem:[%s1167_s26 + $0x130] sm:$0xff]  ;;  %v283_v17 = vld [vmem:[%s1167_s26 + $0x278] sm:$0xff]  ;;  %v237_v19 = vld [vmem:[%s1167_s26 + $0x108] sm:$0xff] }
  0x23   : > { %1019 = vmatpush.msra.mxu3 %v304_v28  ;;  %557 = vmatpush.msra.mxu1 %v1235_v29  ;;  %v234_v15 = vld [vmem:[%s1167_s26 + $0xf0] sm:$0xff]  ;;  %v240_v23 = vld [vmem:[%s1167_s26 + $0x120] sm:$0xff]  ;;  %v241_v24 = vld [vmem:[%s1167_s26 + $0x128] sm:$0xff] }
  0x24   : > { %445 = vmatpush.msra.mxu0 %v303_v30  ;;  %v286_v21 = vld [vmem:[%s1167_s26 + $0x290] sm:$0xff]  ;;  %v251_v26 = vld [vmem:[%s1167_s26 + $0x178] sm:$0xff]  ;;  %v244_v28 = vld [vmem:[%s1167_s26 + $0x140] sm:$0xff] }
  0x25   : > { %1020 = vmatpush.msra.mxu3 %v303_v30  ;;  %558 = vmatpush.msra.mxu1 %v1244_v31  ;;  %v254_v30 = vld [vmem:[%s1167_s26 + $0x190] sm:$0xff] }
  0x26   : > { %976 = vmatmul.msk.f32.gmra.mxu2 %vm336_vm0, %v212_v32  ;;  %446 = vmatpush.msra.mxu0 %v302_v33  ;;  %v246_v32 = vld [vmem:[%s1167_s26 + $0x150] sm:$0xff] }
  0x27   : > { %1021 = vmatpush.msra.mxu3 %v302_v33  ;;  %559 = vmatpush.msra.mxu1 %v318_v34  ;;  %v247_v33 = vld [vmem:[%s1167_s26 + $0x158] sm:$0xff] }
  0x28   : > { %447 = vmatpush.msra.mxu0 %v301_v35 }
  0x29   : > { %1022 = vmatpush.msra.mxu3 %v301_v35  ;;  %560 = vmatpush.msra.mxu1 %v317_v36  ;;  %v257_v35 = vld [vmem:[%s1167_s26 + $0x1a8] sm:$0xff] }
  0x2a   : > { %448 = vmatpush.msra.mxu0 %v300_v37 }
  0x2b   : > { %1023 = vmatpush.msra.mxu3 %v300_v37  ;;  %561 = vmatpush.msra.mxu1 %v316_v38  ;;  %v249_v37 = vld [vmem:[%s1167_s26 + $0x168] sm:$0xff] }
  0x2c   : > { %449 = vmatmul.f32.vlgmr.msra.gmra.mxu0 %v204_v39  ;;  %521 = vmatmul.f32.vlgmr.msra.gmra.mxu3 %v276_v40  ;;  %v298_v39 = vld [vmem:[%s1167_s26 + $0x2f0] sm:$0xff]  ;;  %v260_v40 = vld [vmem:[%s1167_s26 + $0x1c0] sm:$0xff] }
  0x2d   : > { %562 = vmatmul.f32.vlgmr.msra.gmra.mxu1 %v205_v41  ;;  %1024 = vmatpush.msrb.mxu3 %v1102_v1  ;;  %v223_v1 = vld [vmem:[%s1167_s26 + $0x98] sm:$0xff] }
  0x2e   : > { %977 = vmatmul.msk.f32.gmra.mxu2 %vm336_vm0, %v215_v42 }
  0x2f   : > { %1025 = vmatpush.msrb.mxu3 %v1117_v4  ;;  %v297_v4 = vld [vmem:[%s1167_s26 + $0x2e8] sm:$0xff] }
  0x31   : > { %1026 = vmatpush.msrb.mxu3 %v1132_v7  ;;  %v228_v7 = vld [vmem:[%s1167_s26 + $0xc0] sm:$0xff] }
  0x33   : > { %1027 = vmatpush.msrb.mxu3 %v1147_v10  ;;  %v239_v10 = vld [vmem:[%s1167_s26 + $0x118] sm:$0xff] }
  0x34   : > { %452 = vmatmul.f32.gmra.mxu0 %v207_v43  ;;  %524 = vmatmul.f32.gmra.mxu3 %v279_v44  ;;  %v252_v43 = vld [vmem:[%s1167_s26 + $0x180] sm:$0xff] }
  0x35   : > { %565 = vmatmul.f32.gmra.mxu1 %v208_v45  ;;  %1028 = vmatpush.msrb.mxu3 %v1162_v13  ;;  %v280_v13 = vld [vmem:[%s1167_s26 + $0x260] sm:$0xff]  ;;  %v253_v45 = vld [vmem:[%s1167_s26 + $0x188] sm:$0xff] }
  0x36   : > { %978 = vmatmul.msk.f32.gmra.mxu2 %vm336_vm0, %v218_v46  ;;  %v287_v46 = vld [vmem:[%s1167_s26 + $0x298] sm:$0xff] }
  0x37   : > { %1029 = vmatpush.msrb.mxu3 %v1178_v16  ;;  %v235_v16 = vld [vmem:[%s1167_s26 + $0xf8] sm:$0xff] }
  0x39   : > { %1030 = vmatpush.msrb.mxu3 %v1188_v18  ;;  %v245_v18 = vld [vmem:[%s1167_s26 + $0x148] sm:$0xff] }
  0x3b   : > { %1031 = vmatpush.msrb.mxu3 %v1197_v20  ;;  %v238_v20 = vld [vmem:[%s1167_s26 + $0x110] sm:$0xff] }
  0x3c   : > { %455 = vmatmul.f32.gmra.mxu0 %v210_v47  ;;  %527 = vmatmul.f32.gmra.mxu3 %v282_v48  ;;  %v263_v48 = vld [vmem:[%s1167_s26 + $0x1d8] sm:$0xff] }
  0x3d   : > { %568 = vmatmul.f32.gmra.mxu1 %v211_v49  ;;  %1032 = vmatpush.msrb.mxu3 %v1206_v22  ;;  %v248_v22 = vld [vmem:[%s1167_s26 + $0x160] sm:$0xff] }
  0x3e   : > { %979 = vmatmul.msk.f32.gmra.mxu2 %vm336_vm0, %v221_v50 }
  0x3f   : > { %1033 = vmatpush.msrb.mxu3 %v1216_v25  ;;  %v289_v25 = vld [vmem:[%s1167_s26 + $0x2a8] sm:$0xff] }
  0x41   : > { %1034 = vmatpush.msrb.mxu3 %v1226_v27  ;;  %v243_v27 = vld [vmem:[%s1167_s26 + $0x138] sm:$0xff] }
  0x43   : > { %1035 = vmatpush.msrb.mxu3 %v1235_v29  ;;  %v292_v29 = vld [vmem:[%s1167_s26 + $0x2c0] sm:$0xff] }
  0x44   : > { %458 = vmatmul.f32.gmra.mxu0 %v213_v51  ;;  %530 = vmatmul.f32.gmra.mxu3 %v285_v52 }
  0x45   : > { %571 = vmatmul.f32.gmra.mxu1 %v214_v53  ;;  %1036 = vmatpush.msrb.mxu3 %v1244_v31  ;;  %v255_v53 = vld [vmem:[%s1167_s26 + $0x198] sm:$0xff] }
  0x46   : > { %980 = vmatmul.msk.f32.gmra.mxu2 %vm336_vm0, %v224_v54 }
  0x47   : > { %1037 = vmatpush.msrb.mxu3 %v318_v34  ;;  %v295_v34 = vld [vmem:[%s1167_s26 + $0x2d8] sm:$0xff] }
  0x49   : > { %1038 = vmatpush.msrb.mxu3 %v317_v36 }
  0x4b   : > { %1039 = vmatpush.msrb.mxu3 %v316_v38  ;;  %v250_v38 = vld [vmem:[%s1167_s26 + $0x170] sm:$0xff] }
  0x4c   : > { %461 = vmatmul.f32.gmra.mxu0 %v216_v55  ;;  %533 = vmatmul.f32.gmra.mxu3 %v288_v56  ;;  %v256_v55 = vld [vmem:[%s1167_s26 + $0x1a0] sm:$0xff]  ;;  %v290_v56 = vld [vmem:[%s1167_s26 + $0x2b0] sm:$0xff] }
  0x4d   : > { %574 = vmatmul.f32.gmra.mxu1 %v217_v57  ;;  %1040 = vmatpush.msra.mxu3 %v1107_v2  ;;  %v233_v2 = vld [vmem:[%s1167_s26 + $0xe8] sm:$0xff] }
  0x4e   : > { %981 = vmatmul.msk.f32.gmra.mxu2 %vm336_vm0, %v227_v58  ;;  %v266_v58 = vld [vmem:[%s1167_s26 + $0x1f0] sm:$0xff] }
  0x4f   : > { %1041 = vmatpush.msra.mxu3 %v1122_v5  ;;  %v226_v5 = vld [vmem:[%s1167_s26 + $0xb0] sm:$0xff] }
  0x51   : > { %1042 = vmatpush.msra.mxu3 %v1137_v8  ;;  %v229_v8 = vld [vmem:[%s1167_s26 + $0xc8] sm:$0xff] }
  0x53   : > { %1043 = vmatpush.msra.mxu3 %v1152_v11  ;;  %v231_v11 = vld [vmem:[%s1167_s26 + $0xd8] sm:$0xff] }
  0x54   : > { %464 = vmatmul.f32.gmra.mxu0 %v219_v59  ;;  %536 = vmatmul.f32.gmra.mxu3 %v291_v60 }
  0x55   : > { %577 = vmatmul.f32.gmra.mxu1 %v220_v61 }
  0x56   : > { %982 = vmatmul.msk.f32.gmra.mxu2 %vm336_vm0, %v230_v62 }
  0x5c   : > { %467 = vmatmul.f32.gmra.mxu0 %v222_v63  ;;  %539 = vmatmul.f32.gmra.mxu3 %v294_v0  ;;  %v258_v63 = vld [vmem:[%s1167_s26 + $0x1b0] sm:$0xff] }
  0x5d   : > { %580 = vmatmul.f32.gmra.mxu1 %v223_v1  ;;  %v259_v1 = vld [vmem:[%s1167_s26 + $0x1b8] sm:$0xff] }
  0x5e   : > { %983 = vmatmul.msk.f32.gmra.mxu2 %vm336_vm0, %v233_v2  ;;  %v293_v2 = vld [vmem:[%s1167_s26 + $0x2c8] sm:$0xff] }
  0x64   : > { %470 = vmatmul.f32.gmra.mxu0 %v225_v3  ;;  %542 = vmatmul.f32.gmra.mxu3 %v297_v4  ;;  %v269_v4 = vld [vmem:[%s1167_s26 + $0x208] sm:$0xff] }
  0x65   : > { %583 = vmatmul.f32.gmra.mxu1 %v226_v5 }
  0x66   : > { %984 = vmatmul.msk.f32.gmra.mxu2 %vm336_vm0, %v236_v6 }
  0x6c   : > { %473 = vmatmul.f32.gmra.mxu0 %v228_v7  ;;  %634 = vmatmul.f32.vlgmr.msrb.gmra.mxu3 %v277_v9  ;;  %v261_v9 = vld [vmem:[%s1167_s26 + $0x1c8] sm:$0xff] }
  0x6d   : > { %586 = vmatmul.f32.gmra.mxu1 %v229_v8 }
  0x6e   : > { %985 = vmatmul.msk.f32.gmra.mxu2 %vm336_vm0, %v239_v10 }
  0x74   : > { %476 = vmatmul.f32.gmra.mxu0 %v231_v11  ;;  %637 = vmatmul.f32.gmra.mxu3 %v280_v13  ;;  %v262_v11 = vld [vmem:[%s1167_s26 + $0x1d0] sm:$0xff] }
  0x75   : > { %589 = vmatmul.f32.gmra.mxu1 %v232_v12  ;;  %v296_v12 = vld [vmem:[%s1167_s26 + $0x2e0] sm:$0xff] }
  0x76   : > { %986 = vmatmul.msk.f32.gmra.mxu2 %vm336_vm0, %v242_v14  ;;  %v272_v14 = vld [vmem:[%s1167_s26 + $0x220] sm:$0xff] }
  0x7c   : > { %479 = vmatmul.f32.gmra.mxu0 %v234_v15  ;;  %640 = vmatmul.f32.gmra.mxu3 %v283_v17 }
  0x7d   : > { %592 = vmatmul.f32.gmra.mxu1 %v235_v16 }
  0x7e   : > { %987 = vmatmul.msk.f32.gmra.mxu2 %vm336_vm0, %v245_v18 }
  0x84   : > { %482 = vmatmul.f32.gmra.mxu0 %v237_v19  ;;  %643 = vmatmul.f32.gmra.mxu3 %v286_v21  ;;  %v264_v19 = vld [vmem:[%s1167_s26 + $0x1e0] sm:$0xff]  ;;  %v265_v21 = vld [vmem:[%s1167_s26 + $0x1e8] sm:$0xff] }
  0x85   : > { %595 = vmatmul.f32.gmra.mxu1 %v238_v20 }
  0x86   : > { %988 = vmatmul.msk.f32.gmra.mxu2 %vm336_vm0, %v248_v22  ;;  %v299_v22 = vld [vmem:[%s1167_s26 + $0x2f8] sm:$0xff] }
  0x8c   : > { %485 = vmatmul.f32.gmra.mxu0 %v240_v23  ;;  %646 = vmatmul.f32.gmra.mxu3 %v289_v25 }
  0x8d   : > { %598 = vmatmul.f32.gmra.mxu1 %v241_v24  ;;  %v275_v24 = vld [vmem:[%s1167_s26 + $0x238] sm:$0xff] }
  0x8e   : > { %989 = vmatmul.msk.f32.gmra.mxu2 %vm336_vm0, %v251_v26 }
  0x94   : > { %488 = vmatmul.f32.gmra.mxu0 %v243_v27  ;;  %649 = vmatmul.f32.gmra.mxu3 %v292_v29  ;;  %v267_v29 = vld [vmem:[%s1167_s26 + $0x1f8] sm:$0xff] }
  0x95   : > { %601 = vmatmul.f32.gmra.mxu1 %v244_v28 }
  0x96   : > { %990 = vmatmul.msk.f32.gmra.mxu2 %vm336_vm0, %v254_v30 }
  0x99   : > { %v676_v31 = vpop.f32.mrf.mxu2 }
  0x9c   : > { %491 = vmatmul.f32.gmra.mxu0 %v246_v32  ;;  %652 = vmatmul.f32.gmra.mxu3 %v295_v34 }
  0x9d   : > { %604 = vmatmul.f32.gmra.mxu1 %v247_v33  ;;  %v278_v33 = vld [vmem:[%s1167_s26 + $0x250] sm:$0xff] }
  0x9e   : > { %991 = vmatmul.msk.f32.gmra.mxu2 %vm336_vm0, %v257_v35 }
  0xa1   : > { %v679_v36 = vpop.f32.mrf.mxu2 }
  0xa4   : > { %494 = vmatmul.f32.gmra.mxu0 %v249_v37  ;;  %655 = vmatmul.f32.gmra.mxu3 %v298_v39 }
  0xa5   : > { %607 = vmatmul.f32.gmra.mxu1 %v250_v38  ;;  %v270_v38 = vld [vmem:[%s1167_s26 + $0x210] sm:$0xff] }
  0xa6   : > { %992 = vmatmul.msk.f32.gmra.mxu2 %vm336_vm0, %v260_v40  ;;  %v271_v40 = vld [vmem:[%s1167_s26 + $0x218] sm:$0xff] }
  0xa9   : > { %v682_v41 = vpop.f32.mrf.mxu2  ;;  %v450_v42 = vpop.f32.mrf.mxu0 }
  0xaa   : > { %v563_v44 = vpop.f32.mrf.mxu1 }
  0xab   : > { %v564_v47 = vadd.f32 %v563_v44, %v450_v42  ;;  %v281_v42 = vld [vmem:[%s1167_s26 + $0x268] sm:$0xff] }
  0xac   : > { %497 = vmatmul.f32.gmra.mxu0 %v252_v43  ;;  %1001 = vmatmul.msk.f32.vlgmr.msra.gmra.mxu3 %vm336_vm0, %v287_v46 }
  0xad   : > { %v1369_v49 = vadd.f32 %v676_v31, %v564_v47  ;;  %610 = vmatmul.f32.gmra.mxu1 %v253_v45  ;;  %v268_v31 = vld [vmem:[%s1167_s26 + $0x200] sm:$0xff]  ;;  %v273_v47 = vld [vmem:[%s1167_s26 + $0x228] sm:$0xff] }
  0xae   : > { %993 = vmatmul.msk.f32.gmra.mxu2 %vm336_vm0, %v263_v48 }
  0xaf   : > { %v1373_v50 = vpop.f32.mrf.mxu3 }
  0xb1   : > { %v685_v51 = vpop.f32.mrf.mxu2  ;;  %v453_v52 = vpop.f32.mrf.mxu0 }
  0xb2   : > { %v566_v54 = vpop.f32.mrf.mxu1 }
  0xb3   : > { %v567_v57 = vadd.f32 %v566_v54, %v453_v52 }
  0xb4   : > { %500 = vmatmul.f32.gmra.mxu0 %v255_v53  ;;  %1002 = vmatmul.msk.f32.gmra.mxu3 %vm336_vm0, %v290_v56  ;;  %v284_v53 = vld [vmem:[%s1167_s26 + $0x280] sm:$0xff] }
  0xb5   : > { %v1379_v59 = vadd.f32 %v679_v36, %v567_v57  ;;  %613 = vmatmul.f32.gmra.mxu1 %v256_v55  ;;  %v1440_v55 = vld [vmem:[%s1620_s2] ss:$0 sm:$0xff] }
  0xb6   : > { %994 = vmatmul.msk.f32.gmra.mxu2 %vm336_vm0, %v266_v58 }
  0xb7   : > { %v1383_v60 = vpop.f32.mrf.mxu3 }
  0xb9   : > { %v688_v61 = vpop.f32.mrf.mxu2  ;;  %v456_v62 = vpop.f32.mrf.mxu0 }
  0xba   : > { %v569_v0 = vpop.f32.mrf.mxu1 }
  0xbb   : > { %v570_v3 = vadd.f32 %v569_v0, %v456_v62  ;;  %v776_v62 = vmul.f32 %v1440_v55, %v1369_v49 }
  0xbc   : > { %503 = vmatmul.f32.gmra.mxu0 %v258_v63  ;;  %1003 = vmatmul.msk.f32.gmra.mxu3 %vm336_vm0, %v293_v2  ;;  %v1449_v63 = vld [vmem:[%s1621_s3] ss:$0 sm:$0xff] }
  0xbd   : > { %v1389_v5 = vadd.f32 %v682_v41, %v570_v3  ;;  %616 = vmatmul.f32.gmra.mxu1 %v259_v1  ;;  %v812_v2 = vadd.f32 %v1449_v63, %v776_v62 }
  0xbe   : > { %995 = vmatmul.msk.f32.gmra.mxu2 %vm336_vm0, %v269_v4 }
  0xbf   : > { %v1393_v6 = vpop.f32.mrf.mxu3 }
  0xc1   : > { %v691_v7 = vpop.f32.mrf.mxu2  ;;  %v459_v8 = vpop.f32.mrf.mxu0 }
  0xc2   : > { %v572_v10 = vpop.f32.mrf.mxu1 }
  0xc3   : > { %v573_v13 = vadd.f32 %v572_v10, %v459_v8 }
  0xc4   : > { %506 = vmatmul.f32.gmra.mxu0 %v261_v9  ;;  %1004 = vmatmul.msk.f32.gmra.mxu3 %vm336_vm0, %v296_v12  ;;  %v777_v12 = vmul.f32 %v1440_v55, %v1379_v59  ;;  %v778_v59 = vmul.f32 %v1440_v55, %v1389_v5 }
  0xc5   : > { %v1399_v15 = vadd.f32 %v685_v51, %v573_v13  ;;  %619 = vmatmul.f32.gmra.mxu1 %v262_v11  ;;  %v274_v51 = vld [vmem:[%s1167_s26 + $0x230] sm:$0xff]  ;;  %v844_v11 = vmax.f32 %v812_v2, 0.0 }
  0xc6   : > { %996 = vmatmul.msk.f32.gmra.mxu2 %vm336_vm0, %v272_v14 }
  0xc7   : > { %v1403_v16 = vpop.f32.mrf.mxu3  ;;  %v779_v5 = vmul.f32 %v1440_v55, %v1399_v15 }
  0xc9   : > { %v694_v17 = vpop.f32.mrf.mxu2  ;;  %v462_v18 = vpop.f32.mrf.mxu0 }
  0xca   : > { %v575_v20 = vpop.f32.mrf.mxu1 }
  0xcb   : > { %v576_v23 = vadd.f32 %v575_v20, %v462_v18 }
  0xcc   : > { %509 = vmatmul.f32.gmra.mxu0 %v264_v19  ;;  %1005 = vmatmul.msk.f32.gmra.mxu3 %vm336_vm0, %v299_v22  ;;  %v813_v19 = vadd.f32 %v1449_v63, %v777_v12 }
  0xcd   : > { %v1409_v25 = vadd.f32 %v688_v61, %v576_v23  ;;  %622 = vmatmul.f32.gmra.mxu1 %v265_v21 }
  0xce   : > { %997 = vmatmul.msk.f32.gmra.mxu2 %vm336_vm0, %v275_v24 }
  0xcf   : > { %v1413_v26 = vpop.f32.mrf.mxu3  ;;  %v780_v15 = vmul.f32 %v1440_v55, %v1409_v25 }
  0xd1   : > { %v697_v27 = vpop.f32.mrf.mxu2  ;;  %v465_v28 = vpop.f32.mrf.mxu0 }
  0xd2   : > { %v578_v30 = vpop.f32.mrf.mxu1 }
  0xd3   : > { %v579_v32 = vadd.f32 %v578_v30, %v465_v28  ;;  %v845_v28 = vmax.f32 %v813_v19, 0.0 }
  0xd4   : > { %512 = vmatmul.f32.gmra.mxu0 %v267_v29 }
  0xd5   : > { %v1418_v34 = vadd.f32 %v691_v7, %v579_v32  ;;  %625 = vmatmul.f32.gmra.mxu1 %v268_v31 }
  0xd6   : > { %998 = vmatmul.msk.f32.gmra.mxu2 %vm336_vm0, %v278_v33  ;;  %v814_v33 = vadd.f32 %v1449_v63, %v778_v59 }
  0xd7   : > { %v1421_v35 = vpop.f32.mrf.mxu3  ;;  %v781_v25 = vmul.f32 %v1440_v55, %v1418_v34 }
  0xd9   : > { %v700_v36 = vpop.f32.mrf.mxu2  ;;  %v468_v37 = vpop.f32.mrf.mxu0 }
  0xda   : > { %v581_v39 = vpop.f32.mrf.mxu1 }
  0xdb   : > { %v582_v41 = vadd.f32 %v581_v39, %v468_v37 }
  0xdc   : > { %515 = vmatmul.f32.gmra.mxu0 %v270_v38 }
  0xdd   : > { %v1426_v43 = vadd.f32 %v694_v17, %v582_v41  ;;  %628 = vmatmul.f32.gmra.mxu1 %v271_v40 }
  0xde   : > { %999 = vmatmul.msk.f32.gmra.mxu2 %vm336_vm0, %v281_v42  ;;  %v846_v42 = vmax.f32 %v814_v33, 0.0 }
  0xdf   : > { %v1429_v44 = vpop.f32.mrf.mxu3  ;;  %v782_v34 = vmul.f32 %v1440_v55, %v1426_v43 }
  0xe1   : > { %v703_v45 = vpop.f32.mrf.mxu2  ;;  %v471_v46 = vpop.f32.mrf.mxu0 }
  0xe2   : > { %v584_v48 = vpop.f32.mrf.mxu1 }
  0xe3   : > { %v585_v52 = vadd.f32 %v584_v48, %v471_v46 }
  0xe4   : > { %518 = vmatmul.f32.gmra.mxu0 %v273_v47 }
  0xe5   : > { %v1434_v54 = vadd.f32 %v697_v27, %v585_v52  ;;  %631 = vmatmul.f32.gmra.mxu1 %v274_v51  ;;  %v815_v51 = vadd.f32 %v1449_v63, %v779_v5 }
  0xe6   : > { %1000 = vmatmul.msk.f32.gmra.mxu2 %vm336_vm0, %v284_v53 }
  0xe7   : > { %v1442_v56 = vpop.f32.mrf.mxu3  ;;  %v847_v62 = vmax.f32 %v815_v51, 0.0  ;;  %v783_v43 = vmul.f32 %v1440_v55, %v1434_v54 }
  0xe9   : > { %v706_v57 = vpop.f32.mrf.mxu2  ;;  %v474_v58 = vpop.f32.mrf.mxu0 }
  0xea   : > { %v587_v61 = vpop.f32.mrf.mxu1 }
  0xeb   : > { %v588_v0 = vadd.f32 %v587_v61, %v474_v58 }
  0xed   : > { %v701_v1 = vadd.f32 %v700_v36, %v588_v0 }
  0xef   : > { %v784_v3 = vmul.f32 %v1440_v55, %v701_v1  ;;  %v635_v4 = vpop.f32.mrf.mxu3 }
  0xf0   : > { %v1455_v8 = vadd.f32 %v635_v4, %v1373_v50  ;;  %v816_v4 = vadd.f32 %v1449_v63, %v780_v15 }
  0xf1   : > { %v820_v7 = vadd.f32 %v1449_v63, %v784_v3  ;;  %v709_v9 = vpop.f32.mrf.mxu2  ;;  %v477_v10 = vpop.f32.mrf.mxu0 }
  0xf2   : > { %v590_v49 = vpop.f32.mrf.mxu1 }
  0xf3   : > { %v852_v13 = vmax.f32 %v820_v7, 0.0  ;;  %v591_v14 = vadd.f32 %v590_v49, %v477_v10 }
  0xf5   : > { %v1459_v17 = vmax.f32 %v844_v11, %v852_v13  ;;  %v704_v18 = vadd.f32 %v703_v45, %v591_v14  ;;  %v848_v13 = vmax.f32 %v816_v4, 0.0 }
  0xf7   : > { %v785_v20 = vmul.f32 %v1440_v55, %v704_v18  ;;  %v638_v21 = vpop.f32.mrf.mxu3 }
  0xf8   : > { %v1465_v22 = vadd.f32 %v638_v21, %v1383_v60  ;;  %v817_v21 = vadd.f32 %v1449_v63, %v781_v25 }
  0xf9   : > { %v821_v50 = vadd.f32 %v1449_v63, %v785_v20  ;;  %v712_v23 = vpop.f32.mrf.mxu2  ;;  %v480_v24 = vpop.f32.mrf.mxu0 }
  0xfa   : > { %v593_v27 = vpop.f32.mrf.mxu1 }
  0xfb   : > { %v853_v29 = vmax.f32 %v821_v50, 0.0  ;;  %v594_v30 = vadd.f32 %v593_v27, %v480_v24 }
  0xfd   : > { %v1469_v31 = vmax.f32 %v845_v28, %v853_v29  ;;  %v707_v32 = vadd.f32 %v706_v57, %v594_v30  ;;  %v849_v29 = vmax.f32 %v817_v21, 0.0 }
  0xff   : > { %v786_v36 = vmul.f32 %v1440_v55, %v707_v32  ;;  %v641_v37 = vpop.f32.mrf.mxu3 }
 0x100   : > { %v1475_v38 = vadd.f32 %v641_v37, %v1393_v6  ;;  %v818_v37 = vadd.f32 %v1449_v63, %v782_v34 }
 0x101   : > { %v822_v60 = vadd.f32 %v1449_v63, %v786_v36  ;;  %v715_v39 = vpop.f32.mrf.mxu2  ;;  %v483_v40 = vpop.f32.mrf.mxu0 }
 0x102   : > { %v596_v41 = vpop.f32.mrf.mxu1 }
 0x103   : > { %v854_v45 = vmax.f32 %v822_v60, 0.0  ;;  %v597_v46 = vadd.f32 %v596_v41, %v483_v40 }
 0x105   : > { %v1479_v47 = vmax.f32 %v846_v42, %v854_v45  ;;  %v710_v48 = vadd.f32 %v709_v9, %v597_v46  ;;  %v850_v45 = vmax.f32 %v818_v37, 0.0 }
 0x107   : > { %v787_v52 = vmul.f32 %v1440_v55, %v710_v48  ;;  %v1483_v53 = vpop.f32.mrf.mxu3 }
 0x108   : > { %v645_v25 = vadd.f32 %v1483_v53, %v1403_v16 }
 0x109   : > { %v823_v6 = vadd.f32 %v1449_v63, %v787_v52  ;;  %v718_v57 = vpop.f32.mrf.mxu2  ;;  %v486_v58 = vpop.f32.mrf.mxu0 }
 0x10a   : > { %v599_v61 = vpop.f32.mrf.mxu1 }
 0x10b   : > { %v855_v0 = vmax.f32 %v823_v6, 0.0  ;;  %v600_v1 = vadd.f32 %v599_v61, %v486_v58  ;;  %v819_v6 = vadd.f32 %v1449_v63, %v783_v43 }
 0x10d   : > { %v1488_v2 = vmax.f32 %v847_v62, %v855_v0  ;;  %v713_v3 = vadd.f32 %v712_v23, %v600_v1  ;;  %v851_v1 = vmax.f32 %v819_v6, 0.0 }
 0x10f   : > { %v788_v7 = vmul.f32 %v1440_v55, %v713_v3  ;;  %v1492_v9 = vpop.f32.mrf.mxu3 }
 0x111   : > { %v824_v10 = vadd.f32 %v1449_v63, %v788_v7  ;;  %v721_v49 = vpop.f32.mrf.mxu2  ;;  %v489_v11 = vpop.f32.mrf.mxu0 }
 0x112   : > { %v602_v12 = vpop.f32.mrf.mxu1 }
 0x113   : > { %v856_v14 = vmax.f32 %v824_v10, 0.0  ;;  %v603_v18 = vadd.f32 %v602_v12, %v489_v11 }
 0x115   : > { %v1497_v19 = vmax.f32 %v848_v13, %v856_v14  ;;  %v716_v20 = vadd.f32 %v715_v39, %v603_v18 }
 0x117   : > { %v789_v50 = vmul.f32 %v1440_v55, %v716_v20  ;;  %v1501_v23 = vpop.f32.mrf.mxu3 }
 0x119   : > { %v825_v24 = vadd.f32 %v1449_v63, %v789_v50  ;;  %v1504_v27 = vpop.f32.mrf.mxu2  ;;  %v492_v28 = vpop.f32.mrf.mxu0 }
 0x11a   : > { %v605_v59 = vpop.f32.mrf.mxu1 }
 0x11b   : > { %v857_v30 = vmax.f32 %v825_v24, 0.0  ;;  %v606_v32 = vadd.f32 %v605_v59, %v492_v28  ;;  %v648_v59 = vadd.f32 %v1492_v9, %v1413_v26  ;;  %v651_v26 = vadd.f32 %v1501_v23, %v1421_v35 }
 0x11d   : > { %v1508_v33 = vmax.f32 %v849_v29, %v857_v30  ;;  %v719_v36 = vadd.f32 %v718_v57, %v606_v32 }
 0x11f   : > { %v790_v60 = vmul.f32 %v1440_v55, %v719_v36  ;;  %v1512_v39 = vpop.f32.mrf.mxu3 }
 0x121   : > { %v826_v40 = vadd.f32 %v1449_v63, %v790_v60  ;;  %v1515_v41 = vpop.f32.mrf.mxu2  ;;  %v495_v42 = vpop.f32.mrf.mxu0 }
 0x122   : > { %v608_v5 = vpop.f32.mrf.mxu1 }
 0x123   : > { %v858_v46 = vmax.f32 %v826_v40, 0.0  ;;  %v609_v48 = vadd.f32 %v608_v5, %v495_v42 }
 0x125   : > { %v1519_v51 = vmax.f32 %v850_v45, %v858_v46  ;;  %v722_v52 = vadd.f32 %v721_v49, %v609_v48 }
 0x127   : > { %v791_v57 = vmul.f32 %v1440_v55, %v722_v52  ;;  %v1526_v15 = vpop.f32.mrf.mxu3 }
 0x129   : > { %v827_v58 = vadd.f32 %v1449_v63, %v791_v57  ;;  %v1524_v61 = vpop.f32.mrf.mxu2  ;;  %v498_v62 = vpop.f32.mrf.mxu0 }
 0x12a   : > { %v611_v0 = vpop.f32.mrf.mxu1 }
 0x12b   : > { %v859_v54 = vmax.f32 %v827_v58, 0.0  ;;  %v612_v57 = vadd.f32 %v611_v0, %v498_v62 }
 0x12d   : > { %v1528_v3 = vmax.f32 %v851_v1, %v859_v54 }
 0x12f   : > { %v757_v49 = vpop.f32.mrf.mxu3 }
 0x130   : > { %v758_v18 = vadd.f32 %v757_v49, %v645_v25 }
 0x131   : > { %v733_v4 = vpop.f32.mrf.mxu2  ;;  %v501_v7 = vpop.f32.mrf.mxu0 }
 0x132   : > { %v614_v10 = vpop.f32.mrf.mxu1  ;;  %v803_v24 = vmul.f32 %v1440_v55, %v758_v18 }
 0x134   : > { %v839_v34 = vadd.f32 %v1449_v63, %v803_v24 }
 0x136   : > { %v871_v40 = vmax.f32 %v839_v34, 0.0 }
 0x137   : > { %v760_v14 = vpop.f32.mrf.mxu3 }
 0x138   : > { %v761_v30 = vadd.f32 %v760_v14, %v648_v59  ;;  %v725_v14 = vadd.f32 %v1504_v27, %v612_v57  ;;  %v615_v59 = vadd.f32 %v614_v10, %v501_v7 }
 0x139   : > { %v736_v11 = vpop.f32.mrf.mxu2  ;;  %v1530_v12 = vpop.f32.mrf.mxu0 }
 0x13a   : > { %v1532_v13 = vpop.f32.mrf.mxu1  ;;  %v804_v42 = vmul.f32 %v1440_v55, %v761_v30 }
 0x13c   : > { %v840_v46 = vadd.f32 %v1449_v63, %v804_v42 }
 0x13f   : > { %v763_v53 = vpop.f32.mrf.mxu3 }
 0x140   : > { %v764_v48 = vadd.f32 %v763_v53, %v651_v26 }
 0x141   : > { %v739_v20 = vpop.f32.mrf.mxu2  ;;  %v507_v21 = vpop.f32.mrf.mxu0 }
 0x142   : > { %v620_v50 = vpop.f32.mrf.mxu1  ;;  %v805_v49 = vmul.f32 %v1440_v55, %v764_v48 }
 0x143   : > { %v621_v28 = vadd.f32 %v620_v50, %v507_v21 }
 0x144   : > { %v841_v18 = vadd.f32 %v1449_v63, %v805_v49 }
 0x145   : > { %v734_v29 = vadd.f32 %v733_v4, %v621_v28  ;;  %v872_v4 = vmax.f32 %v840_v46, 0.0  ;;  %v792_v28 = vmul.f32 %v1440_v55, %v725_v14 }
 0x147   : > { %v795_v16 = vmul.f32 %v1440_v55, %v734_v29  ;;  %v766_v1 = vpop.f32.mrf.mxu3 }
 0x149   : > { %v831_v32 = vadd.f32 %v1449_v63, %v795_v16  ;;  %v742_v36 = vpop.f32.mrf.mxu2  ;;  %v510_v37 = vpop.f32.mrf.mxu0 }
 0x14a   : > { %v623_v60 = vpop.f32.mrf.mxu1 }
 0x14b   : > { %v863_v5 = vmax.f32 %v831_v32, 0.0  ;;  %v624_v45 = vadd.f32 %v623_v60, %v510_v37  ;;  %v728_v32 = vadd.f32 %v1515_v41, %v615_v59  ;;  %v657_v37 = vadd.f32 %v1526_v15, %v1442_v56 }
 0x14d   : > { %v887_v9 = vmax.f32 %v863_v5, %v871_v40  ;;  %v737_v43 = vadd.f32 %v736_v11, %v624_v45  ;;  %v793_v41 = vmul.f32 %v1440_v55, %v728_v32 }
 0x14f   : > { %v895_v52 = vmax.f32 %v1488_v2, %v887_v9  ;;  %v796_v6 = vmul.f32 %v1440_v55, %v737_v43  ;;  %v654_v2 = vadd.f32 %v1512_v39, %v1429_v44  ;;  %v769_v7 = vpop.f32.mrf.mxu3  ;;  %v618_v43 = vadd.f32 %v1532_v13, %v1530_v12 }
 0x150   : > { %v770_v5 = vadd.f32 %v769_v7, %v657_v37  ;;  %v829_v12 = vadd.f32 %v1449_v63, %v793_v41 }
 0x151   : > { %904 = vst.msk [vmem:[%s1550_s30 + $0x18] sm:$0xff] %vm900_vm1, %v895_v52  ;;  %v832_v35 = vadd.f32 %v1449_v63, %v796_v6  ;;  %v745_v23 = vpop.f32.mrf.mxu2  ;;  %v513_v58 = vpop.f32.mrf.mxu0  ;;  %v767_v21 = vadd.f32 %v766_v1, %v654_v2  ;;  %v731_v13 = vadd.f32 %v1524_v61, %v618_v43 }
 0x152   : > { %v626_v54 = vpop.f32.mrf.mxu1  ;;  %v807_v57 = vmul.f32 %v1440_v55, %v770_v5  ;;  %v861_v2 = vmax.f32 %v829_v12, 0.0 }
 0x153   : > { %v864_v11 = vmax.f32 %v832_v35, 0.0  ;;  %v627_v25 = vadd.f32 %v626_v54, %v513_v58  ;;  %v806_v30 = vmul.f32 %v1440_v55, %v767_v21  ;;  %v794_v61 = vmul.f32 %v1440_v55, %v731_v13 }
 0x155   : > { %v888_v62 = vmax.f32 %v864_v11, %v872_v4  ;;  %v740_v0 = vadd.f32 %v739_v20, %v627_v25  ;;  %v873_v20 = vmax.f32 %v841_v18, 0.0  ;;  %v842_v42 = vadd.f32 %v1449_v63, %v806_v30 }
 0x156   : > { %v843_v11 = vadd.f32 %v1449_v63, %v807_v57 }
 0x157   : > { %v896_v50 = vmax.f32 %v1497_v19, %v888_v62  ;;  %v797_v24 = vmul.f32 %v1440_v55, %v740_v0  ;;  %v828_v19 = vadd.f32 %v1449_v63, %v792_v28  ;;  %v874_v6 = vmax.f32 %v842_v42, 0.0 }
 0x158   : > { %v875_v21 = vmax.f32 %v843_v11, 0.0 }
 0x159   : > { %905 = vst.msk [vmem:[%s1550_s30 + $0x20] sm:$0xff] %vm900_vm1, %v896_v50  ;;  %v833_v29 = vadd.f32 %v1449_v63, %v797_v24  ;;  %v748_v27 = vpop.f32.mrf.mxu2  ;;  %v516_v34 = vpop.f32.mrf.mxu0  ;;  %v860_v9 = vmax.f32 %v828_v19, 0.0 }
 0x15a   : > { %v749_v44 = vadd.f32 %v748_v27, %v1455_v8  ;;  %v629_v39 = vpop.f32.mrf.mxu1 }
 0x15b   : > { %v865_v16 = vmax.f32 %v833_v29, 0.0  ;;  %v630_v53 = vadd.f32 %v629_v39, %v516_v34 }
 0x15c   : > { %v800_v10 = vmul.f32 %v1440_v55, %v749_v44 }
 0x15d   : > { %v889_v60 = vmax.f32 %v865_v16, %v873_v20  ;;  %v743_v40 = vadd.f32 %v742_v36, %v630_v53 }
 0x15e   : > { %v836_v8 = vadd.f32 %v1449_v63, %v800_v10 }
 0x15f   : > { %v897_v45 = vmax.f32 %v1508_v33, %v889_v60  ;;  %v798_v26 = vmul.f32 %v1440_v55, %v743_v40 }
 0x160   : > { %v868_v46 = vmax.f32 %v836_v8, 0.0 }
 0x161   : > { %906 = vst.msk [vmem:[%s1550_s30 + $0x28] sm:$0xff] %vm900_vm1, %v897_v45  ;;  %v834_v56 = vadd.f32 %v1449_v63, %v798_v26  ;;  %v751_v15 = vpop.f32.mrf.mxu2  ;;  %v519_v36 = vpop.f32.mrf.mxu0 }
 0x162   : > { %v884_v48 = vmax.f32 %v860_v9, %v868_v46  ;;  %v752_v52 = vadd.f32 %v751_v15, %v1465_v22  ;;  %v632_v33 = vpop.f32.mrf.mxu1 }
 0x163   : > { %v866_v35 = vmax.f32 %v834_v56, 0.0  ;;  %v633_v58 = vadd.f32 %v632_v33, %v519_v36 }
 0x164   : > { %v892_v1 = vmax.f32 %v1459_v17, %v884_v48  ;;  %v801_v54 = vmul.f32 %v1440_v55, %v752_v52 }
 0x165   : > { %v890_v4 = vmax.f32 %v866_v35, %v874_v6  ;;  %v746_v49 = vadd.f32 %v745_v23, %v633_v58 }
 0x166   : > { %901 = vst.msk [vmem:[%s1550_s30] sm:$0xff] %vm900_vm1, %v892_v1  ;;  %v837_v22 = vadd.f32 %v1449_v63, %v801_v54 }
 0x167   : > { %v898_v25 = vmax.f32 %v1519_v51, %v890_v4  ;;  %v799_v14 = vmul.f32 %v1440_v55, %v746_v49  ;;  %v830_v51 = vadd.f32 %v1449_v63, %v794_v61 }
 0x168   : > { %v869_v62 = vmax.f32 %v837_v22, 0.0 }
 0x169   : > { %907 = vst.msk [vmem:[%s1550_s30 + $0x30] sm:$0xff] %vm900_vm1, %v898_v25  ;;  %v835_v17 = vadd.f32 %v1449_v63, %v799_v14  ;;  %v754_v23 = vpop.f32.mrf.mxu2  ;;  %v862_v34 = vmax.f32 %v830_v51, 0.0 }
 0x16a   : > { %v885_v0 = vmax.f32 %v861_v2, %v869_v62  ;;  %v755_v18 = vadd.f32 %v754_v23, %v1475_v38 }
 0x16b   : > { %v867_v50 = vmax.f32 %v835_v17, 0.0 }
 0x16c   : > { %v893_v24 = vmax.f32 %v1469_v31, %v885_v0  ;;  %v802_v28 = vmul.f32 %v1440_v55, %v755_v18 }
 0x16d   : > { %v891_v59 = vmax.f32 %v867_v50, %v875_v21 }
 0x16e   : > { %902 = vst.msk [vmem:[%s1550_s30 + $0x8] sm:$0xff] %vm900_vm1, %v893_v24  ;;  %v838_v29 = vadd.f32 %v1449_v63, %v802_v28 }
 0x16f   : > { %v899_v27 = vmax.f32 %v1528_v3, %v891_v59 }
 0x170   : > { %v870_v44 = vmax.f32 %v838_v29, 0.0 }
 0x171   : > { %908 = vst.msk [vmem:[%s1550_s30 + $0x38] sm:$0xff] %vm900_vm1, %v899_v27 }
 0x172   : > { %v886_v38 = vmax.f32 %v862_v34, %v870_v44 }
 0x174   : > { %v894_v39 = vmax.f32 %v1479_v47, %v886_v38 }
 0x176   : > { %903 = vst.msk [vmem:[%s1550_s30 + $0x10] sm:$0xff] %vm900_vm1, %v894_v39 }
 0x177 PF: > { %s14_s15 = sadd.s32 1, %s1061_s15  }
 0x178   : > { %p11_p5 = scmp.ge.s32.totalorder %s14_s15, 4  }
 0x17a   :  { %13 = sbr.rel (!%p11_p5) target bundleno = 1 (0x1), region = 66 }

// kernel: forward.5
= control target key start
LH: loop header
LB: loop body
LE: loop exit
PB: predicated region body
PF: predicated region fallthrough
CT: control target
= control target key end

     0   :  { %s20441_s0 = inlined_call_operand.vmem [shape: f32[2,4096], index: 0, kind: input, shape index: {}]   ;;  %s20442_s1 = inlined_call_operand.vmem [shape: bf16[4096,512], index: 1, kind: input, shape index: {}]   ;;  %s20443_s2 = inlined_call_operand.vmem [shape: f32[1,512], index: 2, kind: input, shape index: {}]   ;;  %s20444_s3 = inlined_call_operand.vmem [shape: f32[1,512], index: 3, kind: input, shape index: {}]   ;;  %s20445_s4 = inlined_call_operand.vmem [shape: bf16[512,128], index: 4, kind: input, shape index: {}]   ;;  %s20446_s5 = inlined_call_operand.vmem [shape: f32[1,128], index: 5, kind: input, shape index: {}]   ;;  %s20447_s6 = inlined_call_operand.vmem [shape: f32[1,128], index: 6, kind: input, shape index: {}]   ;;  %s20448_s7 = inlined_call_operand.vmem [shape: bf16[128,10], index: 7, kind: input, shape index: {}]   ;;  %s20449_s8 = inlined_call_operand.vmem [shape: f32[1,10], index: 8, kind: input, shape index: {}]   ;;  %s20450_s9 = inlined_call_operand.hbm [shape: f32[2,10], index: 9, kind: output, shape index: {}]  }
   0x1   :  { %v8531_v0 = vld [vmem:[%s20442_s1 + $0xe0] sm:$0xf]  ;;  %v12703_v1 = vld [vmem:[%s20442_s1 + $0xec] sm:$0xf0] }
   0x2   :  { %v8659_v2 = vld [vmem:[%s20442_s1 + $0x1e0] sm:$0xf]  ;;  %v8532_v3 = vor.u32 %v12703_v1, %v8531_v0  ;;  %v12735_v4 = vld [vmem:[%s20442_s1 + $0x1ec] sm:$0xf0] }
   0x3   :  { %v8787_v5 = vld [vmem:[%s20442_s1 + $0x2e0] sm:$0xf]  ;;  %v12767_v6 = vld [vmem:[%s20442_s1 + $0x2ec] sm:$0xf0]  ;;  %v8660_v7 = vor.u32 %v12735_v4, %v8659_v2 }
   0x4   :  { %v8788_v8 = vor.u32 %v12767_v6, %v8787_v5  ;;  %v8915_v9 = vld [vmem:[%s20442_s1 + $0x3e0] sm:$0xf]  ;;  %v12799_v10 = vld [vmem:[%s20442_s1 + $0x3ec] sm:$0xf0]  ;;  %6298 = vmatpush.bf16.msra.mxu0 %v8532_v3 }
   0x5   :  { %v8515_v11 = vld [vmem:[%s20442_s1 + $0xc0] sm:$0xf]  ;;  %v8916_v12 = vor.u32 %v12799_v10, %v8915_v9  ;;  %v12699_v13 = vld [vmem:[%s20442_s1 + $0xcc] sm:$0xf0]  ;;  %6311 = vmatpush.bf16.msra.mxu1 %v8660_v7 }
   0x6   :  { %v8643_v14 = vld [vmem:[%s20442_s1 + $0x1c0] sm:$0xf]  ;;  %v12731_v15 = vld [vmem:[%s20442_s1 + $0x1cc] sm:$0xf0]  ;;  %6324 = vmatpush.bf16.msra.mxu2 %v8788_v8  ;;  %v8516_v16 = vor.u32 %v12699_v13, %v8515_v11 }
   0x7   :  { %v8644_v17 = vor.u32 %v12731_v15, %v8643_v14  ;;  %v8771_v18 = vld [vmem:[%s20442_s1 + $0x2c0] sm:$0xf]  ;;  %v12763_v19 = vld [vmem:[%s20442_s1 + $0x2cc] sm:$0xf0]  ;;  %6337 = vmatpush.bf16.msra.mxu3 %v8916_v12 }
   0x8   :  { %v8899_v20 = vld [vmem:[%s20442_s1 + $0x3c0] sm:$0xf]  ;;  %v8772_v21 = vor.u32 %v12763_v19, %v8771_v18  ;;  %v12795_v22 = vld [vmem:[%s20442_s1 + $0x3cc] sm:$0xf0]  ;;  %6299 = vmatpush.bf16.msra.mxu0 %v8516_v16 }
   0x9   :  { %v8499_v23 = vld [vmem:[%s20442_s1 + $0xa0] sm:$0xf]  ;;  %v12695_v24 = vld [vmem:[%s20442_s1 + $0xac] sm:$0xf0]  ;;  %v8900_v25 = vor.u32 %v12795_v22, %v8899_v20  ;;  %6312 = vmatpush.bf16.msra.mxu1 %v8644_v17 }
   0xa   :  { %v8627_v26 = vld [vmem:[%s20442_s1 + $0x1a0] sm:$0xf]  ;;  %v12727_v27 = vld [vmem:[%s20442_s1 + $0x1ac] sm:$0xf0]  ;;  %v8500_v29 = vor.u32 %v12695_v24, %v8499_v23  ;;  %6325 = vmatpush.bf16.msra.mxu2 %v8772_v21 }
   0xb   :  { %v8755_v28 = vld [vmem:[%s20442_s1 + $0x2a0] sm:$0xf]  ;;  %v12759_v30 = vld [vmem:[%s20442_s1 + $0x2ac] sm:$0xf0]  ;;  %v8628_v33 = vor.u32 %v12727_v27, %v8627_v26  ;;  %6338 = vmatpush.bf16.msra.mxu3 %v8900_v25 }
   0xc   :  { %v8883_v31 = vld [vmem:[%s20442_s1 + $0x3a0] sm:$0xf]  ;;  %v12791_v32 = vld [vmem:[%s20442_s1 + $0x3ac] sm:$0xf0]  ;;  %v8756_v34 = vor.u32 %v12759_v30, %v8755_v28  ;;  %6300 = vmatpush.bf16.msra.mxu0 %v8500_v29 }
   0xd   :  { %v8483_v35 = vld [vmem:[%s20442_s1 + $0x80] sm:$0xf]  ;;  %v12691_v36 = vld [vmem:[%s20442_s1 + $0x8c] sm:$0xf0]  ;;  %v8884_v38 = vor.u32 %v12791_v32, %v8883_v31  ;;  %6313 = vmatpush.bf16.msra.mxu1 %v8628_v33 }
   0xe   :  { %v8611_v37 = vld [vmem:[%s20442_s1 + $0x180] sm:$0xf]  ;;  %v12723_v39 = vld [vmem:[%s20442_s1 + $0x18c] sm:$0xf0]  ;;  %v8484_v44 = vor.u32 %v12691_v36, %v8483_v35  ;;  %6326 = vmatpush.bf16.msra.mxu2 %v8756_v34 }
   0xf   :  { %v8739_v40 = vld [vmem:[%s20442_s1 + $0x280] sm:$0xf]  ;;  %v12755_v41 = vld [vmem:[%s20442_s1 + $0x28c] sm:$0xf0]  ;;  %v8612_v45 = vor.u32 %v12723_v39, %v8611_v37  ;;  %6339 = vmatpush.bf16.msra.mxu3 %v8884_v38 }
  0x10   :  { %v8867_v42 = vld [vmem:[%s20442_s1 + $0x380] sm:$0xf]  ;;  %v12787_v43 = vld [vmem:[%s20442_s1 + $0x38c] sm:$0xf0]  ;;  %v8740_v46 = vor.u32 %v12755_v41, %v8739_v40  ;;  %6301 = vmatpush.bf16.msra.mxu0 %v8484_v44 }
  0x11   :  { %v8467_v47 = vld [vmem:[%s20442_s1 + $0x60] sm:$0xf]  ;;  %v12687_v48 = vld [vmem:[%s20442_s1 + $0x6c] sm:$0xf0]  ;;  %v8868_v50 = vor.u32 %v12787_v43, %v8867_v42  ;;  %6314 = vmatpush.bf16.msra.mxu1 %v8612_v45 }
  0x12   :  { %v8595_v49 = vld [vmem:[%s20442_s1 + $0x160] sm:$0xf]  ;;  %v12719_v51 = vld [vmem:[%s20442_s1 + $0x16c] sm:$0xf0]  ;;  %v8468_v56 = vor.u32 %v12687_v48, %v8467_v47  ;;  %6327 = vmatpush.bf16.msra.mxu2 %v8740_v46 }
  0x13   :  { %v8723_v52 = vld [vmem:[%s20442_s1 + $0x260] sm:$0xf]  ;;  %v12751_v53 = vld [vmem:[%s20442_s1 + $0x26c] sm:$0xf0]  ;;  %v8596_v57 = vor.u32 %v12719_v51, %v8595_v49  ;;  %6340 = vmatpush.bf16.msra.mxu3 %v8868_v50 }
  0x14   :  { %v8851_v54 = vld [vmem:[%s20442_s1 + $0x360] sm:$0xf]  ;;  %v12783_v55 = vld [vmem:[%s20442_s1 + $0x36c] sm:$0xf0]  ;;  %v8724_v58 = vor.u32 %v12751_v53, %v8723_v52  ;;  %6302 = vmatpush.bf16.msra.mxu0 %v8468_v56 }
  0x15   :  { %v8451_v59 = vld [vmem:[%s20442_s1 + $0x40] sm:$0xf]  ;;  %v12683_v60 = vld [vmem:[%s20442_s1 + $0x4c] sm:$0xf0]  ;;  %v8852_v62 = vor.u32 %v12783_v55, %v8851_v54  ;;  %6315 = vmatpush.bf16.msra.mxu1 %v8596_v57 }
  0x16   :  { %v8579_v61 = vld [vmem:[%s20442_s1 + $0x140] sm:$0xf]  ;;  %v12715_v63 = vld [vmem:[%s20442_s1 + $0x14c] sm:$0xf0]  ;;  %v8452_v4 = vor.u32 %v12683_v60, %v8451_v59  ;;  %6328 = vmatpush.bf16.msra.mxu2 %v8724_v58 }
  0x17   :  { %v8707_v0 = vld [vmem:[%s20442_s1 + $0x240] sm:$0xf]  ;;  %v12747_v1 = vld [vmem:[%s20442_s1 + $0x24c] sm:$0xf0]  ;;  %v8580_v5 = vor.u32 %v12715_v63, %v8579_v61  ;;  %6341 = vmatpush.bf16.msra.mxu3 %v8852_v62 }
  0x18   :  { %v8835_v2 = vld [vmem:[%s20442_s1 + $0x340] sm:$0xf]  ;;  %v12779_v3 = vld [vmem:[%s20442_s1 + $0x34c] sm:$0xf0]  ;;  %v8708_v6 = vor.u32 %v12747_v1, %v8707_v0  ;;  %6303 = vmatpush.bf16.msra.mxu0 %v8452_v4 }
  0x19   :  { %v8435_v7 = vld [vmem:[%s20442_s1 + $0x20] sm:$0xf]  ;;  %v12679_v8 = vld [vmem:[%s20442_s1 + $0x2c] sm:$0xf0]  ;;  %v8836_v10 = vor.u32 %v12779_v3, %v8835_v2  ;;  %6316 = vmatpush.bf16.msra.mxu1 %v8580_v5 }
  0x1a   :  { %v8563_v9 = vld [vmem:[%s20442_s1 + $0x120] sm:$0xf]  ;;  %v12711_v11 = vld [vmem:[%s20442_s1 + $0x12c] sm:$0xf0]  ;;  %v8436_v16 = vor.u32 %v12679_v8, %v8435_v7  ;;  %6329 = vmatpush.bf16.msra.mxu2 %v8708_v6 }
  0x1b   :  { %v8691_v12 = vld [vmem:[%s20442_s1 + $0x220] sm:$0xf]  ;;  %v12743_v13 = vld [vmem:[%s20442_s1 + $0x22c] sm:$0xf0]  ;;  %v8564_v19 = vor.u32 %v12711_v11, %v8563_v9  ;;  %6342 = vmatpush.bf16.msra.mxu3 %v8836_v10 }
  0x1c   :  { %v8819_v14 = vld [vmem:[%s20442_s1 + $0x320] sm:$0xf]  ;;  %v12775_v15 = vld [vmem:[%s20442_s1 + $0x32c] sm:$0xf0]  ;;  %v8692_v20 = vor.u32 %v12743_v13, %v8691_v12  ;;  %6304 = vmatpush.bf16.msra.mxu0 %v8436_v16 }
  0x1d   :  { %v8419_v17 = vld [vmem:[%s20442_s1] sm:$0xf]  ;;  %v12675_v18 = vld [vmem:[%s20442_s1 + $0xc] sm:$0xf0]  ;;  %v8820_v24 = vor.u32 %v12775_v15, %v8819_v14  ;;  %6317 = vmatpush.bf16.msra.mxu1 %v8564_v19 }
  0x1e   :  { %v8547_v21 = vld [vmem:[%s20442_s1 + $0x100] sm:$0xf]  ;;  %v12707_v22 = vld [vmem:[%s20442_s1 + $0x10c] sm:$0xf0]  ;;  %v8420_v31 = vor.u32 %v12675_v18, %v8419_v17  ;;  %6330 = vmatpush.bf16.msra.mxu2 %v8692_v20 }
  0x1f   :  { %v8675_v23 = vld [vmem:[%s20442_s1 + $0x200] sm:$0xf]  ;;  %v12739_v25 = vld [vmem:[%s20442_s1 + $0x20c] sm:$0xf0]  ;;  %v8548_v35 = vor.u32 %v12707_v22, %v8547_v21  ;;  %6343 = vmatpush.bf16.msra.mxu3 %v8820_v24 }
  0x20   :  { %v8803_v26 = vld [vmem:[%s20442_s1 + $0x300] sm:$0xf]  ;;  %v12771_v27 = vld [vmem:[%s20442_s1 + $0x30c] sm:$0xf0]  ;;  %v8676_v36 = vor.u32 %v12739_v25, %v8675_v23  ;;  %6305 = vmatpush.bf16.msra.mxu0 %v8420_v31 }
  0x21   :  { %v9043_v28 = vld [vmem:[%s20442_s1 + $0x4e0] sm:$0xf]  ;;  %v12831_v29 = vld [vmem:[%s20442_s1 + $0x4ec] sm:$0xf0]  ;;  %v8804_v39 = vor.u32 %v12771_v27, %v8803_v26  ;;  %6318 = vmatpush.bf16.msra.mxu1 %v8548_v35 }
  0x22   :  { %v9171_v30 = vld [vmem:[%s20442_s1 + $0x5e0] sm:$0xf]  ;;  %v12863_v32 = vld [vmem:[%s20442_s1 + $0x5ec] sm:$0xf0]  ;;  %v9044_v40 = vor.u32 %v12831_v29, %v9043_v28  ;;  %6331 = vmatpush.bf16.msra.mxu2 %v8676_v36 }
  0x23   :  { %v9299_v33 = vld [vmem:[%s20442_s1 + $0x6e0] sm:$0xf]  ;;  %v12895_v34 = vld [vmem:[%s20442_s1 + $0x6ec] sm:$0xf0]  ;;  %v9172_v41 = vor.u32 %v12863_v32, %v9171_v30  ;;  %6344 = vmatpush.bf16.msra.mxu3 %v8804_v39 }
  0x24   :  { %v9427_v37 = vld [vmem:[%s20442_s1 + $0x7e0] sm:$0xf]  ;;  %v12927_v38 = vld [vmem:[%s20442_s1 + $0x7ec] sm:$0xf0]  ;;  %v9300_v42 = vor.u32 %v12895_v34, %v9299_v33  ;;  %6350 = vmatpush.bf16.msrb.mxu0 %v9044_v40 }
  0x25   :  { %v9027_v43 = vld [vmem:[%s20442_s1 + $0x4c0] sm:$0xf]  ;;  %v12827_v44 = vld [vmem:[%s20442_s1 + $0x4cc] sm:$0xf0]  ;;  %v9428_v46 = vor.u32 %v12927_v38, %v9427_v37  ;;  %6363 = vmatpush.bf16.msrb.mxu1 %v9172_v41 }
  0x26   :  { %v9155_v45 = vld [vmem:[%s20442_s1 + $0x5c0] sm:$0xf]  ;;  %v12859_v47 = vld [vmem:[%s20442_s1 + $0x5cc] sm:$0xf0]  ;;  %v9028_v52 = vor.u32 %v12827_v44, %v9027_v43  ;;  %6376 = vmatpush.bf16.msrb.mxu2 %v9300_v42 }
  0x27   :  { %v9283_v48 = vld [vmem:[%s20442_s1 + $0x6c0] sm:$0xf]  ;;  %v12891_v49 = vld [vmem:[%s20442_s1 + $0x6cc] sm:$0xf0]  ;;  %v9156_v55 = vor.u32 %v12859_v47, %v9155_v45  ;;  %6389 = vmatpush.bf16.msrb.mxu3 %v9428_v46 }
  0x28   :  { %v9411_v50 = vld [vmem:[%s20442_s1 + $0x7c0] sm:$0xf]  ;;  %v12923_v51 = vld [vmem:[%s20442_s1 + $0x7cc] sm:$0xf0]  ;;  %v9284_v56 = vor.u32 %v12891_v49, %v9283_v48  ;;  %6351 = vmatpush.bf16.msrb.mxu0 %v9028_v52 }
  0x29   :  { %v9011_v53 = vld [vmem:[%s20442_s1 + $0x4a0] sm:$0xf]  ;;  %v12823_v54 = vld [vmem:[%s20442_s1 + $0x4ac] sm:$0xf0]  ;;  %v9412_v60 = vor.u32 %v12923_v51, %v9411_v50  ;;  %6364 = vmatpush.bf16.msrb.mxu1 %v9156_v55 }
  0x2a   :  { %v9139_v57 = vld [vmem:[%s20442_s1 + $0x5a0] sm:$0xf]  ;;  %v12855_v58 = vld [vmem:[%s20442_s1 + $0x5ac] sm:$0xf0]  ;;  %v9012_v1 = vor.u32 %v12823_v54, %v9011_v53  ;;  %6377 = vmatpush.bf16.msrb.mxu2 %v9284_v56 }
  0x2b   :  { %v33_v59 = vld [vmem:[%s20441_s0] sm:$0xff]  ;;  %v12887_v62 = vld [vmem:[%s20442_s1 + $0x6ac] sm:$0xf0]  ;;  %v9140_v3 = vor.u32 %v12855_v58, %v9139_v57  ;;  %6390 = vmatpush.bf16.msrb.mxu3 %v9412_v60  ;;  %v34_v57 = vld [vmem:[%s20441_s0 + $0x8] sm:$0xff] }
  0x2c   :  { %v9267_v61 = vld [vmem:[%s20442_s1 + $0x6a0] sm:$0xf]  ;;  %49 = vst [vmem:[#allocation1] ss:$4 sm:$0xff] %v33_v59  ;;  %v12919_v0 = vld [vmem:[%s20442_s1 + $0x7ac] sm:$0xf0]  ;;  %6352 = vmatpush.bf16.msrb.mxu0 %v9012_v1 }
  0x2d   :  { %v9395_v63 = vld [vmem:[%s20442_s1 + $0x7a0] sm:$0xf]  ;;  %v9268_v4 = vor.u32 %v12887_v62, %v9267_v61  ;;  %v12819_v5 = vld [vmem:[%s20442_s1 + $0x48c] sm:$0xf0]  ;;  %6365 = vmatpush.bf16.msrb.mxu1 %v9140_v3  ;;  %51 = vst [vmem:[#allocation1 + $0x20] ss:$4 sm:$0xff] %v34_v57 }
  0x2e   :  { %v8995_v2 = vld [vmem:[%s20442_s1 + $0x480] sm:$0xf]  ;;  %v12851_v7 = vld [vmem:[%s20442_s1 + $0x58c] sm:$0xf0]  ;;  %v9396_v8 = vor.u32 %v12919_v0, %v9395_v63 }
  0x2f   :  { %v9123_v6 = vld [vmem:[%s20442_s1 + $0x580] sm:$0xf]  ;;  %v12883_v10 = vld [vmem:[%s20442_s1 + $0x68c] sm:$0xf0]  ;;  %v8996_v15 = vor.u32 %v12819_v5, %v8995_v2  ;;  %6378 = vmatpush.bf16.msrb.mxu2 %v9268_v4 }
  0x30   :  { %v9251_v9 = vld [vmem:[%s20442_s1 + $0x680] sm:$0xf]  ;;  %v12915_v12 = vld [vmem:[%s20442_s1 + $0x78c] sm:$0xf0]  ;;  %v9124_v21 = vor.u32 %v12851_v7, %v9123_v6  ;;  %6391 = vmatpush.bf16.msrb.mxu3 %v9396_v8 }
  0x31   :  { %v9379_v11 = vld [vmem:[%s20442_s1 + $0x780] sm:$0xf]  ;;  %v12815_v14 = vld [vmem:[%s20442_s1 + $0x46c] sm:$0xf0]  ;;  %v9252_v22 = vor.u32 %v12883_v10, %v9251_v9  ;;  %6353 = vmatpush.bf16.msrb.mxu0 %v8996_v15 }
  0x32   :  { %v8979_v13 = vld [vmem:[%s20442_s1 + $0x460] sm:$0xf]  ;;  %v12847_v17 = vld [vmem:[%s20442_s1 + $0x56c] sm:$0xf0]  ;;  %v9380_v25 = vor.u32 %v12915_v12, %v9379_v11  ;;  %6366 = vmatpush.bf16.msrb.mxu1 %v9124_v21 }
  0x33   :  { %v9107_v16 = vld [vmem:[%s20442_s1 + $0x560] sm:$0xf]  ;;  %v12879_v19 = vld [vmem:[%s20442_s1 + $0x66c] sm:$0xf0]  ;;  %v8980_v34 = vor.u32 %v12815_v14, %v8979_v13  ;;  %6379 = vmatpush.bf16.msrb.mxu2 %v9252_v22 }
  0x34   :  { %v9235_v18 = vld [vmem:[%s20442_s1 + $0x660] sm:$0xf]  ;;  %v35_v20 = vld [vmem:[%s20441_s0 + $0x10] sm:$0xff]  ;;  %v55_v28 = vld.sshfl [vmem:[#allocation1 + $0x18] sm:$0xff pattern:$0x73625140]  ;;  %v9108_v35 = vor.u32 %v12847_v17, %v9107_v16  ;;  %6392 = vmatpush.bf16.msrb.mxu3 %v9380_v25 }
  0x35   :  { %v54_v23 = vld.sshfl [vmem:[#allocation1 + $0x10] sm:$0xff pattern:$0x73625140]  ;;  %v52_v24 = vld.sshfl [vmem:[#allocation1] sm:$0xff pattern:$0x73625140]  ;;  %v14140_v32 = vpack.c.bf16 %v55_v28, %v55_v28  ;;  %v9236_v36 = vor.u32 %v12879_v19, %v9235_v18  ;;  %6354 = vmatpush.bf16.msrb.mxu0 %v8980_v34 }
  0x36   :  { %v14130_v26 = vpack.c.bf16 %v54_v23, %v54_v23  ;;  %v14132_v27 = vpack.c.bf16 %v52_v24, %v52_v24  ;;  %v53_v29 = vld.sshfl [vmem:[#allocation1 + $0x8] sm:$0xff pattern:$0x73625140]  ;;  %v9363_v30 = vld [vmem:[%s20442_s1 + $0x760] sm:$0xf]  ;;  %6367 = vmatpush.bf16.msrb.mxu1 %v9108_v35 }
  0x37   :  { %v12911_v31 = vld [vmem:[%s20442_s1 + $0x76c] sm:$0xf0]  ;;  %60 = vst [vmem:[#allocation1] ss:$4 sm:$0xff] %v35_v20  ;;  %v14142_v33 = vpack.c.bf16 %v53_v29, %v53_v29  ;;  %v8963_v37 = vld [vmem:[%s20442_s1 + $0x440] sm:$0xf]  ;;  %6345 = vmatmul.bf16.vlgmr.msra.gmra.mxu3 %v14140_v32  ;;  %6380 = vmatpush.bf16.msrb.mxu2 %v9236_v36 }
  0x38   :  { %6332 = vmatmul.bf16.vlgmr.msra.gmra.mxu2 %v14130_v26  ;;  %v12811_v38 = vld [vmem:[%s20442_s1 + $0x44c] sm:$0xf0]  ;;  %v9091_v39 = vld [vmem:[%s20442_s1 + $0x540] sm:$0xf]  ;;  %v9364_v40 = vor.u32 %v12911_v31, %v9363_v30  ;;  %6306 = vmatmul.bf16.vlgmr.msra.gmra.mxu0 %v14132_v27  ;;  %v36_v20 = vld [vmem:[%s20441_s0 + $0x18] sm:$0xff] }
  0x39   :  { %v12843_v41 = vld [vmem:[%s20442_s1 + $0x54c] sm:$0xf0]  ;;  %v9219_v42 = vld [vmem:[%s20442_s1 + $0x640] sm:$0xf]  ;;  %6319 = vmatmul.bf16.vlgmr.msra.gmra.mxu1 %v14142_v33  ;;  %v8964_v46 = vor.u32 %v12811_v38, %v8963_v37 }
  0x3a   :  { %v12875_v43 = vld [vmem:[%s20442_s1 + $0x64c] sm:$0xf0]  ;;  %v9347_v44 = vld [vmem:[%s20442_s1 + $0x740] sm:$0xf]  ;;  %v9092_v49 = vor.u32 %v12843_v41, %v9091_v39  ;;  %6393 = vmatpush.bf16.msrb.mxu3 %v9364_v40 }
  0x3b   :  { %v12907_v45 = vld [vmem:[%s20442_s1 + $0x74c] sm:$0xf0]  ;;  %v8947_v47 = vld [vmem:[%s20442_s1 + $0x420] sm:$0xf]  ;;  %v9220_v50 = vor.u32 %v12875_v43, %v9219_v42  ;;  %6355 = vmatpush.bf16.msrb.mxu0 %v8964_v46 }
  0x3c   :  { %v12807_v48 = vld [vmem:[%s20442_s1 + $0x42c] sm:$0xf0]  ;;  %v9075_v51 = vld [vmem:[%s20442_s1 + $0x520] sm:$0xf]  ;;  %v9348_v54 = vor.u32 %v12907_v45, %v9347_v44  ;;  %6368 = vmatpush.bf16.msrb.mxu1 %v9092_v49 }
  0x3d   :  { %v12839_v52 = vld [vmem:[%s20442_s1 + $0x52c] sm:$0xf0]  ;;  %v9203_v53 = vld [vmem:[%s20442_s1 + $0x620] sm:$0xf]  ;;  %v8948_v60 = vor.u32 %v12807_v48, %v8947_v47  ;;  %6381 = vmatpush.bf16.msrb.mxu2 %v9220_v50 }
  0x3e   :  { %v12871_v55 = vld [vmem:[%s20442_s1 + $0x62c] sm:$0xf0]  ;;  %v9331_v56 = vld [vmem:[%s20442_s1 + $0x720] sm:$0xf]  ;;  %v9076_v0 = vor.u32 %v12839_v52, %v9075_v51  ;;  %6394 = vmatpush.bf16.msrb.mxu3 %v9348_v54 }
  0x3f   :  { %v12903_v58 = vld [vmem:[%s20442_s1 + $0x72c] sm:$0xf0]  ;;  %v8931_v59 = vld [vmem:[%s20442_s1 + $0x400] sm:$0xf]  ;;  %v9204_v1 = vor.u32 %v12871_v55, %v9203_v53  ;;  %6356 = vmatpush.bf16.msrb.mxu0 %v8948_v60 }
  0x40   :  { %v12803_v61 = vld [vmem:[%s20442_s1 + $0x40c] sm:$0xf0]  ;;  %v9059_v62 = vld [vmem:[%s20442_s1 + $0x500] sm:$0xf]  ;;  %v9332_v5 = vor.u32 %v12903_v58, %v9331_v56  ;;  %6369 = vmatpush.bf16.msrb.mxu1 %v9076_v0 }
  0x41   :  { %v12835_v63 = vld [vmem:[%s20442_s1 + $0x50c] sm:$0xf0]  ;;  %v9187_v2 = vld [vmem:[%s20442_s1 + $0x600] sm:$0xf]  ;;  %v8932_v12 = vor.u32 %v12803_v61, %v8931_v59  ;;  %6382 = vmatpush.bf16.msrb.mxu2 %v9204_v1 }
  0x42   :  { %v12867_v3 = vld [vmem:[%s20442_s1 + $0x60c] sm:$0xf0]  ;;  %v9315_v4 = vld [vmem:[%s20442_s1 + $0x700] sm:$0xf]  ;;  %v9060_v16 = vor.u32 %v12835_v63, %v9059_v62  ;;  %6395 = vmatpush.bf16.msrb.mxu3 %v9332_v5 }
  0x43   :  { %v12899_v6 = vld [vmem:[%s20442_s1 + $0x70c] sm:$0xf0]  ;;  %v9555_v7 = vld [vmem:[%s20442_s1 + $0x8e0] sm:$0xf]  ;;  %v9188_v17 = vor.u32 %v12867_v3, %v9187_v2  ;;  %6357 = vmatpush.bf16.msrb.mxu0 %v8932_v12 }
  0x44   :  { %v12959_v8 = vld [vmem:[%s20442_s1 + $0x8ec] sm:$0xf0]  ;;  %v9683_v9 = vld [vmem:[%s20442_s1 + $0x9e0] sm:$0xf]  ;;  %v9316_v21 = vor.u32 %v12899_v6, %v9315_v4  ;;  %6370 = vmatpush.bf16.msrb.mxu1 %v9060_v16 }
  0x45   :  { %v12991_v10 = vld [vmem:[%s20442_s1 + $0x9ec] sm:$0xf0]  ;;  %v9811_v11 = vld [vmem:[%s20442_s1 + $0xae0] sm:$0xf]  ;;  %v9556_v22 = vor.u32 %v12959_v8, %v9555_v7  ;;  %6383 = vmatpush.bf16.msrb.mxu2 %v9188_v17 }
  0x46   :  { %v13023_v13 = vld [vmem:[%s20442_s1 + $0xaec] sm:$0xf0]  ;;  %v9939_v14 = vld [vmem:[%s20442_s1 + $0xbe0] sm:$0xf]  ;;  %v9684_v29 = vor.u32 %v12991_v10, %v9683_v9  ;;  %6396 = vmatpush.bf16.msrb.mxu3 %v9316_v21 }
  0x47   :  { %v13055_v15 = vld [vmem:[%s20442_s1 + $0xbec] sm:$0xf0]  ;;  %v9539_v18 = vld [vmem:[%s20442_s1 + $0x8c0] sm:$0xf]  ;;  %v9812_v30 = vor.u32 %v13023_v13, %v9811_v11  ;;  %6402 = vmatpush.bf16.msra.mxu0 %v9556_v22 }
  0x48   :  { %v12955_v19 = vld [vmem:[%s20442_s1 + $0x8cc] sm:$0xf0]  ;;  %v9667_v23 = vld [vmem:[%s20442_s1 + $0x9c0] sm:$0xf]  ;;  %v9940_v35 = vor.u32 %v13055_v15, %v9939_v14  ;;  %6415 = vmatpush.bf16.msra.mxu1 %v9684_v29 }
  0x49   :  { %v12987_v24 = vld [vmem:[%s20442_s1 + $0x9cc] sm:$0xf0]  ;;  %v56_v28 = vld.sshfl [vmem:[#allocation1 + $0x20] sm:$0xff pattern:$0x73625140]  ;;  %v9540_v43 = vor.u32 %v12955_v19, %v9539_v18  ;;  %6428 = vmatpush.bf16.msra.mxu2 %v9812_v30 }
  0x4a   :  { %v58_v25 = vld.sshfl [vmem:[#allocation1 + $0x30] sm:$0xff pattern:$0x73625140]  ;;  %v59_v31 = vld.sshfl [vmem:[#allocation1 + $0x38] sm:$0xff pattern:$0x73625140]  ;;  %v14276_v41 = vpack.c.bf16 %v56_v28, %v56_v28  ;;  %v9668_v45 = vor.u32 %v12987_v24, %v9667_v23  ;;  %6441 = vmatpush.bf16.msra.mxu3 %v9940_v35 }
  0x4b   :  { %v57_v34 = vld.sshfl [vmem:[#allocation1 + $0x28] sm:$0xff pattern:$0x73625140]  ;;  %v9795_v36 = vld [vmem:[%s20442_s1 + $0xac0] sm:$0xf]  ;;  %v14268_v38 = vpack.c.bf16 %v58_v25, %v58_v25  ;;  %v14278_v42 = vpack.c.bf16 %v59_v31, %v59_v31  ;;  %6403 = vmatpush.bf16.msra.mxu0 %v9540_v43 }
  0x4c   :  { %v13019_v37 = vld [vmem:[%s20442_s1 + $0xacc] sm:$0xf0]  ;;  %61 = vst [vmem:[#allocation1 + $0x20] ss:$4 sm:$0xff] %v36_v20  ;;  %v9923_v39 = vld [vmem:[%s20442_s1 + $0xbc0] sm:$0xf]  ;;  %v14280_v44 = vpack.c.bf16 %v57_v34, %v57_v34  ;;  %6358 = vmatmul.bf16.vlgmr.msrb.gmra.mxu0 %v14276_v41  ;;  %6416 = vmatpush.bf16.msra.mxu1 %v9668_v45 }
  0x4d   :  { %v13051_v40 = vld [vmem:[%s20442_s1 + $0xbcc] sm:$0xf0]  ;;  %v9796_v46 = vor.u32 %v13019_v37, %v9795_v36  ;;  %v9523_v47 = vld [vmem:[%s20442_s1 + $0x8a0] sm:$0xf]  ;;  %6384 = vmatmul.bf16.vlgmr.msrb.gmra.mxu2 %v14268_v38  ;;  %6397 = vmatmul.bf16.vlgmr.msrb.gmra.mxu3 %v14278_v42 }
  0x4e   :  { %v12951_v48 = vld [vmem:[%s20442_s1 + $0x8ac] sm:$0xf0]  ;;  %v9651_v49 = vld [vmem:[%s20442_s1 + $0x9a0] sm:$0xf]  ;;  %v9924_v50 = vor.u32 %v13051_v40, %v9923_v39  ;;  %6371 = vmatmul.bf16.vlgmr.msrb.gmra.mxu1 %v14280_v44 }
  0x4f   :  { %v12983_v51 = vld [vmem:[%s20442_s1 + $0x9ac] sm:$0xf0]  ;;  %v9779_v52 = vld [vmem:[%s20442_s1 + $0xaa0] sm:$0xf]  ;;  %v9524_v56 = vor.u32 %v12951_v48, %v9523_v47  ;;  %6429 = vmatpush.bf16.msra.mxu2 %v9796_v46 }
  0x50   :  { %v13015_v53 = vld [vmem:[%s20442_s1 + $0xaac] sm:$0xf0]  ;;  %v9907_v54 = vld [vmem:[%s20442_s1 + $0xba0] sm:$0xf]  ;;  %v9652_v57 = vor.u32 %v12983_v51, %v9651_v49  ;;  %6442 = vmatpush.bf16.msra.mxu3 %v9924_v50 }
  0x51   :  { %v13047_v55 = vld [vmem:[%s20442_s1 + $0xbac] sm:$0xf0]  ;;  %v9780_v58 = vor.u32 %v13015_v53, %v9779_v52  ;;  %v9507_v59 = vld [vmem:[%s20442_s1 + $0x880] sm:$0xf]  ;;  %6404 = vmatpush.bf16.msra.mxu0 %v9524_v56 }
  0x52   :  { %v12947_v60 = vld [vmem:[%s20442_s1 + $0x88c] sm:$0xf0]  ;;  %v9635_v61 = vld [vmem:[%s20442_s1 + $0x980] sm:$0xf]  ;;  %v9908_v62 = vor.u32 %v13047_v55, %v9907_v54  ;;  %6417 = vmatpush.bf16.msra.mxu1 %v9652_v57 }
  0x53   :  { %v12979_v63 = vld [vmem:[%s20442_s1 + $0x98c] sm:$0xf0]  ;;  %v9763_v0 = vld [vmem:[%s20442_s1 + $0xa80] sm:$0xf]  ;;  %v9508_v4 = vor.u32 %v12947_v60, %v9507_v59  ;;  %6430 = vmatpush.bf16.msra.mxu2 %v9780_v58 }
  0x54   :  { %v13011_v1 = vld [vmem:[%s20442_s1 + $0xa8c] sm:$0xf0]  ;;  %v9891_v2 = vld [vmem:[%s20442_s1 + $0xb80] sm:$0xf]  ;;  %v9636_v8 = vor.u32 %v12979_v63, %v9635_v61  ;;  %6443 = vmatpush.bf16.msra.mxu3 %v9908_v62 }
  0x55   :  { %v13043_v3 = vld [vmem:[%s20442_s1 + $0xb8c] sm:$0xf0]  ;;  %v9491_v5 = vld [vmem:[%s20442_s1 + $0x860] sm:$0xf]  ;;  %v9764_v9 = vor.u32 %v13011_v1, %v9763_v0  ;;  %6405 = vmatpush.bf16.msra.mxu0 %v9508_v4 }
  0x56   :  { %v12943_v6 = vld [vmem:[%s20442_s1 + $0x86c] sm:$0xf0]  ;;  %v9619_v7 = vld [vmem:[%s20442_s1 + $0x960] sm:$0xf]  ;;  %v9892_v13 = vor.u32 %v13043_v3, %v9891_v2  ;;  %6418 = vmatpush.bf16.msra.mxu1 %v9636_v8 }
  0x57   :  { %v12975_v10 = vld [vmem:[%s20442_s1 + $0x96c] sm:$0xf0]  ;;  %v9747_v11 = vld [vmem:[%s20442_s1 + $0xa60] sm:$0xf]  ;;  %v9492_v20 = vor.u32 %v12943_v6, %v9491_v5  ;;  %6431 = vmatpush.bf16.msra.mxu2 %v9764_v9 }
  0x58   :  { %v13007_v12 = vld [vmem:[%s20442_s1 + $0xa6c] sm:$0xf0]  ;;  %v9875_v14 = vld [vmem:[%s20442_s1 + $0xb60] sm:$0xf]  ;;  %v9620_v23 = vor.u32 %v12975_v10, %v9619_v7  ;;  %6444 = vmatpush.bf16.msra.mxu3 %v9892_v13 }
  0x59   :  { %v13039_v15 = vld [vmem:[%s20442_s1 + $0xb6c] sm:$0xf0]  ;;  %v37_v16 = vld [vmem:[%s20441_s0 + $0x20] sm:$0xff]  ;;  %v14368_v21 = vld.sshfl [vmem:[#allocation1 + $0x8] sm:$0xff pattern:$0x73625140]  ;;  %v9748_v24 = vor.u32 %v13007_v12, %v9747_v11  ;;  %6406 = vmatpush.bf16.msra.mxu0 %v9492_v20 }
  0x5a   :  { %v9475_v17 = vld [vmem:[%s20442_s1 + $0x840] sm:$0xf]  ;;  %v14366_v19 = vld.sshfl [vmem:[#allocation1 + $0x10] sm:$0xff pattern:$0x73625140]  ;;  %v9876_v29 = vor.u32 %v13039_v15, %v9875_v14  ;;  %6419 = vmatpush.bf16.msra.mxu1 %v9620_v23 }
  0x5b   :  { %v14364_v18 = vld.sshfl [vmem:[#allocation1] sm:$0xff pattern:$0x73625140]  ;;  %v14370_v22 = vld.sshfl [vmem:[#allocation1 + $0x18] sm:$0xff pattern:$0x73625140]  ;;  %6432 = vmatpush.bf16.msra.mxu2 %v9748_v24 }
  0x5c   :  { %v12939_v25 = vld [vmem:[%s20442_s1 + $0x84c] sm:$0xf0]  ;;  %v9603_v28 = vld [vmem:[%s20442_s1 + $0x940] sm:$0xf]  ;;  %70 = vst [vmem:[#allocation1] ss:$4 sm:$0xff] %v37_v16  ;;  %6445 = vmatpush.bf16.msra.mxu3 %v9876_v29  ;;  %v14476_v24 = vpack.c.bf16 %v14364_v18, %v14364_v18  ;;  %v14493_v18 = vpack.c.bf16 %v14368_v21, %v14368_v21 }
  0x5d   :  { %v12971_v30 = vld [vmem:[%s20442_s1 + $0x94c] sm:$0xf0]  ;;  %v9731_v31 = vld [vmem:[%s20442_s1 + $0xa40] sm:$0xf]  ;;  %v9476_v37 = vor.u32 %v12939_v25, %v9475_v17 }
  0x5e   :  { %v13003_v34 = vld [vmem:[%s20442_s1 + $0xa4c] sm:$0xf0]  ;;  %v9859_v35 = vld [vmem:[%s20442_s1 + $0xb40] sm:$0xf]  ;;  %v9604_v39 = vor.u32 %v12971_v30, %v9603_v28  ;;  %v14489_v30 = vpack.c.bf16 %v14366_v19, %v14366_v19 }
  0x5f   :  { %v13035_v36 = vld [vmem:[%s20442_s1 + $0xb4c] sm:$0xf0]  ;;  %v9732_v40 = vor.u32 %v13003_v34, %v9731_v31  ;;  %v9459_v43 = vld [vmem:[%s20442_s1 + $0x820] sm:$0xf]  ;;  %6407 = vmatpush.bf16.msra.mxu0 %v9476_v37 }
  0x60   :  { %v12935_v45 = vld [vmem:[%s20442_s1 + $0x82c] sm:$0xf0]  ;;  %v9587_v46 = vld [vmem:[%s20442_s1 + $0x920] sm:$0xf]  ;;  %v9860_v47 = vor.u32 %v13035_v36, %v9859_v35  ;;  %6420 = vmatpush.bf16.msra.mxu1 %v9604_v39  ;;  %v14503_v35 = vpack.c.bf16 %v14370_v22, %v14370_v22 }
  0x61   :  { %v12967_v48 = vld [vmem:[%s20442_s1 + $0x92c] sm:$0xf0]  ;;  %v9715_v49 = vld [vmem:[%s20442_s1 + $0xa20] sm:$0xf]  ;;  %v9460_v53 = vor.u32 %v12935_v45, %v9459_v43  ;;  %6433 = vmatpush.bf16.msra.mxu2 %v9732_v40 }
  0x62   :  { %v12999_v50 = vld [vmem:[%s20442_s1 + $0xa2c] sm:$0xf0]  ;;  %v9843_v51 = vld [vmem:[%s20442_s1 + $0xb20] sm:$0xf]  ;;  %v9588_v56 = vor.u32 %v12967_v48, %v9587_v46  ;;  %6446 = vmatpush.bf16.msra.mxu3 %v9860_v47 }
  0x63   :  { %v13031_v52 = vld [vmem:[%s20442_s1 + $0xb2c] sm:$0xf0]  ;;  %v9443_v54 = vld [vmem:[%s20442_s1 + $0x800] sm:$0xf]  ;;  %v9716_v57 = vor.u32 %v12999_v50, %v9715_v49  ;;  %6408 = vmatpush.bf16.msra.mxu0 %v9460_v53 }
  0x64   :  { %v12931_v55 = vld [vmem:[%s20442_s1 + $0x80c] sm:$0xf0]  ;;  %v9571_v58 = vld [vmem:[%s20442_s1 + $0x900] sm:$0xf]  ;;  %v9844_v61 = vor.u32 %v13031_v52, %v9843_v51  ;;  %6421 = vmatpush.bf16.msra.mxu1 %v9588_v56  ;;  %v38_v56 = vld [vmem:[%s20441_s0 + $0x28] sm:$0xff] }
  0x65   :  { %v12963_v59 = vld [vmem:[%s20442_s1 + $0x90c] sm:$0xf0]  ;;  %v9699_v60 = vld [vmem:[%s20442_s1 + $0xa00] sm:$0xf]  ;;  %v9444_v4 = vor.u32 %v12931_v55, %v9443_v54  ;;  %6434 = vmatpush.bf16.msra.mxu2 %v9716_v57 }
  0x66   :  { %v12995_v62 = vld [vmem:[%s20442_s1 + $0xa0c] sm:$0xf0]  ;;  %v9827_v63 = vld [vmem:[%s20442_s1 + $0xb00] sm:$0xf]  ;;  %v9572_v8 = vor.u32 %v12963_v59, %v9571_v58  ;;  %6447 = vmatpush.bf16.msra.mxu3 %v9844_v61 }
  0x67   :  { %v13027_v0 = vld [vmem:[%s20442_s1 + $0xb0c] sm:$0xf0]  ;;  %v10067_v1 = vld [vmem:[%s20442_s1 + $0xce0] sm:$0xf]  ;;  %v9700_v9 = vor.u32 %v12995_v62, %v9699_v60  ;;  %6409 = vmatpush.bf16.msra.mxu0 %v9444_v4 }
  0x68   :  { %v13087_v2 = vld [vmem:[%s20442_s1 + $0xcec] sm:$0xf0]  ;;  %v10195_v3 = vld [vmem:[%s20442_s1 + $0xde0] sm:$0xf]  ;;  %v9828_v12 = vor.u32 %v13027_v0, %v9827_v63  ;;  %6422 = vmatpush.bf16.msra.mxu1 %v9572_v8 }
  0x69   :  { %v13119_v5 = vld [vmem:[%s20442_s1 + $0xdec] sm:$0xf0]  ;;  %v10323_v6 = vld [vmem:[%s20442_s1 + $0xee0] sm:$0xf]  ;;  %v10068_v13 = vor.u32 %v13087_v2, %v10067_v1  ;;  %6435 = vmatpush.bf16.msra.mxu2 %v9700_v9 }
  0x6a   :  { %v13151_v7 = vld [vmem:[%s20442_s1 + $0xeec] sm:$0xf0]  ;;  %v10451_v10 = vld [vmem:[%s20442_s1 + $0xfe0] sm:$0xf]  ;;  %v10196_v14 = vor.u32 %v13119_v5, %v10195_v3  ;;  %6448 = vmatpush.bf16.msra.mxu3 %v9828_v12  ;;  %6410 = vmatmul.bf16.vlgmr.msra.gmra.mxu0 %v14476_v24 }
  0x6b   :  { %v13183_v11 = vld [vmem:[%s20442_s1 + $0xfec] sm:$0xf0]  ;;  %v10324_v15 = vor.u32 %v13151_v7, %v10323_v6  ;;  %v10051_v16 = vld [vmem:[%s20442_s1 + $0xcc0] sm:$0xf]  ;;  %6454 = vmatpush.bf16.msrb.mxu0 %v10068_v13  ;;  %6423 = vmatmul.bf16.vlgmr.msra.gmra.mxu1 %v14493_v18 }
  0x6c   :  { %v13083_v17 = vld [vmem:[%s20442_s1 + $0xccc] sm:$0xf0]  ;;  %v10179_v20 = vld [vmem:[%s20442_s1 + $0xdc0] sm:$0xf]  ;;  %v10452_v23 = vor.u32 %v13183_v11, %v10451_v10  ;;  %6467 = vmatpush.bf16.msrb.mxu1 %v10196_v14  ;;  %6436 = vmatmul.bf16.vlgmr.msra.gmra.mxu2 %v14489_v30 }
  0x6d   :  { %v13115_v25 = vld [vmem:[%s20442_s1 + $0xdcc] sm:$0xf0]  ;;  %v10307_v28 = vld [vmem:[%s20442_s1 + $0xec0] sm:$0xf]  ;;  %v10052_v19 = vor.u32 %v13083_v17, %v10051_v16  ;;  %6480 = vmatpush.bf16.msrb.mxu2 %v10324_v15  ;;  %6449 = vmatmul.bf16.vlgmr.msra.gmra.mxu3 %v14503_v35 }
  0x6e   :  { %v13147_v29 = vld [vmem:[%s20442_s1 + $0xecc] sm:$0xf0]  ;;  %v10435_v31 = vld [vmem:[%s20442_s1 + $0xfc0] sm:$0xf]  ;;  %v10180_v36 = vor.u32 %v13115_v25, %v10179_v20  ;;  %6493 = vmatpush.bf16.msrb.mxu3 %v10452_v23 }
  0x6f   :  { %v13179_v34 = vld [vmem:[%s20442_s1 + $0xfcc] sm:$0xf0]  ;;  %v10035_v21 = vld [vmem:[%s20442_s1 + $0xca0] sm:$0xf]  ;;  %v10308_v37 = vor.u32 %v13147_v29, %v10307_v28  ;;  %6455 = vmatpush.bf16.msrb.mxu0 %v10052_v19 }
  0x70   :  { %v13079_v39 = vld [vmem:[%s20442_s1 + $0xcac] sm:$0xf0]  ;;  %v10163_v40 = vld [vmem:[%s20442_s1 + $0xda0] sm:$0xf]  ;;  %v10436_v43 = vor.u32 %v13179_v34, %v10435_v31  ;;  %6468 = vmatpush.bf16.msrb.mxu1 %v10180_v36 }
  0x71   :  { %v13111_v22 = vld [vmem:[%s20442_s1 + $0xdac] sm:$0xf0]  ;;  %v10291_v45 = vld [vmem:[%s20442_s1 + $0xea0] sm:$0xf]  ;;  %v10036_v51 = vor.u32 %v13079_v39, %v10035_v21  ;;  %6481 = vmatpush.bf16.msrb.mxu2 %v10308_v37 }
  0x72   :  { %v13143_v46 = vld [vmem:[%s20442_s1 + $0xeac] sm:$0xf0]  ;;  %v10419_v47 = vld [vmem:[%s20442_s1 + $0xfa0] sm:$0xf]  ;;  %v10164_v57 = vor.u32 %v13111_v22, %v10163_v40  ;;  %6494 = vmatpush.bf16.msrb.mxu3 %v10436_v43 }
  0x73   :  { %v13175_v48 = vld [vmem:[%s20442_s1 + $0xfac] sm:$0xf0]  ;;  %v10019_v49 = vld [vmem:[%s20442_s1 + $0xc80] sm:$0xf]  ;;  %v10292_v58 = vor.u32 %v13143_v46, %v10291_v45  ;;  %6456 = vmatpush.bf16.msrb.mxu0 %v10036_v51 }
  0x74   :  { %v13075_v50 = vld [vmem:[%s20442_s1 + $0xc8c] sm:$0xf0]  ;;  %v10147_v52 = vld [vmem:[%s20442_s1 + $0xd80] sm:$0xf]  ;;  %v10420_v61 = vor.u32 %v13175_v48, %v10419_v47  ;;  %6469 = vmatpush.bf16.msrb.mxu1 %v10164_v57 }
  0x75   :  { %v13107_v53 = vld [vmem:[%s20442_s1 + $0xd8c] sm:$0xf0]  ;;  %v10275_v54 = vld [vmem:[%s20442_s1 + $0xe80] sm:$0xf]  ;;  %v10020_v2 = vor.u32 %v13075_v50, %v10019_v49  ;;  %6482 = vmatpush.bf16.msrb.mxu2 %v10292_v58 }
  0x76   :  { %v13139_v55 = vld [vmem:[%s20442_s1 + $0xe8c] sm:$0xf0]  ;;  %v14554_v59 = vld.sshfl [vmem:[#allocation1 + $0x20] sm:$0xff pattern:$0x73625140]  ;;  %v10148_v3 = vor.u32 %v13107_v53, %v10147_v52  ;;  %6495 = vmatpush.bf16.msrb.mxu3 %v10420_v61 }
  0x77   :  { %v14556_v60 = vld.sshfl [vmem:[#allocation1 + $0x30] sm:$0xff pattern:$0x73625140]  ;;  %v14558_v62 = vld.sshfl [vmem:[#allocation1 + $0x28] sm:$0xff pattern:$0x73625140]  ;;  %v10276_v4 = vor.u32 %v13139_v55, %v10275_v54  ;;  %6457 = vmatpush.bf16.msrb.mxu0 %v10020_v2 }
  0x78   :  { %v14560_v63 = vld.sshfl [vmem:[#allocation1 + $0x38] sm:$0xff pattern:$0x73625140]  ;;  %v10403_v0 = vld [vmem:[%s20442_s1 + $0xf80] sm:$0xf]  ;;  %6470 = vmatpush.bf16.msrb.mxu1 %v10148_v3 }
  0x79   :  { %v13171_v1 = vld [vmem:[%s20442_s1 + $0xf8c] sm:$0xf0]  ;;  %71 = vst [vmem:[#allocation1 + $0x20] ss:$4 sm:$0xff] %v38_v56  ;;  %v10003_v5 = vld [vmem:[%s20442_s1 + $0xc60] sm:$0xf]  ;;  %6483 = vmatpush.bf16.msrb.mxu2 %v10276_v4 }
  0x7a   :  { %v13071_v6 = vld [vmem:[%s20442_s1 + $0xc6c] sm:$0xf0]  ;;  %v10131_v7 = vld [vmem:[%s20442_s1 + $0xd60] sm:$0xf]  ;;  %v10404_v8 = vor.u32 %v13171_v1, %v10403_v0 }
  0x7b   :  { %v13103_v9 = vld [vmem:[%s20442_s1 + $0xd6c] sm:$0xf0]  ;;  %v10259_v10 = vld [vmem:[%s20442_s1 + $0xe60] sm:$0xf]  ;;  %v10004_v14 = vor.u32 %v13071_v6, %v10003_v5 }
  0x7c   :  { %v13135_v11 = vld [vmem:[%s20442_s1 + $0xe6c] sm:$0xf0]  ;;  %v10387_v12 = vld [vmem:[%s20442_s1 + $0xf60] sm:$0xf]  ;;  %v10132_v15 = vor.u32 %v13103_v9, %v10131_v7  ;;  %6496 = vmatpush.bf16.msrb.mxu3 %v10404_v8 }
  0x7d   :  { %v13167_v13 = vld [vmem:[%s20442_s1 + $0xf6c] sm:$0xf0]  ;;  %v10260_v16 = vor.u32 %v13135_v11, %v10259_v10  ;;  %v9987_v17 = vld [vmem:[%s20442_s1 + $0xc40] sm:$0xf]  ;;  %6458 = vmatpush.bf16.msrb.mxu0 %v10004_v14 }
  0x7e   :  { %v13067_v20 = vld [vmem:[%s20442_s1 + $0xc4c] sm:$0xf0]  ;;  %v10115_v23 = vld [vmem:[%s20442_s1 + $0xd40] sm:$0xf]  ;;  %v10388_v25 = vor.u32 %v13167_v13, %v10387_v12  ;;  %6471 = vmatpush.bf16.msrb.mxu1 %v10132_v15 }
  0x7f   :  { %v13099_v28 = vld [vmem:[%s20442_s1 + $0xd4c] sm:$0xf0]  ;;  %v10243_v29 = vld [vmem:[%s20442_s1 + $0xe40] sm:$0xf]  ;;  %v9988_v21 = vor.u32 %v13067_v20, %v9987_v17  ;;  %6484 = vmatpush.bf16.msrb.mxu2 %v10260_v16 }
  0x80   :  { %v13131_v31 = vld [vmem:[%s20442_s1 + $0xe4c] sm:$0xf0]  ;;  %v10371_v34 = vld [vmem:[%s20442_s1 + $0xf40] sm:$0xf]  ;;  %v10116_v37 = vor.u32 %v13099_v28, %v10115_v23  ;;  %6497 = vmatpush.bf16.msrb.mxu3 %v10388_v25 }
  0x81   :  { %v13163_v19 = vld [vmem:[%s20442_s1 + $0xf4c] sm:$0xf0]  ;;  %v9971_v36 = vld [vmem:[%s20442_s1 + $0xc20] sm:$0xf]  ;;  %v10244_v39 = vor.u32 %v13131_v31, %v10243_v29  ;;  %6459 = vmatpush.bf16.msrb.mxu0 %v9988_v21 }
  0x82   :  { %v13063_v40 = vld [vmem:[%s20442_s1 + $0xc2c] sm:$0xf0]  ;;  %v10099_v22 = vld [vmem:[%s20442_s1 + $0xd20] sm:$0xf]  ;;  %v10372_v45 = vor.u32 %v13163_v19, %v10371_v34  ;;  %6472 = vmatpush.bf16.msrb.mxu1 %v10116_v37 }
  0x83   :  { %v13095_v43 = vld [vmem:[%s20442_s1 + $0xd2c] sm:$0xf0]  ;;  %v10227_v46 = vld [vmem:[%s20442_s1 + $0xe20] sm:$0xf]  ;;  %v9972_v52 = vor.u32 %v13063_v40, %v9971_v36  ;;  %6485 = vmatpush.bf16.msrb.mxu2 %v10244_v39 }
  0x84   :  { %v13127_v47 = vld [vmem:[%s20442_s1 + $0xe2c] sm:$0xf0]  ;;  %v10355_v48 = vld [vmem:[%s20442_s1 + $0xf20] sm:$0xf]  ;;  %v10100_v57 = vor.u32 %v13095_v43, %v10099_v22  ;;  %6498 = vmatpush.bf16.msrb.mxu3 %v10372_v45 }
  0x85   :  { %v13159_v49 = vld [vmem:[%s20442_s1 + $0xf2c] sm:$0xf0]  ;;  %v9955_v50 = vld [vmem:[%s20442_s1 + $0xc00] sm:$0xf]  ;;  %v10228_v58 = vor.u32 %v13127_v47, %v10227_v46  ;;  %6460 = vmatpush.bf16.msrb.mxu0 %v9972_v52 }
  0x86   :  { %v13059_v51 = vld [vmem:[%s20442_s1 + $0xc0c] sm:$0xf0]  ;;  %v10083_v53 = vld [vmem:[%s20442_s1 + $0xd00] sm:$0xf]  ;;  %v10356_v2 = vor.u32 %v13159_v49, %v10355_v48 }
  0x87   :  { %v13091_v54 = vld [vmem:[%s20442_s1 + $0xd0c] sm:$0xf0]  ;;  %v10211_v55 = vld [vmem:[%s20442_s1 + $0xe00] sm:$0xf]  ;;  %v9956_v6 = vor.u32 %v13059_v51, %v9955_v50 }
  0x88   :  { %v13123_v56 = vld [vmem:[%s20442_s1 + $0xe0c] sm:$0xf0]  ;;  %v10339_v61 = vld [vmem:[%s20442_s1 + $0xf00] sm:$0xf] }
  0x89   :  { %v13155_v0 = vld [vmem:[%s20442_s1 + $0xf0c] sm:$0xf0]  ;;  %v10579_v1 = vld [vmem:[%s20442_s1 + $0x10e0] sm:$0xf] }
  0x8a   :  { %v13215_v3 = vld [vmem:[%s20442_s1 + $0x10ec] sm:$0xf0]  ;;  %v10707_v4 = vld [vmem:[%s20442_s1 + $0x11e0] sm:$0xf] }
  0x8b   :  { %v13247_v5 = vld [vmem:[%s20442_s1 + $0x11ec] sm:$0xf0]  ;;  %v10835_v7 = vld [vmem:[%s20442_s1 + $0x12e0] sm:$0xf] }
  0x8c   :  { %v13279_v8 = vld [vmem:[%s20442_s1 + $0x12ec] sm:$0xf0] }
  0x8d   :  { %14 = vsyncpa [#allocation3], 0  ;;  %6473 = vmatpush.bf16.msrb.mxu1 %v10100_v57  ;;  %6486 = vmatpush.bf16.msrb.mxu2 %v10228_v58  ;;  %v10084_v9 = vor.u32 %v13091_v54, %v10083_v53  ;;  %v10212_v10 = vor.u32 %v13123_v56, %v10211_v55  ;;  %v10963_v11 = vld [vmem:[%s20442_s1 + $0x13e0] sm:$0xf]  ;;  %v13311_v12 = vld [vmem:[%s20442_s1 + $0x13ec] sm:$0xf0]  ;;  %v10340_v13 = vor.u32 %v13155_v0, %v10339_v61 }
  0x8e   :  { %6499 = vmatpush.bf16.msrb.mxu3 %v10356_v2  ;;  %v10580_v14 = vor.u32 %v13215_v3, %v10579_v1  ;;  %v10708_v15 = vor.u32 %v13247_v5, %v10707_v4  ;;  %v10836_v16 = vor.u32 %v13279_v8, %v10835_v7  ;;  %v10563_v17 = vld [vmem:[%s20442_s1 + $0x10c0] sm:$0xf]  ;;  %v13211_v20 = vld [vmem:[%s20442_s1 + $0x10cc] sm:$0xf0]  ;;  %6461 = vmatpush.bf16.msrb.mxu0 %v9956_v6  ;;  %s8408_s21 = sshll.u32 %s20450_s9, 4  ;;  %vm8399_vm0 = vcmask 74752   ;;  %s8409_s21 = int_to_ptr.hbm [resolvable:$true] %s8408_s21 }
  0x8f   :  { %v10691_v23 = vld [vmem:[%s20442_s1 + $0x11c0] sm:$0xf]  ;;  %v10964_v25 = vor.u32 %v13311_v12, %v10963_v11  ;;  %v14699_v28 = vpack.c.bf16 %v14554_v59, %v14554_v59  ;;  %v13243_v29 = vld [vmem:[%s20442_s1 + $0x11cc] sm:$0xf0]  ;;  %v14712_v19 = vpack.c.bf16 %v14556_v60, %v14556_v60  ;;  %v14716_v59 = vpack.c.bf16 %v14558_v62, %v14558_v62 }
  0x90   :  { %v10819_v31 = vld [vmem:[%s20442_s1 + $0x12c0] sm:$0xf]  ;;  %v13275_v34 = vld [vmem:[%s20442_s1 + $0x12cc] sm:$0xf0]  ;;  %v14726_v37 = vpack.c.bf16 %v14560_v63, %v14560_v63  ;;  %v10564_v60 = vor.u32 %v13211_v20, %v10563_v17  ;;  %v10692_v39 = vor.u32 %v13243_v29, %v10691_v23 }
  0x91   :  { %6474 = vmatpush.bf16.msrb.mxu1 %v10084_v9  ;;  %6487 = vmatpush.bf16.msrb.mxu2 %v10212_v10  ;;  %v10947_v21 = vld [vmem:[%s20442_s1 + $0x13c0] sm:$0xf]  ;;  %v13307_v36 = vld [vmem:[%s20442_s1 + $0x13cc] sm:$0xf0]  ;;  %v10820_v62 = vor.u32 %v13275_v34, %v10819_v31 }
  0x92   :  { %6500 = vmatpush.bf16.msrb.mxu3 %v10340_v13  ;;  %6506 = vmatpush.bf16.msra.mxu0 %v10580_v14  ;;  %v10547_v40 = vld [vmem:[%s20442_s1 + $0x10a0] sm:$0xf]  ;;  %v13207_v22 = vld [vmem:[%s20442_s1 + $0x10ac] sm:$0xf0]  ;;  %v10948_v63 = vor.u32 %v13307_v36, %v10947_v21 }
  0x93   :  { %v10675_v43 = vld [vmem:[%s20442_s1 + $0x11a0] sm:$0xf]  ;;  %6462 = vmatmul.bf16.vlgmr.msrb.gmra.mxu0 %v14699_v28  ;;  %v13239_v45 = vld [vmem:[%s20442_s1 + $0x11ac] sm:$0xf0]  ;;  %v10548_v50 = vor.u32 %v13207_v22, %v10547_v40 }
  0x94   :  { %v10803_v46 = vld [vmem:[%s20442_s1 + $0x12a0] sm:$0xf]  ;;  %v13271_v47 = vld [vmem:[%s20442_s1 + $0x12ac] sm:$0xf0]  ;;  %6488 = vmatmul.bf16.vlgmr.msrb.gmra.mxu2 %v14712_v19  ;;  %6475 = vmatmul.bf16.vlgmr.msrb.gmra.mxu1 %v14716_v59  ;;  %v10676_v51 = vor.u32 %v13239_v45, %v10675_v43 }
  0x95   :  { %6519 = vmatpush.bf16.msra.mxu1 %v10708_v15  ;;  %6532 = vmatpush.bf16.msra.mxu2 %v10836_v16  ;;  %v10931_v48 = vld [vmem:[%s20442_s1 + $0x13a0] sm:$0xf]  ;;  %v13303_v49 = vld [vmem:[%s20442_s1 + $0x13ac] sm:$0xf0]  ;;  %v10804_v52 = vor.u32 %v13271_v47, %v10803_v46 }
  0x96   :  { %6545 = vmatpush.bf16.msra.mxu3 %v10964_v25  ;;  %6507 = vmatpush.bf16.msra.mxu0 %v10564_v60  ;;  %v10531_v53 = vld [vmem:[%s20442_s1 + $0x1080] sm:$0xf]  ;;  %v13203_v54 = vld [vmem:[%s20442_s1 + $0x108c] sm:$0xf0]  ;;  %v10932_v56 = vor.u32 %v13303_v49, %v10931_v48 }
  0x97   :  { %6501 = vmatmul.bf16.vlgmr.msrb.gmra.mxu3 %v14726_v37  ;;  %v10659_v55 = vld [vmem:[%s20442_s1 + $0x1180] sm:$0xf]  ;;  %v13235_v57 = vld [vmem:[%s20442_s1 + $0x118c] sm:$0xf0]  ;;  %v10532_v2 = vor.u32 %v13203_v54, %v10531_v53 }
  0x98   :  { %v10787_v58 = vld [vmem:[%s20442_s1 + $0x1280] sm:$0xf]  ;;  %v13267_v61 = vld [vmem:[%s20442_s1 + $0x128c] sm:$0xf0]  ;;  %v10660_v3 = vor.u32 %v13235_v57, %v10659_v55 }
  0x99   :  { %6520 = vmatpush.bf16.msra.mxu1 %v10692_v39  ;;  %6533 = vmatpush.bf16.msra.mxu2 %v10820_v62  ;;  %v10915_v0 = vld [vmem:[%s20442_s1 + $0x1380] sm:$0xf]  ;;  %v13299_v1 = vld [vmem:[%s20442_s1 + $0x138c] sm:$0xf0]  ;;  %v10788_v4 = vor.u32 %v13267_v61, %v10787_v58 }
  0x9a   :  { %6546 = vmatpush.bf16.msra.mxu3 %v10948_v63  ;;  %6508 = vmatpush.bf16.msra.mxu0 %v10548_v50  ;;  %v10515_v5 = vld [vmem:[%s20442_s1 + $0x1060] sm:$0xf]  ;;  %v13199_v6 = vld [vmem:[%s20442_s1 + $0x106c] sm:$0xf0]  ;;  %v10916_v8 = vor.u32 %v13299_v1, %v10915_v0 }
  0x9b   :  { %v10643_v7 = vld [vmem:[%s20442_s1 + $0x1160] sm:$0xf]  ;;  %v13231_v9 = vld [vmem:[%s20442_s1 + $0x116c] sm:$0xf0]  ;;  %v10516_v14 = vor.u32 %v13199_v6, %v10515_v5 }
  0x9c   :  { %v10771_v10 = vld [vmem:[%s20442_s1 + $0x1260] sm:$0xf]  ;;  %v13263_v11 = vld [vmem:[%s20442_s1 + $0x126c] sm:$0xf0]  ;;  %v10644_v15 = vor.u32 %v13231_v9, %v10643_v7 }
  0x9d   :  { %6521 = vmatpush.bf16.msra.mxu1 %v10676_v51  ;;  %6534 = vmatpush.bf16.msra.mxu2 %v10804_v52  ;;  %v10899_v12 = vld [vmem:[%s20442_s1 + $0x1360] sm:$0xf]  ;;  %v13295_v13 = vld [vmem:[%s20442_s1 + $0x136c] sm:$0xf0]  ;;  %v10772_v16 = vor.u32 %v13263_v11, %v10771_v10 }
  0x9e   :  { %6547 = vmatpush.bf16.msra.mxu3 %v10932_v56  ;;  %6509 = vmatpush.bf16.msra.mxu0 %v10532_v2  ;;  %v10499_v17 = vld [vmem:[%s20442_s1 + $0x1040] sm:$0xf]  ;;  %v13195_v20 = vld [vmem:[%s20442_s1 + $0x104c] sm:$0xf0]  ;;  %v10900_v25 = vor.u32 %v13295_v13, %v10899_v12 }
  0x9f   :  { %v10627_v23 = vld [vmem:[%s20442_s1 + $0x1140] sm:$0xf]  ;;  %v13227_v29 = vld [vmem:[%s20442_s1 + $0x114c] sm:$0xf0]  ;;  %v10500_v60 = vor.u32 %v13195_v20, %v10499_v17 }
  0xa0   :  { %v10755_v31 = vld [vmem:[%s20442_s1 + $0x1240] sm:$0xf]  ;;  %v13259_v34 = vld [vmem:[%s20442_s1 + $0x124c] sm:$0xf0]  ;;  %v10628_v39 = vor.u32 %v13227_v29, %v10627_v23 }
  0xa1   :  { %6522 = vmatpush.bf16.msra.mxu1 %v10660_v3  ;;  %6535 = vmatpush.bf16.msra.mxu2 %v10788_v4  ;;  %v10883_v21 = vld [vmem:[%s20442_s1 + $0x1340] sm:$0xf]  ;;  %v13291_v36 = vld [vmem:[%s20442_s1 + $0x134c] sm:$0xf0]  ;;  %v10756_v62 = vor.u32 %v13259_v34, %v10755_v31 }
  0xa2   :  { %6548 = vmatpush.bf16.msra.mxu3 %v10916_v8  ;;  %6510 = vmatpush.bf16.msra.mxu0 %v10516_v14  ;;  %v10483_v40 = vld [vmem:[%s20442_s1 + $0x1020] sm:$0xf]  ;;  %v13191_v22 = vld [vmem:[%s20442_s1 + $0x102c] sm:$0xf0]  ;;  %v10884_v63 = vor.u32 %v13291_v36, %v10883_v21 }
  0xa3   :  { %v10611_v43 = vld [vmem:[%s20442_s1 + $0x1120] sm:$0xf]  ;;  %v13223_v45 = vld [vmem:[%s20442_s1 + $0x112c] sm:$0xf0]  ;;  %v10484_v51 = vor.u32 %v13191_v22, %v10483_v40 }
  0xa4   :  { %v10739_v46 = vld [vmem:[%s20442_s1 + $0x1220] sm:$0xf]  ;;  %v13255_v47 = vld [vmem:[%s20442_s1 + $0x122c] sm:$0xf0]  ;;  %v10612_v55 = vor.u32 %v13223_v45, %v10611_v43 }
  0xa5   :  { %6523 = vmatpush.bf16.msra.mxu1 %v10644_v15  ;;  %6536 = vmatpush.bf16.msra.mxu2 %v10772_v16  ;;  %v10867_v48 = vld [vmem:[%s20442_s1 + $0x1320] sm:$0xf]  ;;  %v13287_v49 = vld [vmem:[%s20442_s1 + $0x132c] sm:$0xf0]  ;;  %v10740_v56 = vor.u32 %v13255_v47, %v10739_v46 }
  0xa6   :  { %6549 = vmatpush.bf16.msra.mxu3 %v10900_v25  ;;  %v10467_v50 = vld [vmem:[%s20442_s1 + $0x1000] sm:$0xf]  ;;  %6511 = vmatpush.bf16.msra.mxu0 %v10500_v60  ;;  %v13187_v52 = vld [vmem:[%s20442_s1 + $0x100c] sm:$0xf0]  ;;  %v10868_v0 = vor.u32 %v13287_v49, %v10867_v48 }
  0xa7   :  { %v10595_v53 = vld [vmem:[%s20442_s1 + $0x1100] sm:$0xf]  ;;  %v13219_v54 = vld [vmem:[%s20442_s1 + $0x110c] sm:$0xf0]  ;;  %v10468_v7 = vor.u32 %v13187_v52, %v10467_v50 }
  0xa8   :  { %v10723_v57 = vld [vmem:[%s20442_s1 + $0x1200] sm:$0xf]  ;;  %v13251_v58 = vld [vmem:[%s20442_s1 + $0x120c] sm:$0xf0]  ;;  %v10596_v11 = vor.u32 %v13219_v54, %v10595_v53 }
  0xa9   :  { %6524 = vmatpush.bf16.msra.mxu1 %v10628_v39  ;;  %6537 = vmatpush.bf16.msra.mxu2 %v10756_v62  ;;  %v10851_v61 = vld [vmem:[%s20442_s1 + $0x1300] sm:$0xf]  ;;  %v13283_v1 = vld [vmem:[%s20442_s1 + $0x130c] sm:$0xf0]  ;;  %v10724_v12 = vor.u32 %v13251_v58, %v10723_v57 }
  0xaa   :  { %6550 = vmatpush.bf16.msra.mxu3 %v10884_v63  ;;  %v11091_v2 = vld [vmem:[%s20442_s1 + $0x14e0] sm:$0xf]  ;;  %v13343_v3 = vld [vmem:[%s20442_s1 + $0x14ec] sm:$0xf0]  ;;  %6512 = vmatpush.bf16.msra.mxu0 %v10484_v51  ;;  %v10852_v15 = vor.u32 %v13283_v1, %v10851_v61 }
  0xab   :  { %v11219_v4 = vld [vmem:[%s20442_s1 + $0x15e0] sm:$0xf]  ;;  %v13375_v5 = vld [vmem:[%s20442_s1 + $0x15ec] sm:$0xf0]  ;;  %v11092_v16 = vor.u32 %v13343_v3, %v11091_v2 }
  0xac   :  { %v11347_v6 = vld [vmem:[%s20442_s1 + $0x16e0] sm:$0xf]  ;;  %v13407_v8 = vld [vmem:[%s20442_s1 + $0x16ec] sm:$0xf0]  ;;  %v11220_v23 = vor.u32 %v13375_v5, %v11219_v4 }
  0xad   :  { %v11475_v9 = vld [vmem:[%s20442_s1 + $0x17e0] sm:$0xf]  ;;  %v13439_v10 = vld [vmem:[%s20442_s1 + $0x17ec] sm:$0xf0]  ;;  %6525 = vmatpush.bf16.msra.mxu1 %v10612_v55  ;;  %6538 = vmatpush.bf16.msra.mxu2 %v10740_v56  ;;  %v11348_v25 = vor.u32 %v13407_v8, %v11347_v6 }
  0xae   :  { %v72_v13 = vld.sshfl [vmem:[#allocation1] sm:$0xff pattern:$0x73625140]  ;;  %v74_v14 = vld.sshfl [vmem:[#allocation1 + $0x10] sm:$0xff pattern:$0x73625140]  ;;  %6551 = vmatpush.bf16.msra.mxu3 %v10868_v0  ;;  %6513 = vmatpush.bf16.msra.mxu0 %v10468_v7  ;;  %v11476_v21 = vor.u32 %v13439_v10, %v11475_v9 }
  0xaf   :  { %v73_v17 = vld.sshfl [vmem:[#allocation1 + $0x8] sm:$0xff pattern:$0x73625140]  ;;  %v75_v20 = vld.sshfl [vmem:[#allocation1 + $0x18] sm:$0xff pattern:$0x73625140]  ;;  %v14909_v36 = vpack.c.bf16 %v72_v13, %v72_v13  ;;  %v14920_v40 = vpack.c.bf16 %v74_v14, %v74_v14 }
  0xb0   :  { %v11075_v29 = vld [vmem:[%s20442_s1 + $0x14c0] sm:$0xf]  ;;  %v13339_v31 = vld [vmem:[%s20442_s1 + $0x14cc] sm:$0xf0]  ;;  %v14922_v22 = vpack.c.bf16 %v73_v17, %v73_v17  ;;  %v14930_v45 = vpack.c.bf16 %v75_v20, %v75_v20 }
  0xb1   :  { %v11203_v34 = vld [vmem:[%s20442_s1 + $0x15c0] sm:$0xf]  ;;  %v13371_v60 = vld [vmem:[%s20442_s1 + $0x15cc] sm:$0xf0]  ;;  %6526 = vmatpush.bf16.msra.mxu1 %v10596_v11  ;;  %6539 = vmatpush.bf16.msra.mxu2 %v10724_v12  ;;  %v11076_v46 = vor.u32 %v13339_v31, %v11075_v29 }
  0xb2   :  { %v11331_v39 = vld [vmem:[%s20442_s1 + $0x16c0] sm:$0xf]  ;;  %v13403_v62 = vld [vmem:[%s20442_s1 + $0x16cc] sm:$0xf0]  ;;  %6552 = vmatpush.bf16.msra.mxu3 %v10852_v15  ;;  %6558 = vmatpush.bf16.msrb.mxu0 %v11092_v16  ;;  %v11204_v47 = vor.u32 %v13371_v60, %v11203_v34 }
  0xb3   :  { %v11459_v43 = vld [vmem:[%s20442_s1 + $0x17c0] sm:$0xf]  ;;  %v13435_v63 = vld [vmem:[%s20442_s1 + $0x17cc] sm:$0xf0]  ;;  %v11332_v48 = vor.u32 %v13403_v62, %v11331_v39  ;;  %6514 = vmatmul.bf16.vlgmr.msra.gmra.mxu0 %v14909_v36 }
  0xb4   :  { %v11059_v49 = vld [vmem:[%s20442_s1 + $0x14a0] sm:$0xf]  ;;  %v13335_v50 = vld [vmem:[%s20442_s1 + $0x14ac] sm:$0xf0]  ;;  %v11460_v52 = vor.u32 %v13435_v63, %v11459_v43  ;;  %6540 = vmatmul.bf16.vlgmr.msra.gmra.mxu2 %v14920_v40  ;;  %6527 = vmatmul.bf16.vlgmr.msra.gmra.mxu1 %v14922_v22 }
  0xb5   :  { %6571 = vmatpush.bf16.msrb.mxu1 %v11220_v23  ;;  %6584 = vmatpush.bf16.msrb.mxu2 %v11348_v25  ;;  %v11187_v51 = vld [vmem:[%s20442_s1 + $0x15a0] sm:$0xf]  ;;  %v13367_v53 = vld [vmem:[%s20442_s1 + $0x15ac] sm:$0xf0]  ;;  %v11060_v58 = vor.u32 %v13335_v50, %v11059_v49 }
  0xb6   :  { %6597 = vmatpush.bf16.msrb.mxu3 %v11476_v21  ;;  %v11315_v54 = vld [vmem:[%s20442_s1 + $0x16a0] sm:$0xf]  ;;  %v13399_v55 = vld [vmem:[%s20442_s1 + $0x16ac] sm:$0xf0]  ;;  %6559 = vmatpush.bf16.msrb.mxu0 %v11076_v46  ;;  %v11188_v61 = vor.u32 %v13367_v53, %v11187_v51 }
  0xb7   :  { %v11443_v56 = vld [vmem:[%s20442_s1 + $0x17a0] sm:$0xf]  ;;  %v13431_v57 = vld [vmem:[%s20442_s1 + $0x17ac] sm:$0xf0]  ;;  %6553 = vmatmul.bf16.vlgmr.msra.gmra.mxu3 %v14930_v45  ;;  %v11316_v0 = vor.u32 %v13399_v55, %v11315_v54 }
  0xb8   :  { %v11043_v1 = vld [vmem:[%s20442_s1 + $0x1480] sm:$0xf]  ;;  %v13331_v2 = vld [vmem:[%s20442_s1 + $0x148c] sm:$0xf0]  ;;  %v11444_v4 = vor.u32 %v13431_v57, %v11443_v56 }
  0xb9   :  { %6572 = vmatpush.bf16.msrb.mxu1 %v11204_v47  ;;  %6585 = vmatpush.bf16.msrb.mxu2 %v11332_v48  ;;  %v11171_v3 = vld [vmem:[%s20442_s1 + $0x1580] sm:$0xf]  ;;  %v13363_v5 = vld [vmem:[%s20442_s1 + $0x158c] sm:$0xf0]  ;;  %v11044_v10 = vor.u32 %v13331_v2, %v11043_v1 }
  0xba   :  { %6598 = vmatpush.bf16.msrb.mxu3 %v11460_v52  ;;  %v11299_v6 = vld [vmem:[%s20442_s1 + $0x1680] sm:$0xf]  ;;  %v13395_v7 = vld [vmem:[%s20442_s1 + $0x168c] sm:$0xf0]  ;;  %6560 = vmatpush.bf16.msrb.mxu0 %v11060_v58  ;;  %v11172_v11 = vor.u32 %v13363_v5, %v11171_v3 }
  0xbb   :  { %v11427_v8 = vld [vmem:[%s20442_s1 + $0x1780] sm:$0xf]  ;;  %v13427_v9 = vld [vmem:[%s20442_s1 + $0x178c] sm:$0xf0]  ;;  %v11300_v12 = vor.u32 %v13395_v7, %v11299_v6 }
  0xbc   :  { %v11027_v13 = vld [vmem:[%s20442_s1 + $0x1460] sm:$0xf]  ;;  %v13327_v14 = vld [vmem:[%s20442_s1 + $0x146c] sm:$0xf0]  ;;  %v11428_v16 = vor.u32 %v13427_v9, %v11427_v8 }
  0xbd   :  { %6573 = vmatpush.bf16.msrb.mxu1 %v11188_v61  ;;  %6586 = vmatpush.bf16.msrb.mxu2 %v11316_v0  ;;  %v11155_v15 = vld [vmem:[%s20442_s1 + $0x1560] sm:$0xf]  ;;  %v13359_v17 = vld [vmem:[%s20442_s1 + $0x156c] sm:$0xf0]  ;;  %v11028_v31 = vor.u32 %v13327_v14, %v11027_v13 }
  0xbe   :  { %6599 = vmatpush.bf16.msrb.mxu3 %v11444_v4  ;;  %v11283_v20 = vld [vmem:[%s20442_s1 + $0x1660] sm:$0xf]  ;;  %v13391_v23 = vld [vmem:[%s20442_s1 + $0x166c] sm:$0xf0]  ;;  %6561 = vmatpush.bf16.msrb.mxu0 %v11044_v10  ;;  %v11156_v34 = vor.u32 %v13359_v17, %v11155_v15  ;;  %v6307_v4 = vpop.f32.mrf.mxu0  ;;  %v6320_v10 = vpop.f32.mrf.mxu1 }
  0xbf   :  { %v11411_v25 = vld [vmem:[%s20442_s1 + $0x1760] sm:$0xf]  ;;  %v13423_v29 = vld [vmem:[%s20442_s1 + $0x176c] sm:$0xf0]  ;;  %v11284_v21 = vor.u32 %v13391_v23, %v11283_v20 }
  0xc0   :  { %v11011_v60 = vld [vmem:[%s20442_s1 + $0x1440] sm:$0xf]  ;;  %v13323_v39 = vld [vmem:[%s20442_s1 + $0x144c] sm:$0xf0]  ;;  %v11412_v43 = vor.u32 %v13423_v29, %v11411_v25 }
  0xc1   :  { %6574 = vmatpush.bf16.msrb.mxu1 %v11172_v11  ;;  %6587 = vmatpush.bf16.msrb.mxu2 %v11300_v12  ;;  %v11139_v62 = vld [vmem:[%s20442_s1 + $0x1540] sm:$0xf]  ;;  %v13355_v63 = vld [vmem:[%s20442_s1 + $0x154c] sm:$0xf0]  ;;  %v11012_v50 = vor.u32 %v13323_v39, %v11011_v60 }
  0xc2   :  { %6600 = vmatpush.bf16.msrb.mxu3 %v11428_v16  ;;  %v11267_v46 = vld [vmem:[%s20442_s1 + $0x1640] sm:$0xf]  ;;  %v13387_v47 = vld [vmem:[%s20442_s1 + $0x164c] sm:$0xf0]  ;;  %6562 = vmatpush.bf16.msrb.mxu0 %v11028_v31  ;;  %v11140_v52 = vor.u32 %v13355_v63, %v11139_v62  ;;  %v6321_v16 = vadd.f32 %v6320_v10, %v6307_v4 }
  0xc3   :  { %v11395_v48 = vld [vmem:[%s20442_s1 + $0x1740] sm:$0xf]  ;;  %v13419_v49 = vld [vmem:[%s20442_s1 + $0x174c] sm:$0xf0]  ;;  %v11268_v53 = vor.u32 %v13387_v47, %v11267_v46 }
  0xc4   :  { %v10995_v51 = vld [vmem:[%s20442_s1 + $0x1420] sm:$0xf]  ;;  %v13319_v54 = vld [vmem:[%s20442_s1 + $0x142c] sm:$0xf0]  ;;  %v11396_v57 = vor.u32 %v13419_v49, %v11395_v48 }
  0xc5   :  { %6575 = vmatpush.bf16.msrb.mxu1 %v11156_v34  ;;  %6588 = vmatpush.bf16.msrb.mxu2 %v11284_v21  ;;  %v11123_v55 = vld [vmem:[%s20442_s1 + $0x1520] sm:$0xf]  ;;  %v13351_v56 = vld [vmem:[%s20442_s1 + $0x152c] sm:$0xf0]  ;;  %v10996_v5 = vor.u32 %v13319_v54, %v10995_v51  ;;  %v6333_v34 = vpop.f32.mrf.mxu2 }
  0xc6   :  { %6601 = vmatpush.bf16.msrb.mxu3 %v11412_v43  ;;  %v11251_v58 = vld [vmem:[%s20442_s1 + $0x1620] sm:$0xf]  ;;  %v13383_v61 = vld [vmem:[%s20442_s1 + $0x162c] sm:$0xf0]  ;;  %6563 = vmatpush.bf16.msrb.mxu0 %v11012_v50  ;;  %v11124_v11 = vor.u32 %v13351_v56, %v11123_v55  ;;  %v6334_v43 = vadd.f32 %v6333_v34, %v6321_v16 }
  0xc7   :  { %v11379_v0 = vld [vmem:[%s20442_s1 + $0x1720] sm:$0xf]  ;;  %v13415_v1 = vld [vmem:[%s20442_s1 + $0x172c] sm:$0xf0]  ;;  %v11252_v12 = vor.u32 %v13383_v61, %v11251_v58 }
  0xc8   :  { %v10979_v2 = vld [vmem:[%s20442_s1 + $0x1400] sm:$0xf]  ;;  %v13315_v3 = vld [vmem:[%s20442_s1 + $0x140c] sm:$0xf0]  ;;  %v11380_v17 = vor.u32 %v13415_v1, %v11379_v0  ;;  %v6309_v0 = vpop.f32.mrf.mxu0 }
  0xc9   :  { %v11107_v6 = vld [vmem:[%s20442_s1 + $0x1500] sm:$0xf]  ;;  %v13347_v7 = vld [vmem:[%s20442_s1 + $0x150c] sm:$0xf0]  ;;  %6576 = vmatpush.bf16.msrb.mxu1 %v11140_v52  ;;  %6589 = vmatpush.bf16.msrb.mxu2 %v11268_v53  ;;  %v10980_v60 = vor.u32 %v13315_v3, %v10979_v2  ;;  %v6346_v53 = vpop.f32.mrf.mxu3 }
  0xca   :  { %v11235_v8 = vld [vmem:[%s20442_s1 + $0x1600] sm:$0xf]  ;;  %v13379_v9 = vld [vmem:[%s20442_s1 + $0x160c] sm:$0xf0]  ;;  %6602 = vmatpush.bf16.msrb.mxu3 %v11396_v57  ;;  %6564 = vmatpush.bf16.msrb.mxu0 %v10996_v5  ;;  %v11108_v63 = vor.u32 %v13347_v7, %v11107_v6  ;;  %v15116_v61 = vadd.f32 %v6346_v53, %v6334_v43  ;;  %v6322_v6 = vpop.f32.mrf.mxu1 }
  0xcb   :  { %v11363_v13 = vld [vmem:[%s20442_s1 + $0x1700] sm:$0xf]  ;;  %v13411_v14 = vld [vmem:[%s20442_s1 + $0x170c] sm:$0xf0]  ;;  %v11236_v46 = vor.u32 %v13379_v9, %v11235_v8 }
  0xcc   :  { %v11603_v15 = vld [vmem:[%s20442_s1 + $0x18e0] sm:$0xf]  ;;  %v13471_v20 = vld [vmem:[%s20442_s1 + $0x18ec] sm:$0xf0]  ;;  %v11364_v49 = vor.u32 %v13411_v14, %v11363_v13 }
  0xcd   :  { %v11731_v23 = vld [vmem:[%s20442_s1 + $0x19e0] sm:$0xf]  ;;  %v13503_v25 = vld [vmem:[%s20442_s1 + $0x19ec] sm:$0xf0]  ;;  %6577 = vmatpush.bf16.msrb.mxu1 %v11124_v11  ;;  %6590 = vmatpush.bf16.msrb.mxu2 %v11252_v12  ;;  %v11604_v50 = vor.u32 %v13471_v20, %v11603_v15  ;;  %v6335_v20 = vpop.f32.mrf.mxu2 }
  0xce   :  { %v11859_v29 = vld [vmem:[%s20442_s1 + $0x1ae0] sm:$0xf]  ;;  %v13535_v31 = vld [vmem:[%s20442_s1 + $0x1aec] sm:$0xf0]  ;;  %6603 = vmatpush.bf16.msrb.mxu3 %v11380_v17  ;;  %v11732_v54 = vor.u32 %v13503_v25, %v11731_v23  ;;  %6565 = vmatpush.bf16.msrb.mxu0 %v10980_v60 }
  0xcf   :  { %v39_v21 = vld [vmem:[%s20441_s0 + $0x30] sm:$0xff]  ;;  %v11987_v39 = vld [vmem:[%s20442_s1 + $0x1be0] sm:$0xf]  ;;  %v77_v51 = vld.sshfl [vmem:[#allocation1 + $0x28] sm:$0xff pattern:$0x73625140]  ;;  %v11860_v55 = vor.u32 %v13535_v31, %v11859_v29 }
  0xd0   :  { %v13567_v62 = vld [vmem:[%s20442_s1 + $0x1bec] sm:$0xf0]  ;;  %80 = vst [vmem:[#allocation1] ss:$4 sm:$0xff] %v39_v21  ;;  %v11587_v56 = vld [vmem:[%s20442_s1 + $0x18c0] sm:$0xf]  ;;  %v15131_v8 = vpack.c.bf16 %v77_v51, %v77_v51 }
  0xd1   :  { %v76_v47 = vld.sshfl [vmem:[#allocation1 + $0x20] sm:$0xff pattern:$0x73625140]  ;;  %v78_v48 = vld.sshfl [vmem:[#allocation1 + $0x30] sm:$0xff pattern:$0x73625140]  ;;  %v11988_v1 = vor.u32 %v13567_v62, %v11987_v39  ;;  %6578 = vmatpush.bf16.msrb.mxu1 %v11108_v63  ;;  %6591 = vmatpush.bf16.msrb.mxu2 %v11236_v46  ;;  %v6348_v39 = vpop.f32.mrf.mxu3 }
  0xd2   :  { %v79_v52 = vld.sshfl [vmem:[#allocation1 + $0x38] sm:$0xff pattern:$0x73625140]  ;;  %v13467_v57 = vld [vmem:[%s20442_s1 + $0x18cc] sm:$0xf0]  ;;  %v15118_v2 = vpack.c.bf16 %v76_v47, %v76_v47  ;;  %v15129_v7 = vpack.c.bf16 %v78_v48, %v78_v48  ;;  %6604 = vmatpush.bf16.msrb.mxu3 %v11364_v49  ;;  %6610 = vmatpush.bf16.msra.mxu0 %v11604_v50 }
  0xd3   :  { %v11715_v58 = vld [vmem:[%s20442_s1 + $0x19c0] sm:$0xf]  ;;  %v13499_v3 = vld [vmem:[%s20442_s1 + $0x19cc] sm:$0xf0]  ;;  %v15139_v11 = vpack.c.bf16 %v79_v52, %v79_v52  ;;  %v11588_v12 = vor.u32 %v13467_v57, %v11587_v56 }
  0xd4   :  { %v11843_v4 = vld [vmem:[%s20442_s1 + $0x1ac0] sm:$0xf]  ;;  %v13531_v5 = vld [vmem:[%s20442_s1 + $0x1acc] sm:$0xf0]  ;;  %v11716_v13 = vor.u32 %v13499_v3, %v11715_v58  ;;  %6566 = vmatmul.bf16.vlgmr.msrb.gmra.mxu0 %v15118_v2  ;;  %6592 = vmatmul.bf16.vlgmr.msrb.gmra.mxu2 %v15129_v7 }
  0xd5   :  { %v11971_v9 = vld [vmem:[%s20442_s1 + $0x1bc0] sm:$0xf]  ;;  %v13563_v10 = vld [vmem:[%s20442_s1 + $0x1bcc] sm:$0xf0]  ;;  %6623 = vmatpush.bf16.msra.mxu1 %v11732_v54  ;;  %6636 = vmatpush.bf16.msra.mxu2 %v11860_v55  ;;  %v11844_v14 = vor.u32 %v13531_v5, %v11843_v4  ;;  %v6359_v55 = vpop.f32.mrf.mxu0  ;;  %v6372_v4 = vpop.f32.mrf.mxu1 }
  0xd6   :  { %v11571_v15 = vld [vmem:[%s20442_s1 + $0x18a0] sm:$0xf]  ;;  %v13463_v16 = vld [vmem:[%s20442_s1 + $0x18ac] sm:$0xf0]  ;;  %6649 = vmatpush.bf16.msra.mxu3 %v11988_v1  ;;  %v11972_v23 = vor.u32 %v13563_v10, %v11971_v9  ;;  %6579 = vmatmul.bf16.vlgmr.msrb.gmra.mxu1 %v15131_v8  ;;  %v6360_v3 = vadd.f32 %v6359_v55, %v15116_v61 }
  0xd7   :  { %v11699_v17 = vld [vmem:[%s20442_s1 + $0x19a0] sm:$0xf]  ;;  %v13495_v25 = vld [vmem:[%s20442_s1 + $0x19ac] sm:$0xf0]  ;;  %6605 = vmatmul.bf16.vlgmr.msrb.gmra.mxu3 %v15139_v11  ;;  %6611 = vmatpush.bf16.msra.mxu0 %v11588_v12  ;;  %v11572_v60 = vor.u32 %v13463_v16, %v11571_v15 }
  0xd8   :  { %v11827_v29 = vld [vmem:[%s20442_s1 + $0x1aa0] sm:$0xf]  ;;  %v13527_v31 = vld [vmem:[%s20442_s1 + $0x1aac] sm:$0xf0]  ;;  %v11700_v62 = vor.u32 %v13495_v25, %v11699_v17  ;;  %v6385_v25 = vpop.f32.mrf.mxu2 }
  0xd9   :  { %v11955_v34 = vld [vmem:[%s20442_s1 + $0x1ba0] sm:$0xf]  ;;  %v13559_v21 = vld [vmem:[%s20442_s1 + $0x1bac] sm:$0xf0]  ;;  %6624 = vmatpush.bf16.msra.mxu1 %v11716_v13  ;;  %6637 = vmatpush.bf16.msra.mxu2 %v11844_v14  ;;  %v11828_v43 = vor.u32 %v13527_v31, %v11827_v29  ;;  %v6373_v13 = vadd.f32 %v6372_v4, %v6360_v3  ;;  %v6398_v39 = vpop.f32.mrf.mxu3 }
  0xda   :  { %v11555_v63 = vld [vmem:[%s20442_s1 + $0x1880] sm:$0xf]  ;;  %v13459_v46 = vld [vmem:[%s20442_s1 + $0x188c] sm:$0xf0]  ;;  %6650 = vmatpush.bf16.msra.mxu3 %v11972_v23  ;;  %v11956_v48 = vor.u32 %v13559_v21, %v11955_v34 }
  0xdb   :  { %v11683_v47 = vld [vmem:[%s20442_s1 + $0x1980] sm:$0xf]  ;;  %v13491_v49 = vld [vmem:[%s20442_s1 + $0x198c] sm:$0xf0]  ;;  %6612 = vmatpush.bf16.msra.mxu0 %v11572_v60  ;;  %v11556_v54 = vor.u32 %v13459_v46, %v11555_v63  ;;  %v6386_v60 = vadd.f32 %v6385_v25, %v6373_v13 }
  0xdc   :  { %v11811_v50 = vld [vmem:[%s20442_s1 + $0x1a80] sm:$0xf]  ;;  %v13523_v51 = vld [vmem:[%s20442_s1 + $0x1a8c] sm:$0xf0]  ;;  %v11684_v56 = vor.u32 %v13491_v49, %v11683_v47 }
  0xdd   :  { %v11939_v52 = vld [vmem:[%s20442_s1 + $0x1b80] sm:$0xf]  ;;  %v13555_v53 = vld [vmem:[%s20442_s1 + $0x1b8c] sm:$0xf0]  ;;  %6625 = vmatpush.bf16.msra.mxu1 %v11700_v62  ;;  %6638 = vmatpush.bf16.msra.mxu2 %v11828_v43  ;;  %v11812_v57 = vor.u32 %v13523_v51, %v11811_v50  ;;  %v15242_v46 = vadd.f32 %v6398_v39, %v6386_v60 }
  0xde   :  { %v11539_v58 = vld [vmem:[%s20442_s1 + $0x1860] sm:$0xf]  ;;  %v13455_v0 = vld [vmem:[%s20442_s1 + $0x186c] sm:$0xf0]  ;;  %6651 = vmatpush.bf16.msra.mxu3 %v11956_v48  ;;  %v11940_v5 = vor.u32 %v13555_v53, %v11939_v52  ;;  %v6361_v48 = vpop.f32.mrf.mxu0 }
  0xdf   :  { %v11667_v1 = vld [vmem:[%s20442_s1 + $0x1960] sm:$0xf]  ;;  %v13487_v6 = vld [vmem:[%s20442_s1 + $0x196c] sm:$0xf0]  ;;  %6613 = vmatpush.bf16.msra.mxu0 %v11556_v54  ;;  %v11540_v14 = vor.u32 %v13455_v0, %v11539_v58  ;;  %v6374_v54 = vpop.f32.mrf.mxu1 }
  0xe0   :  { %v11795_v9 = vld [vmem:[%s20442_s1 + $0x1a60] sm:$0xf]  ;;  %v13519_v10 = vld [vmem:[%s20442_s1 + $0x1a6c] sm:$0xf0]  ;;  %v11668_v15 = vor.u32 %v13487_v6, %v11667_v1 }
  0xe1   :  { %v11923_v12 = vld [vmem:[%s20442_s1 + $0x1b60] sm:$0xf]  ;;  %v13551_v61 = vld [vmem:[%s20442_s1 + $0x1b6c] sm:$0xf0]  ;;  %6626 = vmatpush.bf16.msra.mxu1 %v11684_v56  ;;  %6639 = vmatpush.bf16.msra.mxu2 %v11812_v57  ;;  %v11796_v16 = vor.u32 %v13519_v10, %v11795_v9 }
  0xe2   :  { %v11523_v17 = vld [vmem:[%s20442_s1 + $0x1840] sm:$0xf]  ;;  %v13451_v20 = vld [vmem:[%s20442_s1 + $0x184c] sm:$0xf0]  ;;  %6652 = vmatpush.bf16.msra.mxu3 %v11940_v5  ;;  %v11924_v29 = vor.u32 %v13551_v61, %v11923_v12 }
  0xe3   :  { %v11651_v23 = vld [vmem:[%s20442_s1 + $0x1940] sm:$0xf]  ;;  %v13483_v31 = vld [vmem:[%s20442_s1 + $0x194c] sm:$0xf0]  ;;  %6614 = vmatpush.bf16.msra.mxu0 %v11540_v14  ;;  %v11524_v63 = vor.u32 %v13451_v20, %v11523_v17 }
  0xe4   :  { %v11779_v34 = vld [vmem:[%s20442_s1 + $0x1a40] sm:$0xf]  ;;  %v13515_v21 = vld [vmem:[%s20442_s1 + $0x1a4c] sm:$0xf0]  ;;  %v11652_v49 = vor.u32 %v13483_v31, %v11651_v23 }
  0xe5   :  { %v11907_v62 = vld [vmem:[%s20442_s1 + $0x1b40] sm:$0xf]  ;;  %v13547_v43 = vld [vmem:[%s20442_s1 + $0x1b4c] sm:$0xf0]  ;;  %6627 = vmatpush.bf16.msra.mxu1 %v11668_v15  ;;  %6640 = vmatpush.bf16.msra.mxu2 %v11796_v16  ;;  %v11780_v50 = vor.u32 %v13515_v21, %v11779_v34  ;;  %v6387_v16 = vpop.f32.mrf.mxu2  ;;  %v40_v21 = vld [vmem:[%s20441_s0 + $0x38] sm:$0xff] }
  0xe6   :  { %v11507_v47 = vld [vmem:[%s20442_s1 + $0x1820] sm:$0xf]  ;;  %v13447_v51 = vld [vmem:[%s20442_s1 + $0x182c] sm:$0xf0]  ;;  %6653 = vmatpush.bf16.msra.mxu3 %v11924_v29  ;;  %v11908_v55 = vor.u32 %v13547_v43, %v11907_v62  ;;  %v6400_v29 = vpop.f32.mrf.mxu3  ;;  %81 = vst [vmem:[#allocation1 + $0x20] ss:$4 sm:$0xff] %v40_v21 }
  0xe7   :  { %v11635_v52 = vld [vmem:[%s20442_s1 + $0x1920] sm:$0xf]  ;;  %v13479_v53 = vld [vmem:[%s20442_s1 + $0x192c] sm:$0xf0]  ;;  %6615 = vmatpush.bf16.msra.mxu0 %v11524_v63  ;;  %v11508_v4 = vor.u32 %v13447_v51, %v11507_v47 }
  0xe8   :  { %v11763_v56 = vld [vmem:[%s20442_s1 + $0x1a20] sm:$0xf]  ;;  %v13511_v57 = vld [vmem:[%s20442_s1 + $0x1a2c] sm:$0xf0]  ;;  %v11636_v12 = vor.u32 %v13479_v53, %v11635_v52 }
  0xe9   :  { %v11891_v58 = vld [vmem:[%s20442_s1 + $0x1b20] sm:$0xf]  ;;  %v13543_v0 = vld [vmem:[%s20442_s1 + $0x1b2c] sm:$0xf0]  ;;  %6628 = vmatpush.bf16.msra.mxu1 %v11652_v49  ;;  %6641 = vmatpush.bf16.msra.mxu2 %v11780_v50  ;;  %v11764_v61 = vor.u32 %v13511_v57, %v11763_v56 }
  0xea   :  { %v11491_v1 = vld [vmem:[%s20442_s1 + $0x1800] sm:$0xf]  ;;  %v13443_v3 = vld [vmem:[%s20442_s1 + $0x180c] sm:$0xf0]  ;;  %6654 = vmatpush.bf16.msra.mxu3 %v11908_v55  ;;  %v11892_v17 = vor.u32 %v13543_v0, %v11891_v58 }
  0xeb   :  { %v11619_v5 = vld [vmem:[%s20442_s1 + $0x1900] sm:$0xf]  ;;  %v13475_v6 = vld [vmem:[%s20442_s1 + $0x190c] sm:$0xf0]  ;;  %6616 = vmatpush.bf16.msra.mxu0 %v11508_v4  ;;  %v11492_v60 = vor.u32 %v13443_v3, %v11491_v1 }
  0xec   :  { %v11747_v9 = vld [vmem:[%s20442_s1 + $0x1a00] sm:$0xf]  ;;  %v13507_v10 = vld [vmem:[%s20442_s1 + $0x1a0c] sm:$0xf0]  ;;  %v11620_v43 = vor.u32 %v13475_v6, %v11619_v5 }
  0xed   :  { %v11875_v13 = vld [vmem:[%s20442_s1 + $0x1b00] sm:$0xf]  ;;  %v13539_v14 = vld [vmem:[%s20442_s1 + $0x1b0c] sm:$0xf0]  ;;  %6629 = vmatpush.bf16.msra.mxu1 %v11636_v12  ;;  %6642 = vmatpush.bf16.msra.mxu2 %v11764_v61  ;;  %v11748_v63 = vor.u32 %v13507_v10, %v11747_v9 }
  0xee   :  { %v12115_v15 = vld [vmem:[%s20442_s1 + $0x1ce0] sm:$0xf]  ;;  %v13599_v20 = vld [vmem:[%s20442_s1 + $0x1cec] sm:$0xf0]  ;;  %6655 = vmatpush.bf16.msra.mxu3 %v11892_v17  ;;  %v11876_v49 = vor.u32 %v13539_v14, %v11875_v13 }
  0xef   :  { %v12243_v23 = vld [vmem:[%s20442_s1 + $0x1de0] sm:$0xf]  ;;  %v13631_v25 = vld [vmem:[%s20442_s1 + $0x1dec] sm:$0xf0]  ;;  %v12116_v50 = vor.u32 %v13599_v20, %v12115_v15  ;;  %6617 = vmatpush.bf16.msra.mxu0 %v11492_v60 }
  0xf0   :  { %v12371_v31 = vld [vmem:[%s20442_s1 + $0x1ee0] sm:$0xf]  ;;  %v13663_v34 = vld [vmem:[%s20442_s1 + $0x1eec] sm:$0xf0]  ;;  %v12244_v53 = vor.u32 %v13631_v25, %v12243_v23 }
  0xf1   :  { %v12499_v39 = vld [vmem:[%s20442_s1 + $0x1fe0] sm:$0xf]  ;;  %v13695_v62 = vld [vmem:[%s20442_s1 + $0x1fec] sm:$0xf0]  ;;  %v12372_v54 = vor.u32 %v13663_v34, %v12371_v31  ;;  %6630 = vmatpush.bf16.msra.mxu1 %v11620_v43  ;;  %6643 = vmatpush.bf16.msra.mxu2 %v11748_v63 }
  0xf2   :  { %v82_v47 = vld.sshfl [vmem:[#allocation1] sm:$0xff pattern:$0x73625140]  ;;  %v84_v48 = vld.sshfl [vmem:[#allocation1 + $0x10] sm:$0xff pattern:$0x73625140]  ;;  %v12500_v58 = vor.u32 %v13695_v62, %v12499_v39  ;;  %6656 = vmatpush.bf16.msra.mxu3 %v11876_v49 }
  0xf3   :  { %v83_v51 = vld.sshfl [vmem:[#allocation1 + $0x8] sm:$0xff pattern:$0x73625140]  ;;  %v85_v52 = vld.sshfl [vmem:[#allocation1 + $0x18] sm:$0xff pattern:$0x73625140]  ;;  %v15328_v0 = vpack.c.bf16 %v82_v47, %v82_v47  ;;  %v15339_v5 = vpack.c.bf16 %v84_v48, %v84_v48  ;;  %6662 = vmatpush.bf16.msrb.mxu0 %v12116_v50 }
  0xf4   :  { %v12099_v55 = vld [vmem:[%s20442_s1 + $0x1cc0] sm:$0xf]  ;;  %v13595_v56 = vld [vmem:[%s20442_s1 + $0x1ccc] sm:$0xf0]  ;;  %v15341_v6 = vpack.c.bf16 %v83_v51, %v83_v51  ;;  %v15349_v12 = vpack.c.bf16 %v85_v52, %v85_v52  ;;  %v6411_v51 = vpop.f32.mrf.mxu0 }
  0xf5   :  { %v12227_v57 = vld [vmem:[%s20442_s1 + $0x1dc0] sm:$0xf]  ;;  %v13627_v1 = vld [vmem:[%s20442_s1 + $0x1dcc] sm:$0xf0]  ;;  %v12100_v61 = vor.u32 %v13595_v56, %v12099_v55  ;;  %6675 = vmatpush.bf16.msrb.mxu1 %v12244_v53  ;;  %6688 = vmatpush.bf16.msrb.mxu2 %v12372_v54  ;;  %v6412_v54 = vadd.f32 %v6411_v51, %v15242_v46  ;;  %v6424_v56 = vpop.f32.mrf.mxu1 }
  0xf6   :  { %v12355_v3 = vld [vmem:[%s20442_s1 + $0x1ec0] sm:$0xf]  ;;  %v13659_v4 = vld [vmem:[%s20442_s1 + $0x1ecc] sm:$0xf0]  ;;  %v12228_v13 = vor.u32 %v13627_v1, %v12227_v57  ;;  %6701 = vmatpush.bf16.msrb.mxu3 %v12500_v58  ;;  %6618 = vmatmul.bf16.vlgmr.msra.gmra.mxu0 %v15328_v0 }
  0xf7   :  { %v12483_v9 = vld [vmem:[%s20442_s1 + $0x1fc0] sm:$0xf]  ;;  %v13691_v10 = vld [vmem:[%s20442_s1 + $0x1fcc] sm:$0xf0]  ;;  %v12356_v14 = vor.u32 %v13659_v4, %v12355_v3  ;;  %6644 = vmatmul.bf16.vlgmr.msra.gmra.mxu2 %v15339_v5  ;;  %6631 = vmatmul.bf16.vlgmr.msra.gmra.mxu1 %v15341_v6 }
  0xf8   :  { %v12083_v15 = vld [vmem:[%s20442_s1 + $0x1ca0] sm:$0xf]  ;;  %v13591_v16 = vld [vmem:[%s20442_s1 + $0x1cac] sm:$0xf0]  ;;  %v12484_v20 = vor.u32 %v13691_v10, %v12483_v9  ;;  %6657 = vmatmul.bf16.vlgmr.msra.gmra.mxu3 %v15349_v12  ;;  %6663 = vmatpush.bf16.msrb.mxu0 %v12100_v61  ;;  %v6425_v9 = vadd.f32 %v6424_v56, %v6412_v54 }
  0xf9   :  { %v12211_v17 = vld [vmem:[%s20442_s1 + $0x1da0] sm:$0xf]  ;;  %v13623_v23 = vld [vmem:[%s20442_s1 + $0x1dac] sm:$0xf0]  ;;  %v12084_v21 = vor.u32 %v13591_v16, %v12083_v15  ;;  %6676 = vmatpush.bf16.msrb.mxu1 %v12228_v13  ;;  %6689 = vmatpush.bf16.msrb.mxu2 %v12356_v14 }
  0xfa   :  { %v12339_v25 = vld [vmem:[%s20442_s1 + $0x1ea0] sm:$0xf]  ;;  %v13655_v29 = vld [vmem:[%s20442_s1 + $0x1eac] sm:$0xf0]  ;;  %v12212_v60 = vor.u32 %v13623_v23, %v12211_v17  ;;  %6702 = vmatpush.bf16.msrb.mxu3 %v12484_v20 }
  0xfb   :  { %v12467_v31 = vld [vmem:[%s20442_s1 + $0x1fa0] sm:$0xf]  ;;  %v13687_v34 = vld [vmem:[%s20442_s1 + $0x1fac] sm:$0xf0]  ;;  %v12340_v39 = vor.u32 %v13655_v29, %v12339_v25 }
  0xfc   :  { %v12067_v62 = vld [vmem:[%s20442_s1 + $0x1c80] sm:$0xf]  ;;  %v13587_v43 = vld [vmem:[%s20442_s1 + $0x1c8c] sm:$0xf0]  ;;  %v12468_v47 = vor.u32 %v13687_v34, %v12467_v31  ;;  %6664 = vmatpush.bf16.msrb.mxu0 %v12084_v21  ;;  %v6437_v34 = vpop.f32.mrf.mxu2 }
  0xfd   :  { %v12195_v63 = vld [vmem:[%s20442_s1 + $0x1d80] sm:$0xf]  ;;  %v13619_v48 = vld [vmem:[%s20442_s1 + $0x1d8c] sm:$0xf0]  ;;  %v12068_v55 = vor.u32 %v13587_v43, %v12067_v62  ;;  %6677 = vmatpush.bf16.msrb.mxu1 %v12212_v60  ;;  %6690 = vmatpush.bf16.msrb.mxu2 %v12340_v39  ;;  %v6438_v62 = vadd.f32 %v6437_v34, %v6425_v9  ;;  %v6450_v43 = vpop.f32.mrf.mxu3  ;;  %v8533_v34 = vld [vmem:[%s20442_s1 + $0xf0] sm:$0xf0] }
  0xfe   :  { %v12323_v49 = vld [vmem:[%s20442_s1 + $0x1e80] sm:$0xf]  ;;  %v13651_v50 = vld [vmem:[%s20442_s1 + $0x1e8c] sm:$0xf0]  ;;  %v12196_v57 = vor.u32 %v13619_v48, %v12195_v63  ;;  %6703 = vmatpush.bf16.msrb.mxu3 %v12468_v47  ;;  %v6413_v48 = vpop.f32.mrf.mxu0 }
  0xff   :  { %v12451_v52 = vld [vmem:[%s20442_s1 + $0x1f80] sm:$0xf]  ;;  %v13683_v53 = vld [vmem:[%s20442_s1 + $0x1f8c] sm:$0xf0]  ;;  %v12324_v58 = vor.u32 %v13651_v50, %v12323_v49  ;;  %v6426_v50 = vpop.f32.mrf.mxu1  ;;  %v15452_v51 = vadd.f32 %v6450_v43, %v6438_v62  ;;  %v12765_v62 = vld [vmem:[%s20442_s1 + $0x2e4] sm:$0xf] }
 0x100   :  { %v12051_v1 = vld [vmem:[%s20442_s1 + $0x1c60] sm:$0xf]  ;;  %v13583_v3 = vld [vmem:[%s20442_s1 + $0x1c6c] sm:$0xf0]  ;;  %v12452_v46 = vor.u32 %v13683_v53, %v12451_v52  ;;  %6665 = vmatpush.bf16.msrb.mxu0 %v12068_v55  ;;  %v12797_v48 = vld [vmem:[%s20442_s1 + $0x3e4] sm:$0xf] }
 0x101   :  { %v12179_v4 = vld [vmem:[%s20442_s1 + $0x1d60] sm:$0xf]  ;;  %v13615_v10 = vld [vmem:[%s20442_s1 + $0x1d6c] sm:$0xf0]  ;;  %v12052_v16 = vor.u32 %v13583_v3, %v12051_v1  ;;  %6678 = vmatpush.bf16.msrb.mxu1 %v12196_v57  ;;  %6691 = vmatpush.bf16.msrb.mxu2 %v12324_v58 }
 0x102   :  { %v12307_v61 = vld [vmem:[%s20442_s1 + $0x1e60] sm:$0xf]  ;;  %v13647_v13 = vld [vmem:[%s20442_s1 + $0x1e6c] sm:$0xf0]  ;;  %v12180_v17 = vor.u32 %v13615_v10, %v12179_v4  ;;  %6704 = vmatpush.bf16.msrb.mxu3 %v12452_v46 }
 0x103   :  { %v12435_v14 = vld [vmem:[%s20442_s1 + $0x1f60] sm:$0xf]  ;;  %v13679_v15 = vld [vmem:[%s20442_s1 + $0x1f6c] sm:$0xf0]  ;;  %v12308_v20 = vor.u32 %v13647_v13, %v12307_v61 }
 0x104   :  { %v12035_v23 = vld [vmem:[%s20442_s1 + $0x1c40] sm:$0xf]  ;;  %v13579_v25 = vld [vmem:[%s20442_s1 + $0x1c4c] sm:$0xf0]  ;;  %v12436_v31 = vor.u32 %v13679_v15, %v12435_v14  ;;  %6666 = vmatpush.bf16.msrb.mxu0 %v12052_v16 }
 0x105   :  { %v12163_v29 = vld [vmem:[%s20442_s1 + $0x1d40] sm:$0xf]  ;;  %v13611_v21 = vld [vmem:[%s20442_s1 + $0x1d4c] sm:$0xf0]  ;;  %v12036_v49 = vor.u32 %v13579_v25, %v12035_v23  ;;  %6679 = vmatpush.bf16.msrb.mxu1 %v12180_v17  ;;  %6692 = vmatpush.bf16.msrb.mxu2 %v12308_v20  ;;  %v6452_v43 = vpop.f32.mrf.mxu3 }
 0x106   :  { %v12291_v60 = vld [vmem:[%s20442_s1 + $0x1e40] sm:$0xf]  ;;  %v13643_v39 = vld [vmem:[%s20442_s1 + $0x1e4c] sm:$0xf0]  ;;  %v12164_v52 = vor.u32 %v13611_v21, %v12163_v29  ;;  %6705 = vmatpush.bf16.msrb.mxu3 %v12436_v31  ;;  %v12701_v31 = vld [vmem:[%s20442_s1 + $0xe4] sm:$0xf]  ;;  %v6439_v21 = vpop.f32.mrf.mxu2 }
 0x107   :  { %v12419_v63 = vld [vmem:[%s20442_s1 + $0x1f40] sm:$0xf]  ;;  %v13675_v47 = vld [vmem:[%s20442_s1 + $0x1f4c] sm:$0xf0]  ;;  %v12292_v53 = vor.u32 %v13643_v39, %v12291_v60  ;;  %v12733_v60 = vld [vmem:[%s20442_s1 + $0x1e4] sm:$0xf] }
 0x108   :  { %v12019_v54 = vld [vmem:[%s20442_s1 + $0x1c20] sm:$0xf]  ;;  %v13575_v55 = vld [vmem:[%s20442_s1 + $0x1c2c] sm:$0xf0]  ;;  %v12420_v57 = vor.u32 %v13675_v47, %v12419_v63  ;;  %6667 = vmatpush.bf16.msrb.mxu0 %v12036_v49  ;;  %v8661_v39 = vld [vmem:[%s20442_s1 + $0x1f0] sm:$0xf0] }
 0x109   :  { %v12147_v56 = vld [vmem:[%s20442_s1 + $0x1d20] sm:$0xf]  ;;  %v13607_v58 = vld [vmem:[%s20442_s1 + $0x1d2c] sm:$0xf0]  ;;  %v12020_v10 = vor.u32 %v13575_v55, %v12019_v54  ;;  %6680 = vmatpush.bf16.msrb.mxu1 %v12164_v52  ;;  %6693 = vmatpush.bf16.msrb.mxu2 %v12292_v53  ;;  %v8789_v47 = vld [vmem:[%s20442_s1 + $0x2f0] sm:$0xf0] }
 0x10a   :  { %v12275_v1 = vld [vmem:[%s20442_s1 + $0x1e20] sm:$0xf]  ;;  %v13639_v3 = vld [vmem:[%s20442_s1 + $0x1e2c] sm:$0xf0]  ;;  %v12148_v15 = vor.u32 %v13607_v58, %v12147_v56  ;;  %6706 = vmatpush.bf16.msrb.mxu3 %v12420_v57  ;;  %v8917_v49 = vld [vmem:[%s20442_s1 + $0x3f0] sm:$0xf0]  ;;  %v8536_v56 = vor.u32 %v12701_v31, %v8533_v34 }
 0x10b   :  { %v12403_v4 = vld [vmem:[%s20442_s1 + $0x1f20] sm:$0xf]  ;;  %v13671_v46 = vld [vmem:[%s20442_s1 + $0x1f2c] sm:$0xf0]  ;;  %v12276_v16 = vor.u32 %v13639_v3, %v12275_v1  ;;  %v8664_v1 = vor.u32 %v12733_v60, %v8661_v39  ;;  %v8792_v3 = vor.u32 %v12765_v62, %v8789_v47  ;;  %v12693_v21 = vld [vmem:[%s20442_s1 + $0xa4] sm:$0xf] }
 0x10c   :  { %v12003_v9 = vld [vmem:[%s20442_s1 + $0x1c00] sm:$0xf]  ;;  %v13571_v61 = vld [vmem:[%s20442_s1 + $0x1c0c] sm:$0xf0]  ;;  %v12404_v25 = vor.u32 %v13671_v46, %v12403_v4  ;;  %6668 = vmatpush.bf16.msrb.mxu0 %v12020_v10  ;;  %v12697_v4 = vld [vmem:[%s20442_s1 + $0xc4] sm:$0xf]  ;;  %v8920_v10 = vor.u32 %v12797_v48, %v8917_v49 }
 0x10d   :  { %v12131_v13 = vld [vmem:[%s20442_s1 + $0x1d00] sm:$0xf]  ;;  %v13603_v14 = vld [vmem:[%s20442_s1 + $0x1d0c] sm:$0xf0]  ;;  %v12004_v63 = vor.u32 %v13571_v61, %v12003_v9  ;;  %6681 = vmatpush.bf16.msrb.mxu1 %v12148_v15  ;;  %6694 = vmatpush.bf16.msrb.mxu2 %v12276_v16  ;;  %v8517_v46 = vld [vmem:[%s20442_s1 + $0xd0] sm:$0xf0] }
 0x10e   :  { %v12259_v17 = vld [vmem:[%s20442_s1 + $0x1e00] sm:$0xf]  ;;  %v13635_v20 = vld [vmem:[%s20442_s1 + $0x1e0c] sm:$0xf0]  ;;  %v12132_v50 = vor.u32 %v13603_v14, %v12131_v13  ;;  %6707 = vmatpush.bf16.msrb.mxu3 %v12404_v25  ;;  %v12729_v9 = vld [vmem:[%s20442_s1 + $0x1c4] sm:$0xf] }
 0x10f   :  { %v12387_v23 = vld [vmem:[%s20442_s1 + $0x1f00] sm:$0xf]  ;;  %v13667_v29 = vld [vmem:[%s20442_s1 + $0x1f0c] sm:$0xf0]  ;;  %v12260_v52 = vor.u32 %v13635_v20, %v12259_v17  ;;  %v8645_v13 = vld [vmem:[%s20442_s1 + $0x1d0] sm:$0xf0] }
 0x110   :  { %v86_v53 = vld.sshfl [vmem:[#allocation1 + $0x20] sm:$0xff pattern:$0x73625140]  ;;  %v88_v54 = vld.sshfl [vmem:[#allocation1 + $0x30] sm:$0xff pattern:$0x73625140]  ;;  %v12388_v55 = vor.u32 %v13667_v29, %v12387_v23  ;;  %6669 = vmatpush.bf16.msrb.mxu0 %v12004_v63  ;;  %v8520_v29 = vor.u32 %v12697_v4, %v8517_v46  ;;  %v8648_v31 = vor.u32 %v12729_v9, %v8645_v13  ;;  %v6463_v4 = vpop.f32.mrf.mxu0 }
 0x111   :  { %v87_v57 = vld.sshfl [vmem:[#allocation1 + $0x28] sm:$0xff pattern:$0x73625140]  ;;  %v89_v58 = vld.sshfl [vmem:[#allocation1 + $0x38] sm:$0xff pattern:$0x73625140]  ;;  %v15535_v61 = vpack.c.bf16 %v86_v53, %v86_v53  ;;  %6682 = vmatpush.bf16.msrb.mxu1 %v12132_v50  ;;  %6695 = vmatpush.bf16.msrb.mxu2 %v12260_v52  ;;  %v15546_v16 = vpack.c.bf16 %v88_v54, %v88_v54 }
 0x112   :  { %v12761_v14 = vld [vmem:[%s20442_s1 + $0x2c4] sm:$0xf]  ;;  %v8773_v15 = vld [vmem:[%s20442_s1 + $0x2d0] sm:$0xf0]  ;;  %v15548_v17 = vpack.c.bf16 %v87_v57, %v87_v57  ;;  %6708 = vmatpush.bf16.msrb.mxu3 %v12388_v55  ;;  %v15556_v25 = vpack.c.bf16 %v89_v58, %v89_v58 }
 0x113   :  { %v12793_v20 = vld [vmem:[%s20442_s1 + $0x3c4] sm:$0xf]  ;;  %v8901_v23 = vld [vmem:[%s20442_s1 + $0x3d0] sm:$0xf0]  ;;  %v8776_v34 = vor.u32 %v12761_v14, %v8773_v15  ;;  %6670 = vmatmul.bf16.vlgmr.msrb.gmra.mxu0 %v15535_v61  ;;  %v6476_v14 = vpop.f32.mrf.mxu1 }
 0x114   :  { %6714 = vmatpush.bf16.msra.mxu0 %v8536_v56  ;;  %v8501_v60 = vld [vmem:[%s20442_s1 + $0xb0] sm:$0xf0]  ;;  %v12725_v39 = vld [vmem:[%s20442_s1 + $0x1a4] sm:$0xf]  ;;  %v8904_v62 = vor.u32 %v12793_v20, %v8901_v23  ;;  %6696 = vmatmul.bf16.vlgmr.msrb.gmra.mxu2 %v15546_v16 }
 0x115   :  { %6727 = vmatpush.bf16.msra.mxu1 %v8664_v1  ;;  %6740 = vmatpush.bf16.msra.mxu2 %v8792_v3  ;;  %v8629_v43 = vld [vmem:[%s20442_s1 + $0x1b0] sm:$0xf0]  ;;  %v12757_v63 = vld [vmem:[%s20442_s1 + $0x2a4] sm:$0xf]  ;;  %v8504_v50 = vor.u32 %v12693_v21, %v8501_v60 }
 0x116   :  { %6753 = vmatpush.bf16.msra.mxu3 %v8920_v10  ;;  %v8757_v47 = vld [vmem:[%s20442_s1 + $0x2b0] sm:$0xf0]  ;;  %6683 = vmatmul.bf16.vlgmr.msrb.gmra.mxu1 %v15548_v17  ;;  %v12789_v48 = vld [vmem:[%s20442_s1 + $0x3a4] sm:$0xf]  ;;  %v8632_v52 = vor.u32 %v12725_v39, %v8629_v43  ;;  %v6464_v10 = vadd.f32 %v6463_v4, %v15452_v51 }
 0x117   :  { %v8885_v49 = vld [vmem:[%s20442_s1 + $0x3b0] sm:$0xf0]  ;;  %6709 = vmatmul.bf16.vlgmr.msrb.gmra.mxu3 %v15556_v25  ;;  %v8760_v53 = vor.u32 %v12757_v63, %v8757_v47  ;;  %v12689_v54 = vld [vmem:[%s20442_s1 + $0x84] sm:$0xf] }
 0x118   :  { %6715 = vmatpush.bf16.msra.mxu0 %v8520_v29  ;;  %v8485_v55 = vld [vmem:[%s20442_s1 + $0x90] sm:$0xf0]  ;;  %v12721_v56 = vld [vmem:[%s20442_s1 + $0x184] sm:$0xf]  ;;  %v8888_v57 = vor.u32 %v12789_v48, %v8885_v49 }
 0x119   :  { %6728 = vmatpush.bf16.msra.mxu1 %v8648_v31  ;;  %6741 = vmatpush.bf16.msra.mxu2 %v8776_v34  ;;  %v8613_v58 = vld [vmem:[%s20442_s1 + $0x190] sm:$0xf0]  ;;  %v12753_v1 = vld [vmem:[%s20442_s1 + $0x284] sm:$0xf]  ;;  %v8488_v13 = vor.u32 %v12689_v54, %v8485_v55  ;;  %v6477_v34 = vadd.f32 %v6476_v14, %v6464_v10  ;;  %v6489_v54 = vpop.f32.mrf.mxu2 }
 0x11a   :  { %6754 = vmatpush.bf16.msra.mxu3 %v8904_v62  ;;  %v8741_v3 = vld [vmem:[%s20442_s1 + $0x290] sm:$0xf0]  ;;  %v12785_v46 = vld [vmem:[%s20442_s1 + $0x384] sm:$0xf]  ;;  %v8616_v15 = vor.u32 %v12721_v56, %v8613_v58 }
 0x11b   :  { %v8869_v9 = vld [vmem:[%s20442_s1 + $0x390] sm:$0xf0]  ;;  %v8744_v20 = vor.u32 %v12753_v1, %v8741_v3  ;;  %v12685_v23 = vld [vmem:[%s20442_s1 + $0x64] sm:$0xf]  ;;  %v6490_v58 = vadd.f32 %v6489_v54, %v6477_v34  ;;  %v6502_v1 = vpop.f32.mrf.mxu3  ;;  %v6478_v10 = vpop.f32.mrf.mxu1 }
 0x11c   :  { %6716 = vmatpush.bf16.msra.mxu0 %v8504_v50  ;;  %v8469_v29 = vld [vmem:[%s20442_s1 + $0x70] sm:$0xf0]  ;;  %v12717_v31 = vld [vmem:[%s20442_s1 + $0x164] sm:$0xf]  ;;  %v8872_v51 = vor.u32 %v12785_v46, %v8869_v9  ;;  %v6465_v46 = vpop.f32.mrf.mxu0 }
 0x11d   :  { %6729 = vmatpush.bf16.msra.mxu1 %v8632_v52  ;;  %6742 = vmatpush.bf16.msra.mxu2 %v8760_v53  ;;  %v8597_v21 = vld [vmem:[%s20442_s1 + $0x170] sm:$0xf0]  ;;  %v12749_v60 = vld [vmem:[%s20442_s1 + $0x264] sm:$0xf]  ;;  %v8472_v63 = vor.u32 %v12685_v23, %v8469_v29 }
 0x11e   :  { %6755 = vmatpush.bf16.msra.mxu3 %v8888_v57  ;;  %v8725_v39 = vld [vmem:[%s20442_s1 + $0x270] sm:$0xf0]  ;;  %v12781_v62 = vld [vmem:[%s20442_s1 + $0x364] sm:$0xf]  ;;  %v8600_v47 = vor.u32 %v12717_v31, %v8597_v21 }
 0x11f   :  { %v8853_v43 = vld [vmem:[%s20442_s1 + $0x370] sm:$0xf0]  ;;  %v8728_v48 = vor.u32 %v12749_v60, %v8725_v39  ;;  %v12681_v49 = vld [vmem:[%s20442_s1 + $0x44] sm:$0xf] }
 0x120   :  { %6717 = vmatpush.bf16.msra.mxu0 %v8488_v13  ;;  %v8453_v50 = vld [vmem:[%s20442_s1 + $0x50] sm:$0xf0]  ;;  %v12713_v52 = vld [vmem:[%s20442_s1 + $0x144] sm:$0xf]  ;;  %v8856_v53 = vor.u32 %v12781_v62, %v8853_v43  ;;  %v15659_v13 = vadd.f32 %v6502_v1, %v6490_v58 }
 0x121   :  { %6730 = vmatpush.bf16.msra.mxu1 %v8616_v15  ;;  %6743 = vmatpush.bf16.msra.mxu2 %v8744_v20  ;;  %v8581_v55 = vld [vmem:[%s20442_s1 + $0x150] sm:$0xf0]  ;;  %v12745_v56 = vld [vmem:[%s20442_s1 + $0x244] sm:$0xf]  ;;  %v8456_v9 = vor.u32 %v12681_v49, %v8453_v50 }
 0x122   :  { %6756 = vmatpush.bf16.msra.mxu3 %v8872_v51  ;;  %v8709_v57 = vld [vmem:[%s20442_s1 + $0x250] sm:$0xf0]  ;;  %v12777_v3 = vld [vmem:[%s20442_s1 + $0x344] sm:$0xf]  ;;  %v8584_v14 = vor.u32 %v12713_v52, %v8581_v55 }
 0x123   :  { %v8837_v4 = vld [vmem:[%s20442_s1 + $0x350] sm:$0xf0]  ;;  %v8712_v15 = vor.u32 %v12745_v56, %v8709_v57  ;;  %v12677_v20 = vld [vmem:[%s20442_s1 + $0x24] sm:$0xf]  ;;  %v6491_v57 = vpop.f32.mrf.mxu2 }
 0x124   :  { %6718 = vmatpush.bf16.msra.mxu0 %v8472_v63  ;;  %v8437_v23 = vld [vmem:[%s20442_s1 + $0x30] sm:$0xf0]  ;;  %v12709_v29 = vld [vmem:[%s20442_s1 + $0x124] sm:$0xf]  ;;  %v8840_v31 = vor.u32 %v12777_v3, %v8837_v4  ;;  %v6504_v4 = vpop.f32.mrf.mxu3 }
 0x125   :  { %6731 = vmatpush.bf16.msra.mxu1 %v8600_v47  ;;  %6744 = vmatpush.bf16.msra.mxu2 %v8728_v48  ;;  %v8565_v51 = vld [vmem:[%s20442_s1 + $0x130] sm:$0xf0]  ;;  %v12741_v34 = vld [vmem:[%s20442_s1 + $0x224] sm:$0xf]  ;;  %v8440_v62 = vor.u32 %v12677_v20, %v8437_v23 }
 0x126   :  { %6757 = vmatpush.bf16.msra.mxu3 %v8856_v53  ;;  %v8693_v21 = vld [vmem:[%s20442_s1 + $0x230] sm:$0xf0]  ;;  %v12773_v60 = vld [vmem:[%s20442_s1 + $0x324] sm:$0xf]  ;;  %v8568_v47 = vor.u32 %v12709_v29, %v8565_v51 }
 0x127   :  { %v8821_v39 = vld [vmem:[%s20442_s1 + $0x330] sm:$0xf0]  ;;  %v12673_v43 = vld [vmem:[%s20442_s1 + $0x4] sm:$0xf]  ;;  %v8696_v48 = vor.u32 %v12741_v34, %v8693_v21 }
 0x128   :  { %6719 = vmatpush.bf16.msra.mxu0 %v8456_v9  ;;  %v8421_v63 = vld [vmem:[%s20442_s1 + $0x10] sm:$0xf0]  ;;  %v12705_v49 = vld [vmem:[%s20442_s1 + $0x104] sm:$0xf]  ;;  %v8824_v53 = vor.u32 %v12773_v60, %v8821_v39 }
 0x129   :  { %6732 = vmatpush.bf16.msra.mxu1 %v8584_v14  ;;  %6745 = vmatpush.bf16.msra.mxu2 %v8712_v15  ;;  %v8549_v50 = vld [vmem:[%s20442_s1 + $0x110] sm:$0xf0]  ;;  %v12737_v52 = vld [vmem:[%s20442_s1 + $0x204] sm:$0xf]  ;;  %v8424_v46 = vor.u32 %v12673_v43, %v8421_v63 }
 0x12a   :  { %6758 = vmatpush.bf16.msra.mxu3 %v8840_v31  ;;  %v8677_v54 = vld [vmem:[%s20442_s1 + $0x210] sm:$0xf0]  ;;  %v12769_v55 = vld [vmem:[%s20442_s1 + $0x304] sm:$0xf]  ;;  %v8552_v15 = vor.u32 %v12705_v49, %v8549_v50 }
 0x12b   :  { %v8805_v56 = vld [vmem:[%s20442_s1 + $0x310] sm:$0xf0]  ;;  %v12829_v58 = vld [vmem:[%s20442_s1 + $0x4e4] sm:$0xf]  ;;  %v8680_v20 = vor.u32 %v12737_v52, %v8677_v54 }
 0x12c   :  { %v9045_v1 = vld [vmem:[%s20442_s1 + $0x4f0] sm:$0xf0]  ;;  %v12861_v3 = vld [vmem:[%s20442_s1 + $0x5e4] sm:$0xf]  ;;  %6720 = vmatpush.bf16.msra.mxu0 %v8440_v62  ;;  %v8808_v31 = vor.u32 %v12769_v55, %v8805_v56 }
 0x12d   :  { %v9173_v9 = vld [vmem:[%s20442_s1 + $0x5f0] sm:$0xf0]  ;;  %v12893_v10 = vld [vmem:[%s20442_s1 + $0x6e4] sm:$0xf]  ;;  %6733 = vmatpush.bf16.msra.mxu1 %v8568_v47  ;;  %6746 = vmatpush.bf16.msra.mxu2 %v8696_v48  ;;  %v9048_v51 = vor.u32 %v12829_v58, %v9045_v1 }
 0x12e   :  { %v9301_v14 = vld [vmem:[%s20442_s1 + $0x6f0] sm:$0xf0]  ;;  %v12925_v23 = vld [vmem:[%s20442_s1 + $0x7e4] sm:$0xf]  ;;  %6759 = vmatpush.bf16.msra.mxu3 %v8824_v53  ;;  %v9176_v34 = vor.u32 %v12861_v3, %v9173_v9 }
 0x12f   :  { %v9429_v29 = vld [vmem:[%s20442_s1 + $0x7f0] sm:$0xf0]  ;;  %v9304_v21 = vor.u32 %v12893_v10, %v9301_v14  ;;  %v12825_v60 = vld [vmem:[%s20442_s1 + $0x4c4] sm:$0xf] }
 0x130   :  { %v9029_v39 = vld [vmem:[%s20442_s1 + $0x4d0] sm:$0xf0]  ;;  %v12857_v62 = vld [vmem:[%s20442_s1 + $0x5c4] sm:$0xf]  ;;  %6721 = vmatpush.bf16.msra.mxu0 %v8424_v46  ;;  %v9432_v43 = vor.u32 %v12925_v23, %v9429_v29 }
 0x131   :  { %v9157_v63 = vld [vmem:[%s20442_s1 + $0x5d0] sm:$0xf0]  ;;  %v12889_v47 = vld [vmem:[%s20442_s1 + $0x6c4] sm:$0xf]  ;;  %6734 = vmatpush.bf16.msra.mxu1 %v8552_v15  ;;  %6747 = vmatpush.bf16.msra.mxu2 %v8680_v20  ;;  %v9032_v52 = vor.u32 %v12825_v60, %v9029_v39  ;;  %v6515_v60 = vpop.f32.mrf.mxu0 }
 0x132   :  { %v9285_v48 = vld [vmem:[%s20442_s1 + $0x6d0] sm:$0xf0]  ;;  %v12921_v49 = vld [vmem:[%s20442_s1 + $0x7c4] sm:$0xf]  ;;  %6760 = vmatpush.bf16.msra.mxu3 %v8808_v31  ;;  %v9160_v53 = vor.u32 %v12857_v62, %v9157_v63 }
 0x133   :  { %v9413_v50 = vld [vmem:[%s20442_s1 + $0x7d0] sm:$0xf0]  ;;  %v9288_v54 = vor.u32 %v12889_v47, %v9285_v48  ;;  %v12821_v55 = vld [vmem:[%s20442_s1 + $0x4a4] sm:$0xf]  ;;  %6722 = vmatmul.bf16.vlgmr.msra.gmra.mxu0 %v14132_v27  ;;  %v6528_v47 = vpop.f32.mrf.mxu1 }
 0x134   :  { %6766 = vmatpush.bf16.msrb.mxu0 %v9048_v51  ;;  %v9013_v56 = vld [vmem:[%s20442_s1 + $0x4b0] sm:$0xf0]  ;;  %v12853_v57 = vld [vmem:[%s20442_s1 + $0x5a4] sm:$0xf]  ;;  %v9416_v58 = vor.u32 %v12921_v49, %v9413_v50  ;;  %6748 = vmatmul.bf16.vlgmr.msra.gmra.mxu2 %v14130_v26 }
 0x135   :  { %6779 = vmatpush.bf16.msrb.mxu1 %v9176_v34  ;;  %6792 = vmatpush.bf16.msrb.mxu2 %v9304_v21  ;;  %v9141_v1 = vld [vmem:[%s20442_s1 + $0x5b0] sm:$0xf0]  ;;  %v12885_v3 = vld [vmem:[%s20442_s1 + $0x6a4] sm:$0xf]  ;;  %v9016_v10 = vor.u32 %v12821_v55, %v9013_v56 }
 0x136   :  { %6805 = vmatpush.bf16.msrb.mxu3 %v9432_v43  ;;  %v9269_v4 = vld [vmem:[%s20442_s1 + $0x6b0] sm:$0xf0]  ;;  %v12917_v46 = vld [vmem:[%s20442_s1 + $0x7a4] sm:$0xf]  ;;  %6735 = vmatmul.bf16.vlgmr.msra.gmra.mxu1 %v14142_v33  ;;  %v9144_v14 = vor.u32 %v12853_v57, %v9141_v1  ;;  %v6516_v43 = vadd.f32 %v6515_v60, %v15659_v13 }
 0x137   :  { %v9397_v9 = vld [vmem:[%s20442_s1 + $0x7b0] sm:$0xf0]  ;;  %6761 = vmatmul.bf16.vlgmr.msra.gmra.mxu3 %v14140_v32  ;;  %v9272_v15 = vor.u32 %v12885_v3, %v9269_v4  ;;  %v12817_v20 = vld [vmem:[%s20442_s1 + $0x484] sm:$0xf] }
 0x138   :  { %6767 = vmatpush.bf16.msrb.mxu0 %v9032_v52  ;;  %v8997_v23 = vld [vmem:[%s20442_s1 + $0x490] sm:$0xf0]  ;;  %v12849_v29 = vld [vmem:[%s20442_s1 + $0x584] sm:$0xf]  ;;  %v9400_v31 = vor.u32 %v12917_v46, %v9397_v9 }
 0x139   :  { %6780 = vmatpush.bf16.msrb.mxu1 %v9160_v53  ;;  %6793 = vmatpush.bf16.msrb.mxu2 %v9288_v54  ;;  %v9125_v51 = vld [vmem:[%s20442_s1 + $0x590] sm:$0xf0]  ;;  %v12881_v34 = vld [vmem:[%s20442_s1 + $0x684] sm:$0xf]  ;;  %v9000_v63 = vor.u32 %v12817_v20, %v8997_v23  ;;  %v6529_v54 = vadd.f32 %v6528_v47, %v6516_v43  ;;  %v6541_v20 = vpop.f32.mrf.mxu2 }
 0x13a   :  { %6806 = vmatpush.bf16.msrb.mxu3 %v9416_v58  ;;  %v9253_v21 = vld [vmem:[%s20442_s1 + $0x690] sm:$0xf0]  ;;  %v12913_v39 = vld [vmem:[%s20442_s1 + $0x784] sm:$0xf]  ;;  %v9128_v48 = vor.u32 %v12849_v29, %v9125_v51 }
 0x13b   :  { %v9381_v62 = vld [vmem:[%s20442_s1 + $0x790] sm:$0xf0]  ;;  %v9256_v49 = vor.u32 %v12881_v34, %v9253_v21  ;;  %v12813_v50 = vld [vmem:[%s20442_s1 + $0x464] sm:$0xf]  ;;  %v6542_v51 = vadd.f32 %v6541_v20, %v6529_v54  ;;  %v6554_v34 = vpop.f32.mrf.mxu3  ;;  %v6530_v43 = vpop.f32.mrf.mxu1 }
 0x13c   :  { %6768 = vmatpush.bf16.msrb.mxu0 %v9016_v10  ;;  %v8981_v52 = vld [vmem:[%s20442_s1 + $0x470] sm:$0xf0]  ;;  %v12845_v53 = vld [vmem:[%s20442_s1 + $0x564] sm:$0xf]  ;;  %v9384_v13 = vor.u32 %v12913_v39, %v9381_v62  ;;  %v6517_v39 = vpop.f32.mrf.mxu0 }
 0x13d   :  { %6781 = vmatpush.bf16.msrb.mxu1 %v9144_v14  ;;  %6794 = vmatpush.bf16.msrb.mxu2 %v9272_v15  ;;  %v9109_v55 = vld [vmem:[%s20442_s1 + $0x570] sm:$0xf0]  ;;  %v12877_v56 = vld [vmem:[%s20442_s1 + $0x664] sm:$0xf]  ;;  %v8984_v3 = vor.u32 %v12813_v50, %v8981_v52 }
 0x13e   :  { %6807 = vmatpush.bf16.msrb.mxu3 %v9400_v31  ;;  %v9237_v57 = vld [vmem:[%s20442_s1 + $0x670] sm:$0xf0]  ;;  %v12909_v58 = vld [vmem:[%s20442_s1 + $0x764] sm:$0xf]  ;;  %v9112_v4 = vor.u32 %v12845_v53, %v9109_v55 }
 0x13f   :  { %v9365_v1 = vld [vmem:[%s20442_s1 + $0x770] sm:$0xf0]  ;;  %v9240_v46 = vor.u32 %v12877_v56, %v9237_v57  ;;  %v12809_v9 = vld [vmem:[%s20442_s1 + $0x444] sm:$0xf] }
 0x140   :  { %6769 = vmatpush.bf16.msrb.mxu0 %v9000_v63  ;;  %v8965_v10 = vld [vmem:[%s20442_s1 + $0x450] sm:$0xf0]  ;;  %v12841_v14 = vld [vmem:[%s20442_s1 + $0x544] sm:$0xf]  ;;  %v9368_v15 = vor.u32 %v12909_v58, %v9365_v1  ;;  %v15858_v63 = vadd.f32 %v6554_v34, %v6542_v51 }
 0x141   :  { %6782 = vmatpush.bf16.msrb.mxu1 %v9128_v48  ;;  %6795 = vmatpush.bf16.msrb.mxu2 %v9256_v49  ;;  %v9093_v23 = vld [vmem:[%s20442_s1 + $0x550] sm:$0xf0]  ;;  %v12873_v29 = vld [vmem:[%s20442_s1 + $0x644] sm:$0xf]  ;;  %v8968_v62 = vor.u32 %v12809_v9, %v8965_v10 }
 0x142   :  { %6808 = vmatpush.bf16.msrb.mxu3 %v9384_v13  ;;  %v9221_v31 = vld [vmem:[%s20442_s1 + $0x650] sm:$0xf0]  ;;  %v12905_v21 = vld [vmem:[%s20442_s1 + $0x744] sm:$0xf]  ;;  %v9096_v47 = vor.u32 %v12841_v14, %v9093_v23 }
 0x143   :  { %v9349_v60 = vld [vmem:[%s20442_s1 + $0x750] sm:$0xf0]  ;;  %v9224_v48 = vor.u32 %v12873_v29, %v9221_v31  ;;  %v12805_v49 = vld [vmem:[%s20442_s1 + $0x424] sm:$0xf]  ;;  %v6543_v31 = vpop.f32.mrf.mxu2 }
 0x144   :  { %6770 = vmatpush.bf16.msrb.mxu0 %v8984_v3  ;;  %v8949_v50 = vld [vmem:[%s20442_s1 + $0x430] sm:$0xf0]  ;;  %v12837_v52 = vld [vmem:[%s20442_s1 + $0x524] sm:$0xf]  ;;  %v9352_v53 = vor.u32 %v12905_v21, %v9349_v60  ;;  %v6556_v60 = vpop.f32.mrf.mxu3 }
 0x145   :  { %6783 = vmatpush.bf16.msrb.mxu1 %v9112_v4  ;;  %6796 = vmatpush.bf16.msrb.mxu2 %v9240_v46  ;;  %v9077_v13 = vld [vmem:[%s20442_s1 + $0x530] sm:$0xf0]  ;;  %v12869_v54 = vld [vmem:[%s20442_s1 + $0x624] sm:$0xf]  ;;  %v8952_v58 = vor.u32 %v12805_v49, %v8949_v50 }
 0x146   :  { %6809 = vmatpush.bf16.msrb.mxu3 %v9368_v15  ;;  %v9205_v55 = vld [vmem:[%s20442_s1 + $0x630] sm:$0xf0]  ;;  %v12901_v56 = vld [vmem:[%s20442_s1 + $0x724] sm:$0xf]  ;;  %v9080_v4 = vor.u32 %v12837_v52, %v9077_v13 }
 0x147   :  { %v9333_v57 = vld [vmem:[%s20442_s1 + $0x730] sm:$0xf0]  ;;  %v12801_v1 = vld [vmem:[%s20442_s1 + $0x404] sm:$0xf]  ;;  %v9208_v46 = vor.u32 %v12869_v54, %v9205_v55 }
 0x148   :  { %6771 = vmatpush.bf16.msrb.mxu0 %v8968_v62  ;;  %v8933_v3 = vld [vmem:[%s20442_s1 + $0x410] sm:$0xf0]  ;;  %v12833_v9 = vld [vmem:[%s20442_s1 + $0x504] sm:$0xf]  ;;  %v9336_v15 = vor.u32 %v12901_v56, %v9333_v57 }
 0x149   :  { %6784 = vmatpush.bf16.msrb.mxu1 %v9096_v47  ;;  %6797 = vmatpush.bf16.msrb.mxu2 %v9224_v48  ;;  %v9061_v10 = vld [vmem:[%s20442_s1 + $0x510] sm:$0xf0]  ;;  %v12865_v14 = vld [vmem:[%s20442_s1 + $0x604] sm:$0xf]  ;;  %v8936_v39 = vor.u32 %v12801_v1, %v8933_v3 }
 0x14a   :  { %6810 = vmatpush.bf16.msrb.mxu3 %v9352_v53  ;;  %v9189_v20 = vld [vmem:[%s20442_s1 + $0x610] sm:$0xf0]  ;;  %v12897_v23 = vld [vmem:[%s20442_s1 + $0x704] sm:$0xf]  ;;  %v9064_v48 = vor.u32 %v12833_v9, %v9061_v10 }
 0x14b   :  { %v9317_v29 = vld [vmem:[%s20442_s1 + $0x710] sm:$0xf0]  ;;  %v12957_v51 = vld [vmem:[%s20442_s1 + $0x8e4] sm:$0xf]  ;;  %v9192_v49 = vor.u32 %v12865_v14, %v9189_v20 }
 0x14c   :  { %v9557_v34 = vld [vmem:[%s20442_s1 + $0x8f0] sm:$0xf0]  ;;  %v12989_v21 = vld [vmem:[%s20442_s1 + $0x9e4] sm:$0xf]  ;;  %6772 = vmatpush.bf16.msrb.mxu0 %v8952_v58  ;;  %v9320_v53 = vor.u32 %v12897_v23, %v9317_v29 }
 0x14d   :  { %v9685_v62 = vld [vmem:[%s20442_s1 + $0x9f0] sm:$0xf0]  ;;  %v13021_v43 = vld [vmem:[%s20442_s1 + $0xae4] sm:$0xf]  ;;  %6785 = vmatpush.bf16.msrb.mxu1 %v9080_v4  ;;  %6798 = vmatpush.bf16.msrb.mxu2 %v9208_v46  ;;  %v9560_v13 = vor.u32 %v12957_v51, %v9557_v34 }
 0x14e   :  { %v9813_v47 = vld [vmem:[%s20442_s1 + $0xaf0] sm:$0xf0]  ;;  %v13053_v50 = vld [vmem:[%s20442_s1 + $0xbe4] sm:$0xf]  ;;  %6811 = vmatpush.bf16.msrb.mxu3 %v9336_v15  ;;  %v9688_v54 = vor.u32 %v12989_v21, %v9685_v62 }
 0x14f   :  { %v9941_v52 = vld [vmem:[%s20442_s1 + $0xbf0] sm:$0xf0]  ;;  %v9816_v55 = vor.u32 %v13021_v43, %v9813_v47  ;;  %v12953_v56 = vld [vmem:[%s20442_s1 + $0x8c4] sm:$0xf] }
 0x150   :  { %v9541_v57 = vld [vmem:[%s20442_s1 + $0x8d0] sm:$0xf0]  ;;  %v12985_v58 = vld [vmem:[%s20442_s1 + $0x9c4] sm:$0xf]  ;;  %6773 = vmatpush.bf16.msrb.mxu0 %v8936_v39  ;;  %v9944_v1 = vor.u32 %v13053_v50, %v9941_v52 }
 0x151   :  { %v9669_v3 = vld [vmem:[%s20442_s1 + $0x9d0] sm:$0xf0]  ;;  %v13017_v4 = vld [vmem:[%s20442_s1 + $0xac4] sm:$0xf]  ;;  %6786 = vmatpush.bf16.msrb.mxu1 %v9064_v48  ;;  %6799 = vmatpush.bf16.msrb.mxu2 %v9192_v49  ;;  %v9544_v14 = vor.u32 %v12953_v56, %v9541_v57  ;;  %v6567_v56 = vpop.f32.mrf.mxu0 }
 0x152   :  { %v9797_v46 = vld [vmem:[%s20442_s1 + $0xad0] sm:$0xf0]  ;;  %v13049_v9 = vld [vmem:[%s20442_s1 + $0xbc4] sm:$0xf]  ;;  %6812 = vmatpush.bf16.msrb.mxu3 %v9320_v53  ;;  %v9672_v15 = vor.u32 %v12985_v58, %v9669_v3 }
 0x153   :  { %v9925_v10 = vld [vmem:[%s20442_s1 + $0xbd0] sm:$0xf0]  ;;  %v9800_v20 = vor.u32 %v13017_v4, %v9797_v46  ;;  %v12949_v23 = vld [vmem:[%s20442_s1 + $0x8a4] sm:$0xf]  ;;  %6774 = vmatmul.bf16.vlgmr.msrb.gmra.mxu0 %v14276_v41  ;;  %v6580_v4 = vpop.f32.mrf.mxu1 }
 0x154   :  { %6818 = vmatpush.bf16.msra.mxu0 %v9560_v13  ;;  %v9525_v29 = vld [vmem:[%s20442_s1 + $0x8b0] sm:$0xf0]  ;;  %v12981_v31 = vld [vmem:[%s20442_s1 + $0x9a4] sm:$0xf]  ;;  %v9928_v51 = vor.u32 %v13049_v9, %v9925_v10  ;;  %6800 = vmatmul.bf16.vlgmr.msrb.gmra.mxu2 %v14268_v38 }
 0x155   :  { %6831 = vmatpush.bf16.msra.mxu1 %v9688_v54  ;;  %6844 = vmatpush.bf16.msra.mxu2 %v9816_v55  ;;  %v9653_v34 = vld [vmem:[%s20442_s1 + $0x9b0] sm:$0xf0]  ;;  %v13013_v21 = vld [vmem:[%s20442_s1 + $0xaa4] sm:$0xf]  ;;  %v9528_v43 = vor.u32 %v12949_v23, %v9525_v29 }
 0x156   :  { %6857 = vmatpush.bf16.msra.mxu3 %v9944_v1  ;;  %v9781_v60 = vld [vmem:[%s20442_s1 + $0xab0] sm:$0xf0]  ;;  %v13045_v39 = vld [vmem:[%s20442_s1 + $0xba4] sm:$0xf]  ;;  %6787 = vmatmul.bf16.vlgmr.msrb.gmra.mxu1 %v14280_v44  ;;  %v9656_v47 = vor.u32 %v12981_v31, %v9653_v34  ;;  %v6568_v1 = vadd.f32 %v6567_v56, %v15858_v63 }
 0x157   :  { %6813 = vmatmul.bf16.vlgmr.msrb.gmra.mxu3 %v14278_v42  ;;  %v9909_v62 = vld [vmem:[%s20442_s1 + $0xbb0] sm:$0xf0]  ;;  %v9784_v48 = vor.u32 %v13013_v21, %v9781_v60  ;;  %v12945_v49 = vld [vmem:[%s20442_s1 + $0x884] sm:$0xf] }
 0x158   :  { %6819 = vmatpush.bf16.msra.mxu0 %v9544_v14  ;;  %v9509_v50 = vld [vmem:[%s20442_s1 + $0x890] sm:$0xf0]  ;;  %v12977_v52 = vld [vmem:[%s20442_s1 + $0x984] sm:$0xf]  ;;  %v9912_v53 = vor.u32 %v13045_v39, %v9909_v62 }
 0x159   :  { %6832 = vmatpush.bf16.msra.mxu1 %v9672_v15  ;;  %6845 = vmatpush.bf16.msra.mxu2 %v9800_v20  ;;  %v9637_v13 = vld [vmem:[%s20442_s1 + $0x990] sm:$0xf0]  ;;  %v13009_v54 = vld [vmem:[%s20442_s1 + $0xa84] sm:$0xf]  ;;  %v9512_v3 = vor.u32 %v12945_v49, %v9509_v50  ;;  %v6581_v20 = vadd.f32 %v6580_v4, %v6568_v1  ;;  %v6593_v49 = vpop.f32.mrf.mxu2 }
 0x15a   :  { %6858 = vmatpush.bf16.msra.mxu3 %v9928_v51  ;;  %v9765_v55 = vld [vmem:[%s20442_s1 + $0xa90] sm:$0xf0]  ;;  %v13041_v57 = vld [vmem:[%s20442_s1 + $0xb84] sm:$0xf]  ;;  %v9640_v46 = vor.u32 %v12977_v52, %v9637_v13 }
 0x15b   :  { %v9893_v58 = vld [vmem:[%s20442_s1 + $0xb90] sm:$0xf0]  ;;  %v9768_v9 = vor.u32 %v13009_v54, %v9765_v55  ;;  %v12941_v10 = vld [vmem:[%s20442_s1 + $0x864] sm:$0xf]  ;;  %v6594_v13 = vadd.f32 %v6593_v49, %v6581_v20  ;;  %v6606_v54 = vpop.f32.mrf.mxu3  ;;  %v6582_v1 = vpop.f32.mrf.mxu1 }
 0x15c   :  { %6820 = vmatpush.bf16.msra.mxu0 %v9528_v43  ;;  %v9493_v14 = vld [vmem:[%s20442_s1 + $0x870] sm:$0xf0]  ;;  %v12973_v15 = vld [vmem:[%s20442_s1 + $0x964] sm:$0xf]  ;;  %v9896_v63 = vor.u32 %v13041_v57, %v9893_v58  ;;  %v6569_v57 = vpop.f32.mrf.mxu0 }
 0x15d   :  { %6833 = vmatpush.bf16.msra.mxu1 %v9656_v47  ;;  %6846 = vmatpush.bf16.msra.mxu2 %v9784_v48  ;;  %v9621_v23 = vld [vmem:[%s20442_s1 + $0x970] sm:$0xf0]  ;;  %v13005_v29 = vld [vmem:[%s20442_s1 + $0xa64] sm:$0xf]  ;;  %v9496_v21 = vor.u32 %v12941_v10, %v9493_v14 }
 0x15e   :  { %6859 = vmatpush.bf16.msra.mxu3 %v9912_v53  ;;  %v9749_v31 = vld [vmem:[%s20442_s1 + $0xa70] sm:$0xf0]  ;;  %v13037_v51 = vld [vmem:[%s20442_s1 + $0xb64] sm:$0xf]  ;;  %v9624_v60 = vor.u32 %v12973_v15, %v9621_v23 }
 0x15f   :  { %v9877_v34 = vld [vmem:[%s20442_s1 + $0xb70] sm:$0xf0]  ;;  %v9752_v39 = vor.u32 %v13005_v29, %v9749_v31  ;;  %v12937_v62 = vld [vmem:[%s20442_s1 + $0x844] sm:$0xf] }
 0x160   :  { %6821 = vmatpush.bf16.msra.mxu0 %v9512_v3  ;;  %v9477_v43 = vld [vmem:[%s20442_s1 + $0x850] sm:$0xf0]  ;;  %v12969_v47 = vld [vmem:[%s20442_s1 + $0x944] sm:$0xf]  ;;  %v9880_v48 = vor.u32 %v13037_v51, %v9877_v34  ;;  %v16057_v3 = vadd.f32 %v6606_v54, %v6594_v13 }
 0x161   :  { %6834 = vmatpush.bf16.msra.mxu1 %v9640_v46  ;;  %6847 = vmatpush.bf16.msra.mxu2 %v9768_v9  ;;  %v9605_v50 = vld [vmem:[%s20442_s1 + $0x950] sm:$0xf0]  ;;  %v13001_v52 = vld [vmem:[%s20442_s1 + $0xa44] sm:$0xf]  ;;  %v9480_v58 = vor.u32 %v12937_v62, %v9477_v43 }
 0x162   :  { %6860 = vmatpush.bf16.msra.mxu3 %v9896_v63  ;;  %v9733_v53 = vld [vmem:[%s20442_s1 + $0xa50] sm:$0xf0]  ;;  %v13033_v55 = vld [vmem:[%s20442_s1 + $0xb44] sm:$0xf]  ;;  %v9608_v4 = vor.u32 %v12969_v47, %v9605_v50 }
 0x163   :  { %v9861_v56 = vld [vmem:[%s20442_s1 + $0xb50] sm:$0xf0]  ;;  %v9736_v46 = vor.u32 %v13001_v52, %v9733_v53  ;;  %v12933_v9 = vld [vmem:[%s20442_s1 + $0x824] sm:$0xf]  ;;  %v6595_v53 = vpop.f32.mrf.mxu2 }
 0x164   :  { %6822 = vmatpush.bf16.msra.mxu0 %v9496_v21  ;;  %v9461_v10 = vld [vmem:[%s20442_s1 + $0x830] sm:$0xf0]  ;;  %v12965_v14 = vld [vmem:[%s20442_s1 + $0x924] sm:$0xf]  ;;  %v9864_v15 = vor.u32 %v13033_v55, %v9861_v56  ;;  %v6608_v56 = vpop.f32.mrf.mxu3 }
 0x165   :  { %6835 = vmatpush.bf16.msra.mxu1 %v9624_v60  ;;  %6848 = vmatpush.bf16.msra.mxu2 %v9752_v39  ;;  %v9589_v63 = vld [vmem:[%s20442_s1 + $0x930] sm:$0xf0]  ;;  %v12997_v20 = vld [vmem:[%s20442_s1 + $0xa24] sm:$0xf]  ;;  %v9464_v51 = vor.u32 %v12933_v9, %v9461_v10 }
 0x166   :  { %6861 = vmatpush.bf16.msra.mxu3 %v9880_v48  ;;  %v9717_v23 = vld [vmem:[%s20442_s1 + $0xa30] sm:$0xf0]  ;;  %v13029_v29 = vld [vmem:[%s20442_s1 + $0xb24] sm:$0xf]  ;;  %v9592_v60 = vor.u32 %v12965_v14, %v9589_v63 }
 0x167   :  { %v9845_v31 = vld [vmem:[%s20442_s1 + $0xb30] sm:$0xf0]  ;;  %v12929_v34 = vld [vmem:[%s20442_s1 + $0x804] sm:$0xf]  ;;  %v9720_v39 = vor.u32 %v12997_v20, %v9717_v23 }
 0x168   :  { %6823 = vmatpush.bf16.msra.mxu0 %v9480_v58  ;;  %v9445_v21 = vld [vmem:[%s20442_s1 + $0x810] sm:$0xf0]  ;;  %v12961_v62 = vld [vmem:[%s20442_s1 + $0x904] sm:$0xf]  ;;  %v9848_v48 = vor.u32 %v13029_v29, %v9845_v31 }
 0x169   :  { %6836 = vmatpush.bf16.msra.mxu1 %v9608_v4  ;;  %6849 = vmatpush.bf16.msra.mxu2 %v9736_v46  ;;  %v9573_v43 = vld [vmem:[%s20442_s1 + $0x910] sm:$0xf0]  ;;  %v12993_v47 = vld [vmem:[%s20442_s1 + $0xa04] sm:$0xf]  ;;  %v9448_v57 = vor.u32 %v12929_v34, %v9445_v21 }
 0x16a   :  { %6862 = vmatpush.bf16.msra.mxu3 %v9864_v15  ;;  %v9701_v49 = vld [vmem:[%s20442_s1 + $0xa10] sm:$0xf0]  ;;  %v13025_v50 = vld [vmem:[%s20442_s1 + $0xb04] sm:$0xf]  ;;  %v9576_v46 = vor.u32 %v12961_v62, %v9573_v43 }
 0x16b   :  { %v9829_v52 = vld [vmem:[%s20442_s1 + $0xb10] sm:$0xf0]  ;;  %v13085_v13 = vld [vmem:[%s20442_s1 + $0xce4] sm:$0xf]  ;;  %v9704_v9 = vor.u32 %v12993_v47, %v9701_v49 }
 0x16c   :  { %v10069_v54 = vld [vmem:[%s20442_s1 + $0xcf0] sm:$0xf0]  ;;  %v13117_v55 = vld [vmem:[%s20442_s1 + $0xde4] sm:$0xf]  ;;  %6824 = vmatpush.bf16.msra.mxu0 %v9464_v51  ;;  %v9832_v15 = vor.u32 %v13025_v50, %v9829_v52 }
 0x16d   :  { %v10197_v58 = vld [vmem:[%s20442_s1 + $0xdf0] sm:$0xf0]  ;;  %v13149_v1 = vld [vmem:[%s20442_s1 + $0xee4] sm:$0xf]  ;;  %6837 = vmatpush.bf16.msra.mxu1 %v9592_v60  ;;  %6850 = vmatpush.bf16.msra.mxu2 %v9720_v39  ;;  %v10072_v63 = vor.u32 %v13085_v13, %v10069_v54 }
 0x16e   :  { %v10325_v4 = vld [vmem:[%s20442_s1 + $0xef0] sm:$0xf0]  ;;  %v13181_v10 = vld [vmem:[%s20442_s1 + $0xfe4] sm:$0xf]  ;;  %6863 = vmatpush.bf16.msra.mxu3 %v9848_v48  ;;  %v10200_v20 = vor.u32 %v13117_v55, %v10197_v58 }
 0x16f   :  { %v10453_v14 = vld [vmem:[%s20442_s1 + $0xff0] sm:$0xf0]  ;;  %v10328_v23 = vor.u32 %v13149_v1, %v10325_v4  ;;  %v13081_v29 = vld [vmem:[%s20442_s1 + $0xcc4] sm:$0xf] }
 0x170   :  { %v10053_v31 = vld [vmem:[%s20442_s1 + $0xcd0] sm:$0xf0]  ;;  %v13113_v51 = vld [vmem:[%s20442_s1 + $0xdc4] sm:$0xf]  ;;  %6825 = vmatpush.bf16.msra.mxu0 %v9448_v57  ;;  %v10456_v34 = vor.u32 %v13181_v10, %v10453_v14 }
 0x171   :  { %v10181_v21 = vld [vmem:[%s20442_s1 + $0xdd0] sm:$0xf0]  ;;  %v13145_v60 = vld [vmem:[%s20442_s1 + $0xec4] sm:$0xf]  ;;  %6838 = vmatpush.bf16.msra.mxu1 %v9576_v46  ;;  %6851 = vmatpush.bf16.msra.mxu2 %v9704_v9  ;;  %v10056_v47 = vor.u32 %v13081_v29, %v10053_v31 }
 0x172   :  { %v10309_v39 = vld [vmem:[%s20442_s1 + $0xed0] sm:$0xf0]  ;;  %v13177_v62 = vld [vmem:[%s20442_s1 + $0xfc4] sm:$0xf]  ;;  %6864 = vmatpush.bf16.msra.mxu3 %v9832_v15  ;;  %v10184_v48 = vor.u32 %v13113_v51, %v10181_v21 }
 0x173   :  { %v10437_v43 = vld [vmem:[%s20442_s1 + $0xfd0] sm:$0xf0]  ;;  %v10312_v49 = vor.u32 %v13145_v60, %v10309_v39  ;;  %v13077_v50 = vld [vmem:[%s20442_s1 + $0xca4] sm:$0xf]  ;;  %6826 = vmatmul.bf16.vlgmr.msra.gmra.mxu0 %v14476_v24  ;;  %v6619_v29 = vpop.f32.mrf.mxu0 }
 0x174   :  { %6870 = vmatpush.bf16.msrb.mxu0 %v10072_v63  ;;  %v10037_v52 = vld [vmem:[%s20442_s1 + $0xcb0] sm:$0xf0]  ;;  %v13109_v53 = vld [vmem:[%s20442_s1 + $0xda4] sm:$0xf]  ;;  %v10440_v13 = vor.u32 %v13177_v62, %v10437_v43  ;;  %6852 = vmatmul.bf16.vlgmr.msra.gmra.mxu2 %v14489_v30  ;;  %v6632_v60 = vpop.f32.mrf.mxu1 }
 0x175   :  { %6883 = vmatpush.bf16.msrb.mxu1 %v10200_v20  ;;  %6896 = vmatpush.bf16.msrb.mxu2 %v10328_v23  ;;  %v10165_v54 = vld [vmem:[%s20442_s1 + $0xdb0] sm:$0xf0]  ;;  %v13141_v55 = vld [vmem:[%s20442_s1 + $0xea4] sm:$0xf]  ;;  %v10040_v1 = vor.u32 %v13077_v50, %v10037_v52 }
 0x176   :  { %6909 = vmatpush.bf16.msrb.mxu3 %v10456_v34  ;;  %v10293_v56 = vld [vmem:[%s20442_s1 + $0xeb0] sm:$0xf0]  ;;  %6839 = vmatmul.bf16.vlgmr.msra.gmra.mxu1 %v14493_v18  ;;  %v13173_v57 = vld [vmem:[%s20442_s1 + $0xfa4] sm:$0xf]  ;;  %v10168_v4 = vor.u32 %v13109_v53, %v10165_v54  ;;  %v6620_v34 = vadd.f32 %v6619_v29, %v16057_v3 }
 0x177   :  { %v10421_v58 = vld [vmem:[%s20442_s1 + $0xfb0] sm:$0xf0]  ;;  %6865 = vmatmul.bf16.vlgmr.msra.gmra.mxu3 %v14503_v35  ;;  %v10296_v46 = vor.u32 %v13141_v55, %v10293_v56  ;;  %v13073_v9 = vld [vmem:[%s20442_s1 + $0xc84] sm:$0xf] }
 0x178   :  { %6871 = vmatpush.bf16.msrb.mxu0 %v10056_v47  ;;  %v10021_v10 = vld [vmem:[%s20442_s1 + $0xc90] sm:$0xf0]  ;;  %v13105_v14 = vld [vmem:[%s20442_s1 + $0xd84] sm:$0xf]  ;;  %v10424_v15 = vor.u32 %v13173_v57, %v10421_v58 }
 0x179   :  { %6884 = vmatpush.bf16.msrb.mxu1 %v10184_v48  ;;  %6897 = vmatpush.bf16.msrb.mxu2 %v10312_v49  ;;  %v10149_v63 = vld [vmem:[%s20442_s1 + $0xd90] sm:$0xf0]  ;;  %v13137_v20 = vld [vmem:[%s20442_s1 + $0xe84] sm:$0xf]  ;;  %v10024_v21 = vor.u32 %v13073_v9, %v10021_v10  ;;  %v6633_v49 = vadd.f32 %v6632_v60, %v6620_v34 }
 0x17a   :  { %6910 = vmatpush.bf16.msrb.mxu3 %v10440_v13  ;;  %v10277_v23 = vld [vmem:[%s20442_s1 + $0xe90] sm:$0xf0]  ;;  %v13169_v31 = vld [vmem:[%s20442_s1 + $0xf84] sm:$0xf]  ;;  %v10152_v39 = vor.u32 %v13105_v14, %v10149_v63  ;;  %v6645_v9 = vpop.f32.mrf.mxu2 }
 0x17b   :  { %v10405_v51 = vld [vmem:[%s20442_s1 + $0xf90] sm:$0xf0]  ;;  %v10280_v62 = vor.u32 %v13137_v20, %v10277_v23  ;;  %v13069_v43 = vld [vmem:[%s20442_s1 + $0xc64] sm:$0xf]  ;;  %v6646_v63 = vadd.f32 %v6645_v9, %v6633_v49  ;;  %v6658_v20 = vpop.f32.mrf.mxu3 }
 0x17c   :  { %6872 = vmatpush.bf16.msrb.mxu0 %v10040_v1  ;;  %v10005_v47 = vld [vmem:[%s20442_s1 + $0xc70] sm:$0xf0]  ;;  %v13101_v48 = vld [vmem:[%s20442_s1 + $0xd64] sm:$0xf]  ;;  %v10408_v3 = vor.u32 %v13169_v31, %v10405_v51  ;;  %v6621_v31 = vpop.f32.mrf.mxu0  ;;  %v6634_v34 = vpop.f32.mrf.mxu1 }
 0x17d   :  { %6885 = vmatpush.bf16.msrb.mxu1 %v10168_v4  ;;  %6898 = vmatpush.bf16.msrb.mxu2 %v10296_v46  ;;  %v10133_v50 = vld [vmem:[%s20442_s1 + $0xd70] sm:$0xf0]  ;;  %v13133_v52 = vld [vmem:[%s20442_s1 + $0xe64] sm:$0xf]  ;;  %v10008_v55 = vor.u32 %v13069_v43, %v10005_v47 }
 0x17e   :  { %6911 = vmatpush.bf16.msrb.mxu3 %v10424_v15  ;;  %v10261_v53 = vld [vmem:[%s20442_s1 + $0xe70] sm:$0xf0]  ;;  %v13165_v13 = vld [vmem:[%s20442_s1 + $0xf64] sm:$0xf]  ;;  %v10136_v56 = vor.u32 %v13101_v48, %v10133_v50 }
 0x17f   :  { %v10389_v54 = vld [vmem:[%s20442_s1 + $0xf70] sm:$0xf0]  ;;  %v10264_v57 = vor.u32 %v13133_v52, %v10261_v53  ;;  %v13065_v58 = vld [vmem:[%s20442_s1 + $0xc44] sm:$0xf] }
 0x180   :  { %6873 = vmatpush.bf16.msrb.mxu0 %v10024_v21  ;;  %v9989_v1 = vld [vmem:[%s20442_s1 + $0xc50] sm:$0xf0]  ;;  %v13097_v4 = vld [vmem:[%s20442_s1 + $0xd44] sm:$0xf]  ;;  %v10392_v46 = vor.u32 %v13165_v13, %v10389_v54  ;;  %v16256_v21 = vadd.f32 %v6658_v20, %v6646_v63 }
 0x181   :  { %6886 = vmatpush.bf16.msrb.mxu1 %v10152_v39  ;;  %6899 = vmatpush.bf16.msrb.mxu2 %v10280_v62  ;;  %v10117_v10 = vld [vmem:[%s20442_s1 + $0xd50] sm:$0xf0]  ;;  %v13129_v14 = vld [vmem:[%s20442_s1 + $0xe44] sm:$0xf]  ;;  %v9992_v51 = vor.u32 %v13065_v58, %v9989_v1 }
 0x182   :  { %6912 = vmatpush.bf16.msrb.mxu3 %v10408_v3  ;;  %v10245_v15 = vld [vmem:[%s20442_s1 + $0xe50] sm:$0xf0]  ;;  %v13161_v23 = vld [vmem:[%s20442_s1 + $0xf44] sm:$0xf]  ;;  %v10120_v60 = vor.u32 %v13097_v4, %v10117_v10 }
 0x183   :  { %v10373_v29 = vld [vmem:[%s20442_s1 + $0xf50] sm:$0xf0]  ;;  %v10248_v39 = vor.u32 %v13129_v14, %v10245_v15  ;;  %v13061_v62 = vld [vmem:[%s20442_s1 + $0xc24] sm:$0xf]  ;;  %v6647_v15 = vpop.f32.mrf.mxu2 }
 0x184   :  { %6874 = vmatpush.bf16.msrb.mxu0 %v10008_v55  ;;  %v9973_v43 = vld [vmem:[%s20442_s1 + $0xc30] sm:$0xf0]  ;;  %v13093_v47 = vld [vmem:[%s20442_s1 + $0xd24] sm:$0xf]  ;;  %v10376_v48 = vor.u32 %v13161_v23, %v10373_v29  ;;  %v6660_v29 = vpop.f32.mrf.mxu3 }
 0x185   :  { %6887 = vmatpush.bf16.msrb.mxu1 %v10136_v56  ;;  %6900 = vmatpush.bf16.msrb.mxu2 %v10264_v57  ;;  %v10101_v3 = vld [vmem:[%s20442_s1 + $0xd30] sm:$0xf0]  ;;  %v13125_v49 = vld [vmem:[%s20442_s1 + $0xe24] sm:$0xf]  ;;  %v9976_v13 = vor.u32 %v13061_v62, %v9973_v43 }
 0x186   :  { %6913 = vmatpush.bf16.msrb.mxu3 %v10392_v46  ;;  %v10229_v50 = vld [vmem:[%s20442_s1 + $0xe30] sm:$0xf0]  ;;  %v13157_v52 = vld [vmem:[%s20442_s1 + $0xf24] sm:$0xf]  ;;  %v10104_v56 = vor.u32 %v13093_v47, %v10101_v3 }
 0x187   :  { %v10357_v53 = vld [vmem:[%s20442_s1 + $0xf30] sm:$0xf0]  ;;  %v13057_v54 = vld [vmem:[%s20442_s1 + $0xc04] sm:$0xf]  ;;  %v10232_v57 = vor.u32 %v13125_v49, %v10229_v50 }
 0x188   :  { %6875 = vmatpush.bf16.msrb.mxu0 %v9992_v51  ;;  %v9957_v55 = vld [vmem:[%s20442_s1 + $0xc10] sm:$0xf0]  ;;  %v13089_v58 = vld [vmem:[%s20442_s1 + $0xd04] sm:$0xf]  ;;  %v10360_v46 = vor.u32 %v13157_v52, %v10357_v53 }
 0x189   :  { %6888 = vmatpush.bf16.msrb.mxu1 %v10120_v60  ;;  %6901 = vmatpush.bf16.msrb.mxu2 %v10248_v39  ;;  %v10085_v1 = vld [vmem:[%s20442_s1 + $0xd10] sm:$0xf0]  ;;  %v13121_v4 = vld [vmem:[%s20442_s1 + $0xe04] sm:$0xf]  ;;  %v9960_v31 = vor.u32 %v13057_v54, %v9957_v55 }
 0x18a   :  { %6914 = vmatpush.bf16.msrb.mxu3 %v10376_v48  ;;  %v10213_v9 = vld [vmem:[%s20442_s1 + $0xe10] sm:$0xf0]  ;;  %v13153_v10 = vld [vmem:[%s20442_s1 + $0xf04] sm:$0xf]  ;;  %v10088_v39 = vor.u32 %v13089_v58, %v10085_v1 }
 0x18b   :  { %v10341_v14 = vld [vmem:[%s20442_s1 + $0xf10] sm:$0xf0]  ;;  %v13213_v63 = vld [vmem:[%s20442_s1 + $0x10e4] sm:$0xf]  ;;  %v10216_v62 = vor.u32 %v13121_v4, %v10213_v9 }
 0x18c   :  { %v10581_v20 = vld [vmem:[%s20442_s1 + $0x10f0] sm:$0xf0]  ;;  %v13245_v23 = vld [vmem:[%s20442_s1 + $0x11e4] sm:$0xf]  ;;  %6876 = vmatpush.bf16.msrb.mxu0 %v9976_v13  ;;  %v10344_v48 = vor.u32 %v13153_v10, %v10341_v14 }
 0x18d   :  { %v10709_v51 = vld [vmem:[%s20442_s1 + $0x11f0] sm:$0xf0]  ;;  %v13277_v34 = vld [vmem:[%s20442_s1 + $0x12e4] sm:$0xf]  ;;  %6889 = vmatpush.bf16.msrb.mxu1 %v10104_v56  ;;  %6902 = vmatpush.bf16.msrb.mxu2 %v10232_v57  ;;  %v10584_v3 = vor.u32 %v13213_v63, %v10581_v20 }
 0x18e   :  { %v10837_v60 = vld [vmem:[%s20442_s1 + $0x12f0] sm:$0xf0]  ;;  %v13309_v43 = vld [vmem:[%s20442_s1 + $0x13e4] sm:$0xf]  ;;  %6915 = vmatpush.bf16.msrb.mxu3 %v10360_v46  ;;  %v10712_v49 = vor.u32 %v13245_v23, %v10709_v51 }
 0x18f   :  { %v10965_v47 = vld [vmem:[%s20442_s1 + $0x13f0] sm:$0xf0]  ;;  %v10840_v50 = vor.u32 %v13277_v34, %v10837_v60  ;;  %v13209_v52 = vld [vmem:[%s20442_s1 + $0x10c4] sm:$0xf] }
 0x190   :  { %v10565_v53 = vld [vmem:[%s20442_s1 + $0x10d0] sm:$0xf0]  ;;  %v13241_v13 = vld [vmem:[%s20442_s1 + $0x11c4] sm:$0xf]  ;;  %6877 = vmatpush.bf16.msrb.mxu0 %v9960_v31  ;;  %v10968_v54 = vor.u32 %v13309_v43, %v10965_v47 }
 0x191   :  { %v10693_v55 = vld [vmem:[%s20442_s1 + $0x11d0] sm:$0xf0]  ;;  %v13273_v56 = vld [vmem:[%s20442_s1 + $0x12c4] sm:$0xf]  ;;  %6890 = vmatpush.bf16.msrb.mxu1 %v10088_v39  ;;  %6903 = vmatpush.bf16.msrb.mxu2 %v10216_v62  ;;  %v10568_v4 = vor.u32 %v13209_v52, %v10565_v53  ;;  %v6671_v52 = vpop.f32.mrf.mxu0 }
 0x192   :  { %v10821_v57 = vld [vmem:[%s20442_s1 + $0x12d0] sm:$0xf0]  ;;  %v13305_v58 = vld [vmem:[%s20442_s1 + $0x13c4] sm:$0xf]  ;;  %6916 = vmatpush.bf16.msrb.mxu3 %v10344_v48  ;;  %v10696_v46 = vor.u32 %v13241_v13, %v10693_v55 }
 0x193   :  { %v10949_v1 = vld [vmem:[%s20442_s1 + $0x13d0] sm:$0xf0]  ;;  %v10824_v9 = vor.u32 %v13273_v56, %v10821_v57  ;;  %v13205_v10 = vld [vmem:[%s20442_s1 + $0x10a4] sm:$0xf]  ;;  %6878 = vmatmul.bf16.vlgmr.msrb.gmra.mxu0 %v14699_v28  ;;  %v6684_v56 = vpop.f32.mrf.mxu1 }
 0x194   :  { %6922 = vmatpush.bf16.msra.mxu0 %v10584_v3  ;;  %v10549_v14 = vld [vmem:[%s20442_s1 + $0x10b0] sm:$0xf0]  ;;  %v13237_v15 = vld [vmem:[%s20442_s1 + $0x11a4] sm:$0xf]  ;;  %v10952_v63 = vor.u32 %v13305_v58, %v10949_v1  ;;  %6904 = vmatmul.bf16.vlgmr.msrb.gmra.mxu2 %v14712_v19 }
 0x195   :  { %6935 = vmatpush.bf16.msra.mxu1 %v10712_v49  ;;  %6948 = vmatpush.bf16.msra.mxu2 %v10840_v50  ;;  %v10677_v20 = vld [vmem:[%s20442_s1 + $0x11b0] sm:$0xf0]  ;;  %v13269_v23 = vld [vmem:[%s20442_s1 + $0x12a4] sm:$0xf]  ;;  %v10552_v34 = vor.u32 %v13205_v10, %v10549_v14 }
 0x196   :  { %6961 = vmatpush.bf16.msra.mxu3 %v10968_v54  ;;  %v10805_v29 = vld [vmem:[%s20442_s1 + $0x12b0] sm:$0xf0]  ;;  %6891 = vmatmul.bf16.vlgmr.msrb.gmra.mxu1 %v14716_v59  ;;  %v13301_v31 = vld [vmem:[%s20442_s1 + $0x13a4] sm:$0xf]  ;;  %v10680_v60 = vor.u32 %v13237_v15, %v10677_v20  ;;  %v6672_v54 = vadd.f32 %v6671_v52, %v16256_v21 }
 0x197   :  { %v10933_v51 = vld [vmem:[%s20442_s1 + $0x13b0] sm:$0xf0]  ;;  %6917 = vmatmul.bf16.vlgmr.msrb.gmra.mxu3 %v14726_v37  ;;  %v10808_v39 = vor.u32 %v13269_v23, %v10805_v29  ;;  %v13201_v62 = vld [vmem:[%s20442_s1 + $0x1084] sm:$0xf] }
 0x198   :  { %6923 = vmatpush.bf16.msra.mxu0 %v10568_v4  ;;  %v10533_v43 = vld [vmem:[%s20442_s1 + $0x1090] sm:$0xf0]  ;;  %v13233_v47 = vld [vmem:[%s20442_s1 + $0x1184] sm:$0xf]  ;;  %v10936_v48 = vor.u32 %v13301_v31, %v10933_v51 }
 0x199   :  { %6936 = vmatpush.bf16.msra.mxu1 %v10696_v46  ;;  %6949 = vmatpush.bf16.msra.mxu2 %v10824_v9  ;;  %v10661_v3 = vld [vmem:[%s20442_s1 + $0x1190] sm:$0xf0]  ;;  %v13265_v49 = vld [vmem:[%s20442_s1 + $0x1284] sm:$0xf]  ;;  %v10536_v55 = vor.u32 %v13201_v62, %v10533_v43  ;;  %v6685_v9 = vadd.f32 %v6684_v56, %v6672_v54  ;;  %v6697_v62 = vpop.f32.mrf.mxu2 }
 0x19a   :  { %6962 = vmatpush.bf16.msra.mxu3 %v10952_v63  ;;  %v10789_v50 = vld [vmem:[%s20442_s1 + $0x1290] sm:$0xf0]  ;;  %v13297_v53 = vld [vmem:[%s20442_s1 + $0x1384] sm:$0xf]  ;;  %v10664_v57 = vor.u32 %v13233_v47, %v10661_v3 }
 0x19b   :  { %v10917_v13 = vld [vmem:[%s20442_s1 + $0x1390] sm:$0xf0]  ;;  %v10792_v58 = vor.u32 %v13265_v49, %v10789_v50  ;;  %v13197_v1 = vld [vmem:[%s20442_s1 + $0x1064] sm:$0xf]  ;;  %v6698_v3 = vadd.f32 %v6697_v62, %v6685_v9  ;;  %v6710_v49 = vpop.f32.mrf.mxu3  ;;  %v6686_v54 = vpop.f32.mrf.mxu1 }
 0x19c   :  { %6924 = vmatpush.bf16.msra.mxu0 %v10552_v34  ;;  %v10517_v4 = vld [vmem:[%s20442_s1 + $0x1070] sm:$0xf0]  ;;  %v13229_v46 = vld [vmem:[%s20442_s1 + $0x1164] sm:$0xf]  ;;  %v10920_v21 = vor.u32 %v13297_v53, %v10917_v13  ;;  %v6673_v53 = vpop.f32.mrf.mxu0 }
 0x19d   :  { %6937 = vmatpush.bf16.msra.mxu1 %v10680_v60  ;;  %6950 = vmatpush.bf16.msra.mxu2 %v10808_v39  ;;  %v10645_v10 = vld [vmem:[%s20442_s1 + $0x1170] sm:$0xf0]  ;;  %v13261_v14 = vld [vmem:[%s20442_s1 + $0x1264] sm:$0xf]  ;;  %v10520_v23 = vor.u32 %v13197_v1, %v10517_v4 }
 0x19e   :  { %6963 = vmatpush.bf16.msra.mxu3 %v10936_v48  ;;  %v10773_v15 = vld [vmem:[%s20442_s1 + $0x1270] sm:$0xf0]  ;;  %v13293_v63 = vld [vmem:[%s20442_s1 + $0x1364] sm:$0xf]  ;;  %v10648_v29 = vor.u32 %v13229_v46, %v10645_v10 }
 0x19f   :  { %v10901_v20 = vld [vmem:[%s20442_s1 + $0x1370] sm:$0xf0]  ;;  %v10776_v31 = vor.u32 %v13261_v14, %v10773_v15  ;;  %v13193_v51 = vld [vmem:[%s20442_s1 + $0x1044] sm:$0xf] }
 0x1a0   :  { %6925 = vmatpush.bf16.msra.mxu0 %v10536_v55  ;;  %v10501_v34 = vld [vmem:[%s20442_s1 + $0x1050] sm:$0xf0]  ;;  %v13225_v60 = vld [vmem:[%s20442_s1 + $0x1144] sm:$0xf]  ;;  %v10904_v39 = vor.u32 %v13293_v63, %v10901_v20  ;;  %v16455_v55 = vadd.f32 %v6710_v49, %v6698_v3 }
 0x1a1   :  { %6938 = vmatpush.bf16.msra.mxu1 %v10664_v57  ;;  %6951 = vmatpush.bf16.msra.mxu2 %v10792_v58  ;;  %v10629_v43 = vld [vmem:[%s20442_s1 + $0x1150] sm:$0xf0]  ;;  %v13257_v47 = vld [vmem:[%s20442_s1 + $0x1244] sm:$0xf]  ;;  %v10504_v13 = vor.u32 %v13193_v51, %v10501_v34 }
 0x1a2   :  { %6964 = vmatpush.bf16.msra.mxu3 %v10920_v21  ;;  %v10757_v48 = vld [vmem:[%s20442_s1 + $0x1250] sm:$0xf0]  ;;  %v13289_v50 = vld [vmem:[%s20442_s1 + $0x1344] sm:$0xf]  ;;  %v10632_v56 = vor.u32 %v13225_v60, %v10629_v43 }
 0x1a3   :  { %v10885_v52 = vld [vmem:[%s20442_s1 + $0x1350] sm:$0xf0]  ;;  %v10760_v57 = vor.u32 %v13257_v47, %v10757_v48  ;;  %v13189_v58 = vld [vmem:[%s20442_s1 + $0x1024] sm:$0xf]  ;;  %v6699_v48 = vpop.f32.mrf.mxu2 }
 0x1a4   :  { %6926 = vmatpush.bf16.msra.mxu0 %v10520_v23  ;;  %v10485_v1 = vld [vmem:[%s20442_s1 + $0x1030] sm:$0xf0]  ;;  %v13221_v4 = vld [vmem:[%s20442_s1 + $0x1124] sm:$0xf]  ;;  %v10888_v46 = vor.u32 %v13289_v50, %v10885_v52  ;;  %v6712_v52 = vpop.f32.mrf.mxu3 }
 0x1a5   :  { %6939 = vmatpush.bf16.msra.mxu1 %v10648_v29  ;;  %6952 = vmatpush.bf16.msra.mxu2 %v10776_v31  ;;  %v10613_v21 = vld [vmem:[%s20442_s1 + $0x1130] sm:$0xf0]  ;;  %v13253_v9 = vld [vmem:[%s20442_s1 + $0x1224] sm:$0xf]  ;;  %v10488_v63 = vor.u32 %v13189_v58, %v10485_v1 }
 0x1a6   :  { %6965 = vmatpush.bf16.msra.mxu3 %v10904_v39  ;;  %v10741_v10 = vld [vmem:[%s20442_s1 + $0x1230] sm:$0xf0]  ;;  %v13285_v14 = vld [vmem:[%s20442_s1 + $0x1324] sm:$0xf]  ;;  %v10616_v29 = vor.u32 %v13221_v4, %v10613_v21 }
 0x1a7   :  { %v10869_v15 = vld [vmem:[%s20442_s1 + $0x1330] sm:$0xf0]  ;;  %v13185_v20 = vld [vmem:[%s20442_s1 + $0x1004] sm:$0xf]  ;;  %v10744_v31 = vor.u32 %v13253_v9, %v10741_v10 }
 0x1a8   :  { %6927 = vmatpush.bf16.msra.mxu0 %v10504_v13  ;;  %v10469_v23 = vld [vmem:[%s20442_s1 + $0x1010] sm:$0xf0]  ;;  %v13217_v51 = vld [vmem:[%s20442_s1 + $0x1104] sm:$0xf]  ;;  %v10872_v39 = vor.u32 %v13285_v14, %v10869_v15 }
 0x1a9   :  { %6940 = vmatpush.bf16.msra.mxu1 %v10632_v56  ;;  %6953 = vmatpush.bf16.msra.mxu2 %v10760_v57  ;;  %v10597_v34 = vld [vmem:[%s20442_s1 + $0x1110] sm:$0xf0]  ;;  %v13249_v60 = vld [vmem:[%s20442_s1 + $0x1204] sm:$0xf]  ;;  %v10472_v53 = vor.u32 %v13185_v20, %v10469_v23 }
 0x1aa   :  { %6966 = vmatpush.bf16.msra.mxu3 %v10888_v46  ;;  %v10725_v62 = vld [vmem:[%s20442_s1 + $0x1210] sm:$0xf0]  ;;  %v13281_v43 = vld [vmem:[%s20442_s1 + $0x1304] sm:$0xf]  ;;  %v10600_v57 = vor.u32 %v13217_v51, %v10597_v34 }
 0x1ab   :  { %v10853_v47 = vld [vmem:[%s20442_s1 + $0x1310] sm:$0xf0]  ;;  %v13341_v3 = vld [vmem:[%s20442_s1 + $0x14e4] sm:$0xf]  ;;  %v10728_v58 = vor.u32 %v13249_v60, %v10725_v62 }
 0x1ac   :  { %v11093_v49 = vld [vmem:[%s20442_s1 + $0x14f0] sm:$0xf0]  ;;  %v13373_v50 = vld [vmem:[%s20442_s1 + $0x15e4] sm:$0xf]  ;;  %6928 = vmatpush.bf16.msra.mxu0 %v10488_v63  ;;  %v10856_v46 = vor.u32 %v13281_v43, %v10853_v47 }
 0x1ad   :  { %v11221_v13 = vld [vmem:[%s20442_s1 + $0x15f0] sm:$0xf0]  ;;  %v13405_v54 = vld [vmem:[%s20442_s1 + $0x16e4] sm:$0xf]  ;;  %6941 = vmatpush.bf16.msra.mxu1 %v10616_v29  ;;  %6954 = vmatpush.bf16.msra.mxu2 %v10744_v31  ;;  %v11096_v21 = vor.u32 %v13341_v3, %v11093_v49 }
 0x1ae   :  { %v11349_v56 = vld [vmem:[%s20442_s1 + $0x16f0] sm:$0xf0]  ;;  %v13437_v1 = vld [vmem:[%s20442_s1 + $0x17e4] sm:$0xf]  ;;  %6967 = vmatpush.bf16.msra.mxu3 %v10872_v39  ;;  %v11224_v9 = vor.u32 %v13373_v50, %v11221_v13 }
 0x1af   :  { %v11477_v4 = vld [vmem:[%s20442_s1 + $0x17f0] sm:$0xf0]  ;;  %v11352_v10 = vor.u32 %v13405_v54, %v11349_v56  ;;  %v13337_v14 = vld [vmem:[%s20442_s1 + $0x14c4] sm:$0xf] }
 0x1b0   :  { %v11077_v15 = vld [vmem:[%s20442_s1 + $0x14d0] sm:$0xf0]  ;;  %v13369_v63 = vld [vmem:[%s20442_s1 + $0x15c4] sm:$0xf]  ;;  %6929 = vmatpush.bf16.msra.mxu0 %v10472_v53  ;;  %v11480_v20 = vor.u32 %v13437_v1, %v11477_v4 }
 0x1b1   :  { %v11205_v23 = vld [vmem:[%s20442_s1 + $0x15d0] sm:$0xf0]  ;;  %v13401_v29 = vld [vmem:[%s20442_s1 + $0x16c4] sm:$0xf]  ;;  %6942 = vmatpush.bf16.msra.mxu1 %v10600_v57  ;;  %6955 = vmatpush.bf16.msra.mxu2 %v10728_v58  ;;  %v11080_v60 = vor.u32 %v13337_v14, %v11077_v15 }
 0x1b2   :  { %v11333_v31 = vld [vmem:[%s20442_s1 + $0x16d0] sm:$0xf0]  ;;  %v13433_v51 = vld [vmem:[%s20442_s1 + $0x17c4] sm:$0xf]  ;;  %6968 = vmatpush.bf16.msra.mxu3 %v10856_v46  ;;  %v11208_v39 = vor.u32 %v13369_v63, %v11205_v23 }
 0x1b3   :  { %v11461_v34 = vld [vmem:[%s20442_s1 + $0x17d0] sm:$0xf0]  ;;  %v11336_v62 = vor.u32 %v13401_v29, %v11333_v31  ;;  %v13333_v43 = vld [vmem:[%s20442_s1 + $0x14a4] sm:$0xf]  ;;  %6930 = vmatmul.bf16.vlgmr.msra.gmra.mxu0 %v14909_v36 }
 0x1b4   :  { %6974 = vmatpush.bf16.msrb.mxu0 %v11096_v21  ;;  %v11061_v47 = vld [vmem:[%s20442_s1 + $0x14b0] sm:$0xf0]  ;;  %v13365_v48 = vld [vmem:[%s20442_s1 + $0x15a4] sm:$0xf]  ;;  %v11464_v3 = vor.u32 %v13433_v51, %v11461_v34  ;;  %6956 = vmatmul.bf16.vlgmr.msra.gmra.mxu2 %v14920_v40 }
 0x1b5   :  { %6987 = vmatpush.bf16.msrb.mxu1 %v11224_v9  ;;  %7000 = vmatpush.bf16.msrb.mxu2 %v11352_v10  ;;  %v11189_v49 = vld [vmem:[%s20442_s1 + $0x15b0] sm:$0xf0]  ;;  %v13397_v50 = vld [vmem:[%s20442_s1 + $0x16a4] sm:$0xf]  ;;  %v11064_v54 = vor.u32 %v13333_v43, %v11061_v47 }
 0x1b6   :  { %7013 = vmatpush.bf16.msrb.mxu3 %v11480_v20  ;;  %v11317_v52 = vld [vmem:[%s20442_s1 + $0x16b0] sm:$0xf0]  ;;  %6943 = vmatmul.bf16.vlgmr.msra.gmra.mxu1 %v14922_v22  ;;  %v13429_v53 = vld [vmem:[%s20442_s1 + $0x17a4] sm:$0xf]  ;;  %v11192_v56 = vor.u32 %v13365_v48, %v11189_v49  ;;  %v6723_v20 = vpop.f32.mrf.mxu0 }
 0x1b7   :  { %v11445_v13 = vld [vmem:[%s20442_s1 + $0x17b0] sm:$0xf0]  ;;  %6969 = vmatmul.bf16.vlgmr.msra.gmra.mxu3 %v14930_v45  ;;  %v11320_v57 = vor.u32 %v13397_v50, %v11317_v52  ;;  %v13329_v58 = vld [vmem:[%s20442_s1 + $0x1484] sm:$0xf] }
 0x1b8   :  { %6975 = vmatpush.bf16.msrb.mxu0 %v11080_v60  ;;  %v11045_v1 = vld [vmem:[%s20442_s1 + $0x1490] sm:$0xf0]  ;;  %v13361_v4 = vld [vmem:[%s20442_s1 + $0x1584] sm:$0xf]  ;;  %v11448_v46 = vor.u32 %v13429_v53, %v11445_v13  ;;  %v6736_v60 = vpop.f32.mrf.mxu1 }
 0x1b9   :  { %6988 = vmatpush.bf16.msrb.mxu1 %v11208_v39  ;;  %7001 = vmatpush.bf16.msrb.mxu2 %v11336_v62  ;;  %v11173_v21 = vld [vmem:[%s20442_s1 + $0x1590] sm:$0xf0]  ;;  %v13393_v9 = vld [vmem:[%s20442_s1 + $0x1684] sm:$0xf]  ;;  %v11048_v63 = vor.u32 %v13329_v58, %v11045_v1  ;;  %v6737_v48 = vadd.f32 %v6736_v60, %v6723_v20 }
 0x1ba   :  { %7014 = vmatpush.bf16.msrb.mxu3 %v11464_v3  ;;  %v11301_v10 = vld [vmem:[%s20442_s1 + $0x1690] sm:$0xf0]  ;;  %v13425_v14 = vld [vmem:[%s20442_s1 + $0x1784] sm:$0xf]  ;;  %v11176_v23 = vor.u32 %v13361_v4, %v11173_v21 }
 0x1bb   :  { %v11429_v15 = vld [vmem:[%s20442_s1 + $0x1790] sm:$0xf0]  ;;  %v11304_v29 = vor.u32 %v13393_v9, %v11301_v10  ;;  %v13325_v31 = vld [vmem:[%s20442_s1 + $0x1464] sm:$0xf]  ;;  %v6762_v9 = vpop.f32.mrf.mxu3 }
 0x1bc   :  { %6976 = vmatpush.bf16.msrb.mxu0 %v11064_v54  ;;  %v11029_v51 = vld [vmem:[%s20442_s1 + $0x1470] sm:$0xf0]  ;;  %v13357_v34 = vld [vmem:[%s20442_s1 + $0x1564] sm:$0xf]  ;;  %v11432_v39 = vor.u32 %v13425_v14, %v11429_v15 }
 0x1bd   :  { %6989 = vmatpush.bf16.msrb.mxu1 %v11192_v56  ;;  %7002 = vmatpush.bf16.msrb.mxu2 %v11320_v57  ;;  %v11157_v62 = vld [vmem:[%s20442_s1 + $0x1570] sm:$0xf0]  ;;  %v13389_v43 = vld [vmem:[%s20442_s1 + $0x1664] sm:$0xf]  ;;  %v11032_v50 = vor.u32 %v13325_v31, %v11029_v51  ;;  %v6749_v57 = vpop.f32.mrf.mxu2 }
 0x1be   :  { %7015 = vmatpush.bf16.msrb.mxu3 %v11448_v46  ;;  %v11285_v47 = vld [vmem:[%s20442_s1 + $0x1670] sm:$0xf0]  ;;  %v13421_v3 = vld [vmem:[%s20442_s1 + $0x1764] sm:$0xf]  ;;  %v11160_v52 = vor.u32 %v13357_v34, %v11157_v62  ;;  %v6750_v21 = vadd.f32 %v6749_v57, %v6737_v48  ;;  %v6725_v20 = vpop.f32.mrf.mxu0 }
 0x1bf   :  { %v11413_v49 = vld [vmem:[%s20442_s1 + $0x1770] sm:$0xf0]  ;;  %v11288_v53 = vor.u32 %v13389_v43, %v11285_v47  ;;  %v13321_v13 = vld [vmem:[%s20442_s1 + $0x1444] sm:$0xf] }
 0x1c0   :  { %6977 = vmatpush.bf16.msrb.mxu0 %v11048_v63  ;;  %v11013_v54 = vld [vmem:[%s20442_s1 + $0x1450] sm:$0xf0]  ;;  %v13353_v56 = vld [vmem:[%s20442_s1 + $0x1544] sm:$0xf]  ;;  %v11416_v58 = vor.u32 %v13421_v3, %v11413_v49  ;;  %v16653_v63 = vadd.f32 %v6762_v9, %v6750_v21  ;;  %v6738_v60 = vpop.f32.mrf.mxu1 }
 0x1c1   :  { %6990 = vmatpush.bf16.msrb.mxu1 %v11176_v23  ;;  %7003 = vmatpush.bf16.msrb.mxu2 %v11304_v29  ;;  %v11141_v1 = vld [vmem:[%s20442_s1 + $0x1550] sm:$0xf0]  ;;  %v13385_v4 = vld [vmem:[%s20442_s1 + $0x1644] sm:$0xf]  ;;  %v11016_v15 = vor.u32 %v13321_v13, %v11013_v54 }
 0x1c2   :  { %7016 = vmatpush.bf16.msrb.mxu3 %v11432_v39  ;;  %v11269_v46 = vld [vmem:[%s20442_s1 + $0x1650] sm:$0xf0]  ;;  %v13417_v10 = vld [vmem:[%s20442_s1 + $0x1744] sm:$0xf]  ;;  %v11144_v23 = vor.u32 %v13353_v56, %v11141_v1 }
 0x1c3   :  { %v11397_v14 = vld [vmem:[%s20442_s1 + $0x1750] sm:$0xf0]  ;;  %v11272_v29 = vor.u32 %v13385_v4, %v11269_v46  ;;  %v13317_v31 = vld [vmem:[%s20442_s1 + $0x1424] sm:$0xf]  ;;  %v6764_v9 = vpop.f32.mrf.mxu3 }
 0x1c4   :  { %6978 = vmatpush.bf16.msrb.mxu0 %v11032_v50  ;;  %v10997_v51 = vld [vmem:[%s20442_s1 + $0x1430] sm:$0xf0]  ;;  %v13349_v34 = vld [vmem:[%s20442_s1 + $0x1524] sm:$0xf]  ;;  %v11400_v39 = vor.u32 %v13417_v10, %v11397_v14 }
 0x1c5   :  { %6991 = vmatpush.bf16.msrb.mxu1 %v11160_v52  ;;  %7004 = vmatpush.bf16.msrb.mxu2 %v11288_v53  ;;  %v11125_v62 = vld [vmem:[%s20442_s1 + $0x1530] sm:$0xf0]  ;;  %v13381_v43 = vld [vmem:[%s20442_s1 + $0x1624] sm:$0xf]  ;;  %v11000_v49 = vor.u32 %v13317_v31, %v10997_v51 }
 0x1c6   :  { %7017 = vmatpush.bf16.msrb.mxu3 %v11416_v58  ;;  %v11253_v47 = vld [vmem:[%s20442_s1 + $0x1630] sm:$0xf0]  ;;  %v13413_v48 = vld [vmem:[%s20442_s1 + $0x1724] sm:$0xf]  ;;  %v11128_v53 = vor.u32 %v13349_v34, %v11125_v62  ;;  %v6751_v58 = vpop.f32.mrf.mxu2 }
 0x1c7   :  { %v11381_v3 = vld [vmem:[%s20442_s1 + $0x1730] sm:$0xf0]  ;;  %v13313_v50 = vld [vmem:[%s20442_s1 + $0x1404] sm:$0xf]  ;;  %v11256_v13 = vor.u32 %v13381_v43, %v11253_v47 }
 0x1c8   :  { %6979 = vmatpush.bf16.msrb.mxu0 %v11016_v15  ;;  %v10981_v52 = vld [vmem:[%s20442_s1 + $0x1410] sm:$0xf0]  ;;  %v13345_v54 = vld [vmem:[%s20442_s1 + $0x1504] sm:$0xf]  ;;  %v11384_v1 = vor.u32 %v13413_v48, %v11381_v3 }
 0x1c9   :  { %6992 = vmatpush.bf16.msrb.mxu1 %v11144_v23  ;;  %7005 = vmatpush.bf16.msrb.mxu2 %v11272_v29  ;;  %v11109_v56 = vld [vmem:[%s20442_s1 + $0x1510] sm:$0xf0]  ;;  %v13377_v57 = vld [vmem:[%s20442_s1 + $0x1604] sm:$0xf]  ;;  %v10984_v20 = vor.u32 %v13313_v50, %v10981_v52 }
 0x1ca   :  { %7018 = vmatpush.bf16.msrb.mxu3 %v11400_v39  ;;  %v11237_v4 = vld [vmem:[%s20442_s1 + $0x1610] sm:$0xf0]  ;;  %v13409_v46 = vld [vmem:[%s20442_s1 + $0x1704] sm:$0xf]  ;;  %v11112_v51 = vor.u32 %v13345_v54, %v11109_v56 }
 0x1cb   :  { %v11365_v21 = vld [vmem:[%s20442_s1 + $0x1710] sm:$0xf0]  ;;  %v13469_v10 = vld [vmem:[%s20442_s1 + $0x18e4] sm:$0xf]  ;;  %v11240_v34 = vor.u32 %v13377_v57, %v11237_v4 }
 0x1cc   :  { %v11605_v14 = vld [vmem:[%s20442_s1 + $0x18f0] sm:$0xf0]  ;;  %v13501_v15 = vld [vmem:[%s20442_s1 + $0x19e4] sm:$0xf]  ;;  %6980 = vmatpush.bf16.msrb.mxu0 %v11000_v49  ;;  %v11368_v62 = vor.u32 %v13409_v46, %v11365_v21 }
 0x1cd   :  { %v11733_v23 = vld [vmem:[%s20442_s1 + $0x19f0] sm:$0xf0]  ;;  %v13533_v29 = vld [vmem:[%s20442_s1 + $0x1ae4] sm:$0xf]  ;;  %6993 = vmatpush.bf16.msrb.mxu1 %v11128_v53  ;;  %7006 = vmatpush.bf16.msrb.mxu2 %v11256_v13  ;;  %v11608_v43 = vor.u32 %v13469_v10, %v11605_v14 }
 0x1ce   :  { %v11861_v31 = vld [vmem:[%s20442_s1 + $0x1af0] sm:$0xf0]  ;;  %v13565_v60 = vld [vmem:[%s20442_s1 + $0x1be4] sm:$0xf]  ;;  %7019 = vmatpush.bf16.msrb.mxu3 %v11384_v1  ;;  %v11736_v47 = vor.u32 %v13501_v15, %v11733_v23 }
 0x1cf   :  { %v11989_v39 = vld [vmem:[%s20442_s1 + $0x1bf0] sm:$0xf0]  ;;  %v11864_v48 = vor.u32 %v13533_v29, %v11861_v31  ;;  %v13465_v3 = vld [vmem:[%s20442_s1 + $0x18c4] sm:$0xf] }
 0x1d0   :  { %v11589_v49 = vld [vmem:[%s20442_s1 + $0x18d0] sm:$0xf0]  ;;  %v13497_v50 = vld [vmem:[%s20442_s1 + $0x19c4] sm:$0xf]  ;;  %6981 = vmatpush.bf16.msrb.mxu0 %v10984_v20  ;;  %v11992_v52 = vor.u32 %v13565_v60, %v11989_v39 }
 0x1d1   :  { %v11717_v53 = vld [vmem:[%s20442_s1 + $0x19d0] sm:$0xf0]  ;;  %v13529_v13 = vld [vmem:[%s20442_s1 + $0x1ac4] sm:$0xf]  ;;  %6994 = vmatpush.bf16.msrb.mxu1 %v11112_v51  ;;  %7007 = vmatpush.bf16.msrb.mxu2 %v11240_v34  ;;  %v11592_v58 = vor.u32 %v13465_v3, %v11589_v49 }
 0x1d2   :  { %v11845_v54 = vld [vmem:[%s20442_s1 + $0x1ad0] sm:$0xf0]  ;;  %v13561_v56 = vld [vmem:[%s20442_s1 + $0x1bc4] sm:$0xf]  ;;  %7020 = vmatpush.bf16.msrb.mxu3 %v11368_v62  ;;  %v11720_v1 = vor.u32 %v13497_v50, %v11717_v53  ;;  %v6775_v53 = vpop.f32.mrf.mxu0 }
 0x1d3   :  { %v11973_v57 = vld [vmem:[%s20442_s1 + $0x1bd0] sm:$0xf0]  ;;  %v11848_v4 = vor.u32 %v13529_v13, %v11845_v54  ;;  %v13461_v46 = vld [vmem:[%s20442_s1 + $0x18a4] sm:$0xf]  ;;  %6982 = vmatmul.bf16.vlgmr.msrb.gmra.mxu0 %v15118_v2 }
 0x1d4   :  { %7026 = vmatpush.bf16.msra.mxu0 %v11608_v43  ;;  %v11573_v21 = vld [vmem:[%s20442_s1 + $0x18b0] sm:$0xf0]  ;;  %v13493_v9 = vld [vmem:[%s20442_s1 + $0x19a4] sm:$0xf]  ;;  %v11976_v10 = vor.u32 %v13561_v56, %v11973_v57  ;;  %7008 = vmatmul.bf16.vlgmr.msrb.gmra.mxu2 %v15129_v7 }
 0x1d5   :  { %7039 = vmatpush.bf16.msra.mxu1 %v11736_v47  ;;  %7052 = vmatpush.bf16.msra.mxu2 %v11864_v48  ;;  %v11701_v14 = vld [vmem:[%s20442_s1 + $0x19b0] sm:$0xf0]  ;;  %v13525_v15 = vld [vmem:[%s20442_s1 + $0x1aa4] sm:$0xf]  ;;  %v11576_v31 = vor.u32 %v13461_v46, %v11573_v21 }
 0x1d6   :  { %7065 = vmatpush.bf16.msra.mxu3 %v11992_v52  ;;  %v11829_v20 = vld [vmem:[%s20442_s1 + $0x1ab0] sm:$0xf0]  ;;  %6995 = vmatmul.bf16.vlgmr.msrb.gmra.mxu1 %v15131_v8  ;;  %v13557_v23 = vld [vmem:[%s20442_s1 + $0x1ba4] sm:$0xf]  ;;  %v11704_v51 = vor.u32 %v13493_v9, %v11701_v14 }
 0x1d7   :  { %v11957_v29 = vld [vmem:[%s20442_s1 + $0x1bb0] sm:$0xf0]  ;;  %7021 = vmatmul.bf16.vlgmr.msrb.gmra.mxu3 %v15139_v11  ;;  %v11832_v34 = vor.u32 %v13525_v15, %v11829_v20  ;;  %v13457_v60 = vld [vmem:[%s20442_s1 + $0x1884] sm:$0xf] }
 0x1d8   :  { %7027 = vmatpush.bf16.msra.mxu0 %v11592_v58  ;;  %v11557_v39 = vld [vmem:[%s20442_s1 + $0x1890] sm:$0xf0]  ;;  %v13489_v62 = vld [vmem:[%s20442_s1 + $0x1984] sm:$0xf]  ;;  %v11960_v43 = vor.u32 %v13557_v23, %v11957_v29 }
 0x1d9   :  { %7040 = vmatpush.bf16.msra.mxu1 %v11720_v1  ;;  %7053 = vmatpush.bf16.msra.mxu2 %v11848_v4  ;;  %v11685_v47 = vld [vmem:[%s20442_s1 + $0x1990] sm:$0xf0]  ;;  %v13521_v48 = vld [vmem:[%s20442_s1 + $0x1a84] sm:$0xf]  ;;  %v11560_v52 = vor.u32 %v13457_v60, %v11557_v39  ;;  %v6776_v1 = vadd.f32 %v6775_v53, %v16653_v63  ;;  %v6788_v4 = vpop.f32.mrf.mxu1  ;;  %v6801_v60 = vpop.f32.mrf.mxu2 }
 0x1da   :  { %7066 = vmatpush.bf16.msra.mxu3 %v11976_v10  ;;  %v11813_v3 = vld [vmem:[%s20442_s1 + $0x1a90] sm:$0xf0]  ;;  %v13553_v49 = vld [vmem:[%s20442_s1 + $0x1b84] sm:$0xf]  ;;  %v11688_v13 = vor.u32 %v13489_v62, %v11685_v47 }
 0x1db   :  { %v11941_v50 = vld [vmem:[%s20442_s1 + $0x1b90] sm:$0xf0]  ;;  %v11816_v54 = vor.u32 %v13521_v48, %v11813_v3  ;;  %v13453_v56 = vld [vmem:[%s20442_s1 + $0x1864] sm:$0xf]  ;;  %v6789_v15 = vadd.f32 %v6788_v4, %v6776_v1  ;;  %v6814_v3 = vpop.f32.mrf.mxu3 }
 0x1dc   :  { %7028 = vmatpush.bf16.msra.mxu0 %v11576_v31  ;;  %v11541_v57 = vld [vmem:[%s20442_s1 + $0x1870] sm:$0xf0]  ;;  %v13485_v58 = vld [vmem:[%s20442_s1 + $0x1964] sm:$0xf]  ;;  %v11944_v46 = vor.u32 %v13553_v49, %v11941_v50 }
 0x1dd   :  { %7041 = vmatpush.bf16.msra.mxu1 %v11704_v51  ;;  %7054 = vmatpush.bf16.msra.mxu2 %v11832_v34  ;;  %v11669_v21 = vld [vmem:[%s20442_s1 + $0x1970] sm:$0xf0]  ;;  %v13517_v9 = vld [vmem:[%s20442_s1 + $0x1a64] sm:$0xf]  ;;  %v11544_v20 = vor.u32 %v13453_v56, %v11541_v57  ;;  %v6802_v48 = vadd.f32 %v6801_v60, %v6789_v15 }
 0x1de   :  { %7067 = vmatpush.bf16.msra.mxu3 %v11960_v43  ;;  %v11797_v10 = vld [vmem:[%s20442_s1 + $0x1a70] sm:$0xf0]  ;;  %v13549_v14 = vld [vmem:[%s20442_s1 + $0x1b64] sm:$0xf]  ;;  %v11672_v23 = vor.u32 %v13485_v58, %v11669_v21 }
 0x1df   :  { %v11925_v63 = vld [vmem:[%s20442_s1 + $0x1b70] sm:$0xf0]  ;;  %v11800_v29 = vor.u32 %v13517_v9, %v11797_v10  ;;  %v13449_v31 = vld [vmem:[%s20442_s1 + $0x1844] sm:$0xf]  ;;  %v16852_v53 = vadd.f32 %v6814_v3, %v6802_v48 }
 0x1e0   :  { %7029 = vmatpush.bf16.msra.mxu0 %v11560_v52  ;;  %v11525_v51 = vld [vmem:[%s20442_s1 + $0x1850] sm:$0xf0]  ;;  %v13481_v34 = vld [vmem:[%s20442_s1 + $0x1944] sm:$0xf]  ;;  %v11928_v39 = vor.u32 %v13549_v14, %v11925_v63 }
 0x1e1   :  { %7042 = vmatpush.bf16.msra.mxu1 %v11688_v13  ;;  %7055 = vmatpush.bf16.msra.mxu2 %v11816_v54  ;;  %v11653_v62 = vld [vmem:[%s20442_s1 + $0x1950] sm:$0xf0]  ;;  %v13513_v43 = vld [vmem:[%s20442_s1 + $0x1a44] sm:$0xf]  ;;  %v11528_v52 = vor.u32 %v13449_v31, %v11525_v51  ;;  %v6777_v13 = vpop.f32.mrf.mxu0  ;;  %v6790_v4 = vpop.f32.mrf.mxu1 }
 0x1e2   :  { %7068 = vmatpush.bf16.msra.mxu3 %v11944_v46  ;;  %v11781_v47 = vld [vmem:[%s20442_s1 + $0x1a50] sm:$0xf0]  ;;  %v13545_v49 = vld [vmem:[%s20442_s1 + $0x1b44] sm:$0xf]  ;;  %v11656_v54 = vor.u32 %v13481_v34, %v11653_v62 }
 0x1e3   :  { %v11909_v50 = vld [vmem:[%s20442_s1 + $0x1b50] sm:$0xf0]  ;;  %v11784_v56 = vor.u32 %v13513_v43, %v11781_v47  ;;  %v13445_v57 = vld [vmem:[%s20442_s1 + $0x1824] sm:$0xf]  ;;  %v6816_v3 = vpop.f32.mrf.mxu3 }
 0x1e4   :  { %7030 = vmatpush.bf16.msra.mxu0 %v11544_v20  ;;  %v11509_v58 = vld [vmem:[%s20442_s1 + $0x1830] sm:$0xf0]  ;;  %v13477_v1 = vld [vmem:[%s20442_s1 + $0x1924] sm:$0xf]  ;;  %v11912_v46 = vor.u32 %v13545_v49, %v11909_v50 }
 0x1e5   :  { %7043 = vmatpush.bf16.msra.mxu1 %v11672_v23  ;;  %7056 = vmatpush.bf16.msra.mxu2 %v11800_v29  ;;  %v11637_v21 = vld [vmem:[%s20442_s1 + $0x1930] sm:$0xf0]  ;;  %v13509_v9 = vld [vmem:[%s20442_s1 + $0x1a24] sm:$0xf]  ;;  %v11512_v15 = vor.u32 %v13445_v57, %v11509_v58 }
 0x1e6   :  { %7069 = vmatpush.bf16.msra.mxu3 %v11928_v39  ;;  %v11765_v10 = vld [vmem:[%s20442_s1 + $0x1a30] sm:$0xf0]  ;;  %v13541_v14 = vld [vmem:[%s20442_s1 + $0x1b24] sm:$0xf]  ;;  %v11640_v29 = vor.u32 %v13477_v1, %v11637_v21  ;;  %v6803_v39 = vpop.f32.mrf.mxu2 }
 0x1e7   :  { %v11893_v63 = vld [vmem:[%s20442_s1 + $0x1b30] sm:$0xf0]  ;;  %v13441_v20 = vld [vmem:[%s20442_s1 + $0x1804] sm:$0xf]  ;;  %v11768_v31 = vor.u32 %v13509_v9, %v11765_v10 }
 0x1e8   :  { %7031 = vmatpush.bf16.msra.mxu0 %v11528_v52  ;;  %v11493_v23 = vld [vmem:[%s20442_s1 + $0x1810] sm:$0xf0]  ;;  %v13473_v51 = vld [vmem:[%s20442_s1 + $0x1904] sm:$0xf]  ;;  %v11896_v62 = vor.u32 %v13541_v14, %v11893_v63 }
 0x1e9   :  { %7044 = vmatpush.bf16.msra.mxu1 %v11656_v54  ;;  %7057 = vmatpush.bf16.msra.mxu2 %v11784_v56  ;;  %v11621_v34 = vld [vmem:[%s20442_s1 + $0x1910] sm:$0xf0]  ;;  %v13505_v60 = vld [vmem:[%s20442_s1 + $0x1a04] sm:$0xf]  ;;  %v11496_v13 = vor.u32 %v13441_v20, %v11493_v23 }
 0x1ea   :  { %7070 = vmatpush.bf16.msra.mxu3 %v11912_v46  ;;  %v11749_v43 = vld [vmem:[%s20442_s1 + $0x1a10] sm:$0xf0]  ;;  %v13537_v47 = vld [vmem:[%s20442_s1 + $0x1b04] sm:$0xf]  ;;  %v11624_v58 = vor.u32 %v13473_v51, %v11621_v34 }
 0x1eb   :  { %v11877_v48 = vld [vmem:[%s20442_s1 + $0x1b10] sm:$0xf0]  ;;  %v13597_v49 = vld [vmem:[%s20442_s1 + $0x1ce4] sm:$0xf]  ;;  %v11752_v1 = vor.u32 %v13505_v60, %v11749_v43 }
 0x1ec   :  { %v12117_v50 = vld [vmem:[%s20442_s1 + $0x1cf0] sm:$0xf0]  ;;  %v13629_v52 = vld [vmem:[%s20442_s1 + $0x1de4] sm:$0xf]  ;;  %7032 = vmatpush.bf16.msra.mxu0 %v11512_v15  ;;  %v11880_v21 = vor.u32 %v13537_v47, %v11877_v48 }
 0x1ed   :  { %v12245_v54 = vld [vmem:[%s20442_s1 + $0x1df0] sm:$0xf0]  ;;  %v13661_v56 = vld [vmem:[%s20442_s1 + $0x1ee4] sm:$0xf]  ;;  %7045 = vmatpush.bf16.msra.mxu1 %v11640_v29  ;;  %7058 = vmatpush.bf16.msra.mxu2 %v11768_v31  ;;  %v12120_v9 = vor.u32 %v13597_v49, %v12117_v50 }
 0x1ee   :  { %v12373_v57 = vld [vmem:[%s20442_s1 + $0x1ef0] sm:$0xf0]  ;;  %v13693_v4 = vld [vmem:[%s20442_s1 + $0x1fe4] sm:$0xf]  ;;  %7071 = vmatpush.bf16.msra.mxu3 %v11896_v62  ;;  %v12248_v10 = vor.u32 %v13629_v52, %v12245_v54 }
 0x1ef   :  { %v12501_v46 = vld [vmem:[%s20442_s1 + $0x1ff0] sm:$0xf0]  ;;  %v12376_v14 = vor.u32 %v13661_v56, %v12373_v57  ;;  %v13593_v63 = vld [vmem:[%s20442_s1 + $0x1cc4] sm:$0xf] }
 0x1f0   :  { %v12101_v15 = vld [vmem:[%s20442_s1 + $0x1cd0] sm:$0xf0]  ;;  %v13625_v20 = vld [vmem:[%s20442_s1 + $0x1dc4] sm:$0xf]  ;;  %7033 = vmatpush.bf16.msra.mxu0 %v11496_v13  ;;  %v12504_v23 = vor.u32 %v13693_v4, %v12501_v46 }
 0x1f1   :  { %v12229_v29 = vld [vmem:[%s20442_s1 + $0x1dd0] sm:$0xf0]  ;;  %v13657_v31 = vld [vmem:[%s20442_s1 + $0x1ec4] sm:$0xf]  ;;  %7046 = vmatpush.bf16.msra.mxu1 %v11624_v58  ;;  %7059 = vmatpush.bf16.msra.mxu2 %v11752_v1  ;;  %v12104_v39 = vor.u32 %v13593_v63, %v12101_v15  ;;  %v6827_v15 = vpop.f32.mrf.mxu0 }
 0x1f2   :  { %v12357_v51 = vld [vmem:[%s20442_s1 + $0x1ed0] sm:$0xf0]  ;;  %v13689_v34 = vld [vmem:[%s20442_s1 + $0x1fc4] sm:$0xf]  ;;  %7072 = vmatpush.bf16.msra.mxu3 %v11880_v21  ;;  %v12232_v62 = vor.u32 %v13625_v20, %v12229_v29  ;;  %v6828_v29 = vadd.f32 %v6827_v15, %v16852_v53 }
 0x1f3   :  { %v12485_v60 = vld [vmem:[%s20442_s1 + $0x1fd0] sm:$0xf0]  ;;  %v12360_v43 = vor.u32 %v13657_v31, %v12357_v51  ;;  %v13589_v47 = vld [vmem:[%s20442_s1 + $0x1ca4] sm:$0xf]  ;;  %7034 = vmatmul.bf16.vlgmr.msra.gmra.mxu0 %v15328_v0  ;;  %v6840_v51 = vpop.f32.mrf.mxu1 }
 0x1f4   :  { %7078 = vmatpush.bf16.msrb.mxu0 %v12120_v9  ;;  %v12085_v48 = vld [vmem:[%s20442_s1 + $0x1cb0] sm:$0xf0]  ;;  %v13621_v3 = vld [vmem:[%s20442_s1 + $0x1da4] sm:$0xf]  ;;  %v12488_v49 = vor.u32 %v13689_v34, %v12485_v60  ;;  %7060 = vmatmul.bf16.vlgmr.msra.gmra.mxu2 %v15339_v5 }
 0x1f5   :  { %7091 = vmatpush.bf16.msrb.mxu1 %v12248_v10  ;;  %7104 = vmatpush.bf16.msrb.mxu2 %v12376_v14  ;;  %v12213_v50 = vld [vmem:[%s20442_s1 + $0x1db0] sm:$0xf0]  ;;  %v13653_v52 = vld [vmem:[%s20442_s1 + $0x1ea4] sm:$0xf]  ;;  %v12088_v57 = vor.u32 %v13589_v47, %v12085_v48  ;;  %v6841_v47 = vadd.f32 %v6840_v51, %v6828_v29 }
 0x1f6   :  { %7117 = vmatpush.bf16.msrb.mxu3 %v12504_v23  ;;  %v12341_v13 = vld [vmem:[%s20442_s1 + $0x1eb0] sm:$0xf0]  ;;  %7047 = vmatmul.bf16.vlgmr.msra.gmra.mxu1 %v15341_v6  ;;  %v13685_v54 = vld [vmem:[%s20442_s1 + $0x1fa4] sm:$0xf]  ;;  %v12216_v58 = vor.u32 %v13621_v3, %v12213_v50 }
 0x1f7   :  { %v12469_v56 = vld [vmem:[%s20442_s1 + $0x1fb0] sm:$0xf0]  ;;  %7073 = vmatmul.bf16.vlgmr.msra.gmra.mxu3 %v15349_v12  ;;  %v12344_v1 = vor.u32 %v13653_v52, %v12341_v13  ;;  %v13585_v4 = vld [vmem:[%s20442_s1 + $0x1c84] sm:$0xf] }
 0x1f8   :  { %7079 = vmatpush.bf16.msrb.mxu0 %v12104_v39  ;;  %v12069_v46 = vld [vmem:[%s20442_s1 + $0x1c90] sm:$0xf0]  ;;  %v13617_v21 = vld [vmem:[%s20442_s1 + $0x1d84] sm:$0xf]  ;;  %v12472_v9 = vor.u32 %v13685_v54, %v12469_v56 }
 0x1f9   :  { %7092 = vmatpush.bf16.msrb.mxu1 %v12232_v62  ;;  %7105 = vmatpush.bf16.msrb.mxu2 %v12360_v43  ;;  %v12197_v10 = vld [vmem:[%s20442_s1 + $0x1d90] sm:$0xf0]  ;;  %v13649_v14 = vld [vmem:[%s20442_s1 + $0x1e84] sm:$0xf]  ;;  %v12072_v31 = vor.u32 %v13585_v4, %v12069_v46  ;;  %v6853_v46 = vpop.f32.mrf.mxu2 }
 0x1fa   :  { %7118 = vmatpush.bf16.msrb.mxu3 %v12488_v49  ;;  %v12325_v63 = vld [vmem:[%s20442_s1 + $0x1e90] sm:$0xf0]  ;;  %v13681_v20 = vld [vmem:[%s20442_s1 + $0x1f84] sm:$0xf]  ;;  %v12200_v34 = vor.u32 %v13617_v21, %v12197_v10 }
 0x1fb   :  { %v12453_v23 = vld [vmem:[%s20442_s1 + $0x1f90] sm:$0xf0]  ;;  %v12328_v60 = vor.u32 %v13649_v14, %v12325_v63  ;;  %v13581_v39 = vld [vmem:[%s20442_s1 + $0x1c64] sm:$0xf]  ;;  %v6854_v14 = vadd.f32 %v6853_v46, %v6841_v47  ;;  %v6866_v63 = vpop.f32.mrf.mxu3 }
 0x1fc   :  { %7080 = vmatpush.bf16.msrb.mxu0 %v12088_v57  ;;  %v12053_v62 = vld [vmem:[%s20442_s1 + $0x1c70] sm:$0xf0]  ;;  %v13613_v43 = vld [vmem:[%s20442_s1 + $0x1d64] sm:$0xf]  ;;  %v12456_v53 = vor.u32 %v13681_v20, %v12453_v23  ;;  %v6829_v23 = vpop.f32.mrf.mxu0 }
 0x1fd   :  { %7093 = vmatpush.bf16.msrb.mxu1 %v12216_v58  ;;  %7106 = vmatpush.bf16.msrb.mxu2 %v12344_v1  ;;  %v12181_v48 = vld [vmem:[%s20442_s1 + $0x1d70] sm:$0xf0]  ;;  %v13645_v3 = vld [vmem:[%s20442_s1 + $0x1e64] sm:$0xf]  ;;  %v12056_v13 = vor.u32 %v13581_v39, %v12053_v62  ;;  %v17051_v51 = vadd.f32 %v6866_v63, %v6854_v14  ;;  %v8539_v63 = vld [vmem:[%s20442_s1 + $0xe8] sm:$0xf] }
 0x1fe   :  { %7119 = vmatpush.bf16.msrb.mxu3 %v12472_v9  ;;  %v12309_v49 = vld [vmem:[%s20442_s1 + $0x1e70] sm:$0xf0]  ;;  %v13677_v50 = vld [vmem:[%s20442_s1 + $0x1f64] sm:$0xf]  ;;  %v12184_v54 = vor.u32 %v13613_v43, %v12181_v48 }
 0x1ff   :  { %v12437_v52 = vld [vmem:[%s20442_s1 + $0x1f70] sm:$0xf0]  ;;  %v12312_v56 = vor.u32 %v13645_v3, %v12309_v49  ;;  %v13577_v57 = vld [vmem:[%s20442_s1 + $0x1c44] sm:$0xf] }
 0x200   :  { %7081 = vmatpush.bf16.msrb.mxu0 %v12072_v31  ;;  %v12037_v58 = vld [vmem:[%s20442_s1 + $0x1c50] sm:$0xf0]  ;;  %v13609_v1 = vld [vmem:[%s20442_s1 + $0x1d44] sm:$0xf]  ;;  %v12440_v4 = vor.u32 %v13677_v50, %v12437_v52  ;;  %v6842_v31 = vpop.f32.mrf.mxu1 }
 0x201   :  { %7094 = vmatpush.bf16.msrb.mxu1 %v12200_v34  ;;  %7107 = vmatpush.bf16.msrb.mxu2 %v12328_v60  ;;  %v12165_v21 = vld [vmem:[%s20442_s1 + $0x1d50] sm:$0xf0]  ;;  %v13641_v9 = vld [vmem:[%s20442_s1 + $0x1e44] sm:$0xf]  ;;  %v12040_v29 = vor.u32 %v13577_v57, %v12037_v58  ;;  %v6855_v14 = vpop.f32.mrf.mxu2  ;;  %v12736_v31 = vld [vmem:[%s20442_s1 + $0x1f4] sm:$0xf0] }
 0x202   :  { %7120 = vmatpush.bf16.msrb.mxu3 %v12456_v53  ;;  %v12293_v10 = vld [vmem:[%s20442_s1 + $0x1e50] sm:$0xf0]  ;;  %v13673_v15 = vld [vmem:[%s20442_s1 + $0x1f44] sm:$0xf]  ;;  %v12168_v34 = vor.u32 %v13609_v1, %v12165_v21  ;;  %v12696_v14 = vld [vmem:[%s20442_s1 + $0xb4] sm:$0xf0] }
 0x203   :  { %v12421_v20 = vld [vmem:[%s20442_s1 + $0x1f50] sm:$0xf0]  ;;  %v12296_v60 = vor.u32 %v13641_v9, %v12293_v10  ;;  %v13573_v39 = vld [vmem:[%s20442_s1 + $0x1c24] sm:$0xf]  ;;  %v6868_v23 = vpop.f32.mrf.mxu3 }
 0x204   :  { %7082 = vmatpush.bf16.msrb.mxu0 %v12056_v13  ;;  %v12021_v62 = vld [vmem:[%s20442_s1 + $0x1c30] sm:$0xf0]  ;;  %v13605_v43 = vld [vmem:[%s20442_s1 + $0x1d24] sm:$0xf]  ;;  %v12424_v53 = vor.u32 %v13673_v15, %v12421_v20  ;;  %v12704_v15 = vld [vmem:[%s20442_s1 + $0xf4] sm:$0xf0] }
 0x205   :  { %7095 = vmatpush.bf16.msrb.mxu1 %v12184_v54  ;;  %7108 = vmatpush.bf16.msrb.mxu2 %v12312_v56  ;;  %v12149_v47 = vld [vmem:[%s20442_s1 + $0x1d30] sm:$0xf0]  ;;  %v13637_v48 = vld [vmem:[%s20442_s1 + $0x1e24] sm:$0xf]  ;;  %v12024_v52 = vor.u32 %v13573_v39, %v12021_v62  ;;  %v8667_v20 = vld [vmem:[%s20442_s1 + $0x1e8] sm:$0xf] }
 0x206   :  { %7121 = vmatpush.bf16.msrb.mxu3 %v12440_v4  ;;  %v12277_v3 = vld [vmem:[%s20442_s1 + $0x1e30] sm:$0xf0]  ;;  %v13669_v49 = vld [vmem:[%s20442_s1 + $0x1f24] sm:$0xf]  ;;  %v12152_v56 = vor.u32 %v13605_v43, %v12149_v47  ;;  %v8923_v43 = vld [vmem:[%s20442_s1 + $0x3e8] sm:$0xf] }
 0x207   :  { %v12405_v50 = vld [vmem:[%s20442_s1 + $0x1f30] sm:$0xf0]  ;;  %v13569_v13 = vld [vmem:[%s20442_s1 + $0x1c04] sm:$0xf]  ;;  %v12280_v57 = vor.u32 %v13637_v48, %v12277_v3  ;;  %v8540_v48 = vor.u32 %v12704_v15, %v8539_v63  ;;  %v8668_v3 = vor.u32 %v12736_v31, %v8667_v20  ;;  %v8635_v63 = vld [vmem:[%s20442_s1 + $0x1a8] sm:$0xf] }
 0x208   :  { %7083 = vmatpush.bf16.msrb.mxu0 %v12040_v29  ;;  %v12005_v54 = vld [vmem:[%s20442_s1 + $0x1c10] sm:$0xf0]  ;;  %v13601_v58 = vld [vmem:[%s20442_s1 + $0x1d04] sm:$0xf]  ;;  %v12408_v46 = vor.u32 %v13669_v49, %v12405_v50  ;;  %v8523_v50 = vld [vmem:[%s20442_s1 + $0xc8] sm:$0xf] }
 0x209   :  { %7096 = vmatpush.bf16.msrb.mxu1 %v12168_v34  ;;  %7109 = vmatpush.bf16.msrb.mxu2 %v12296_v60  ;;  %v12133_v1 = vld [vmem:[%s20442_s1 + $0x1d10] sm:$0xf0]  ;;  %v13633_v4 = vld [vmem:[%s20442_s1 + $0x1e04] sm:$0xf]  ;;  %v12008_v29 = vor.u32 %v13569_v13, %v12005_v54  ;;  %v8795_v34 = vld [vmem:[%s20442_s1 + $0x2e8] sm:$0xf] }
 0x20a   :  { %7122 = vmatpush.bf16.msrb.mxu3 %v12424_v53  ;;  %v12261_v21 = vld [vmem:[%s20442_s1 + $0x1e10] sm:$0xf0]  ;;  %v13665_v9 = vld [vmem:[%s20442_s1 + $0x1f04] sm:$0xf]  ;;  %v12768_v60 = vld [vmem:[%s20442_s1 + $0x2f4] sm:$0xf0]  ;;  %v12136_v39 = vor.u32 %v13601_v58, %v12133_v1 }
 0x20b   :  { %v12389_v10 = vld [vmem:[%s20442_s1 + $0x1f10] sm:$0xf0]  ;;  %v12264_v62 = vor.u32 %v13633_v4, %v12261_v21  ;;  %v12800_v53 = vld [vmem:[%s20442_s1 + $0x3f4] sm:$0xf0]  ;;  %v8796_v49 = vor.u32 %v12768_v60, %v8795_v34  ;;  %v8651_v13 = vld [vmem:[%s20442_s1 + $0x1c8] sm:$0xf] }
 0x20c   :  { %7084 = vmatpush.bf16.msrb.mxu0 %v12024_v52  ;;  %v12392_v47 = vor.u32 %v13665_v9, %v12389_v10  ;;  %v12700_v52 = vld [vmem:[%s20442_s1 + $0xd4] sm:$0xf0]  ;;  %v8924_v54 = vor.u32 %v12800_v53, %v8923_v43  ;;  %v8907_v1 = vld [vmem:[%s20442_s1 + $0x3c8] sm:$0xf] }
 0x20d   :  { %7097 = vmatpush.bf16.msrb.mxu1 %v12152_v56  ;;  %7110 = vmatpush.bf16.msrb.mxu2 %v12280_v57  ;;  %v12732_v56 = vld [vmem:[%s20442_s1 + $0x1d4] sm:$0xf0]  ;;  %v8779_v57 = vld [vmem:[%s20442_s1 + $0x2c8] sm:$0xf] }
 0x20e   :  { %7123 = vmatpush.bf16.msrb.mxu3 %v12408_v46  ;;  %v12764_v58 = vld [vmem:[%s20442_s1 + $0x2d4] sm:$0xf0]  ;;  %v8524_v46 = vor.u32 %v12700_v52, %v8523_v50  ;;  %v8652_v21 = vor.u32 %v12732_v56, %v8651_v13  ;;  %v8507_v10 = vld [vmem:[%s20442_s1 + $0xa8] sm:$0xf] }
 0x20f   :  { %v12796_v4 = vld [vmem:[%s20442_s1 + $0x3d4] sm:$0xf0]  ;;  %v8780_v9 = vor.u32 %v12764_v58, %v8779_v57  ;;  %v8763_v23 = vld [vmem:[%s20442_s1 + $0x2a8] sm:$0xf]  ;;  %v8508_v60 = vor.u32 %v12696_v14, %v8507_v10 }
 0x210   :  { %7085 = vmatpush.bf16.msrb.mxu0 %v12008_v29  ;;  %v8908_v15 = vor.u32 %v12796_v4, %v8907_v1  ;;  %v12728_v20 = vld [vmem:[%s20442_s1 + $0x1b4] sm:$0xf0]  ;;  %v8891_v31 = vld [vmem:[%s20442_s1 + $0x3a8] sm:$0xf]  ;;  %v6879_v52 = vpop.f32.mrf.mxu0 }
 0x211   :  { %7098 = vmatpush.bf16.msrb.mxu1 %v12136_v39  ;;  %7111 = vmatpush.bf16.msrb.mxu2 %v12264_v62  ;;  %v12760_v29 = vld [vmem:[%s20442_s1 + $0x2b4] sm:$0xf0]  ;;  %v8636_v39 = vor.u32 %v12728_v20, %v8635_v63  ;;  %v8491_v43 = vld [vmem:[%s20442_s1 + $0x88] sm:$0xf]  ;;  %v6880_v56 = vadd.f32 %v6879_v52, %v17051_v51 }
 0x212   :  { %7124 = vmatpush.bf16.msrb.mxu3 %v12392_v47  ;;  %v12792_v34 = vld [vmem:[%s20442_s1 + $0x3b4] sm:$0xf0]  ;;  %v8764_v62 = vor.u32 %v12760_v29, %v8763_v23  ;;  %v8619_v47 = vld [vmem:[%s20442_s1 + $0x188] sm:$0xf] }
 0x213   :  { %7086 = vmatmul.bf16.vlgmr.msrb.gmra.mxu0 %v15535_v61  ;;  %v12692_v53 = vld [vmem:[%s20442_s1 + $0x94] sm:$0xf0]  ;;  %v8875_v13 = vld [vmem:[%s20442_s1 + $0x388] sm:$0xf]  ;;  %v6892_v58 = vpop.f32.mrf.mxu1 }
 0x214   :  { %7130 = vmatpush.bf16.msra.mxu0 %v8540_v48  ;;  %7112 = vmatmul.bf16.vlgmr.msrb.gmra.mxu2 %v15546_v16  ;;  %v8892_v48 = vor.u32 %v12792_v34, %v8891_v31  ;;  %v12756_v50 = vld [vmem:[%s20442_s1 + $0x294] sm:$0xf0]  ;;  %v8492_v57 = vor.u32 %v12692_v53, %v8491_v43  ;;  %v6893_v10 = vadd.f32 %v6892_v58, %v6880_v56  ;;  %v8731_v63 = vld [vmem:[%s20442_s1 + $0x268] sm:$0xf] }
 0x215   :  { %7143 = vmatpush.bf16.msra.mxu1 %v8668_v3  ;;  %7156 = vmatpush.bf16.msra.mxu2 %v8796_v49  ;;  %v12724_v3 = vld [vmem:[%s20442_s1 + $0x194] sm:$0xf0]  ;;  %v8747_v49 = vld [vmem:[%s20442_s1 + $0x288] sm:$0xf] }
 0x216   :  { %7169 = vmatpush.bf16.msra.mxu3 %v8924_v54  ;;  %7099 = vmatmul.bf16.vlgmr.msrb.gmra.mxu1 %v15548_v17  ;;  %v12788_v54 = vld [vmem:[%s20442_s1 + $0x394] sm:$0xf0]  ;;  %v8620_v1 = vor.u32 %v12724_v3, %v8619_v47  ;;  %v8748_v4 = vor.u32 %v12756_v50, %v8747_v49  ;;  %v8859_v20 = vld [vmem:[%s20442_s1 + $0x368] sm:$0xf] }
 0x217   :  { %7125 = vmatmul.bf16.vlgmr.msrb.gmra.mxu3 %v15556_v25  ;;  %v8876_v51 = vor.u32 %v12788_v54, %v8875_v13  ;;  %v12720_v14 = vld [vmem:[%s20442_s1 + $0x174] sm:$0xf0]  ;;  %v6905_v53 = vpop.f32.mrf.mxu2  ;;  %v8843_v52 = vld [vmem:[%s20442_s1 + $0x348] sm:$0xf] }
 0x218   :  { %7131 = vmatpush.bf16.msra.mxu0 %v8524_v46  ;;  %v8475_v46 = vld [vmem:[%s20442_s1 + $0x68] sm:$0xf]  ;;  %v12784_v23 = vld [vmem:[%s20442_s1 + $0x374] sm:$0xf0]  ;;  %v6906_v49 = vadd.f32 %v6905_v53, %v6893_v10  ;;  %v6881_v54 = vpop.f32.mrf.mxu0 }
 0x219   :  { %7144 = vmatpush.bf16.msra.mxu1 %v8652_v21  ;;  %7157 = vmatpush.bf16.msra.mxu2 %v8780_v9  ;;  %v12688_v21 = vld [vmem:[%s20442_s1 + $0x74] sm:$0xf0]  ;;  %v8603_v9 = vld [vmem:[%s20442_s1 + $0x168] sm:$0xf]  ;;  %v8860_v43 = vor.u32 %v12784_v23, %v8859_v20 }
 0x21a   :  { %7170 = vmatpush.bf16.msra.mxu3 %v8908_v15  ;;  %v12752_v15 = vld [vmem:[%s20442_s1 + $0x274] sm:$0xf0]  ;;  %v8476_v29 = vor.u32 %v12688_v21, %v8475_v46  ;;  %v8604_v31 = vor.u32 %v12720_v14, %v8603_v9  ;;  %v6918_v50 = vpop.f32.mrf.mxu3  ;;  %v8443_v46 = vld [vmem:[%s20442_s1 + $0x28] sm:$0xf] }
 0x21b   :  { %v8732_v34 = vor.u32 %v12752_v15, %v8731_v63  ;;  %v12716_v47 = vld [vmem:[%s20442_s1 + $0x154] sm:$0xf0]  ;;  %v17250_v58 = vadd.f32 %v6918_v50, %v6906_v49  ;;  %v8571_v9 = vld [vmem:[%s20442_s1 + $0x128] sm:$0xf] }
 0x21c   :  { %7132 = vmatpush.bf16.msra.mxu0 %v8508_v60  ;;  %v8459_v60 = vld [vmem:[%s20442_s1 + $0x48] sm:$0xf]  ;;  %v12748_v3 = vld [vmem:[%s20442_s1 + $0x254] sm:$0xf0] }
 0x21d   :  { %7145 = vmatpush.bf16.msra.mxu1 %v8636_v39  ;;  %7158 = vmatpush.bf16.msra.mxu2 %v8764_v62  ;;  %v12684_v39 = vld [vmem:[%s20442_s1 + $0x54] sm:$0xf0]  ;;  %v8587_v62 = vld [vmem:[%s20442_s1 + $0x148] sm:$0xf] }
 0x21e   :  { %7171 = vmatpush.bf16.msra.mxu3 %v8892_v48  ;;  %v8715_v48 = vld [vmem:[%s20442_s1 + $0x248] sm:$0xf]  ;;  %v12780_v13 = vld [vmem:[%s20442_s1 + $0x354] sm:$0xf0]  ;;  %v8460_v56 = vor.u32 %v12684_v39, %v8459_v60 }
 0x21f   :  { %v12680_v21 = vld [vmem:[%s20442_s1 + $0x34] sm:$0xf0]  ;;  %v8699_v14 = vld [vmem:[%s20442_s1 + $0x228] sm:$0xf]  ;;  %v6907_v49 = vpop.f32.mrf.mxu2 }
 0x220   :  { %7133 = vmatpush.bf16.msra.mxu0 %v8492_v57  ;;  %v6894_v57 = vpop.f32.mrf.mxu1  ;;  %v12712_v10 = vld [vmem:[%s20442_s1 + $0x134] sm:$0xf0]  ;;  %v8827_v15 = vld [vmem:[%s20442_s1 + $0x328] sm:$0xf]  ;;  %v8444_v23 = vor.u32 %v12680_v21, %v8443_v46 }
 0x221   :  { %7146 = vmatpush.bf16.msra.mxu1 %v8620_v1  ;;  %7159 = vmatpush.bf16.msra.mxu2 %v8748_v4  ;;  %v8588_v1 = vor.u32 %v12716_v47, %v8587_v62  ;;  %v8716_v4 = vor.u32 %v12748_v3, %v8715_v48  ;;  %v12744_v63 = vld [vmem:[%s20442_s1 + $0x234] sm:$0xf0]  ;;  %v8555_v39 = vld [vmem:[%s20442_s1 + $0x108] sm:$0xf] }
 0x222   :  { %7172 = vmatpush.bf16.msra.mxu3 %v8876_v51  ;;  %v8844_v51 = vor.u32 %v12780_v13, %v8843_v52  ;;  %v12776_v20 = vld [vmem:[%s20442_s1 + $0x334] sm:$0xf0]  ;;  %v8700_v60 = vor.u32 %v12744_v63, %v8699_v14  ;;  %v8811_v48 = vld [vmem:[%s20442_s1 + $0x308] sm:$0xf]  ;;  %v6920_v54 = vpop.f32.mrf.mxu3 }
 0x223   :  { %v12708_v62 = vld [vmem:[%s20442_s1 + $0x114] sm:$0xf0]  ;;  %v8828_v53 = vor.u32 %v12776_v20, %v8827_v15  ;;  %v9051_v50 = vld [vmem:[%s20442_s1 + $0x4e8] sm:$0xf] }
 0x224   :  { %7134 = vmatpush.bf16.msra.mxu0 %v8476_v29  ;;  %v8427_v29 = vld [vmem:[%s20442_s1 + $0x8] sm:$0xf]  ;;  %v12740_v47 = vld [vmem:[%s20442_s1 + $0x214] sm:$0xf0]  ;;  %v8556_v46 = vor.u32 %v12708_v62, %v8555_v39 }
 0x225   :  { %7147 = vmatpush.bf16.msra.mxu1 %v8604_v31  ;;  %7160 = vmatpush.bf16.msra.mxu2 %v8732_v34  ;;  %v12676_v31 = vld [vmem:[%s20442_s1 + $0x14] sm:$0xf0]  ;;  %v8572_v34 = vor.u32 %v12712_v10, %v8571_v9  ;;  %v9179_v13 = vld [vmem:[%s20442_s1 + $0x5e8] sm:$0xf] }
 0x226   :  { %7173 = vmatpush.bf16.msra.mxu3 %v8860_v43  ;;  %v8683_v43 = vld [vmem:[%s20442_s1 + $0x208] sm:$0xf]  ;;  %v12772_v3 = vld [vmem:[%s20442_s1 + $0x314] sm:$0xf0] }
 0x227   :  { %v12832_v52 = vld [vmem:[%s20442_s1 + $0x4f4] sm:$0xf0]  ;;  %v8684_v21 = vor.u32 %v12740_v47, %v8683_v43  ;;  %v9435_v9 = vld [vmem:[%s20442_s1 + $0x7e8] sm:$0xf]  ;;  %v8812_v10 = vor.u32 %v12772_v3, %v8811_v48 }
 0x228   :  { %7135 = vmatpush.bf16.msra.mxu0 %v8460_v56  ;;  %v8428_v56 = vor.u32 %v12676_v31, %v8427_v29  ;;  %v12864_v57 = vld [vmem:[%s20442_s1 + $0x5f4] sm:$0xf0]  ;;  %v9052_v14 = vor.u32 %v12832_v52, %v9051_v50  ;;  %v9035_v20 = vld [vmem:[%s20442_s1 + $0x4c8] sm:$0xf] }
 0x229   :  { %7148 = vmatpush.bf16.msra.mxu1 %v8588_v1  ;;  %7161 = vmatpush.bf16.msra.mxu2 %v8716_v4  ;;  %v9307_v1 = vld [vmem:[%s20442_s1 + $0x6e8] sm:$0xf]  ;;  %v12896_v4 = vld [vmem:[%s20442_s1 + $0x6f4] sm:$0xf0]  ;;  %v9180_v63 = vor.u32 %v12864_v57, %v9179_v13 }
 0x22a   :  { %7174 = vmatpush.bf16.msra.mxu3 %v8844_v51  ;;  %v12928_v51 = vld [vmem:[%s20442_s1 + $0x7f4] sm:$0xf0]  ;;  %v9308_v15 = vor.u32 %v12896_v4, %v9307_v1  ;;  %v9163_v29 = vld [vmem:[%s20442_s1 + $0x5c8] sm:$0xf] }
 0x22b   :  { %v9436_v31 = vor.u32 %v12928_v51, %v9435_v9  ;;  %v12892_v39 = vld [vmem:[%s20442_s1 + $0x6d4] sm:$0xf0]  ;;  %v9419_v62 = vld [vmem:[%s20442_s1 + $0x7c8] sm:$0xf] }
 0x22c   :  { %7136 = vmatpush.bf16.msra.mxu0 %v8444_v23  ;;  %v12828_v23 = vld [vmem:[%s20442_s1 + $0x4d4] sm:$0xf0]  ;;  %v9019_v3 = vld [vmem:[%s20442_s1 + $0x4a8] sm:$0xf] }
 0x22d   :  { %7149 = vmatpush.bf16.msra.mxu1 %v8572_v34  ;;  %7162 = vmatpush.bf16.msra.mxu2 %v8700_v60  ;;  %v12860_v34 = vld [vmem:[%s20442_s1 + $0x5d4] sm:$0xf0]  ;;  %v9291_v60 = vld [vmem:[%s20442_s1 + $0x6c8] sm:$0xf] }
 0x22e   :  { %7175 = vmatpush.bf16.msra.mxu3 %v8828_v53  ;;  %v12924_v43 = vld [vmem:[%s20442_s1 + $0x7d4] sm:$0xf0]  ;;  %v9036_v53 = vor.u32 %v12828_v23, %v9035_v20  ;;  %v9164_v47 = vor.u32 %v12860_v34, %v9163_v29  ;;  %v9292_v48 = vor.u32 %v12892_v39, %v9291_v60  ;;  %v9147_v50 = vld [vmem:[%s20442_s1 + $0x5a8] sm:$0xf] }
 0x22f   :  { %v12824_v49 = vld [vmem:[%s20442_s1 + $0x4b4] sm:$0xf0]  ;;  %v9420_v52 = vor.u32 %v12924_v43, %v9419_v62  ;;  %v9275_v54 = vld [vmem:[%s20442_s1 + $0x6a8] sm:$0xf] }
 0x230   :  { %7137 = vmatpush.bf16.msra.mxu0 %v8428_v56  ;;  %v12856_v13 = vld [vmem:[%s20442_s1 + $0x5b4] sm:$0xf0]  ;;  %v9403_v57 = vld [vmem:[%s20442_s1 + $0x7a8] sm:$0xf]  ;;  %v9020_v4 = vor.u32 %v12824_v49, %v9019_v3  ;;  %v6931_v23 = vpop.f32.mrf.mxu0 }
 0x231   :  { %7150 = vmatpush.bf16.msra.mxu1 %v8556_v46  ;;  %7163 = vmatpush.bf16.msra.mxu2 %v8684_v21  ;;  %v12888_v56 = vld [vmem:[%s20442_s1 + $0x6b4] sm:$0xf0]  ;;  %v9148_v46 = vor.u32 %v12856_v13, %v9147_v50  ;;  %v9003_v9 = vld [vmem:[%s20442_s1 + $0x488] sm:$0xf]  ;;  %v6932_v34 = vadd.f32 %v6931_v23, %v17250_v58 }
 0x232   :  { %7176 = vmatpush.bf16.msra.mxu3 %v8812_v10  ;;  %v12920_v1 = vld [vmem:[%s20442_s1 + $0x7b4] sm:$0xf0]  ;;  %v9276_v21 = vor.u32 %v12888_v56, %v9275_v54  ;;  %v9131_v10 = vld [vmem:[%s20442_s1 + $0x588] sm:$0xf] }
 0x233   :  { %7138 = vmatmul.bf16.vlgmr.msra.gmra.mxu0 %v14132_v27  ;;  %v12820_v51 = vld [vmem:[%s20442_s1 + $0x494] sm:$0xf0]  ;;  %v9387_v29 = vld [vmem:[%s20442_s1 + $0x788] sm:$0xf]  ;;  %v6944_v39 = vpop.f32.mrf.mxu1 }
 0x234   :  { %7182 = vmatpush.bf16.msrb.mxu0 %v9052_v14  ;;  %7164 = vmatmul.bf16.vlgmr.msra.gmra.mxu2 %v14130_v26  ;;  %v9404_v14 = vor.u32 %v12920_v1, %v9403_v57  ;;  %v12884_v20 = vld [vmem:[%s20442_s1 + $0x694] sm:$0xf0]  ;;  %v9004_v60 = vor.u32 %v12820_v51, %v9003_v9  ;;  %v6945_v3 = vadd.f32 %v6944_v39, %v6932_v34  ;;  %v9243_v50 = vld [vmem:[%s20442_s1 + $0x668] sm:$0xf] }
 0x235   :  { %7195 = vmatpush.bf16.msrb.mxu1 %v9180_v63  ;;  %7208 = vmatpush.bf16.msrb.mxu2 %v9308_v15  ;;  %v12852_v63 = vld [vmem:[%s20442_s1 + $0x594] sm:$0xf0]  ;;  %v9259_v15 = vld [vmem:[%s20442_s1 + $0x688] sm:$0xf] }
 0x236   :  { %7221 = vmatpush.bf16.msrb.mxu3 %v9436_v31  ;;  %7151 = vmatmul.bf16.vlgmr.msra.gmra.mxu1 %v14142_v33  ;;  %v12916_v31 = vld [vmem:[%s20442_s1 + $0x794] sm:$0xf0]  ;;  %v9132_v62 = vor.u32 %v12852_v63, %v9131_v10  ;;  %v9260_v43 = vor.u32 %v12884_v20, %v9259_v15  ;;  %v9371_v13 = vld [vmem:[%s20442_s1 + $0x768] sm:$0xf] }
 0x237   :  { %7177 = vmatmul.bf16.vlgmr.msra.gmra.mxu3 %v14140_v32  ;;  %v9388_v58 = vor.u32 %v12916_v31, %v9387_v29  ;;  %v12848_v49 = vld [vmem:[%s20442_s1 + $0x574] sm:$0xf0]  ;;  %v6957_v51 = vpop.f32.mrf.mxu2  ;;  %v9355_v23 = vld [vmem:[%s20442_s1 + $0x748] sm:$0xf] }
 0x238   :  { %7183 = vmatpush.bf16.msrb.mxu0 %v9036_v53  ;;  %v8987_v53 = vld [vmem:[%s20442_s1 + $0x468] sm:$0xf]  ;;  %v12912_v54 = vld [vmem:[%s20442_s1 + $0x774] sm:$0xf0]  ;;  %v6958_v15 = vadd.f32 %v6957_v51, %v6945_v3  ;;  %v6933_v31 = vpop.f32.mrf.mxu0 }
 0x239   :  { %7196 = vmatpush.bf16.msrb.mxu1 %v9164_v47  ;;  %7209 = vmatpush.bf16.msrb.mxu2 %v9292_v48  ;;  %v12816_v47 = vld [vmem:[%s20442_s1 + $0x474] sm:$0xf0]  ;;  %v9115_v48 = vld [vmem:[%s20442_s1 + $0x568] sm:$0xf]  ;;  %v9372_v9 = vor.u32 %v12912_v54, %v9371_v13 }
 0x23a   :  { %7222 = vmatpush.bf16.msrb.mxu3 %v9420_v52  ;;  %v12880_v52 = vld [vmem:[%s20442_s1 + $0x674] sm:$0xf0]  ;;  %v8988_v56 = vor.u32 %v12816_v47, %v8987_v53  ;;  %v9116_v57 = vor.u32 %v12848_v49, %v9115_v48  ;;  %v6970_v20 = vpop.f32.mrf.mxu3  ;;  %v8955_v53 = vld [vmem:[%s20442_s1 + $0x428] sm:$0xf] }
 0x23b   :  { %v9244_v1 = vor.u32 %v12880_v52, %v9243_v50  ;;  %v12844_v10 = vld [vmem:[%s20442_s1 + $0x554] sm:$0xf0]  ;;  %v17449_v39 = vadd.f32 %v6970_v20, %v6958_v15  ;;  %v9083_v48 = vld [vmem:[%s20442_s1 + $0x528] sm:$0xf] }
 0x23c   :  { %7184 = vmatpush.bf16.msrb.mxu0 %v9020_v4  ;;  %v8971_v4 = vld [vmem:[%s20442_s1 + $0x448] sm:$0xf]  ;;  %v12876_v63 = vld [vmem:[%s20442_s1 + $0x654] sm:$0xf0] }
 0x23d   :  { %7197 = vmatpush.bf16.msrb.mxu1 %v9148_v46  ;;  %7210 = vmatpush.bf16.msrb.mxu2 %v9276_v21  ;;  %v12812_v46 = vld [vmem:[%s20442_s1 + $0x454] sm:$0xf0]  ;;  %v9099_v21 = vld [vmem:[%s20442_s1 + $0x548] sm:$0xf] }
 0x23e   :  { %7223 = vmatpush.bf16.msrb.mxu3 %v9404_v14  ;;  %v9227_v14 = vld [vmem:[%s20442_s1 + $0x648] sm:$0xf]  ;;  %v12908_v29 = vld [vmem:[%s20442_s1 + $0x754] sm:$0xf0]  ;;  %v8972_v34 = vor.u32 %v12812_v46, %v8971_v4 }
 0x23f   :  { %v12808_v47 = vld [vmem:[%s20442_s1 + $0x434] sm:$0xf0]  ;;  %v9211_v49 = vld [vmem:[%s20442_s1 + $0x628] sm:$0xf]  ;;  %v6959_v15 = vpop.f32.mrf.mxu2 }
 0x240   :  { %7185 = vmatpush.bf16.msrb.mxu0 %v9004_v60  ;;  %v6946_v60 = vpop.f32.mrf.mxu1  ;;  %v12840_v3 = vld [vmem:[%s20442_s1 + $0x534] sm:$0xf0]  ;;  %v9339_v52 = vld [vmem:[%s20442_s1 + $0x728] sm:$0xf]  ;;  %v8956_v54 = vor.u32 %v12808_v47, %v8955_v53 }
 0x241   :  { %7198 = vmatpush.bf16.msrb.mxu1 %v9132_v62  ;;  %7211 = vmatpush.bf16.msrb.mxu2 %v9260_v43  ;;  %v9100_v62 = vor.u32 %v12844_v10, %v9099_v21  ;;  %v9228_v43 = vor.u32 %v12876_v63, %v9227_v14  ;;  %v12872_v50 = vld [vmem:[%s20442_s1 + $0x634] sm:$0xf0]  ;;  %v9067_v46 = vld [vmem:[%s20442_s1 + $0x508] sm:$0xf] }
 0x242   :  { %7224 = vmatpush.bf16.msrb.mxu3 %v9388_v58  ;;  %v9356_v58 = vor.u32 %v12908_v29, %v9355_v23  ;;  %v12904_v13 = vld [vmem:[%s20442_s1 + $0x734] sm:$0xf0]  ;;  %v9212_v4 = vor.u32 %v12872_v50, %v9211_v49  ;;  %v9323_v14 = vld [vmem:[%s20442_s1 + $0x708] sm:$0xf]  ;;  %v6972_v31 = vpop.f32.mrf.mxu3 }
 0x243   :  { %v12836_v21 = vld [vmem:[%s20442_s1 + $0x514] sm:$0xf0]  ;;  %v9340_v51 = vor.u32 %v12904_v13, %v9339_v52  ;;  %v9563_v20 = vld [vmem:[%s20442_s1 + $0x8e8] sm:$0xf] }
 0x244   :  { %7186 = vmatpush.bf16.msrb.mxu0 %v8988_v56  ;;  %v8939_v56 = vld [vmem:[%s20442_s1 + $0x408] sm:$0xf]  ;;  %v12868_v10 = vld [vmem:[%s20442_s1 + $0x614] sm:$0xf0]  ;;  %v9068_v53 = vor.u32 %v12836_v21, %v9067_v46 }
 0x245   :  { %7199 = vmatpush.bf16.msrb.mxu1 %v9116_v57  ;;  %7212 = vmatpush.bf16.msrb.mxu2 %v9244_v1  ;;  %v12804_v57 = vld [vmem:[%s20442_s1 + $0x414] sm:$0xf0]  ;;  %v9084_v1 = vor.u32 %v12840_v3, %v9083_v48  ;;  %v9691_v29 = vld [vmem:[%s20442_s1 + $0x9e8] sm:$0xf] }
 0x246   :  { %7225 = vmatpush.bf16.msrb.mxu3 %v9372_v9  ;;  %v9195_v9 = vld [vmem:[%s20442_s1 + $0x608] sm:$0xf]  ;;  %v12900_v63 = vld [vmem:[%s20442_s1 + $0x714] sm:$0xf0] }
 0x247   :  { %v12960_v23 = vld [vmem:[%s20442_s1 + $0x8f4] sm:$0xf0]  ;;  %v9196_v47 = vor.u32 %v12868_v10, %v9195_v9  ;;  %v9947_v48 = vld [vmem:[%s20442_s1 + $0xbe8] sm:$0xf]  ;;  %v9324_v3 = vor.u32 %v12900_v63, %v9323_v14 }
 0x248   :  { %7187 = vmatpush.bf16.msrb.mxu0 %v8972_v34  ;;  %v8940_v34 = vor.u32 %v12804_v57, %v8939_v56  ;;  %v12992_v60 = vld [vmem:[%s20442_s1 + $0x9f4] sm:$0xf0]  ;;  %v9564_v49 = vor.u32 %v12960_v23, %v9563_v20  ;;  %v9547_v13 = vld [vmem:[%s20442_s1 + $0x8c8] sm:$0xf] }
 0x249   :  { %7200 = vmatpush.bf16.msrb.mxu1 %v9100_v62  ;;  %7213 = vmatpush.bf16.msrb.mxu2 %v9228_v43  ;;  %v9819_v62 = vld [vmem:[%s20442_s1 + $0xae8] sm:$0xf]  ;;  %v13024_v43 = vld [vmem:[%s20442_s1 + $0xaf4] sm:$0xf0]  ;;  %v9692_v50 = vor.u32 %v12992_v60, %v9691_v29 }
 0x24a   :  { %7226 = vmatpush.bf16.msrb.mxu3 %v9356_v58  ;;  %v13056_v58 = vld [vmem:[%s20442_s1 + $0xbf4] sm:$0xf0]  ;;  %v9820_v52 = vor.u32 %v13024_v43, %v9819_v62  ;;  %v9675_v56 = vld [vmem:[%s20442_s1 + $0x9c8] sm:$0xf] }
 0x24b   :  { %v9948_v57 = vor.u32 %v13056_v58, %v9947_v48  ;;  %v13020_v46 = vld [vmem:[%s20442_s1 + $0xad4] sm:$0xf0]  ;;  %v9931_v21 = vld [vmem:[%s20442_s1 + $0xbc8] sm:$0xf] }
 0x24c   :  { %7188 = vmatpush.bf16.msrb.mxu0 %v8956_v54  ;;  %v12956_v54 = vld [vmem:[%s20442_s1 + $0x8d4] sm:$0xf0]  ;;  %v9531_v63 = vld [vmem:[%s20442_s1 + $0x8a8] sm:$0xf] }
 0x24d   :  { %7201 = vmatpush.bf16.msrb.mxu1 %v9084_v1  ;;  %7214 = vmatpush.bf16.msrb.mxu2 %v9212_v4  ;;  %v12988_v1 = vld [vmem:[%s20442_s1 + $0x9d4] sm:$0xf0]  ;;  %v9803_v4 = vld [vmem:[%s20442_s1 + $0xac8] sm:$0xf] }
 0x24e   :  { %7227 = vmatpush.bf16.msrb.mxu3 %v9340_v51  ;;  %v13052_v9 = vld [vmem:[%s20442_s1 + $0xbd4] sm:$0xf0]  ;;  %v9548_v51 = vor.u32 %v12956_v54, %v9547_v13  ;;  %v9676_v10 = vor.u32 %v12988_v1, %v9675_v56  ;;  %v9804_v14 = vor.u32 %v13020_v46, %v9803_v4  ;;  %v9659_v20 = vld [vmem:[%s20442_s1 + $0x9a8] sm:$0xf] }
 0x24f   :  { %v12952_v15 = vld [vmem:[%s20442_s1 + $0x8b4] sm:$0xf0]  ;;  %v9932_v23 = vor.u32 %v13052_v9, %v9931_v21  ;;  %v9787_v31 = vld [vmem:[%s20442_s1 + $0xaa8] sm:$0xf] }
 0x250   :  { %7189 = vmatpush.bf16.msrb.mxu0 %v8940_v34  ;;  %v12984_v29 = vld [vmem:[%s20442_s1 + $0x9b4] sm:$0xf0]  ;;  %v9915_v60 = vld [vmem:[%s20442_s1 + $0xba8] sm:$0xf]  ;;  %v9532_v43 = vor.u32 %v12952_v15, %v9531_v63  ;;  %v6983_v54 = vpop.f32.mrf.mxu0 }
 0x251   :  { %7202 = vmatpush.bf16.msrb.mxu1 %v9068_v53  ;;  %7215 = vmatpush.bf16.msrb.mxu2 %v9196_v47  ;;  %v13016_v34 = vld [vmem:[%s20442_s1 + $0xab4] sm:$0xf0]  ;;  %v9660_v53 = vor.u32 %v12984_v29, %v9659_v20  ;;  %v9515_v48 = vld [vmem:[%s20442_s1 + $0x888] sm:$0xf]  ;;  %v6984_v1 = vadd.f32 %v6983_v54, %v17449_v39 }
 0x252   :  { %7228 = vmatpush.bf16.msrb.mxu3 %v9324_v3  ;;  %v13048_v62 = vld [vmem:[%s20442_s1 + $0xbb4] sm:$0xf0]  ;;  %v9788_v47 = vor.u32 %v13016_v34, %v9787_v31  ;;  %v9643_v3 = vld [vmem:[%s20442_s1 + $0x988] sm:$0xf] }
 0x253   :  { %7190 = vmatmul.bf16.vlgmr.msrb.gmra.mxu0 %v14276_v41  ;;  %v12948_v58 = vld [vmem:[%s20442_s1 + $0x894] sm:$0xf0]  ;;  %v9899_v56 = vld [vmem:[%s20442_s1 + $0xb88] sm:$0xf]  ;;  %v6996_v46 = vpop.f32.mrf.mxu1 }
 0x254   :  { %7234 = vmatpush.bf16.msra.mxu0 %v9564_v49  ;;  %7216 = vmatmul.bf16.vlgmr.msrb.gmra.mxu2 %v14268_v38  ;;  %v9916_v49 = vor.u32 %v13048_v62, %v9915_v60  ;;  %v13012_v13 = vld [vmem:[%s20442_s1 + $0xa94] sm:$0xf0]  ;;  %v9516_v4 = vor.u32 %v12948_v58, %v9515_v48  ;;  %v6997_v63 = vadd.f32 %v6996_v46, %v6984_v1  ;;  %v9755_v20 = vld [vmem:[%s20442_s1 + $0xa68] sm:$0xf] }
 0x255   :  { %7247 = vmatpush.bf16.msra.mxu1 %v9692_v50  ;;  %7260 = vmatpush.bf16.msra.mxu2 %v9820_v52  ;;  %v12980_v50 = vld [vmem:[%s20442_s1 + $0x994] sm:$0xf0]  ;;  %v9771_v52 = vld [vmem:[%s20442_s1 + $0xa88] sm:$0xf] }
 0x256   :  { %7273 = vmatpush.bf16.msra.mxu3 %v9948_v57  ;;  %7203 = vmatmul.bf16.vlgmr.msrb.gmra.mxu1 %v14280_v44  ;;  %v13044_v57 = vld [vmem:[%s20442_s1 + $0xb94] sm:$0xf0]  ;;  %v9644_v21 = vor.u32 %v12980_v50, %v9643_v3  ;;  %v9772_v9 = vor.u32 %v13012_v13, %v9771_v52  ;;  %v9883_v29 = vld [vmem:[%s20442_s1 + $0xb68] sm:$0xf] }
 0x257   :  { %7229 = vmatmul.bf16.vlgmr.msrb.gmra.mxu3 %v14278_v42  ;;  %v9900_v39 = vor.u32 %v13044_v57, %v9899_v56  ;;  %v12976_v15 = vld [vmem:[%s20442_s1 + $0x974] sm:$0xf0]  ;;  %v7009_v58 = vpop.f32.mrf.mxu2  ;;  %v9867_v54 = vld [vmem:[%s20442_s1 + $0xb48] sm:$0xf] }
 0x258   :  { %7235 = vmatpush.bf16.msra.mxu0 %v9548_v51  ;;  %v9499_v51 = vld [vmem:[%s20442_s1 + $0x868] sm:$0xf]  ;;  %v13040_v31 = vld [vmem:[%s20442_s1 + $0xb74] sm:$0xf0]  ;;  %v7010_v52 = vadd.f32 %v7009_v58, %v6997_v63  ;;  %v6985_v57 = vpop.f32.mrf.mxu0 }
 0x259   :  { %7248 = vmatpush.bf16.msra.mxu1 %v9676_v10  ;;  %7261 = vmatpush.bf16.msra.mxu2 %v9804_v14  ;;  %v12944_v10 = vld [vmem:[%s20442_s1 + $0x874] sm:$0xf0]  ;;  %v9627_v14 = vld [vmem:[%s20442_s1 + $0x968] sm:$0xf]  ;;  %v9884_v48 = vor.u32 %v13040_v31, %v9883_v29 }
 0x25a   :  { %7274 = vmatpush.bf16.msra.mxu3 %v9932_v23  ;;  %v13008_v23 = vld [vmem:[%s20442_s1 + $0xa74] sm:$0xf0]  ;;  %v9500_v34 = vor.u32 %v12944_v10, %v9499_v51  ;;  %v9628_v60 = vor.u32 %v12976_v15, %v9627_v14  ;;  %v7022_v13 = vpop.f32.mrf.mxu3  ;;  %v9467_v51 = vld [vmem:[%s20442_s1 + $0x828] sm:$0xf] }
 0x25b   :  { %v9756_v62 = vor.u32 %v13008_v23, %v9755_v20  ;;  %v12972_v3 = vld [vmem:[%s20442_s1 + $0x954] sm:$0xf0]  ;;  %v17648_v46 = vadd.f32 %v7022_v13, %v7010_v52  ;;  %v9595_v14 = vld [vmem:[%s20442_s1 + $0x928] sm:$0xf] }
 0x25c   :  { %7236 = vmatpush.bf16.msra.mxu0 %v9532_v43  ;;  %v9483_v43 = vld [vmem:[%s20442_s1 + $0x848] sm:$0xf]  ;;  %v13004_v50 = vld [vmem:[%s20442_s1 + $0xa54] sm:$0xf0] }
 0x25d   :  { %7249 = vmatpush.bf16.msra.mxu1 %v9660_v53  ;;  %7262 = vmatpush.bf16.msra.mxu2 %v9788_v47  ;;  %v12940_v53 = vld [vmem:[%s20442_s1 + $0x854] sm:$0xf0]  ;;  %v9611_v47 = vld [vmem:[%s20442_s1 + $0x948] sm:$0xf] }
 0x25e   :  { %7275 = vmatpush.bf16.msra.mxu3 %v9916_v49  ;;  %v9739_v49 = vld [vmem:[%s20442_s1 + $0xa48] sm:$0xf]  ;;  %v13036_v56 = vld [vmem:[%s20442_s1 + $0xb54] sm:$0xf0]  ;;  %v9484_v1 = vor.u32 %v12940_v53, %v9483_v43 }
 0x25f   :  { %v12936_v10 = vld [vmem:[%s20442_s1 + $0x834] sm:$0xf0]  ;;  %v9723_v15 = vld [vmem:[%s20442_s1 + $0xa28] sm:$0xf]  ;;  %v7011_v52 = vpop.f32.mrf.mxu2 }
 0x260   :  { %7237 = vmatpush.bf16.msra.mxu0 %v9516_v4  ;;  %v6998_v4 = vpop.f32.mrf.mxu1  ;;  %v12968_v63 = vld [vmem:[%s20442_s1 + $0x934] sm:$0xf0]  ;;  %v9851_v23 = vld [vmem:[%s20442_s1 + $0xb28] sm:$0xf]  ;;  %v9468_v31 = vor.u32 %v12936_v10, %v9467_v51 }
 0x261   :  { %7250 = vmatpush.bf16.msra.mxu1 %v9644_v21  ;;  %7263 = vmatpush.bf16.msra.mxu2 %v9772_v9  ;;  %v9612_v21 = vor.u32 %v12972_v3, %v9611_v47  ;;  %v9740_v9 = vor.u32 %v13004_v50, %v9739_v49  ;;  %v13000_v20 = vld [vmem:[%s20442_s1 + $0xa34] sm:$0xf0]  ;;  %v9579_v53 = vld [vmem:[%s20442_s1 + $0x908] sm:$0xf] }
 0x262   :  { %7276 = vmatpush.bf16.msra.mxu3 %v9900_v39  ;;  %v9868_v39 = vor.u32 %v13036_v56, %v9867_v54  ;;  %v13032_v29 = vld [vmem:[%s20442_s1 + $0xb34] sm:$0xf0]  ;;  %v9724_v43 = vor.u32 %v13000_v20, %v9723_v15  ;;  %v9835_v49 = vld [vmem:[%s20442_s1 + $0xb08] sm:$0xf]  ;;  %v7024_v57 = vpop.f32.mrf.mxu3 }
 0x263   :  { %v12964_v47 = vld [vmem:[%s20442_s1 + $0x914] sm:$0xf0]  ;;  %v9852_v58 = vor.u32 %v13032_v29, %v9851_v23  ;;  %v10075_v13 = vld [vmem:[%s20442_s1 + $0xce8] sm:$0xf] }
 0x264   :  { %7238 = vmatpush.bf16.msra.mxu0 %v9500_v34  ;;  %v9451_v34 = vld [vmem:[%s20442_s1 + $0x808] sm:$0xf]  ;;  %v12996_v3 = vld [vmem:[%s20442_s1 + $0xa14] sm:$0xf0]  ;;  %v9580_v51 = vor.u32 %v12964_v47, %v9579_v53 }
 0x265   :  { %7251 = vmatpush.bf16.msra.mxu1 %v9628_v60  ;;  %7264 = vmatpush.bf16.msra.mxu2 %v9756_v62  ;;  %v12932_v60 = vld [vmem:[%s20442_s1 + $0x814] sm:$0xf0]  ;;  %v9596_v62 = vor.u32 %v12968_v63, %v9595_v14  ;;  %v10203_v56 = vld [vmem:[%s20442_s1 + $0xde8] sm:$0xf] }
 0x266   :  { %7277 = vmatpush.bf16.msra.mxu3 %v9884_v48  ;;  %v9707_v48 = vld [vmem:[%s20442_s1 + $0xa08] sm:$0xf]  ;;  %v13028_v50 = vld [vmem:[%s20442_s1 + $0xb14] sm:$0xf0] }
 0x267   :  { %v13088_v54 = vld [vmem:[%s20442_s1 + $0xcf4] sm:$0xf0]  ;;  %v9708_v10 = vor.u32 %v12996_v3, %v9707_v48  ;;  %v10459_v14 = vld [vmem:[%s20442_s1 + $0xfe8] sm:$0xf]  ;;  %v9836_v63 = vor.u32 %v13028_v50, %v9835_v49 }
 0x268   :  { %7239 = vmatpush.bf16.msra.mxu0 %v9484_v1  ;;  %v9452_v1 = vor.u32 %v12932_v60, %v9451_v34  ;;  %v13120_v4 = vld [vmem:[%s20442_s1 + $0xdf4] sm:$0xf0]  ;;  %v10076_v15 = vor.u32 %v13088_v54, %v10075_v13  ;;  %v10059_v29 = vld [vmem:[%s20442_s1 + $0xcc8] sm:$0xf] }
 0x269   :  { %7252 = vmatpush.bf16.msra.mxu1 %v9612_v21  ;;  %7265 = vmatpush.bf16.msra.mxu2 %v9740_v9  ;;  %v10331_v21 = vld [vmem:[%s20442_s1 + $0xee8] sm:$0xf]  ;;  %v13152_v9 = vld [vmem:[%s20442_s1 + $0xef4] sm:$0xf0]  ;;  %v10204_v20 = vor.u32 %v13120_v4, %v10203_v56 }
 0x26a   :  { %7278 = vmatpush.bf16.msra.mxu3 %v9868_v39  ;;  %v13184_v39 = vld [vmem:[%s20442_s1 + $0xff4] sm:$0xf0]  ;;  %v10332_v23 = vor.u32 %v13152_v9, %v10331_v21  ;;  %v10187_v34 = vld [vmem:[%s20442_s1 + $0xdc8] sm:$0xf] }
 0x26b   :  { %v10460_v60 = vor.u32 %v13184_v39, %v10459_v14  ;;  %v13148_v53 = vld [vmem:[%s20442_s1 + $0xed4] sm:$0xf0]  ;;  %v10443_v47 = vld [vmem:[%s20442_s1 + $0xfc8] sm:$0xf] }
 0x26c   :  { %7240 = vmatpush.bf16.msra.mxu0 %v9468_v31  ;;  %v13084_v31 = vld [vmem:[%s20442_s1 + $0xcd4] sm:$0xf0]  ;;  %v10043_v50 = vld [vmem:[%s20442_s1 + $0xca8] sm:$0xf] }
 0x26d   :  { %7253 = vmatpush.bf16.msra.mxu1 %v9596_v62  ;;  %7266 = vmatpush.bf16.msra.mxu2 %v9724_v43  ;;  %v13116_v62 = vld [vmem:[%s20442_s1 + $0xdd4] sm:$0xf0]  ;;  %v10315_v43 = vld [vmem:[%s20442_s1 + $0xec8] sm:$0xf] }
 0x26e   :  { %7279 = vmatpush.bf16.msra.mxu3 %v9852_v58  ;;  %v13180_v48 = vld [vmem:[%s20442_s1 + $0xfd4] sm:$0xf0]  ;;  %v10060_v58 = vor.u32 %v13084_v31, %v10059_v29  ;;  %v10188_v3 = vor.u32 %v13116_v62, %v10187_v34  ;;  %v10316_v49 = vor.u32 %v13148_v53, %v10315_v43  ;;  %v10171_v13 = vld [vmem:[%s20442_s1 + $0xda8] sm:$0xf] }
 0x26f   :  { %v13080_v52 = vld [vmem:[%s20442_s1 + $0xcb4] sm:$0xf0]  ;;  %v10444_v54 = vor.u32 %v13180_v48, %v10443_v47  ;;  %v10299_v57 = vld [vmem:[%s20442_s1 + $0xea8] sm:$0xf] }
 0x270   :  { %7241 = vmatpush.bf16.msra.mxu0 %v9452_v1  ;;  %v13112_v56 = vld [vmem:[%s20442_s1 + $0xdb4] sm:$0xf0]  ;;  %v10427_v4 = vld [vmem:[%s20442_s1 + $0xfa8] sm:$0xf]  ;;  %v10044_v9 = vor.u32 %v13080_v52, %v10043_v50  ;;  %v7035_v31 = vpop.f32.mrf.mxu0 }
 0x271   :  { %7254 = vmatpush.bf16.msra.mxu1 %v9580_v51  ;;  %7267 = vmatpush.bf16.msra.mxu2 %v9708_v10  ;;  %v13144_v1 = vld [vmem:[%s20442_s1 + $0xeb4] sm:$0xf0]  ;;  %v10172_v51 = vor.u32 %v13112_v56, %v10171_v13  ;;  %v10027_v14 = vld [vmem:[%s20442_s1 + $0xc88] sm:$0xf]  ;;  %v7036_v62 = vadd.f32 %v7035_v31, %v17648_v46 }
 0x272   :  { %7280 = vmatpush.bf16.msra.mxu3 %v9836_v63  ;;  %v13176_v21 = vld [vmem:[%s20442_s1 + $0xfb4] sm:$0xf0]  ;;  %v10300_v10 = vor.u32 %v13144_v1, %v10299_v57  ;;  %v10155_v63 = vld [vmem:[%s20442_s1 + $0xd88] sm:$0xf] }
 0x273   :  { %7242 = vmatmul.bf16.vlgmr.msra.gmra.mxu0 %v14476_v24  ;;  %v13076_v39 = vld [vmem:[%s20442_s1 + $0xc94] sm:$0xf0]  ;;  %v10411_v34 = vld [vmem:[%s20442_s1 + $0xf88] sm:$0xf]  ;;  %v7048_v53 = vpop.f32.mrf.mxu1 }
 0x274   :  { %7286 = vmatpush.bf16.msrb.mxu0 %v10076_v15  ;;  %7268 = vmatmul.bf16.vlgmr.msra.gmra.mxu2 %v14489_v30  ;;  %v10428_v15 = vor.u32 %v13176_v21, %v10427_v4  ;;  %v13140_v29 = vld [vmem:[%s20442_s1 + $0xe94] sm:$0xf0]  ;;  %v10028_v43 = vor.u32 %v13076_v39, %v10027_v14  ;;  %v7049_v50 = vadd.f32 %v7048_v53, %v7036_v62  ;;  %v10267_v13 = vld [vmem:[%s20442_s1 + $0xe68] sm:$0xf] }
 0x275   :  { %7299 = vmatpush.bf16.msrb.mxu1 %v10204_v20  ;;  %7312 = vmatpush.bf16.msrb.mxu2 %v10332_v23  ;;  %v13108_v20 = vld [vmem:[%s20442_s1 + $0xd94] sm:$0xf0]  ;;  %v10283_v23 = vld [vmem:[%s20442_s1 + $0xe88] sm:$0xf] }
 0x276   :  { %7325 = vmatpush.bf16.msrb.mxu3 %v10460_v60  ;;  %7255 = vmatmul.bf16.vlgmr.msra.gmra.mxu1 %v14493_v18  ;;  %v13172_v60 = vld [vmem:[%s20442_s1 + $0xf94] sm:$0xf0]  ;;  %v10156_v47 = vor.u32 %v13108_v20, %v10155_v63  ;;  %v10284_v48 = vor.u32 %v13140_v29, %v10283_v23  ;;  %v10395_v56 = vld [vmem:[%s20442_s1 + $0xf68] sm:$0xf] }
 0x277   :  { %7281 = vmatmul.bf16.vlgmr.msra.gmra.mxu3 %v14503_v35  ;;  %v10412_v46 = vor.u32 %v13172_v60, %v10411_v34  ;;  %v13104_v52 = vld [vmem:[%s20442_s1 + $0xd74] sm:$0xf0]  ;;  %v7061_v39 = vpop.f32.mrf.mxu2  ;;  %v10379_v31 = vld [vmem:[%s20442_s1 + $0xf48] sm:$0xf] }
 0x278   :  { %7287 = vmatpush.bf16.msrb.mxu0 %v10060_v58  ;;  %v10011_v58 = vld [vmem:[%s20442_s1 + $0xc68] sm:$0xf]  ;;  %v13168_v57 = vld [vmem:[%s20442_s1 + $0xf74] sm:$0xf0]  ;;  %v7062_v23 = vadd.f32 %v7061_v39, %v7049_v50  ;;  %v7037_v60 = vpop.f32.mrf.mxu0 }
 0x279   :  { %7300 = vmatpush.bf16.msrb.mxu1 %v10188_v3  ;;  %7313 = vmatpush.bf16.msrb.mxu2 %v10316_v49  ;;  %v13072_v3 = vld [vmem:[%s20442_s1 + $0xc74] sm:$0xf0]  ;;  %v10139_v49 = vld [vmem:[%s20442_s1 + $0xd68] sm:$0xf]  ;;  %v10396_v14 = vor.u32 %v13168_v57, %v10395_v56 }
 0x27a   :  { %7326 = vmatpush.bf16.msrb.mxu3 %v10444_v54  ;;  %v13136_v54 = vld [vmem:[%s20442_s1 + $0xe74] sm:$0xf0]  ;;  %v10012_v1 = vor.u32 %v13072_v3, %v10011_v58  ;;  %v10140_v4 = vor.u32 %v13104_v52, %v10139_v49  ;;  %v7074_v29 = vpop.f32.mrf.mxu3  ;;  %v9979_v58 = vld [vmem:[%s20442_s1 + $0xc28] sm:$0xf] }
 0x27b   :  { %v10268_v21 = vor.u32 %v13136_v54, %v10267_v13  ;;  %v13100_v63 = vld [vmem:[%s20442_s1 + $0xd54] sm:$0xf0]  ;;  %v17847_v53 = vadd.f32 %v7074_v29, %v7062_v23  ;;  %v10107_v49 = vld [vmem:[%s20442_s1 + $0xd28] sm:$0xf] }
 0x27c   :  { %7288 = vmatpush.bf16.msrb.mxu0 %v10044_v9  ;;  %v9995_v9 = vld [vmem:[%s20442_s1 + $0xc48] sm:$0xf]  ;;  %v13132_v20 = vld [vmem:[%s20442_s1 + $0xe54] sm:$0xf0] }
 0x27d   :  { %7301 = vmatpush.bf16.msrb.mxu1 %v10172_v51  ;;  %7314 = vmatpush.bf16.msrb.mxu2 %v10300_v10  ;;  %v13068_v51 = vld [vmem:[%s20442_s1 + $0xc54] sm:$0xf0]  ;;  %v10123_v10 = vld [vmem:[%s20442_s1 + $0xd48] sm:$0xf] }
 0x27e   :  { %7327 = vmatpush.bf16.msrb.mxu3 %v10428_v15  ;;  %v10251_v15 = vld [vmem:[%s20442_s1 + $0xe48] sm:$0xf]  ;;  %v13164_v34 = vld [vmem:[%s20442_s1 + $0xf54] sm:$0xf0]  ;;  %v9996_v62 = vor.u32 %v13068_v51, %v9995_v9 }
 0x27f   :  { %v13064_v3 = vld [vmem:[%s20442_s1 + $0xc34] sm:$0xf0]  ;;  %v10235_v52 = vld [vmem:[%s20442_s1 + $0xe28] sm:$0xf]  ;;  %v7063_v23 = vpop.f32.mrf.mxu2 }
 0x280   :  { %7289 = vmatpush.bf16.msrb.mxu0 %v10028_v43  ;;  %v7050_v43 = vpop.f32.mrf.mxu1  ;;  %v13096_v50 = vld [vmem:[%s20442_s1 + $0xd34] sm:$0xf0]  ;;  %v10363_v54 = vld [vmem:[%s20442_s1 + $0xf28] sm:$0xf]  ;;  %v9980_v57 = vor.u32 %v13064_v3, %v9979_v58 }
 0x281   :  { %7302 = vmatpush.bf16.msrb.mxu1 %v10156_v47  ;;  %7315 = vmatpush.bf16.msrb.mxu2 %v10284_v48  ;;  %v10124_v47 = vor.u32 %v13100_v63, %v10123_v10  ;;  %v10252_v48 = vor.u32 %v13132_v20, %v10251_v15  ;;  %v13128_v13 = vld [vmem:[%s20442_s1 + $0xe34] sm:$0xf0]  ;;  %v10091_v51 = vld [vmem:[%s20442_s1 + $0xd08] sm:$0xf] }
 0x282   :  { %7328 = vmatpush.bf16.msrb.mxu3 %v10412_v46  ;;  %v10380_v46 = vor.u32 %v13164_v34, %v10379_v31  ;;  %v13160_v56 = vld [vmem:[%s20442_s1 + $0xf34] sm:$0xf0]  ;;  %v10236_v9 = vor.u32 %v13128_v13, %v10235_v52  ;;  %v10347_v15 = vld [vmem:[%s20442_s1 + $0xf08] sm:$0xf]  ;;  %v7076_v60 = vpop.f32.mrf.mxu3 }
 0x283   :  { %v13092_v10 = vld [vmem:[%s20442_s1 + $0xd14] sm:$0xf0]  ;;  %v10364_v39 = vor.u32 %v13160_v56, %v10363_v54  ;;  %v10587_v29 = vld [vmem:[%s20442_s1 + $0x10e8] sm:$0xf] }
 0x284   :  { %7290 = vmatpush.bf16.msrb.mxu0 %v10012_v1  ;;  %v9963_v1 = vld [vmem:[%s20442_s1 + $0xc08] sm:$0xf]  ;;  %v13124_v63 = vld [vmem:[%s20442_s1 + $0xe14] sm:$0xf0]  ;;  %v10092_v58 = vor.u32 %v13092_v10, %v10091_v51 }
 0x285   :  { %7303 = vmatpush.bf16.msrb.mxu1 %v10140_v4  ;;  %7316 = vmatpush.bf16.msrb.mxu2 %v10268_v21  ;;  %v13060_v4 = vld [vmem:[%s20442_s1 + $0xc14] sm:$0xf0]  ;;  %v10108_v21 = vor.u32 %v13096_v50, %v10107_v49  ;;  %v10715_v34 = vld [vmem:[%s20442_s1 + $0x11e8] sm:$0xf] }
 0x286   :  { %7329 = vmatpush.bf16.msrb.mxu3 %v10396_v14  ;;  %v10219_v14 = vld [vmem:[%s20442_s1 + $0xe08] sm:$0xf]  ;;  %v13156_v20 = vld [vmem:[%s20442_s1 + $0xf14] sm:$0xf0] }
 0x287   :  { %v13216_v31 = vld [vmem:[%s20442_s1 + $0x10f4] sm:$0xf0]  ;;  %v10220_v3 = vor.u32 %v13124_v63, %v10219_v14  ;;  %v10971_v49 = vld [vmem:[%s20442_s1 + $0x13e8] sm:$0xf]  ;;  %v10348_v50 = vor.u32 %v13156_v20, %v10347_v15 }
 0x288   :  { %7291 = vmatpush.bf16.msrb.mxu0 %v9996_v62  ;;  %v9964_v62 = vor.u32 %v13060_v4, %v9963_v1  ;;  %v13248_v43 = vld [vmem:[%s20442_s1 + $0x11f4] sm:$0xf0]  ;;  %v10588_v52 = vor.u32 %v13216_v31, %v10587_v29  ;;  %v10571_v56 = vld [vmem:[%s20442_s1 + $0x10c8] sm:$0xf] }
 0x289   :  { %7304 = vmatpush.bf16.msrb.mxu1 %v10124_v47  ;;  %7317 = vmatpush.bf16.msrb.mxu2 %v10252_v48  ;;  %v10843_v47 = vld [vmem:[%s20442_s1 + $0x12e8] sm:$0xf]  ;;  %v13280_v48 = vld [vmem:[%s20442_s1 + $0x12f4] sm:$0xf0]  ;;  %v10716_v13 = vor.u32 %v13248_v43, %v10715_v34 }
 0x28a   :  { %7330 = vmatpush.bf16.msrb.mxu3 %v10380_v46  ;;  %v13312_v46 = vld [vmem:[%s20442_s1 + $0x13f4] sm:$0xf0]  ;;  %v10844_v54 = vor.u32 %v13280_v48, %v10843_v47  ;;  %v10699_v1 = vld [vmem:[%s20442_s1 + $0x11c8] sm:$0xf] }
 0x28b   :  { %v10972_v4 = vor.u32 %v13312_v46, %v10971_v49  ;;  %v13276_v51 = vld [vmem:[%s20442_s1 + $0x12d4] sm:$0xf0]  ;;  %v10955_v10 = vld [vmem:[%s20442_s1 + $0x13c8] sm:$0xf] }
 0x28c   :  { %7292 = vmatpush.bf16.msrb.mxu0 %v9980_v57  ;;  %v13212_v57 = vld [vmem:[%s20442_s1 + $0x10d4] sm:$0xf0]  ;;  %v10555_v20 = vld [vmem:[%s20442_s1 + $0x10a8] sm:$0xf] }
 0x28d   :  { %7305 = vmatpush.bf16.msrb.mxu1 %v10108_v21  ;;  %7318 = vmatpush.bf16.msrb.mxu2 %v10236_v9  ;;  %v13244_v21 = vld [vmem:[%s20442_s1 + $0x11d4] sm:$0xf0]  ;;  %v10827_v9 = vld [vmem:[%s20442_s1 + $0x12c8] sm:$0xf] }
 0x28e   :  { %7331 = vmatpush.bf16.msrb.mxu3 %v10364_v39  ;;  %v13308_v14 = vld [vmem:[%s20442_s1 + $0x13d4] sm:$0xf0]  ;;  %v10572_v39 = vor.u32 %v13212_v57, %v10571_v56  ;;  %v10700_v63 = vor.u32 %v13244_v21, %v10699_v1  ;;  %v10828_v15 = vor.u32 %v13276_v51, %v10827_v9  ;;  %v10683_v29 = vld [vmem:[%s20442_s1 + $0x11a8] sm:$0xf] }
 0x28f   :  { %v13208_v23 = vld [vmem:[%s20442_s1 + $0x10b4] sm:$0xf0]  ;;  %v10956_v31 = vor.u32 %v13308_v14, %v10955_v10  ;;  %v10811_v60 = vld [vmem:[%s20442_s1 + $0x12a8] sm:$0xf] }
 0x290   :  { %7293 = vmatpush.bf16.msrb.mxu0 %v9964_v62  ;;  %v13240_v34 = vld [vmem:[%s20442_s1 + $0x11b4] sm:$0xf0]  ;;  %v10939_v43 = vld [vmem:[%s20442_s1 + $0x13a8] sm:$0xf]  ;;  %v10556_v48 = vor.u32 %v13208_v23, %v10555_v20  ;;  %v7087_v57 = vpop.f32.mrf.mxu0 }
 0x291   :  { %7306 = vmatpush.bf16.msrb.mxu1 %v10092_v58  ;;  %7319 = vmatpush.bf16.msrb.mxu2 %v10220_v3  ;;  %v13272_v62 = vld [vmem:[%s20442_s1 + $0x12b4] sm:$0xf0]  ;;  %v10684_v58 = vor.u32 %v13240_v34, %v10683_v29  ;;  %v10539_v49 = vld [vmem:[%s20442_s1 + $0x1088] sm:$0xf]  ;;  %v7088_v21 = vadd.f32 %v7087_v57, %v17847_v53 }
 0x292   :  { %7332 = vmatpush.bf16.msrb.mxu3 %v10348_v50  ;;  %v13304_v47 = vld [vmem:[%s20442_s1 + $0x13b4] sm:$0xf0]  ;;  %v10812_v3 = vor.u32 %v13272_v62, %v10811_v60  ;;  %v10667_v50 = vld [vmem:[%s20442_s1 + $0x1188] sm:$0xf] }
 0x293   :  { %7294 = vmatmul.bf16.vlgmr.msrb.gmra.mxu0 %v14699_v28  ;;  %v13204_v46 = vld [vmem:[%s20442_s1 + $0x1094] sm:$0xf0]  ;;  %v10923_v1 = vld [vmem:[%s20442_s1 + $0x1388] sm:$0xf]  ;;  %v7100_v51 = vpop.f32.mrf.mxu1 }
 0x294   :  { %7338 = vmatpush.bf16.msra.mxu0 %v10588_v52  ;;  %7320 = vmatmul.bf16.vlgmr.msrb.gmra.mxu2 %v14712_v19  ;;  %v10940_v52 = vor.u32 %v13304_v47, %v10939_v43  ;;  %v13268_v56 = vld [vmem:[%s20442_s1 + $0x1294] sm:$0xf0]  ;;  %v10540_v9 = vor.u32 %v13204_v46, %v10539_v49  ;;  %v7101_v20 = vadd.f32 %v7100_v51, %v7088_v21  ;;  %v10779_v29 = vld [vmem:[%s20442_s1 + $0x1268] sm:$0xf] }
 0x295   :  { %7351 = vmatpush.bf16.msra.mxu1 %v10716_v13  ;;  %7364 = vmatpush.bf16.msra.mxu2 %v10844_v54  ;;  %v13236_v13 = vld [vmem:[%s20442_s1 + $0x1194] sm:$0xf0]  ;;  %v10795_v54 = vld [vmem:[%s20442_s1 + $0x1288] sm:$0xf] }
 0x296   :  { %7377 = vmatpush.bf16.msra.mxu3 %v10972_v4  ;;  %7307 = vmatmul.bf16.vlgmr.msrb.gmra.mxu1 %v14716_v59  ;;  %v13300_v4 = vld [vmem:[%s20442_s1 + $0x1394] sm:$0xf0]  ;;  %v10668_v10 = vor.u32 %v13236_v13, %v10667_v50  ;;  %v10796_v14 = vor.u32 %v13268_v56, %v10795_v54  ;;  %v10907_v34 = vld [vmem:[%s20442_s1 + $0x1368] sm:$0xf] }
 0x297   :  { %7333 = vmatmul.bf16.vlgmr.msrb.gmra.mxu3 %v14726_v37  ;;  %v10924_v53 = vor.u32 %v13300_v4, %v10923_v1  ;;  %v13232_v23 = vld [vmem:[%s20442_s1 + $0x1174] sm:$0xf0]  ;;  %v7113_v46 = vpop.f32.mrf.mxu2  ;;  %v10891_v57 = vld [vmem:[%s20442_s1 + $0x1348] sm:$0xf] }
 0x298   :  { %7339 = vmatpush.bf16.msra.mxu0 %v10572_v39  ;;  %v10523_v39 = vld [vmem:[%s20442_s1 + $0x1068] sm:$0xf]  ;;  %v13296_v60 = vld [vmem:[%s20442_s1 + $0x1374] sm:$0xf0]  ;;  %v7114_v54 = vadd.f32 %v7113_v46, %v7101_v20  ;;  %v7089_v4 = vpop.f32.mrf.mxu0 }
 0x299   :  { %7352 = vmatpush.bf16.msra.mxu1 %v10700_v63  ;;  %7365 = vmatpush.bf16.msra.mxu2 %v10828_v15  ;;  %v13200_v63 = vld [vmem:[%s20442_s1 + $0x1074] sm:$0xf0]  ;;  %v10651_v15 = vld [vmem:[%s20442_s1 + $0x1168] sm:$0xf]  ;;  %v10908_v49 = vor.u32 %v13296_v60, %v10907_v34 }
 0x29a   :  { %7378 = vmatpush.bf16.msra.mxu3 %v10956_v31  ;;  %v13264_v31 = vld [vmem:[%s20442_s1 + $0x1274] sm:$0xf0]  ;;  %v10524_v62 = vor.u32 %v13200_v63, %v10523_v39  ;;  %v10652_v43 = vor.u32 %v13232_v23, %v10651_v15  ;;  %v7126_v56 = vpop.f32.mrf.mxu3  ;;  %v10491_v39 = vld [vmem:[%s20442_s1 + $0x1028] sm:$0xf] }
 0x29b   :  { %v10780_v47 = vor.u32 %v13264_v31, %v10779_v29  ;;  %v13228_v50 = vld [vmem:[%s20442_s1 + $0x1154] sm:$0xf0]  ;;  %v18046_v51 = vadd.f32 %v7126_v56, %v7114_v54  ;;  %v10619_v15 = vld [vmem:[%s20442_s1 + $0x1128] sm:$0xf] }
 0x29c   :  { %7340 = vmatpush.bf16.msra.mxu0 %v10556_v48  ;;  %v10507_v48 = vld [vmem:[%s20442_s1 + $0x1048] sm:$0xf]  ;;  %v13260_v13 = vld [vmem:[%s20442_s1 + $0x1254] sm:$0xf0] }
 0x29d   :  { %7353 = vmatpush.bf16.msra.mxu1 %v10684_v58  ;;  %7366 = vmatpush.bf16.msra.mxu2 %v10812_v3  ;;  %v13196_v58 = vld [vmem:[%s20442_s1 + $0x1054] sm:$0xf0]  ;;  %v10635_v3 = vld [vmem:[%s20442_s1 + $0x1148] sm:$0xf] }
 0x29e   :  { %7379 = vmatpush.bf16.msra.mxu3 %v10940_v52  ;;  %v10763_v52 = vld [vmem:[%s20442_s1 + $0x1248] sm:$0xf]  ;;  %v13292_v1 = vld [vmem:[%s20442_s1 + $0x1354] sm:$0xf0]  ;;  %v10508_v21 = vor.u32 %v13196_v58, %v10507_v48 }
 0x29f   :  { %v13192_v63 = vld [vmem:[%s20442_s1 + $0x1034] sm:$0xf0]  ;;  %v10747_v23 = vld [vmem:[%s20442_s1 + $0x1228] sm:$0xf]  ;;  %v7115_v54 = vpop.f32.mrf.mxu2 }
 0x2a0   :  { %7341 = vmatpush.bf16.msra.mxu0 %v10540_v9  ;;  %v7102_v9 = vpop.f32.mrf.mxu1  ;;  %v13224_v20 = vld [vmem:[%s20442_s1 + $0x1134] sm:$0xf0]  ;;  %v10875_v31 = vld [vmem:[%s20442_s1 + $0x1328] sm:$0xf]  ;;  %v10492_v60 = vor.u32 %v13192_v63, %v10491_v39 }
 0x2a1   :  { %7354 = vmatpush.bf16.msra.mxu1 %v10668_v10  ;;  %7367 = vmatpush.bf16.msra.mxu2 %v10796_v14  ;;  %v10636_v10 = vor.u32 %v13228_v50, %v10635_v3  ;;  %v10764_v14 = vor.u32 %v13260_v13, %v10763_v52  ;;  %v13256_v29 = vld [vmem:[%s20442_s1 + $0x1234] sm:$0xf0]  ;;  %v10603_v58 = vld [vmem:[%s20442_s1 + $0x1108] sm:$0xf] }
 0x2a2   :  { %7380 = vmatpush.bf16.msra.mxu3 %v10924_v53  ;;  %v10892_v53 = vor.u32 %v13292_v1, %v10891_v57  ;;  %v13288_v34 = vld [vmem:[%s20442_s1 + $0x1334] sm:$0xf0]  ;;  %v10748_v48 = vor.u32 %v13256_v29, %v10747_v23  ;;  %v10859_v52 = vld [vmem:[%s20442_s1 + $0x1308] sm:$0xf]  ;;  %v7128_v4 = vpop.f32.mrf.mxu3 }
 0x2a3   :  { %v13220_v3 = vld [vmem:[%s20442_s1 + $0x1114] sm:$0xf0]  ;;  %v10876_v46 = vor.u32 %v13288_v34, %v10875_v31  ;;  %v11099_v56 = vld [vmem:[%s20442_s1 + $0x14e8] sm:$0xf] }
 0x2a4   :  { %7342 = vmatpush.bf16.msra.mxu0 %v10524_v62  ;;  %v10475_v62 = vld [vmem:[%s20442_s1 + $0x1008] sm:$0xf]  ;;  %v13252_v50 = vld [vmem:[%s20442_s1 + $0x1214] sm:$0xf0]  ;;  %v10604_v39 = vor.u32 %v13220_v3, %v10603_v58 }
 0x2a5   :  { %7355 = vmatpush.bf16.msra.mxu1 %v10652_v43  ;;  %7368 = vmatpush.bf16.msra.mxu2 %v10780_v47  ;;  %v13188_v43 = vld [vmem:[%s20442_s1 + $0x1014] sm:$0xf0]  ;;  %v10620_v47 = vor.u32 %v13224_v20, %v10619_v15  ;;  %v11227_v1 = vld [vmem:[%s20442_s1 + $0x15e8] sm:$0xf] }
 0x2a6   :  { %7381 = vmatpush.bf16.msra.mxu3 %v10908_v49  ;;  %v10731_v49 = vld [vmem:[%s20442_s1 + $0x1208] sm:$0xf]  ;;  %v13284_v13 = vld [vmem:[%s20442_s1 + $0x1314] sm:$0xf0] }
 0x2a7   :  { %v13344_v57 = vld [vmem:[%s20442_s1 + $0x14f4] sm:$0xf0]  ;;  %v10732_v63 = vor.u32 %v13252_v50, %v10731_v49  ;;  %v11483_v15 = vld [vmem:[%s20442_s1 + $0x17e8] sm:$0xf]  ;;  %v10860_v20 = vor.u32 %v13284_v13, %v10859_v52 }
 0x2a8   :  { %7343 = vmatpush.bf16.msra.mxu0 %v10508_v21  ;;  %v10476_v21 = vor.u32 %v13188_v43, %v10475_v62  ;;  %v13376_v9 = vld [vmem:[%s20442_s1 + $0x15f4] sm:$0xf0]  ;;  %v11100_v23 = vor.u32 %v13344_v57, %v11099_v56  ;;  %v11083_v34 = vld [vmem:[%s20442_s1 + $0x14c8] sm:$0xf] }
 0x2a9   :  { %7356 = vmatpush.bf16.msra.mxu1 %v10636_v10  ;;  %7369 = vmatpush.bf16.msra.mxu2 %v10764_v14  ;;  %v11355_v10 = vld [vmem:[%s20442_s1 + $0x16e8] sm:$0xf]  ;;  %v13408_v14 = vld [vmem:[%s20442_s1 + $0x16f4] sm:$0xf0]  ;;  %v11228_v29 = vor.u32 %v13376_v9, %v11227_v1 }
 0x2aa   :  { %7382 = vmatpush.bf16.msra.mxu3 %v10892_v53  ;;  %v13440_v53 = vld [vmem:[%s20442_s1 + $0x17f4] sm:$0xf0]  ;;  %v11356_v31 = vor.u32 %v13408_v14, %v11355_v10  ;;  %v11211_v62 = vld [vmem:[%s20442_s1 + $0x15c8] sm:$0xf] }
 0x2ab   :  { %v11484_v43 = vor.u32 %v13440_v53, %v11483_v15  ;;  %v13404_v58 = vld [vmem:[%s20442_s1 + $0x16d4] sm:$0xf0]  ;;  %v11467_v3 = vld [vmem:[%s20442_s1 + $0x17c8] sm:$0xf] }
 0x2ac   :  { %7344 = vmatpush.bf16.msra.mxu0 %v10492_v60  ;;  %v13340_v60 = vld [vmem:[%s20442_s1 + $0x14d4] sm:$0xf0]  ;;  %v11067_v13 = vld [vmem:[%s20442_s1 + $0x14a8] sm:$0xf] }
 0x2ad   :  { %7357 = vmatpush.bf16.msra.mxu1 %v10620_v47  ;;  %7370 = vmatpush.bf16.msra.mxu2 %v10748_v48  ;;  %v13372_v47 = vld [vmem:[%s20442_s1 + $0x15d4] sm:$0xf0]  ;;  %v11339_v48 = vld [vmem:[%s20442_s1 + $0x16c8] sm:$0xf] }
 0x2ae   :  { %7383 = vmatpush.bf16.msra.mxu3 %v10876_v46  ;;  %v13436_v49 = vld [vmem:[%s20442_s1 + $0x17d4] sm:$0xf0]  ;;  %v11084_v46 = vor.u32 %v13340_v60, %v11083_v34  ;;  %v11212_v50 = vor.u32 %v13372_v47, %v11211_v62  ;;  %v11340_v52 = vor.u32 %v13404_v58, %v11339_v48  ;;  %v11195_v56 = vld [vmem:[%s20442_s1 + $0x15a8] sm:$0xf] }
 0x2af   :  { %v13336_v54 = vld [vmem:[%s20442_s1 + $0x14b4] sm:$0xf0]  ;;  %v11468_v57 = vor.u32 %v13436_v49, %v11467_v3  ;;  %v11323_v4 = vld [vmem:[%s20442_s1 + $0x16a8] sm:$0xf] }
 0x2b0   :  { %7345 = vmatpush.bf16.msra.mxu0 %v10476_v21  ;;  %v13368_v1 = vld [vmem:[%s20442_s1 + $0x15b4] sm:$0xf0]  ;;  %v11451_v9 = vld [vmem:[%s20442_s1 + $0x17a8] sm:$0xf]  ;;  %v11068_v14 = vor.u32 %v13336_v54, %v11067_v13  ;;  %v7139_v47 = vpop.f32.mrf.mxu0 }
 0x2b1   :  { %7358 = vmatpush.bf16.msra.mxu1 %v10604_v39  ;;  %7371 = vmatpush.bf16.msra.mxu2 %v10732_v63  ;;  %v13400_v21 = vld [vmem:[%s20442_s1 + $0x16b4] sm:$0xf0]  ;;  %v11196_v39 = vor.u32 %v13368_v1, %v11195_v56  ;;  %v11051_v15 = vld [vmem:[%s20442_s1 + $0x1488] sm:$0xf] }
 0x2b2   :  { %7384 = vmatpush.bf16.msra.mxu3 %v10860_v20  ;;  %v13432_v10 = vld [vmem:[%s20442_s1 + $0x17b4] sm:$0xf0]  ;;  %v11324_v63 = vor.u32 %v13400_v21, %v11323_v4  ;;  %v11179_v20 = vld [vmem:[%s20442_s1 + $0x1588] sm:$0xf] }
 0x2b3   :  { %7346 = vmatmul.bf16.vlgmr.msra.gmra.mxu0 %v14909_v36  ;;  %v13332_v53 = vld [vmem:[%s20442_s1 + $0x1494] sm:$0xf0]  ;;  %v11435_v60 = vld [vmem:[%s20442_s1 + $0x1788] sm:$0xf] }
 0x2b4   :  { %7390 = vmatpush.bf16.msrb.mxu0 %v11100_v23  ;;  %7372 = vmatmul.bf16.vlgmr.msra.gmra.mxu2 %v14920_v40  ;;  %v11452_v23 = vor.u32 %v13432_v10, %v11451_v9  ;;  %v13396_v34 = vld [vmem:[%s20442_s1 + $0x1694] sm:$0xf0]  ;;  %v11035_v3 = vld [vmem:[%s20442_s1 + $0x1468] sm:$0xf] }
 0x2b5   :  { %7403 = vmatpush.bf16.msrb.mxu1 %v11228_v29  ;;  %7416 = vmatpush.bf16.msrb.mxu2 %v11356_v31  ;;  %v13364_v29 = vld [vmem:[%s20442_s1 + $0x1594] sm:$0xf0]  ;;  %v11307_v31 = vld [vmem:[%s20442_s1 + $0x1688] sm:$0xf] }
 0x2b6   :  { %7429 = vmatpush.bf16.msrb.mxu3 %v11484_v43  ;;  %7359 = vmatmul.bf16.vlgmr.msra.gmra.mxu1 %v14922_v22  ;;  %v13428_v62 = vld [vmem:[%s20442_s1 + $0x1794] sm:$0xf0]  ;;  %v11052_v43 = vor.u32 %v13332_v53, %v11051_v15  ;;  %v11180_v48 = vor.u32 %v13364_v29, %v11179_v20  ;;  %v11308_v58 = vor.u32 %v13396_v34, %v11307_v31  ;;  %v11291_v54 = vld [vmem:[%s20442_s1 + $0x1668] sm:$0xf] }
 0x2b7   :  { %7385 = vmatmul.bf16.vlgmr.msra.gmra.mxu3 %v14930_v45  ;;  %v13328_v49 = vld [vmem:[%s20442_s1 + $0x1474] sm:$0xf0]  ;;  %v11419_v1 = vld [vmem:[%s20442_s1 + $0x1768] sm:$0xf]  ;;  %v7165_v15 = vpop.f32.mrf.mxu2 }
 0x2b8   :  { %7391 = vmatpush.bf16.msrb.mxu0 %v11084_v46  ;;  %v11163_v46 = vld [vmem:[%s20442_s1 + $0x1568] sm:$0xf]  ;;  %v13360_v13 = vld [vmem:[%s20442_s1 + $0x1574] sm:$0xf0]  ;;  %v11036_v21 = vor.u32 %v13328_v49, %v11035_v3 }
 0x2b9   :  { %7404 = vmatpush.bf16.msrb.mxu1 %v11212_v50  ;;  %7417 = vmatpush.bf16.msrb.mxu2 %v11340_v52  ;;  %v7152_v50 = vpop.f32.mrf.mxu1  ;;  %v11436_v52 = vor.u32 %v13428_v62, %v11435_v60  ;;  %v13392_v56 = vld [vmem:[%s20442_s1 + $0x1674] sm:$0xf0]  ;;  %v11164_v9 = vor.u32 %v13360_v13, %v11163_v46  ;;  %v11403_v60 = vld [vmem:[%s20442_s1 + $0x1748] sm:$0xf] }
 0x2ba   :  { %7430 = vmatpush.bf16.msrb.mxu3 %v11468_v57  ;;  %v7153_v57 = vadd.f32 %v7152_v50, %v7139_v47  ;;  %v13424_v4 = vld [vmem:[%s20442_s1 + $0x1774] sm:$0xf0]  ;;  %v11292_v10 = vor.u32 %v13392_v56, %v11291_v54  ;;  %v7178_v34 = vpop.f32.mrf.mxu3  ;;  %v11003_v49 = vld [vmem:[%s20442_s1 + $0x1428] sm:$0xf] }
 0x2bb   :  { %v11420_v53 = vor.u32 %v13424_v4, %v11419_v1  ;;  %v13356_v20 = vld [vmem:[%s20442_s1 + $0x1554] sm:$0xf0]  ;;  %v11131_v50 = vld [vmem:[%s20442_s1 + $0x1528] sm:$0xf] }
 0x2bc   :  { %7392 = vmatpush.bf16.msrb.mxu0 %v11068_v14  ;;  %v11019_v14 = vld [vmem:[%s20442_s1 + $0x1448] sm:$0xf]  ;;  %v13388_v29 = vld [vmem:[%s20442_s1 + $0x1654] sm:$0xf0]  ;;  %v7166_v31 = vadd.f32 %v7165_v15, %v7153_v57 }
 0x2bd   :  { %7405 = vmatpush.bf16.msrb.mxu1 %v11196_v39  ;;  %7418 = vmatpush.bf16.msrb.mxu2 %v11324_v63  ;;  %v13324_v39 = vld [vmem:[%s20442_s1 + $0x1454] sm:$0xf0]  ;;  %v11147_v63 = vld [vmem:[%s20442_s1 + $0x1548] sm:$0xf] }
 0x2be   :  { %7431 = vmatpush.bf16.msrb.mxu3 %v11452_v23  ;;  %v11275_v23 = vld [vmem:[%s20442_s1 + $0x1648] sm:$0xf]  ;;  %v13420_v62 = vld [vmem:[%s20442_s1 + $0x1754] sm:$0xf0]  ;;  %v18244_v47 = vadd.f32 %v7178_v34, %v7166_v31 }
 0x2bf   :  { %v11276_v3 = vor.u32 %v13388_v29, %v11275_v23  ;;  %v13320_v46 = vld [vmem:[%s20442_s1 + $0x1434] sm:$0xf0]  ;;  %v11404_v13 = vor.u32 %v13420_v62, %v11403_v60  ;;  %v11259_v56 = vld [vmem:[%s20442_s1 + $0x1628] sm:$0xf] }
 0x2c0   :  { %7393 = vmatpush.bf16.msrb.mxu0 %v11052_v43  ;;  %v11020_v43 = vor.u32 %v13324_v39, %v11019_v14  ;;  %v13352_v54 = vld [vmem:[%s20442_s1 + $0x1534] sm:$0xf0]  ;;  %v11387_v1 = vld [vmem:[%s20442_s1 + $0x1728] sm:$0xf] }
 0x2c1   :  { %7406 = vmatpush.bf16.msrb.mxu1 %v11180_v48  ;;  %7419 = vmatpush.bf16.msrb.mxu2 %v11308_v58  ;;  %v7141_v48 = vpop.f32.mrf.mxu0  ;;  %v11148_v58 = vor.u32 %v13356_v20, %v11147_v63  ;;  %v13384_v57 = vld [vmem:[%s20442_s1 + $0x1634] sm:$0xf0]  ;;  %v11132_v14 = vor.u32 %v13352_v54, %v11131_v50  ;;  %v11115_v63 = vld [vmem:[%s20442_s1 + $0x1508] sm:$0xf]  ;;  %v7167_v20 = vpop.f32.mrf.mxu2 }
 0x2c2   :  { %7432 = vmatpush.bf16.msrb.mxu3 %v11436_v52  ;;  %v7154_v52 = vpop.f32.mrf.mxu1  ;;  %v13416_v4 = vld [vmem:[%s20442_s1 + $0x1734] sm:$0xf0]  ;;  %v11260_v39 = vor.u32 %v13384_v57, %v11259_v56  ;;  %v11371_v31 = vld [vmem:[%s20442_s1 + $0x1708] sm:$0xf]  ;;  %v7180_v60 = vpop.f32.mrf.mxu3 }
 0x2c3   :  { %v13348_v15 = vld [vmem:[%s20442_s1 + $0x1514] sm:$0xf0]  ;;  %v11388_v23 = vor.u32 %v13416_v4, %v11387_v1  ;;  %v11611_v62 = vld [vmem:[%s20442_s1 + $0x18e8] sm:$0xf] }
 0x2c4   :  { %7394 = vmatpush.bf16.msrb.mxu0 %v11036_v21  ;;  %v11004_v21 = vor.u32 %v13320_v46, %v11003_v49  ;;  %v13380_v29 = vld [vmem:[%s20442_s1 + $0x1614] sm:$0xf0]  ;;  %v11739_v48 = vld [vmem:[%s20442_s1 + $0x19e8] sm:$0xf]  ;;  %v11116_v50 = vor.u32 %v13348_v15, %v11115_v63 }
 0x2c5   :  { %7407 = vmatpush.bf16.msrb.mxu1 %v11164_v9  ;;  %7420 = vmatpush.bf16.msrb.mxu2 %v11292_v10  ;;  %v10987_v9 = vld [vmem:[%s20442_s1 + $0x1408] sm:$0xf]  ;;  %v13316_v10 = vld [vmem:[%s20442_s1 + $0x1414] sm:$0xf0] }
 0x2c6   :  { %7433 = vmatpush.bf16.msrb.mxu3 %v11420_v53  ;;  %v11243_v53 = vld [vmem:[%s20442_s1 + $0x1608] sm:$0xf]  ;;  %v13412_v34 = vld [vmem:[%s20442_s1 + $0x1714] sm:$0xf0] }
 0x2c7   :  { %v11867_v49 = vld [vmem:[%s20442_s1 + $0x1ae8] sm:$0xf]  ;;  %v13536_v46 = vld [vmem:[%s20442_s1 + $0x1af4] sm:$0xf0]  ;;  %v11244_v52 = vor.u32 %v13380_v29, %v11243_v53  ;;  %v11372_v56 = vor.u32 %v13412_v34, %v11371_v31 }
 0x2c8   :  { %7395 = vmatpush.bf16.msrb.mxu0 %v11020_v43  ;;  %v13472_v43 = vld [vmem:[%s20442_s1 + $0x18f4] sm:$0xf0]  ;;  %v11868_v4 = vor.u32 %v13536_v46, %v11867_v49  ;;  %v11851_v63 = vld [vmem:[%s20442_s1 + $0x1ac8] sm:$0xf] }
 0x2c9   :  { %7408 = vmatpush.bf16.msrb.mxu1 %v11148_v58  ;;  %7421 = vmatpush.bf16.msrb.mxu2 %v11276_v3  ;;  %v10988_v58 = vor.u32 %v13316_v10, %v10987_v9  ;;  %v13504_v3 = vld [vmem:[%s20442_s1 + $0x19f4] sm:$0xf0]  ;;  %v11612_v57 = vor.u32 %v13472_v43, %v11611_v62  ;;  %v11723_v10 = vld [vmem:[%s20442_s1 + $0x19c8] sm:$0xf] }
 0x2ca   :  { %7434 = vmatpush.bf16.msrb.mxu3 %v11404_v13  ;;  %v11995_v13 = vld [vmem:[%s20442_s1 + $0x1be8] sm:$0xf]  ;;  %v13568_v54 = vld [vmem:[%s20442_s1 + $0x1bf4] sm:$0xf0]  ;;  %v11740_v1 = vor.u32 %v13504_v3, %v11739_v48 }
 0x2cb   :  { %v13468_v9 = vld [vmem:[%s20442_s1 + $0x18d4] sm:$0xf0]  ;;  %v11979_v53 = vld [vmem:[%s20442_s1 + $0x1bc8] sm:$0xf] }
 0x2cc   :  { %7396 = vmatpush.bf16.msrb.mxu0 %v11004_v21  ;;  %v11595_v21 = vld [vmem:[%s20442_s1 + $0x18c8] sm:$0xf]  ;;  %v13532_v15 = vld [vmem:[%s20442_s1 + $0x1ad4] sm:$0xf0] }
 0x2cd   :  { %7409 = vmatpush.bf16.msrb.mxu1 %v11132_v14  ;;  %7422 = vmatpush.bf16.msrb.mxu2 %v11260_v39  ;;  %v11996_v14 = vor.u32 %v13568_v54, %v11995_v13  ;;  %v13500_v39 = vld [vmem:[%s20442_s1 + $0x19d4] sm:$0xf0]  ;;  %v11852_v31 = vor.u32 %v13532_v15, %v11851_v63  ;;  %v11579_v34 = vld [vmem:[%s20442_s1 + $0x18a8] sm:$0xf] }
 0x2ce   :  { %7435 = vmatpush.bf16.msrb.mxu3 %v11388_v23  ;;  %v13564_v20 = vld [vmem:[%s20442_s1 + $0x1bd4] sm:$0xf0]  ;;  %v11596_v23 = vor.u32 %v13468_v9, %v11595_v21  ;;  %v11724_v29 = vor.u32 %v13500_v39, %v11723_v10  ;;  %v11707_v62 = vld [vmem:[%s20442_s1 + $0x19a8] sm:$0xf] }
 0x2cf   :  { %v13464_v60 = vld [vmem:[%s20442_s1 + $0x18b4] sm:$0xf0]  ;;  %v11980_v43 = vor.u32 %v13564_v20, %v11979_v53  ;;  %v11963_v49 = vld [vmem:[%s20442_s1 + $0x1ba8] sm:$0xf] }
 0x2d0   :  { %7397 = vmatpush.bf16.msrb.mxu0 %v10988_v58  ;;  %v13496_v48 = vld [vmem:[%s20442_s1 + $0x19b4] sm:$0xf0]  ;;  %v11835_v58 = vld [vmem:[%s20442_s1 + $0x1aa8] sm:$0xf]  ;;  %v7191_v63 = vpop.f32.mrf.mxu0 }
 0x2d1   :  { %7410 = vmatpush.bf16.msrb.mxu1 %v11116_v50  ;;  %7423 = vmatpush.bf16.msrb.mxu2 %v11244_v52  ;;  %v13528_v3 = vld [vmem:[%s20442_s1 + $0x1ab4] sm:$0xf0]  ;;  %v11580_v50 = vor.u32 %v13464_v60, %v11579_v34  ;;  %v11708_v52 = vor.u32 %v13496_v48, %v11707_v62  ;;  %v11563_v54 = vld [vmem:[%s20442_s1 + $0x1888] sm:$0xf] }
 0x2d2   :  { %7436 = vmatpush.bf16.msrb.mxu3 %v11372_v56  ;;  %v13560_v46 = vld [vmem:[%s20442_s1 + $0x1bb4] sm:$0xf0]  ;;  %v11836_v13 = vor.u32 %v13528_v3, %v11835_v58  ;;  %v11819_v21 = vld [vmem:[%s20442_s1 + $0x1a88] sm:$0xf] }
 0x2d3   :  { %7398 = vmatmul.bf16.vlgmr.msrb.gmra.mxu0 %v15118_v2  ;;  %v13460_v56 = vld [vmem:[%s20442_s1 + $0x1894] sm:$0xf0]  ;;  %v11947_v10 = vld [vmem:[%s20442_s1 + $0x1b88] sm:$0xf]  ;;  %v7204_v34 = vpop.f32.mrf.mxu1 }
 0x2d4   :  { %7442 = vmatpush.bf16.msra.mxu0 %v11612_v57  ;;  %7424 = vmatmul.bf16.vlgmr.msrb.gmra.mxu2 %v15129_v7  ;;  %v11691_v57 = vld [vmem:[%s20442_s1 + $0x1988] sm:$0xf]  ;;  %v13524_v9 = vld [vmem:[%s20442_s1 + $0x1a94] sm:$0xf0]  ;;  %v11564_v39 = vor.u32 %v13460_v56, %v11563_v54 }
 0x2d5   :  { %7455 = vmatpush.bf16.msra.mxu1 %v11740_v1  ;;  %7468 = vmatpush.bf16.msra.mxu2 %v11868_v4  ;;  %v11964_v1 = vor.u32 %v13560_v46, %v11963_v49  ;;  %v13492_v4 = vld [vmem:[%s20442_s1 + $0x1994] sm:$0xf0]  ;;  %v11820_v53 = vor.u32 %v13524_v9, %v11819_v21  ;;  %v11547_v20 = vld [vmem:[%s20442_s1 + $0x1868] sm:$0xf] }
 0x2d6   :  { %7481 = vmatpush.bf16.msra.mxu3 %v11996_v14  ;;  %7411 = vmatmul.bf16.vlgmr.msrb.gmra.mxu1 %v15131_v8  ;;  %v13556_v14 = vld [vmem:[%s20442_s1 + $0x1b94] sm:$0xf0]  ;;  %v11692_v15 = vor.u32 %v13492_v4, %v11691_v57  ;;  %v11931_v58 = vld [vmem:[%s20442_s1 + $0x1b68] sm:$0xf] }
 0x2d7   :  { %7437 = vmatmul.bf16.vlgmr.msrb.gmra.mxu3 %v15139_v11  ;;  %v11948_v60 = vor.u32 %v13556_v14, %v11947_v10  ;;  %v13488_v62 = vld [vmem:[%s20442_s1 + $0x1974] sm:$0xf0]  ;;  %v11659_v54 = vld [vmem:[%s20442_s1 + $0x1948] sm:$0xf]  ;;  %v7217_v56 = vpop.f32.mrf.mxu2 }
 0x2d8   :  { %7443 = vmatpush.bf16.msra.mxu0 %v11596_v23  ;;  %v13456_v23 = vld [vmem:[%s20442_s1 + $0x1874] sm:$0xf0]  ;;  %v11787_v4 = vld [vmem:[%s20442_s1 + $0x1a48] sm:$0xf] }
 0x2d9   :  { %7456 = vmatpush.bf16.msra.mxu1 %v11724_v29  ;;  %7469 = vmatpush.bf16.msra.mxu2 %v11852_v31  ;;  %v11675_v29 = vld [vmem:[%s20442_s1 + $0x1968] sm:$0xf]  ;;  %v7192_v31 = vadd.f32 %v7191_v63, %v18244_v47  ;;  %v13520_v48 = vld [vmem:[%s20442_s1 + $0x1a74] sm:$0xf0]  ;;  %v11548_v49 = vor.u32 %v13456_v23, %v11547_v20 }
 0x2da   :  { %7482 = vmatpush.bf16.msra.mxu3 %v11980_v43  ;;  %v11803_v43 = vld [vmem:[%s20442_s1 + $0x1a68] sm:$0xf]  ;;  %v13552_v47 = vld [vmem:[%s20442_s1 + $0x1b74] sm:$0xf0]  ;;  %v11676_v46 = vor.u32 %v13488_v62, %v11675_v29  ;;  %v7230_v10 = vpop.f32.mrf.mxu3 }
 0x2db   :  { %v7205_v3 = vadd.f32 %v7204_v34, %v7192_v31  ;;  %v11932_v57 = vor.u32 %v13552_v47, %v11931_v58  ;;  %v13516_v21 = vld [vmem:[%s20442_s1 + $0x1a54] sm:$0xf0]  ;;  %v11915_v14 = vld [vmem:[%s20442_s1 + $0x1b48] sm:$0xf] }
 0x2dc   :  { %7444 = vmatpush.bf16.msra.mxu0 %v11580_v50  ;;  %v11804_v50 = vor.u32 %v13520_v48, %v11803_v43  ;;  %v11788_v23 = vor.u32 %v13516_v21, %v11787_v4  ;;  %v11515_v29 = vld [vmem:[%s20442_s1 + $0x1828] sm:$0xf]  ;;  %v13448_v31 = vld [vmem:[%s20442_s1 + $0x1834] sm:$0xf0] }
 0x2dd   :  { %7457 = vmatpush.bf16.msra.mxu1 %v11708_v52  ;;  %7470 = vmatpush.bf16.msra.mxu2 %v11836_v13  ;;  %v11531_v52 = vld [vmem:[%s20442_s1 + $0x1848] sm:$0xf]  ;;  %v13452_v13 = vld [vmem:[%s20442_s1 + $0x1854] sm:$0xf0]  ;;  %v7218_v9 = vadd.f32 %v7217_v56, %v7205_v3 }
 0x2de   :  { %7483 = vmatpush.bf16.msra.mxu3 %v11964_v1  ;;  %v13484_v1 = vld [vmem:[%s20442_s1 + $0x1954] sm:$0xf0]  ;;  %v11532_v63 = vor.u32 %v13452_v13, %v11531_v52  ;;  %v11643_v34 = vld [vmem:[%s20442_s1 + $0x1928] sm:$0xf] }
 0x2df   :  { %v11660_v20 = vor.u32 %v13484_v1, %v11659_v54  ;;  %v13480_v43 = vld [vmem:[%s20442_s1 + $0x1934] sm:$0xf0]  ;;  %v11771_v48 = vld [vmem:[%s20442_s1 + $0x1a28] sm:$0xf]  ;;  %v7219_v1 = vpop.f32.mrf.mxu2 }
 0x2e0   :  { %7445 = vmatpush.bf16.msra.mxu0 %v11564_v39  ;;  %v13548_v39 = vld [vmem:[%s20442_s1 + $0x1b54] sm:$0xf0]  ;;  %v11899_v47 = vld [vmem:[%s20442_s1 + $0x1b28] sm:$0xf]  ;;  %v11644_v52 = vor.u32 %v13480_v43, %v11643_v34 }
 0x2e1   :  { %7458 = vmatpush.bf16.msra.mxu1 %v11692_v15  ;;  %7471 = vmatpush.bf16.msra.mxu2 %v11820_v53  ;;  %v18443_v15 = vadd.f32 %v7230_v10, %v7218_v9  ;;  %v7193_v53 = vpop.f32.mrf.mxu0  ;;  %v11916_v62 = vor.u32 %v13548_v39, %v11915_v14  ;;  %v13512_v58 = vld [vmem:[%s20442_s1 + $0x1a34] sm:$0xf0]  ;;  %v11627_v54 = vld [vmem:[%s20442_s1 + $0x1908] sm:$0xf] }
 0x2e2   :  { %7484 = vmatpush.bf16.msra.mxu3 %v11948_v60  ;;  %v7206_v60 = vpop.f32.mrf.mxu1  ;;  %v13544_v3 = vld [vmem:[%s20442_s1 + $0x1b34] sm:$0xf0]  ;;  %v11772_v13 = vor.u32 %v13512_v58, %v11771_v48  ;;  %v11883_v9 = vld [vmem:[%s20442_s1 + $0x1b08] sm:$0xf]  ;;  %v7232_v14 = vpop.f32.mrf.mxu3 }
 0x2e3   :  { %v13476_v56 = vld [vmem:[%s20442_s1 + $0x1914] sm:$0xf0]  ;;  %v11900_v4 = vor.u32 %v13544_v3, %v11899_v47  ;;  %v12123_v39 = vld [vmem:[%s20442_s1 + $0x1ce8] sm:$0xf] }
 0x2e4   :  { %7446 = vmatpush.bf16.msra.mxu0 %v11548_v49  ;;  %v11516_v49 = vor.u32 %v13448_v31, %v11515_v29  ;;  %v13508_v21 = vld [vmem:[%s20442_s1 + $0x1a14] sm:$0xf0]  ;;  %v12251_v53 = vld [vmem:[%s20442_s1 + $0x1de8] sm:$0xf]  ;;  %v11628_v34 = vor.u32 %v13476_v56, %v11627_v54 }
 0x2e5   :  { %7459 = vmatpush.bf16.msra.mxu1 %v11676_v46  ;;  %7472 = vmatpush.bf16.msra.mxu2 %v11804_v50  ;;  %v11499_v46 = vld [vmem:[%s20442_s1 + $0x1808] sm:$0xf]  ;;  %v13444_v50 = vld [vmem:[%s20442_s1 + $0x1814] sm:$0xf0] }
 0x2e6   :  { %7485 = vmatpush.bf16.msra.mxu3 %v11932_v57  ;;  %v11755_v57 = vld [vmem:[%s20442_s1 + $0x1a08] sm:$0xf]  ;;  %v13540_v10 = vld [vmem:[%s20442_s1 + $0x1b14] sm:$0xf0] }
 0x2e7   :  { %v12379_v29 = vld [vmem:[%s20442_s1 + $0x1ee8] sm:$0xf]  ;;  %v13664_v31 = vld [vmem:[%s20442_s1 + $0x1ef4] sm:$0xf0]  ;;  %v11756_v60 = vor.u32 %v13508_v21, %v11755_v57  ;;  %v11884_v48 = vor.u32 %v13540_v10, %v11883_v9 }
 0x2e8   :  { %7447 = vmatpush.bf16.msra.mxu0 %v11532_v63  ;;  %v13600_v63 = vld [vmem:[%s20442_s1 + $0x1cf4] sm:$0xf0]  ;;  %v12380_v3 = vor.u32 %v13664_v31, %v12379_v29  ;;  %v12363_v54 = vld [vmem:[%s20442_s1 + $0x1ec8] sm:$0xf] }
 0x2e9   :  { %7460 = vmatpush.bf16.msra.mxu1 %v11660_v20  ;;  %7473 = vmatpush.bf16.msra.mxu2 %v11788_v23  ;;  %v11500_v20 = vor.u32 %v13444_v50, %v11499_v46  ;;  %v13632_v23 = vld [vmem:[%s20442_s1 + $0x1df4] sm:$0xf0]  ;;  %v12124_v58 = vor.u32 %v13600_v63, %v12123_v39  ;;  %v12235_v50 = vld [vmem:[%s20442_s1 + $0x1dc8] sm:$0xf] }
 0x2ea   :  { %7486 = vmatpush.bf16.msra.mxu3 %v11916_v62  ;;  %v12507_v62 = vld [vmem:[%s20442_s1 + $0x1fe8] sm:$0xf]  ;;  %v13696_v43 = vld [vmem:[%s20442_s1 + $0x1ff4] sm:$0xf0]  ;;  %v12252_v47 = vor.u32 %v13632_v23, %v12251_v53 }
 0x2eb   :  { %v13596_v46 = vld [vmem:[%s20442_s1 + $0x1cd4] sm:$0xf0]  ;;  %v12491_v57 = vld [vmem:[%s20442_s1 + $0x1fc8] sm:$0xf] }
 0x2ec   :  { %7448 = vmatpush.bf16.msra.mxu0 %v11516_v49  ;;  %v12107_v49 = vld [vmem:[%s20442_s1 + $0x1cc8] sm:$0xf]  ;;  %v13660_v56 = vld [vmem:[%s20442_s1 + $0x1ed4] sm:$0xf0] }
 0x2ed   :  { %7461 = vmatpush.bf16.msra.mxu1 %v11644_v52  ;;  %7474 = vmatpush.bf16.msra.mxu2 %v11772_v13  ;;  %v12508_v52 = vor.u32 %v13696_v43, %v12507_v62  ;;  %v13628_v13 = vld [vmem:[%s20442_s1 + $0x1dd4] sm:$0xf0]  ;;  %v12364_v9 = vor.u32 %v13660_v56, %v12363_v54  ;;  %v12091_v10 = vld [vmem:[%s20442_s1 + $0x1ca8] sm:$0xf] }
 0x2ee   :  { %7487 = vmatpush.bf16.msra.mxu3 %v11900_v4  ;;  %v13692_v1 = vld [vmem:[%s20442_s1 + $0x1fd4] sm:$0xf0]  ;;  %v12108_v4 = vor.u32 %v13596_v46, %v12107_v49  ;;  %v12236_v21 = vor.u32 %v13628_v13, %v12235_v50  ;;  %v12219_v39 = vld [vmem:[%s20442_s1 + $0x1da8] sm:$0xf] }
 0x2ef   :  { %v13592_v14 = vld [vmem:[%s20442_s1 + $0x1cb4] sm:$0xf0]  ;;  %v12492_v63 = vor.u32 %v13692_v1, %v12491_v57  ;;  %v12475_v29 = vld [vmem:[%s20442_s1 + $0x1fa8] sm:$0xf] }
 0x2f0   :  { %7449 = vmatpush.bf16.msra.mxu0 %v11500_v20  ;;  %v13624_v53 = vld [vmem:[%s20442_s1 + $0x1db4] sm:$0xf0]  ;;  %v12347_v20 = vld [vmem:[%s20442_s1 + $0x1ea8] sm:$0xf]  ;;  %v7243_v50 = vpop.f32.mrf.mxu0 }
 0x2f1   :  { %7462 = vmatpush.bf16.msra.mxu1 %v11628_v34  ;;  %7475 = vmatpush.bf16.msra.mxu2 %v11756_v60  ;;  %v13656_v23 = vld [vmem:[%s20442_s1 + $0x1eb4] sm:$0xf0]  ;;  %v12092_v34 = vor.u32 %v13592_v14, %v12091_v10  ;;  %v12220_v60 = vor.u32 %v13624_v53, %v12219_v39  ;;  %v12075_v43 = vld [vmem:[%s20442_s1 + $0x1c88] sm:$0xf]  ;;  %v7244_v54 = vadd.f32 %v7243_v50, %v18443_v15 }
 0x2f2   :  { %7488 = vmatpush.bf16.msra.mxu3 %v11884_v48  ;;  %v13688_v31 = vld [vmem:[%s20442_s1 + $0x1fb4] sm:$0xf0]  ;;  %v12348_v62 = vor.u32 %v13656_v23, %v12347_v20  ;;  %v12331_v49 = vld [vmem:[%s20442_s1 + $0x1e88] sm:$0xf] }
 0x2f3   :  { %7450 = vmatmul.bf16.vlgmr.msra.gmra.mxu0 %v15328_v0  ;;  %v13588_v48 = vld [vmem:[%s20442_s1 + $0x1c94] sm:$0xf0]  ;;  %v7256_v57 = vpop.f32.mrf.mxu1  ;;  %v12187_v10 = vld [vmem:[%s20442_s1 + $0x1d68] sm:$0xf] }
 0x2f4   :  { %7494 = vmatpush.bf16.msrb.mxu0 %v12124_v58  ;;  %7476 = vmatmul.bf16.vlgmr.msra.gmra.mxu2 %v15339_v5  ;;  %v12203_v58 = vld [vmem:[%s20442_s1 + $0x1d88] sm:$0xf]  ;;  %v13652_v46 = vld [vmem:[%s20442_s1 + $0x1e94] sm:$0xf0]  ;;  %v12076_v56 = vor.u32 %v13588_v48, %v12075_v43  ;;  %v7257_v14 = vadd.f32 %v7256_v57, %v7244_v54 }
 0x2f5   :  { %7507 = vmatpush.bf16.msrb.mxu1 %v12252_v47  ;;  %7520 = vmatpush.bf16.msrb.mxu2 %v12380_v3  ;;  %v12476_v47 = vor.u32 %v13688_v31, %v12475_v29  ;;  %v13620_v3 = vld [vmem:[%s20442_s1 + $0x1d94] sm:$0xf0]  ;;  %v12443_v20 = vld [vmem:[%s20442_s1 + $0x1f68] sm:$0xf] }
 0x2f6   :  { %7533 = vmatpush.bf16.msrb.mxu3 %v12508_v52  ;;  %7463 = vmatmul.bf16.vlgmr.msra.gmra.mxu1 %v15341_v6  ;;  %v12459_v52 = vld [vmem:[%s20442_s1 + $0x1f88] sm:$0xf]  ;;  %v13684_v13 = vld [vmem:[%s20442_s1 + $0x1f94] sm:$0xf0]  ;;  %v12204_v1 = vor.u32 %v13620_v3, %v12203_v58 }
 0x2f7   :  { %7489 = vmatmul.bf16.vlgmr.msra.gmra.mxu3 %v15349_v12  ;;  %v12460_v15 = vor.u32 %v13684_v13, %v12459_v52  ;;  %v13616_v39 = vld [vmem:[%s20442_s1 + $0x1d74] sm:$0xf0]  ;;  %v12171_v43 = vld [vmem:[%s20442_s1 + $0x1d48] sm:$0xf]  ;;  %v7269_v58 = vpop.f32.mrf.mxu2 }
 0x2f8   :  { %7495 = vmatpush.bf16.msrb.mxu0 %v12108_v4  ;;  %v12332_v4 = vor.u32 %v13652_v46, %v12331_v49  ;;  %v13648_v53 = vld [vmem:[%s20442_s1 + $0x1e74] sm:$0xf0]  ;;  %v12188_v31 = vor.u32 %v13616_v39, %v12187_v10  ;;  %v12299_v3 = vld [vmem:[%s20442_s1 + $0x1e48] sm:$0xf]  ;;  %v7270_v46 = vadd.f32 %v7269_v58, %v7257_v14  ;;  %v7245_v54 = vpop.f32.mrf.mxu0 }
 0x2f9   :  { %7508 = vmatpush.bf16.msrb.mxu1 %v12236_v21  ;;  %7521 = vmatpush.bf16.msrb.mxu2 %v12364_v9  ;;  %v12059_v21 = vld [vmem:[%s20442_s1 + $0x1c68] sm:$0xf]  ;;  %v13584_v9 = vld [vmem:[%s20442_s1 + $0x1c74] sm:$0xf0]  ;;  %v12734_v54 = vld [vmem:[%s20442_s1 + $0x1ec] sm:$0xf] }
 0x2fa   :  { %7534 = vmatpush.bf16.msrb.mxu3 %v12492_v63  ;;  %v12315_v63 = vld [vmem:[%s20442_s1 + $0x1e68] sm:$0xf]  ;;  %v13680_v23 = vld [vmem:[%s20442_s1 + $0x1f74] sm:$0xf0]  ;;  %v12060_v29 = vor.u32 %v13584_v9, %v12059_v21  ;;  %v7282_v50 = vpop.f32.mrf.mxu3 }
 0x2fb   :  { %v12444_v48 = vor.u32 %v13680_v23, %v12443_v20  ;;  %v13644_v49 = vld [vmem:[%s20442_s1 + $0x1e54] sm:$0xf0]  ;;  %v12427_v52 = vld [vmem:[%s20442_s1 + $0x1f48] sm:$0xf]  ;;  %v7258_v57 = vpop.f32.mrf.mxu1 }
 0x2fc   :  { %7496 = vmatpush.bf16.msrb.mxu0 %v12092_v34  ;;  %v12316_v34 = vor.u32 %v13648_v53, %v12315_v63  ;;  %v13676_v13 = vld [vmem:[%s20442_s1 + $0x1f54] sm:$0xf0]  ;;  %v12300_v21 = vor.u32 %v13644_v49, %v12299_v3  ;;  %v12027_v9 = vld [vmem:[%s20442_s1 + $0x1c28] sm:$0xf] }
 0x2fd   :  { %7509 = vmatpush.bf16.msrb.mxu1 %v12220_v60  ;;  %7522 = vmatpush.bf16.msrb.mxu2 %v12348_v62  ;;  %v12043_v60 = vld [vmem:[%s20442_s1 + $0x1c48] sm:$0xf]  ;;  %v13580_v62 = vld [vmem:[%s20442_s1 + $0x1c54] sm:$0xf0]  ;;  %v12428_v14 = vor.u32 %v13676_v13, %v12427_v52  ;;  %v12702_v52 = vld [vmem:[%s20442_s1 + $0xec] sm:$0xf] }
 0x2fe   :  { %7535 = vmatpush.bf16.msrb.mxu3 %v12476_v47  ;;  %v13612_v47 = vld [vmem:[%s20442_s1 + $0x1d54] sm:$0xf0]  ;;  %v12283_v63 = vld [vmem:[%s20442_s1 + $0x1e28] sm:$0xf]  ;;  %v8541_v13 = vld [vmem:[%s20442_s1 + $0xf8] sm:$0xf0] }
 0x2ff   :  { %v13576_v10 = vld [vmem:[%s20442_s1 + $0x1c34] sm:$0xf0]  ;;  %v12411_v20 = vld [vmem:[%s20442_s1 + $0x1f28] sm:$0xf] }
 0x300   :  { %7497 = vmatpush.bf16.msrb.mxu0 %v12076_v56  ;;  %v12044_v56 = vor.u32 %v13580_v62, %v12043_v60  ;;  %v13608_v39 = vld [vmem:[%s20442_s1 + $0x1d34] sm:$0xf0]  ;;  %v12267_v58 = vld [vmem:[%s20442_s1 + $0x1e08] sm:$0xf] }
 0x301   :  { %7510 = vmatpush.bf16.msrb.mxu1 %v12204_v1  ;;  %7523 = vmatpush.bf16.msrb.mxu2 %v12332_v4  ;;  %v18642_v1 = vadd.f32 %v7282_v50, %v7270_v46  ;;  %v12172_v4 = vor.u32 %v13612_v47, %v12171_v43  ;;  %v13640_v53 = vld [vmem:[%s20442_s1 + $0x1e34] sm:$0xf0]  ;;  %v12139_v43 = vld [vmem:[%s20442_s1 + $0x1d08] sm:$0xf]  ;;  %v7271_v50 = vpop.f32.mrf.mxu2 }
 0x302   :  { %7536 = vmatpush.bf16.msrb.mxu3 %v12460_v15  ;;  %v12155_v15 = vld [vmem:[%s20442_s1 + $0x1d28] sm:$0xf]  ;;  %v13672_v23 = vld [vmem:[%s20442_s1 + $0x1f34] sm:$0xf0]  ;;  %v12284_v62 = vor.u32 %v13640_v53, %v12283_v63  ;;  %v8544_v53 = vor.u32 %v12702_v52, %v8541_v13  ;;  %v12694_v50 = vld [vmem:[%s20442_s1 + $0xac] sm:$0xf] }
 0x303   :  { %v12156_v60 = vor.u32 %v13608_v39, %v12155_v15  ;;  %v12412_v47 = vor.u32 %v13672_v23, %v12411_v20  ;;  %v13636_v3 = vld [vmem:[%s20442_s1 + $0x1e14] sm:$0xf0]  ;;  %v12395_v49 = vld [vmem:[%s20442_s1 + $0x1f08] sm:$0xf]  ;;  %v8925_v39 = vld [vmem:[%s20442_s1 + $0x3f8] sm:$0xf0] }
 0x304   :  { %7498 = vmatpush.bf16.msrb.mxu0 %v12060_v29  ;;  %v12028_v29 = vor.u32 %v13576_v10, %v12027_v9  ;;  %v13668_v46 = vld [vmem:[%s20442_s1 + $0x1f14] sm:$0xf0]  ;;  %v8797_v9 = vld [vmem:[%s20442_s1 + $0x2f8] sm:$0xf0]  ;;  %v12268_v15 = vor.u32 %v13636_v3, %v12267_v58  ;;  %v12794_v58 = vld [vmem:[%s20442_s1 + $0x3cc] sm:$0xf] }
 0x305   :  { %7511 = vmatpush.bf16.msrb.mxu1 %v12188_v31  ;;  %7524 = vmatpush.bf16.msrb.mxu2 %v12316_v34  ;;  %v12011_v31 = vld [vmem:[%s20442_s1 + $0x1c08] sm:$0xf]  ;;  %v13572_v34 = vld [vmem:[%s20442_s1 + $0x1c14] sm:$0xf0]  ;;  %v12396_v63 = vor.u32 %v13668_v46, %v12395_v49  ;;  %v8509_v52 = vld [vmem:[%s20442_s1 + $0xb8] sm:$0xf0] }
 0x306   :  { %7537 = vmatpush.bf16.msrb.mxu3 %v12444_v48  ;;  %v13604_v48 = vld [vmem:[%s20442_s1 + $0x1d14] sm:$0xf0]  ;;  %v12012_v57 = vor.u32 %v13572_v34, %v12011_v31  ;;  %v8525_v31 = vld [vmem:[%s20442_s1 + $0xd8] sm:$0xf0]  ;;  %v12730_v34 = vld [vmem:[%s20442_s1 + $0x1cc] sm:$0xf] }
 0x307   :  { %v12140_v10 = vor.u32 %v13604_v48, %v12139_v43  ;;  %v12762_v43 = vld [vmem:[%s20442_s1 + $0x2cc] sm:$0xf]  ;;  %v8781_v48 = vld [vmem:[%s20442_s1 + $0x2d8] sm:$0xf0] }
 0x308   :  { %7499 = vmatpush.bf16.msrb.mxu0 %v12044_v56  ;;  %v7284_v56 = vpop.f32.mrf.mxu3  ;;  %v8784_v46 = vor.u32 %v12762_v43, %v8781_v48  ;;  %v12726_v13 = vld [vmem:[%s20442_s1 + $0x1ac] sm:$0xf] }
 0x309   :  { %7512 = vmatpush.bf16.msrb.mxu1 %v12172_v4  ;;  %7525 = vmatpush.bf16.msrb.mxu2 %v12300_v21  ;;  %v8669_v4 = vld [vmem:[%s20442_s1 + $0x1f8] sm:$0xf0]  ;;  %v12766_v21 = vld [vmem:[%s20442_s1 + $0x2ec] sm:$0xf] }
 0x30a   :  { %7538 = vmatpush.bf16.msrb.mxu3 %v12428_v14  ;;  %v12798_v14 = vld [vmem:[%s20442_s1 + $0x3ec] sm:$0xf]  ;;  %v8672_v20 = vor.u32 %v12734_v54, %v8669_v4  ;;  %v8800_v23 = vor.u32 %v12766_v21, %v8797_v9  ;;  %v8637_v56 = vld [vmem:[%s20442_s1 + $0x1b8] sm:$0xf0] }
 0x30b   :  { %v8765_v4 = vld [vmem:[%s20442_s1 + $0x2b8] sm:$0xf0]  ;;  %v12790_v21 = vld [vmem:[%s20442_s1 + $0x3ac] sm:$0xf] }
 0x30c   :  { %7500 = vmatpush.bf16.msrb.mxu0 %v12028_v29  ;;  %v12698_v29 = vld [vmem:[%s20442_s1 + $0xcc] sm:$0xf]  ;;  %v8893_v9 = vld [vmem:[%s20442_s1 + $0x3b8] sm:$0xf0] }
 0x30d   :  { %7513 = vmatpush.bf16.msrb.mxu1 %v12156_v60  ;;  %7526 = vmatpush.bf16.msrb.mxu2 %v12284_v62  ;;  %v8928_v60 = vor.u32 %v12798_v14, %v8925_v39  ;;  %v8653_v62 = vld [vmem:[%s20442_s1 + $0x1d8] sm:$0xf0]  ;;  %v8528_v3 = vor.u32 %v12698_v29, %v8525_v31  ;;  %v12690_v39 = vld [vmem:[%s20442_s1 + $0x8c] sm:$0xf] }
 0x30e   :  { %7539 = vmatpush.bf16.msrb.mxu3 %v12412_v47  ;;  %v8909_v47 = vld [vmem:[%s20442_s1 + $0x3d8] sm:$0xf0]  ;;  %v8656_v49 = vor.u32 %v12730_v34, %v8653_v62  ;;  %v12754_v29 = vld [vmem:[%s20442_s1 + $0x28c] sm:$0xf] }
 0x30f   :  { %v8912_v54 = vor.u32 %v12794_v58, %v8909_v47  ;;  %v8749_v31 = vld [vmem:[%s20442_s1 + $0x298] sm:$0xf0] }
 0x310   :  { %7501 = vmatpush.bf16.msrb.mxu0 %v12012_v57  ;;  %v12758_v57 = vld [vmem:[%s20442_s1 + $0x2ac] sm:$0xf]  ;;  %v7295_v34 = vpop.f32.mrf.mxu0  ;;  %v8877_v62 = vld [vmem:[%s20442_s1 + $0x398] sm:$0xf0] }
 0x311   :  { %7514 = vmatpush.bf16.msrb.mxu1 %v12140_v10  ;;  %7527 = vmatpush.bf16.msrb.mxu2 %v12268_v15  ;;  %v8512_v10 = vor.u32 %v12694_v50, %v8509_v52  ;;  %v8640_v15 = vor.u32 %v12726_v13, %v8637_v56  ;;  %v8768_v14 = vor.u32 %v12758_v57, %v8765_v4  ;;  %v12718_v50 = vld [vmem:[%s20442_s1 + $0x16c] sm:$0xf]  ;;  %v8605_v13 = vld [vmem:[%s20442_s1 + $0x178] sm:$0xf0] }
 0x312   :  { %7540 = vmatpush.bf16.msrb.mxu3 %v12396_v63  ;;  %v8493_v63 = vld [vmem:[%s20442_s1 + $0x98] sm:$0xf0]  ;;  %v7296_v43 = vadd.f32 %v7295_v34, %v18642_v1  ;;  %v12782_v57 = vld [vmem:[%s20442_s1 + $0x36c] sm:$0xf] }
 0x313   :  { %7502 = vmatmul.bf16.vlgmr.msrb.gmra.mxu0 %v15535_v61  ;;  %v8496_v48 = vor.u32 %v12690_v39, %v8493_v63  ;;  %v7308_v58 = vpop.f32.mrf.mxu1  ;;  %v8733_v56 = vld [vmem:[%s20442_s1 + $0x278] sm:$0xf0]  ;;  %v12714_v39 = vld [vmem:[%s20442_s1 + $0x14c] sm:$0xf] }
 0x314   :  { %7546 = vmatpush.bf16.msra.mxu0 %v8544_v53  ;;  %7528 = vmatmul.bf16.vlgmr.msrb.gmra.mxu2 %v15546_v16  ;;  %v12722_v53 = vld [vmem:[%s20442_s1 + $0x18c] sm:$0xf]  ;;  %v7309_v52 = vadd.f32 %v7308_v58, %v7296_v43  ;;  %v8861_v4 = vld [vmem:[%s20442_s1 + $0x378] sm:$0xf0] }
 0x315   :  { %7559 = vmatpush.bf16.msra.mxu1 %v8672_v20  ;;  %7572 = vmatpush.bf16.msra.mxu2 %v8800_v23  ;;  %v8896_v20 = vor.u32 %v12790_v21, %v8893_v9  ;;  %v8621_v23 = vld [vmem:[%s20442_s1 + $0x198] sm:$0xf0]  ;;  %v8608_v9 = vor.u32 %v12718_v50, %v8605_v13  ;;  %v8864_v63 = vor.u32 %v12782_v57, %v8861_v4  ;;  %v12774_v57 = vld [vmem:[%s20442_s1 + $0x32c] sm:$0xf] }
 0x316   :  { %7585 = vmatpush.bf16.msra.mxu3 %v8928_v60  ;;  %7515 = vmatmul.bf16.vlgmr.msrb.gmra.mxu1 %v15548_v17  ;;  %v12786_v60 = vld [vmem:[%s20442_s1 + $0x38c] sm:$0xf]  ;;  %v8624_v47 = vor.u32 %v12722_v53, %v8621_v23  ;;  %v8445_v50 = vld [vmem:[%s20442_s1 + $0x38] sm:$0xf0] }
 0x317   :  { %7541 = vmatmul.bf16.vlgmr.msrb.gmra.mxu3 %v15556_v25  ;;  %v8880_v1 = vor.u32 %v12786_v60, %v8877_v62  ;;  %v7321_v53 = vpop.f32.mrf.mxu2  ;;  %v12746_v23 = vld [vmem:[%s20442_s1 + $0x24c] sm:$0xf]  ;;  %v8845_v62 = vld [vmem:[%s20442_s1 + $0x358] sm:$0xf0] }
 0x318   :  { %7547 = vmatpush.bf16.msra.mxu0 %v8528_v3  ;;  %v8752_v3 = vor.u32 %v12754_v29, %v8749_v31  ;;  %v8717_v29 = vld [vmem:[%s20442_s1 + $0x258] sm:$0xf0]  ;;  %v7322_v31 = vadd.f32 %v7321_v53, %v7309_v52  ;;  %v12778_v60 = vld [vmem:[%s20442_s1 + $0x34c] sm:$0xf]  ;;  %v7297_v43 = vpop.f32.mrf.mxu0 }
 0x319   :  { %7560 = vmatpush.bf16.msra.mxu1 %v8656_v49  ;;  %7573 = vmatpush.bf16.msra.mxu2 %v8784_v46  ;;  %v12686_v49 = vld [vmem:[%s20442_s1 + $0x6c] sm:$0xf]  ;;  %v8477_v46 = vld [vmem:[%s20442_s1 + $0x78] sm:$0xf0]  ;;  %v8848_v52 = vor.u32 %v12778_v60, %v8845_v62 }
 0x31a   :  { %7586 = vmatpush.bf16.msra.mxu3 %v8912_v54  ;;  %v12750_v54 = vld [vmem:[%s20442_s1 + $0x26c] sm:$0xf]  ;;  %v8480_v21 = vor.u32 %v12686_v49, %v8477_v46  ;;  %v7334_v34 = vpop.f32.mrf.mxu3  ;;  %v8720_v49 = vor.u32 %v12746_v23, %v8717_v29  ;;  %v8573_v13 = vld [vmem:[%s20442_s1 + $0x138] sm:$0xf0] }
 0x31b   :  { %v7310_v58 = vpop.f32.mrf.mxu1  ;;  %v12678_v46 = vld [vmem:[%s20442_s1 + $0x2c] sm:$0xf]  ;;  %v8829_v4 = vld [vmem:[%s20442_s1 + $0x338] sm:$0xf0] }
 0x31c   :  { %7548 = vmatpush.bf16.msra.mxu0 %v8512_v10  ;;  %v8736_v10 = vor.u32 %v12750_v54, %v8733_v56  ;;  %v12742_v54 = vld [vmem:[%s20442_s1 + $0x22c] sm:$0xf]  ;;  %v8701_v56 = vld [vmem:[%s20442_s1 + $0x238] sm:$0xf0] }
 0x31d   :  { %7561 = vmatpush.bf16.msra.mxu1 %v8640_v15  ;;  %7574 = vmatpush.bf16.msra.mxu2 %v8768_v14  ;;  %v12682_v15 = vld [vmem:[%s20442_s1 + $0x4c] sm:$0xf]  ;;  %v8461_v14 = vld [vmem:[%s20442_s1 + $0x58] sm:$0xf0] }
 0x31e   :  { %7587 = vmatpush.bf16.msra.mxu3 %v8896_v20  ;;  %v8589_v20 = vld [vmem:[%s20442_s1 + $0x158] sm:$0xf0]  ;;  %v12738_v53 = vld [vmem:[%s20442_s1 + $0x20c] sm:$0xf] }
 0x31f   :  { %v8685_v23 = vld [vmem:[%s20442_s1 + $0x218] sm:$0xf0]  ;;  %v12770_v29 = vld [vmem:[%s20442_s1 + $0x30c] sm:$0xf] }
 0x320   :  { %7549 = vmatpush.bf16.msra.mxu0 %v8496_v48  ;;  %v8464_v48 = vor.u32 %v12682_v15, %v8461_v14  ;;  %v8704_v14 = vor.u32 %v12742_v54, %v8701_v56  ;;  %v12830_v60 = vld [vmem:[%s20442_s1 + $0x4ec] sm:$0xf]  ;;  %v9053_v62 = vld [vmem:[%s20442_s1 + $0x4f8] sm:$0xf0] }
 0x321   :  { %7562 = vmatpush.bf16.msra.mxu1 %v8624_v47  ;;  %7575 = vmatpush.bf16.msra.mxu2 %v8752_v3  ;;  %v18841_v47 = vadd.f32 %v7334_v34, %v7322_v31  ;;  %v8592_v3 = vor.u32 %v12714_v39, %v8589_v20  ;;  %v12706_v39 = vld [vmem:[%s20442_s1 + $0x10c] sm:$0xf]  ;;  %v8832_v20 = vor.u32 %v12774_v57, %v8829_v4  ;;  %v8813_v31 = vld [vmem:[%s20442_s1 + $0x318] sm:$0xf0]  ;;  %v7323_v34 = vpop.f32.mrf.mxu2 }
 0x322   :  { %7588 = vmatpush.bf16.msra.mxu3 %v8880_v1  ;;  %v12710_v1 = vld [vmem:[%s20442_s1 + $0x12c] sm:$0xf]  ;;  %v8816_v54 = vor.u32 %v12770_v29, %v8813_v31  ;;  %v9056_v56 = vor.u32 %v12830_v60, %v9053_v62  ;;  %v9021_v60 = vld [vmem:[%s20442_s1 + $0x4b8] sm:$0xf0] }
 0x323   :  { %v8576_v15 = vor.u32 %v12710_v1, %v8573_v13  ;;  %v12862_v43 = vld [vmem:[%s20442_s1 + $0x5ec] sm:$0xf]  ;;  %v8688_v1 = vor.u32 %v12738_v53, %v8685_v23  ;;  %v9437_v13 = vld [vmem:[%s20442_s1 + $0x7f8] sm:$0xf0] }
 0x324   :  { %7550 = vmatpush.bf16.msra.mxu0 %v8480_v21  ;;  %v8448_v21 = vor.u32 %v12678_v46, %v8445_v50  ;;  %v9309_v46 = vld [vmem:[%s20442_s1 + $0x6f8] sm:$0xf0]  ;;  %v12922_v53 = vld [vmem:[%s20442_s1 + $0x7cc] sm:$0xf] }
 0x325   :  { %7563 = vmatpush.bf16.msra.mxu1 %v8608_v9  ;;  %7576 = vmatpush.bf16.msra.mxu2 %v8736_v10  ;;  %v12674_v9 = vld [vmem:[%s20442_s1 + $0xc] sm:$0xf]  ;;  %v8429_v10 = vld [vmem:[%s20442_s1 + $0x18] sm:$0xf0] }
 0x326   :  { %7589 = vmatpush.bf16.msra.mxu3 %v8864_v63  ;;  %v8557_v63 = vld [vmem:[%s20442_s1 + $0x118] sm:$0xf0]  ;;  %v8432_v58 = vor.u32 %v12674_v9, %v8429_v10  ;;  %v12858_v10 = vld [vmem:[%s20442_s1 + $0x5cc] sm:$0xf] }
 0x327   :  { %v8560_v50 = vor.u32 %v12706_v39, %v8557_v63  ;;  %v9037_v9 = vld [vmem:[%s20442_s1 + $0x4d8] sm:$0xf0]  ;;  %v12890_v39 = vld [vmem:[%s20442_s1 + $0x6cc] sm:$0xf] }
 0x328   :  { %7551 = vmatpush.bf16.msra.mxu0 %v8464_v48  ;;  %v7336_v48 = vpop.f32.mrf.mxu3  ;;  %v9293_v63 = vld [vmem:[%s20442_s1 + $0x6d8] sm:$0xf0]  ;;  %v12822_v34 = vld [vmem:[%s20442_s1 + $0x4ac] sm:$0xf] }
 0x329   :  { %7564 = vmatpush.bf16.msra.mxu1 %v8592_v3  ;;  %7577 = vmatpush.bf16.msra.mxu2 %v8720_v49  ;;  %v9181_v3 = vld [vmem:[%s20442_s1 + $0x5f8] sm:$0xf0]  ;;  %v12894_v49 = vld [vmem:[%s20442_s1 + $0x6ec] sm:$0xf]  ;;  %v9296_v31 = vor.u32 %v12890_v39, %v9293_v63 }
 0x32a   :  { %7590 = vmatpush.bf16.msra.mxu3 %v8848_v52  ;;  %v12926_v52 = vld [vmem:[%s20442_s1 + $0x7ec] sm:$0xf]  ;;  %v9184_v57 = vor.u32 %v12862_v43, %v9181_v3  ;;  %v9312_v4 = vor.u32 %v12894_v49, %v9309_v46  ;;  %v9149_v48 = vld [vmem:[%s20442_s1 + $0x5b8] sm:$0xf0] }
 0x32b   :  { %v12854_v62 = vld [vmem:[%s20442_s1 + $0x5ac] sm:$0xf]  ;;  %v9277_v3 = vld [vmem:[%s20442_s1 + $0x6b8] sm:$0xf0] }
 0x32c   :  { %7552 = vmatpush.bf16.msra.mxu0 %v8448_v21  ;;  %v12826_v21 = vld [vmem:[%s20442_s1 + $0x4cc] sm:$0xf]  ;;  %v9405_v46 = vld [vmem:[%s20442_s1 + $0x7b8] sm:$0xf0] }
 0x32d   :  { %7565 = vmatpush.bf16.msra.mxu1 %v8576_v15  ;;  %7578 = vmatpush.bf16.msra.mxu2 %v8704_v14  ;;  %v9440_v15 = vor.u32 %v12926_v52, %v9437_v13  ;;  %v9165_v14 = vld [vmem:[%s20442_s1 + $0x5d8] sm:$0xf0]  ;;  %v9040_v23 = vor.u32 %v12826_v21, %v9037_v9  ;;  %v12918_v49 = vld [vmem:[%s20442_s1 + $0x7ac] sm:$0xf] }
 0x32e   :  { %7591 = vmatpush.bf16.msra.mxu3 %v8832_v20  ;;  %v9421_v20 = vld [vmem:[%s20442_s1 + $0x7d8] sm:$0xf0]  ;;  %v9168_v29 = vor.u32 %v12858_v10, %v9165_v14  ;;  %v12818_v52 = vld [vmem:[%s20442_s1 + $0x48c] sm:$0xf] }
 0x32f   :  { %v9424_v43 = vor.u32 %v12922_v53, %v9421_v20  ;;  %v9005_v13 = vld [vmem:[%s20442_s1 + $0x498] sm:$0xf0]  ;;  %v12814_v63 = vld [vmem:[%s20442_s1 + $0x46c] sm:$0xf] }
 0x330   :  { %7553 = vmatpush.bf16.msra.mxu0 %v8432_v58  ;;  %v12886_v58 = vld [vmem:[%s20442_s1 + $0x6ac] sm:$0xf]  ;;  %v9389_v21 = vld [vmem:[%s20442_s1 + $0x798] sm:$0xf0]  ;;  %v9008_v10 = vor.u32 %v12818_v52, %v9005_v13 }
 0x331   :  { %7566 = vmatpush.bf16.msra.mxu1 %v8560_v50  ;;  %7579 = vmatpush.bf16.msra.mxu2 %v8688_v1  ;;  %v9024_v50 = vor.u32 %v12822_v34, %v9021_v60  ;;  %v9152_v1 = vor.u32 %v12854_v62, %v9149_v48  ;;  %v8989_v53 = vld [vmem:[%s20442_s1 + $0x478] sm:$0xf0]  ;;  %v12846_v20 = vld [vmem:[%s20442_s1 + $0x56c] sm:$0xf] }
 0x332   :  { %7592 = vmatpush.bf16.msra.mxu3 %v8816_v54  ;;  %v12882_v54 = vld [vmem:[%s20442_s1 + $0x68c] sm:$0xf]  ;;  %v9245_v34 = vld [vmem:[%s20442_s1 + $0x678] sm:$0xf0] }
 0x333   :  { %7554 = vmatmul.bf16.vlgmr.msra.gmra.mxu0 %v14132_v27  ;;  %v12850_v27 = vld [vmem:[%s20442_s1 + $0x58c] sm:$0xf]  ;;  %v9373_v62 = vld [vmem:[%s20442_s1 + $0x778] sm:$0xf0] }
 0x334   :  { %7598 = vmatpush.bf16.msrb.mxu0 %v9056_v56  ;;  %7580 = vmatmul.bf16.vlgmr.msra.gmra.mxu2 %v14130_v26  ;;  %v9280_v26 = vor.u32 %v12886_v58, %v9277_v3  ;;  %v9261_v56 = vld [vmem:[%s20442_s1 + $0x698] sm:$0xf0]  ;;  %v12910_v60 = vld [vmem:[%s20442_s1 + $0x76c] sm:$0xf] }
 0x335   :  { %7611 = vmatpush.bf16.msrb.mxu1 %v9184_v57  ;;  %7624 = vmatpush.bf16.msrb.mxu2 %v9312_v4  ;;  %v7347_v57 = vpop.f32.mrf.mxu0  ;;  %v12914_v4 = vld [vmem:[%s20442_s1 + $0x78c] sm:$0xf]  ;;  %v9264_v39 = vor.u32 %v12882_v54, %v9261_v56  ;;  %v9229_v13 = vld [vmem:[%s20442_s1 + $0x658] sm:$0xf0] }
 0x336   :  { %7637 = vmatpush.bf16.msrb.mxu3 %v9440_v15  ;;  %7567 = vmatmul.bf16.vlgmr.msra.gmra.mxu1 %v14142_v33  ;;  %v9133_v33 = vld [vmem:[%s20442_s1 + $0x598] sm:$0xf0]  ;;  %v7348_v9 = vadd.f32 %v7347_v57, %v18841_v47  ;;  %v7360_v15 = vpop.f32.mrf.mxu1  ;;  %v9392_v47 = vor.u32 %v12914_v4, %v9389_v21  ;;  %v12810_v3 = vld [vmem:[%s20442_s1 + $0x44c] sm:$0xf] }
 0x337   :  { %7593 = vmatmul.bf16.vlgmr.msra.gmra.mxu3 %v14140_v32  ;;  %v9408_v32 = vor.u32 %v12918_v49, %v9405_v46  ;;  %v9136_v14 = vor.u32 %v12850_v27, %v9133_v33  ;;  %v8973_v49 = vld [vmem:[%s20442_s1 + $0x458] sm:$0xf0]  ;;  %v12842_v46 = vld [vmem:[%s20442_s1 + $0x54c] sm:$0xf] }
 0x338   :  { %7599 = vmatpush.bf16.msrb.mxu0 %v9040_v23  ;;  %v7361_v23 = vadd.f32 %v7360_v15, %v7348_v9  ;;  %v12874_v52 = vld [vmem:[%s20442_s1 + $0x64c] sm:$0xf]  ;;  %v9357_v54 = vld [vmem:[%s20442_s1 + $0x758] sm:$0xf0]  ;;  %v8976_v57 = vor.u32 %v12810_v3, %v8973_v49 }
 0x339   :  { %7612 = vmatpush.bf16.msrb.mxu1 %v9168_v29  ;;  %7625 = vmatpush.bf16.msrb.mxu2 %v9296_v31  ;;  %v9117_v29 = vld [vmem:[%s20442_s1 + $0x578] sm:$0xf0]  ;;  %v12878_v31 = vld [vmem:[%s20442_s1 + $0x66c] sm:$0xf] }
 0x33a   :  { %7638 = vmatpush.bf16.msrb.mxu3 %v9424_v43  ;;  %v8992_v43 = vor.u32 %v12814_v63, %v8989_v53  ;;  %v9120_v48 = vor.u32 %v12846_v20, %v9117_v29  ;;  %v9248_v58 = vor.u32 %v12878_v31, %v9245_v34  ;;  %v12906_v33 = vld [vmem:[%s20442_s1 + $0x74c] sm:$0xf]  ;;  %v9085_v53 = vld [vmem:[%s20442_s1 + $0x538] sm:$0xf0] }
 0x33b   :  { %v12806_v15 = vld [vmem:[%s20442_s1 + $0x42c] sm:$0xf]  ;;  %v9360_v63 = vor.u32 %v12906_v33, %v9357_v54  ;;  %v9341_v29 = vld [vmem:[%s20442_s1 + $0x738] sm:$0xf0] }
 0x33c   :  { %7600 = vmatpush.bf16.msrb.mxu0 %v9024_v50  ;;  %v9376_v50 = vor.u32 %v12910_v60, %v9373_v62  ;;  %v12870_v20 = vld [vmem:[%s20442_s1 + $0x62c] sm:$0xf]  ;;  %v8941_v60 = vld [vmem:[%s20442_s1 + $0x418] sm:$0xf0] }
 0x33d   :  { %7613 = vmatpush.bf16.msrb.mxu1 %v9152_v1  ;;  %7626 = vmatpush.bf16.msrb.mxu2 %v9280_v26  ;;  %v7373_v1 = vpop.f32.mrf.mxu2  ;;  %v9101_v26 = vld [vmem:[%s20442_s1 + $0x558] sm:$0xf0]  ;;  %v7349_v56 = vpop.f32.mrf.mxu0  ;;  %v12802_v34 = vld [vmem:[%s20442_s1 + $0x40c] sm:$0xf] }
 0x33e   :  { %7639 = vmatpush.bf16.msrb.mxu3 %v9408_v32  ;;  %v7374_v27 = vadd.f32 %v7373_v1, %v7361_v23  ;;  %v7386_v32 = vpop.f32.mrf.mxu3  ;;  %v7362_v4 = vpop.f32.mrf.mxu1  ;;  %v9104_v9 = vor.u32 %v12842_v46, %v9101_v26  ;;  %v12902_v23 = vld [vmem:[%s20442_s1 + $0x72c] sm:$0xf]  ;;  %v9197_v46 = vld [vmem:[%s20442_s1 + $0x618] sm:$0xf0]  ;;  %v8944_v33 = vor.u32 %v12802_v34, %v8941_v60 }
 0x33f   :  { %v12866_v3 = vld [vmem:[%s20442_s1 + $0x60c] sm:$0xf]  ;;  %v9344_v49 = vor.u32 %v12902_v23, %v9341_v29  ;;  %v9325_v1 = vld [vmem:[%s20442_s1 + $0x718] sm:$0xf0] }
 0x340   :  { %7601 = vmatpush.bf16.msrb.mxu0 %v9008_v10  ;;  %v19040_v21 = vadd.f32 %v7386_v32, %v7374_v27  ;;  %v9232_v10 = vor.u32 %v12874_v52, %v9229_v13  ;;  %v12958_v52 = vld [vmem:[%s20442_s1 + $0x8ec] sm:$0xf]  ;;  %v9565_v13 = vld [vmem:[%s20442_s1 + $0x8f8] sm:$0xf0] }
 0x341   :  { %7614 = vmatpush.bf16.msrb.mxu1 %v9136_v14  ;;  %7627 = vmatpush.bf16.msrb.mxu2 %v9264_v39  ;;  %v8957_v14 = vld [vmem:[%s20442_s1 + $0x438] sm:$0xf0]  ;;  %v12838_v39 = vld [vmem:[%s20442_s1 + $0x52c] sm:$0xf] }
 0x342   :  { %7640 = vmatpush.bf16.msrb.mxu3 %v9392_v47  ;;  %v9213_v47 = vld [vmem:[%s20442_s1 + $0x638] sm:$0xf0]  ;;  %v8960_v31 = vor.u32 %v12806_v15, %v8957_v14  ;;  %v9088_v62 = vor.u32 %v12838_v39, %v9085_v53  ;;  %v12990_v27 = vld [vmem:[%s20442_s1 + $0x9ec] sm:$0xf]  ;;  %v9568_v39 = vor.u32 %v12958_v52, %v9565_v13 }
 0x343   :  { %v9693_v54 = vld [vmem:[%s20442_s1 + $0x9f8] sm:$0xf0]  ;;  %v13022_v56 = vld [vmem:[%s20442_s1 + $0xaec] sm:$0xf] }
 0x344   :  { %7602 = vmatpush.bf16.msrb.mxu0 %v8992_v43  ;;  %v9216_v43 = vor.u32 %v12870_v20, %v9213_v47  ;;  %v9949_v15 = vld [vmem:[%s20442_s1 + $0xbf8] sm:$0xf0]  ;;  %v12954_v20 = vld [vmem:[%s20442_s1 + $0x8cc] sm:$0xf] }
 0x345   :  { %7615 = vmatpush.bf16.msrb.mxu1 %v9120_v48  ;;  %7628 = vmatpush.bf16.msrb.mxu2 %v9248_v58  ;;  %v12834_v48 = vld [vmem:[%s20442_s1 + $0x50c] sm:$0xf]  ;;  %v9069_v58 = vld [vmem:[%s20442_s1 + $0x518] sm:$0xf0]  ;;  %v7375_v26 = vpop.f32.mrf.mxu2 }
 0x346   :  { %7641 = vmatpush.bf16.msrb.mxu3 %v9376_v50  ;;  %v12898_v50 = vld [vmem:[%s20442_s1 + $0x70c] sm:$0xf]  ;;  %v7388_v32 = vpop.f32.mrf.mxu3  ;;  %v9072_v4 = vor.u32 %v12834_v48, %v9069_v58  ;;  %v9549_v47 = vld [vmem:[%s20442_s1 + $0x8d8] sm:$0xf0] }
 0x347   :  { %v9328_v14 = vor.u32 %v12898_v50, %v9325_v1  ;;  %v12986_v23 = vld [vmem:[%s20442_s1 + $0x9cc] sm:$0xf]  ;;  %v9805_v60 = vld [vmem:[%s20442_s1 + $0xad8] sm:$0xf0]  ;;  %v9552_v48 = vor.u32 %v12954_v20, %v9549_v47 }
 0x348   :  { %7603 = vmatpush.bf16.msrb.mxu0 %v8976_v57  ;;  %v9821_v57 = vld [vmem:[%s20442_s1 + $0xaf8] sm:$0xf0]  ;;  %v13018_v34 = vld [vmem:[%s20442_s1 + $0xacc] sm:$0xf] }
 0x349   :  { %7616 = vmatpush.bf16.msrb.mxu1 %v9104_v9  ;;  %7629 = vmatpush.bf16.msrb.mxu2 %v9232_v10  ;;  %v9200_v9 = vor.u32 %v12866_v3, %v9197_v46  ;;  %v13054_v10 = vld [vmem:[%s20442_s1 + $0xbec] sm:$0xf]  ;;  %v9824_v53 = vor.u32 %v13022_v56, %v9821_v57  ;;  %v9808_v3 = vor.u32 %v13018_v34, %v9805_v60  ;;  %v9533_v46 = vld [vmem:[%s20442_s1 + $0x8b8] sm:$0xf0] }
 0x34a   :  { %7642 = vmatpush.bf16.msrb.mxu3 %v9360_v63  ;;  %v9696_v63 = vor.u32 %v12990_v27, %v9693_v54  ;;  %v9952_v29 = vor.u32 %v13054_v10, %v9949_v15  ;;  %v12982_v50 = vld [vmem:[%s20442_s1 + $0x9ac] sm:$0xf]  ;;  %v9661_v26 = vld [vmem:[%s20442_s1 + $0x9b8] sm:$0xf0] }
 0x34b   :  { %v13014_v52 = vld [vmem:[%s20442_s1 + $0xaac] sm:$0xf]  ;;  %v9789_v13 = vld [vmem:[%s20442_s1 + $0xab8] sm:$0xf0] }
 0x34c   :  { %7604 = vmatpush.bf16.msrb.mxu0 %v8960_v31  ;;  %v9677_v31 = vld [vmem:[%s20442_s1 + $0x9d8] sm:$0xf0]  ;;  %v9792_v54 = vor.u32 %v13014_v52, %v9789_v13  ;;  %v12978_v56 = vld [vmem:[%s20442_s1 + $0x98c] sm:$0xf] }
 0x34d   :  { %7617 = vmatpush.bf16.msrb.mxu1 %v9088_v62  ;;  %7630 = vmatpush.bf16.msrb.mxu2 %v9216_v43  ;;  %v13050_v62 = vld [vmem:[%s20442_s1 + $0xbcc] sm:$0xf]  ;;  %v9933_v43 = vld [vmem:[%s20442_s1 + $0xbd8] sm:$0xf0]  ;;  %v9680_v58 = vor.u32 %v12986_v23, %v9677_v31 }
 0x34e   :  { %7643 = vmatpush.bf16.msrb.mxu3 %v9344_v49  ;;  %v12950_v49 = vld [vmem:[%s20442_s1 + $0x8ac] sm:$0xf]  ;;  %v9936_v1 = vor.u32 %v13050_v62, %v9933_v43  ;;  %v9917_v27 = vld [vmem:[%s20442_s1 + $0xbb8] sm:$0xf0] }
 0x34f   :  { %v9536_v32 = vor.u32 %v12950_v49, %v9533_v46  ;;  %v13042_v15 = vld [vmem:[%s20442_s1 + $0xb8c] sm:$0xf]  ;;  %v9629_v60 = vld [vmem:[%s20442_s1 + $0x978] sm:$0xf0] }
 0x350   :  { %7605 = vmatpush.bf16.msrb.mxu0 %v8944_v33  ;;  %v9664_v33 = vor.u32 %v12982_v50, %v9661_v26  ;;  %v7399_v10 = vpop.f32.mrf.mxu0  ;;  %v12942_v23 = vld [vmem:[%s20442_s1 + $0x86c] sm:$0xf]  ;;  %v9757_v43 = vld [vmem:[%s20442_s1 + $0xa78] sm:$0xf0] }
 0x351   :  { %7618 = vmatpush.bf16.msrb.mxu1 %v9072_v4  ;;  %7631 = vmatpush.bf16.msrb.mxu2 %v9200_v9  ;;  %v13010_v4 = vld [vmem:[%s20442_s1 + $0xa8c] sm:$0xf]  ;;  %v9773_v9 = vld [vmem:[%s20442_s1 + $0xa98] sm:$0xf0] }
 0x352   :  { %7644 = vmatpush.bf16.msrb.mxu3 %v9328_v14  ;;  %v9901_v14 = vld [vmem:[%s20442_s1 + $0xb98] sm:$0xf0]  ;;  %v9776_v47 = vor.u32 %v13010_v4, %v9773_v9  ;;  %v12974_v31 = vld [vmem:[%s20442_s1 + $0x96c] sm:$0xf] }
 0x353   :  { %7606 = vmatmul.bf16.vlgmr.msrb.gmra.mxu0 %v14276_v41  ;;  %v12946_v41 = vld [vmem:[%s20442_s1 + $0x88c] sm:$0xf]  ;;  %v9632_v49 = vor.u32 %v12974_v31, %v9629_v60 }
 0x354   :  { %7650 = vmatpush.bf16.msra.mxu0 %v9568_v39  ;;  %7632 = vmatmul.bf16.vlgmr.msrb.gmra.mxu2 %v14268_v38  ;;  %v13046_v38 = vld [vmem:[%s20442_s1 + $0xbac] sm:$0xf]  ;;  %v7400_v39 = vadd.f32 %v7399_v10, %v19040_v21  ;;  %v9904_v21 = vor.u32 %v13042_v15, %v9901_v14  ;;  %v9469_v14 = vld [vmem:[%s20442_s1 + $0x838] sm:$0xf0] }
 0x355   :  { %7663 = vmatpush.bf16.msra.mxu1 %v9696_v63  ;;  %7676 = vmatpush.bf16.msra.mxu2 %v9824_v53  ;;  %v9920_v57 = vor.u32 %v13046_v38, %v9917_v27  ;;  %v7412_v53 = vpop.f32.mrf.mxu1  ;;  %v13006_v62 = vld [vmem:[%s20442_s1 + $0xa6c] sm:$0xf]  ;;  %v9613_v38 = vld [vmem:[%s20442_s1 + $0x958] sm:$0xf0] }
 0x356   :  { %7689 = vmatpush.bf16.msra.mxu3 %v9952_v29  ;;  %7619 = vmatmul.bf16.vlgmr.msrb.gmra.mxu1 %v14280_v44  ;;  %v9645_v44 = vld [vmem:[%s20442_s1 + $0x998] sm:$0xf0]  ;;  %v7413_v34 = vadd.f32 %v7412_v53, %v7400_v39  ;;  %v9760_v46 = vor.u32 %v13006_v62, %v9757_v43  ;;  %v12938_v50 = vld [vmem:[%s20442_s1 + $0x84c] sm:$0xf] }
 0x357   :  { %7645 = vmatmul.bf16.vlgmr.msrb.gmra.mxu3 %v14278_v42  ;;  %v9517_v42 = vld [vmem:[%s20442_s1 + $0x898] sm:$0xf0]  ;;  %v9648_v20 = vor.u32 %v12978_v56, %v9645_v44  ;;  %v12970_v26 = vld [vmem:[%s20442_s1 + $0x94c] sm:$0xf]  ;;  %v7425_v13 = vpop.f32.mrf.mxu2 }
 0x358   :  { %7651 = vmatpush.bf16.msra.mxu0 %v9552_v48  ;;  %v9520_v63 = vor.u32 %v12946_v41, %v9517_v42  ;;  %v9501_v29 = vld [vmem:[%s20442_s1 + $0x878] sm:$0xf0]  ;;  %v13038_v48 = vld [vmem:[%s20442_s1 + $0xb6c] sm:$0xf]  ;;  %v7401_v56 = vpop.f32.mrf.mxu0  ;;  %v9616_v9 = vor.u32 %v12970_v26, %v9613_v38 }
 0x359   :  { %7664 = vmatpush.bf16.msra.mxu1 %v9680_v58  ;;  %7677 = vmatpush.bf16.msra.mxu2 %v9808_v3  ;;  %v9885_v58 = vld [vmem:[%s20442_s1 + $0xb78] sm:$0xf0]  ;;  %v9504_v3 = vor.u32 %v12942_v23, %v9501_v29  ;;  %v13002_v27 = vld [vmem:[%s20442_s1 + $0xa4c] sm:$0xf] }
 0x35a   :  { %7690 = vmatpush.bf16.msra.mxu3 %v9936_v1  ;;  %v9485_v1 = vld [vmem:[%s20442_s1 + $0x858] sm:$0xf0]  ;;  %v9888_v52 = vor.u32 %v13038_v48, %v9885_v58  ;;  %v13034_v41 = vld [vmem:[%s20442_s1 + $0xb4c] sm:$0xf] }
 0x35b   :  { %v9869_v42 = vld [vmem:[%s20442_s1 + $0xb58] sm:$0xf0]  ;;  %v12934_v15 = vld [vmem:[%s20442_s1 + $0x82c] sm:$0xf] }
 0x35c   :  { %7652 = vmatpush.bf16.msra.mxu0 %v9536_v32  ;;  %v9741_v32 = vld [vmem:[%s20442_s1 + $0xa58] sm:$0xf0]  ;;  %v12966_v39 = vld [vmem:[%s20442_s1 + $0x92c] sm:$0xf]  ;;  %v9472_v31 = vor.u32 %v12934_v15, %v9469_v14 }
 0x35d   :  { %7665 = vmatpush.bf16.msra.mxu1 %v9664_v33  ;;  %7678 = vmatpush.bf16.msra.mxu2 %v9792_v54  ;;  %v7426_v33 = vadd.f32 %v7425_v13, %v7413_v34  ;;  %v7438_v54 = vpop.f32.mrf.mxu3  ;;  %v7414_v44 = vpop.f32.mrf.mxu1  ;;  %v9744_v10 = vor.u32 %v13002_v27, %v9741_v32  ;;  %v9597_v53 = vld [vmem:[%s20442_s1 + $0x938] sm:$0xf0]  ;;  %v13030_v23 = vld [vmem:[%s20442_s1 + $0xb2c] sm:$0xf] }
 0x35e   :  { %7691 = vmatpush.bf16.msra.mxu3 %v9920_v57  ;;  %v9488_v57 = vor.u32 %v12938_v50, %v9485_v1  ;;  %v9853_v29 = vld [vmem:[%s20442_s1 + $0xb38] sm:$0xf0]  ;;  %v9600_v60 = vor.u32 %v12966_v39, %v9597_v53  ;;  %v12962_v43 = vld [vmem:[%s20442_s1 + $0x90c] sm:$0xf] }
 0x35f   :  { %v19239_v4 = vadd.f32 %v7438_v54, %v7426_v33  ;;  %v9453_v34 = vld [vmem:[%s20442_s1 + $0x818] sm:$0xf0]  ;;  %v12994_v58 = vld [vmem:[%s20442_s1 + $0xa0c] sm:$0xf]  ;;  %v7427_v1 = vpop.f32.mrf.mxu2 }
 0x360   :  { %7653 = vmatpush.bf16.msra.mxu0 %v9520_v63  ;;  %v9872_v63 = vor.u32 %v13034_v41, %v9869_v42  ;;  %v9581_v48 = vld [vmem:[%s20442_s1 + $0x918] sm:$0xf0]  ;;  %v13086_v26 = vld [vmem:[%s20442_s1 + $0xcec] sm:$0xf] }
 0x361   :  { %7666 = vmatpush.bf16.msra.mxu1 %v9648_v20  ;;  %7679 = vmatpush.bf16.msra.mxu2 %v9776_v47  ;;  %v12998_v20 = vld [vmem:[%s20442_s1 + $0xa2c] sm:$0xf]  ;;  %v9725_v47 = vld [vmem:[%s20442_s1 + $0xa38] sm:$0xf0]  ;;  %v9584_v41 = vor.u32 %v12962_v43, %v9581_v48 }
 0x362   :  { %7692 = vmatpush.bf16.msra.mxu3 %v9904_v21  ;;  %v12930_v21 = vld [vmem:[%s20442_s1 + $0x80c] sm:$0xf]  ;;  %v9728_v62 = vor.u32 %v12998_v20, %v9725_v47  ;;  %v9837_v50 = vld [vmem:[%s20442_s1 + $0xb18] sm:$0xf0] }
 0x363   :  { %v13118_v13 = vld [vmem:[%s20442_s1 + $0xdec] sm:$0xf]  ;;  %v9456_v27 = vor.u32 %v12930_v21, %v9453_v34  ;;  %v10205_v32 = vld [vmem:[%s20442_s1 + $0xdf8] sm:$0xf0] }
 0x364   :  { %7654 = vmatpush.bf16.msra.mxu0 %v9504_v3  ;;  %v9856_v3 = vor.u32 %v13030_v23, %v9853_v29  ;;  %v13150_v33 = vld [vmem:[%s20442_s1 + $0xeec] sm:$0xf]  ;;  %v10333_v54 = vld [vmem:[%s20442_s1 + $0xef8] sm:$0xf0] }
 0x365   :  { %7667 = vmatpush.bf16.msra.mxu1 %v9632_v49  ;;  %7680 = vmatpush.bf16.msra.mxu2 %v9760_v46  ;;  %v9709_v49 = vld [vmem:[%s20442_s1 + $0xa18] sm:$0xf0]  ;;  %v13026_v46 = vld [vmem:[%s20442_s1 + $0xb0c] sm:$0xf]  ;;  %v7440_v38 = vpop.f32.mrf.mxu3  ;;  %v10336_v15 = vor.u32 %v13150_v33, %v10333_v54 }
 0x366   :  { %7693 = vmatpush.bf16.msra.mxu3 %v9888_v52  ;;  %v10077_v52 = vld [vmem:[%s20442_s1 + $0xcf8] sm:$0xf0]  ;;  %v9712_v42 = vor.u32 %v12994_v58, %v9709_v49  ;;  %v13182_v56 = vld [vmem:[%s20442_s1 + $0xfec] sm:$0xf]  ;;  %v9840_v44 = vor.u32 %v13026_v46, %v9837_v50 }
 0x367   :  { %v13082_v14 = vld [vmem:[%s20442_s1 + $0xccc] sm:$0xf]  ;;  %v10061_v39 = vld [vmem:[%s20442_s1 + $0xcd8] sm:$0xf0] }
 0x368   :  { %7655 = vmatpush.bf16.msra.mxu0 %v9488_v57  ;;  %v10461_v57 = vld [vmem:[%s20442_s1 + $0xff8] sm:$0xf0]  ;;  %v13146_v47 = vld [vmem:[%s20442_s1 + $0xecc] sm:$0xf]  ;;  %v10064_v21 = vor.u32 %v13082_v14, %v10061_v39 }
 0x369   :  { %7668 = vmatpush.bf16.msra.mxu1 %v9616_v9  ;;  %7681 = vmatpush.bf16.msra.mxu2 %v9744_v10  ;;  %v10080_v9 = vor.u32 %v13086_v26, %v10077_v52  ;;  %v10208_v10 = vor.u32 %v13118_v13, %v10205_v32  ;;  %v10464_v53 = vor.u32 %v13182_v56, %v10461_v57  ;;  %v10189_v20 = vld [vmem:[%s20442_s1 + $0xdd8] sm:$0xf0]  ;;  %v13178_v29 = vld [vmem:[%s20442_s1 + $0xfcc] sm:$0xf] }
 0x36a   :  { %7694 = vmatpush.bf16.msra.mxu3 %v9872_v63  ;;  %v13114_v63 = vld [vmem:[%s20442_s1 + $0xdcc] sm:$0xf]  ;;  %v10317_v23 = vld [vmem:[%s20442_s1 + $0xed8] sm:$0xf0] }
 0x36b   :  { %v10192_v34 = vor.u32 %v13114_v63, %v10189_v20  ;;  %v10045_v43 = vld [vmem:[%s20442_s1 + $0xcb8] sm:$0xf0]  ;;  %v13110_v48 = vld [vmem:[%s20442_s1 + $0xdac] sm:$0xf] }
 0x36c   :  { %7656 = vmatpush.bf16.msra.mxu0 %v9472_v31  ;;  %v10445_v31 = vld [vmem:[%s20442_s1 + $0xfd8] sm:$0xf0]  ;;  %v13142_v49 = vld [vmem:[%s20442_s1 + $0xeac] sm:$0xf] }
 0x36d   :  { %7669 = vmatpush.bf16.msra.mxu1 %v9600_v60  ;;  %7682 = vmatpush.bf16.msra.mxu2 %v9728_v62  ;;  %v10320_v60 = vor.u32 %v13146_v47, %v10317_v23  ;;  %v13078_v62 = vld [vmem:[%s20442_s1 + $0xcac] sm:$0xf]  ;;  %v10448_v58 = vor.u32 %v13178_v29, %v10445_v31  ;;  %v10301_v46 = vld [vmem:[%s20442_s1 + $0xeb8] sm:$0xf0] }
 0x36e   :  { %7695 = vmatpush.bf16.msra.mxu3 %v9856_v3  ;;  %v10173_v3 = vld [vmem:[%s20442_s1 + $0xdb8] sm:$0xf0]  ;;  %v10048_v1 = vor.u32 %v13078_v62, %v10045_v43  ;;  %v10304_v52 = vor.u32 %v13142_v49, %v10301_v46  ;;  %v13106_v13 = vld [vmem:[%s20442_s1 + $0xd8c] sm:$0xf] }
 0x36f   :  { %v10429_v50 = vld [vmem:[%s20442_s1 + $0xfb8] sm:$0xf0]  ;;  %v10176_v26 = vor.u32 %v13110_v48, %v10173_v3  ;;  %v13170_v54 = vld [vmem:[%s20442_s1 + $0xf8c] sm:$0xf] }
 0x370   :  { %7657 = vmatpush.bf16.msra.mxu0 %v9456_v27  ;;  %v10157_v38 = vld [vmem:[%s20442_s1 + $0xd98] sm:$0xf0]  ;;  %v13138_v27 = vld [vmem:[%s20442_s1 + $0xe8c] sm:$0xf]  ;;  %v7451_v33 = vpop.f32.mrf.mxu0 }
 0x371   :  { %7670 = vmatpush.bf16.msra.mxu1 %v9584_v41  ;;  %7683 = vmatpush.bf16.msra.mxu2 %v9712_v42  ;;  %v10285_v32 = vld [vmem:[%s20442_s1 + $0xe98] sm:$0xf0]  ;;  %v7452_v42 = vadd.f32 %v7451_v33, %v19239_v4  ;;  %v13102_v14 = vld [vmem:[%s20442_s1 + $0xd6c] sm:$0xf] }
 0x372   :  { %7696 = vmatpush.bf16.msra.mxu3 %v9840_v44  ;;  %v10413_v41 = vld [vmem:[%s20442_s1 + $0xf98] sm:$0xf0]  ;;  %v10160_v44 = vor.u32 %v13106_v13, %v10157_v38  ;;  %v13166_v47 = vld [vmem:[%s20442_s1 + $0xf6c] sm:$0xf] }
 0x373   :  { %7658 = vmatmul.bf16.vlgmr.msra.gmra.mxu0 %v14476_v24  ;;  %v13174_v24 = vld [vmem:[%s20442_s1 + $0xfac] sm:$0xf]  ;;  %v7464_v57 = vpop.f32.mrf.mxu1  ;;  %v10416_v4 = vor.u32 %v13170_v54, %v10413_v41  ;;  %v10141_v63 = vld [vmem:[%s20442_s1 + $0xd78] sm:$0xf0] }
 0x374   :  { %7702 = vmatpush.bf16.msrb.mxu0 %v10080_v9  ;;  %7684 = vmatmul.bf16.vlgmr.msra.gmra.mxu2 %v14489_v30  ;;  %v13074_v30 = vld [vmem:[%s20442_s1 + $0xc8c] sm:$0xf]  ;;  %v10288_v9 = vor.u32 %v13138_v27, %v10285_v32  ;;  %v7465_v39 = vadd.f32 %v7464_v57, %v7452_v42  ;;  %v10269_v20 = vld [vmem:[%s20442_s1 + $0xe78] sm:$0xf0]  ;;  %v10144_v31 = vor.u32 %v13102_v14, %v10141_v63 }
 0x375   :  { %7715 = vmatpush.bf16.msrb.mxu1 %v10208_v10  ;;  %7728 = vmatpush.bf16.msrb.mxu2 %v10336_v15  ;;  %v13070_v10 = vld [vmem:[%s20442_s1 + $0xc6c] sm:$0xf]  ;;  %v10013_v15 = vld [vmem:[%s20442_s1 + $0xc78] sm:$0xf0] }
 0x376   :  { %7741 = vmatpush.bf16.msrb.mxu3 %v10464_v53  ;;  %7671 = vmatmul.bf16.vlgmr.msra.gmra.mxu1 %v14493_v18  ;;  %v10029_v18 = vld [vmem:[%s20442_s1 + $0xc98] sm:$0xf0]  ;;  %v13134_v53 = vld [vmem:[%s20442_s1 + $0xe6c] sm:$0xf]  ;;  %v10016_v29 = vor.u32 %v13070_v10, %v10013_v15 }
 0x377   :  { %7697 = vmatmul.bf16.vlgmr.msra.gmra.mxu3 %v14503_v35  ;;  %v10432_v35 = vor.u32 %v13174_v24, %v10429_v50  ;;  %v10032_v56 = vor.u32 %v13074_v30, %v10029_v18  ;;  %v10397_v23 = vld [vmem:[%s20442_s1 + $0xf78] sm:$0xf0]  ;;  %v13098_v62 = vld [vmem:[%s20442_s1 + $0xd4c] sm:$0xf]  ;;  %v7477_v48 = vpop.f32.mrf.mxu2 }
 0x378   :  { %7703 = vmatpush.bf16.msrb.mxu0 %v10064_v21  ;;  %v10272_v21 = vor.u32 %v13134_v53, %v10269_v20  ;;  %v10400_v43 = vor.u32 %v13166_v47, %v10397_v23  ;;  %v13130_v3 = vld [vmem:[%s20442_s1 + $0xe4c] sm:$0xf]  ;;  %v10253_v49 = vld [vmem:[%s20442_s1 + $0xe58] sm:$0xf0]  ;;  %v7478_v46 = vadd.f32 %v7477_v48, %v7465_v39 }
 0x379   :  { %7716 = vmatpush.bf16.msrb.mxu1 %v10192_v34  ;;  %7729 = vmatpush.bf16.msrb.mxu2 %v10320_v60  ;;  %v13066_v34 = vld [vmem:[%s20442_s1 + $0xc4c] sm:$0xf]  ;;  %v9997_v60 = vld [vmem:[%s20442_s1 + $0xc58] sm:$0xf0] }
 0x37a   :  { %7742 = vmatpush.bf16.msrb.mxu3 %v10448_v58  ;;  %v10125_v58 = vld [vmem:[%s20442_s1 + $0xd58] sm:$0xf0]  ;;  %v7490_v24 = vpop.f32.mrf.mxu3  ;;  %v13162_v50 = vld [vmem:[%s20442_s1 + $0xf4c] sm:$0xf] }
 0x37b   :  { %v7466_v30 = vpop.f32.mrf.mxu1  ;;  %v19438_v18 = vadd.f32 %v7490_v24, %v7478_v46  ;;  %v10128_v13 = vor.u32 %v13098_v62, %v10125_v58  ;;  %v13062_v38 = vld [vmem:[%s20442_s1 + $0xc2c] sm:$0xf]  ;;  %v9981_v27 = vld [vmem:[%s20442_s1 + $0xc38] sm:$0xf0] }
 0x37c   :  { %7704 = vmatpush.bf16.msrb.mxu0 %v10048_v1  ;;  %v10381_v1 = vld [vmem:[%s20442_s1 + $0xf58] sm:$0xf0]  ;;  %v13094_v32 = vld [vmem:[%s20442_s1 + $0xd2c] sm:$0xf] }
 0x37d   :  { %7717 = vmatpush.bf16.msrb.mxu1 %v10176_v26  ;;  %7730 = vmatpush.bf16.msrb.mxu2 %v10304_v52  ;;  %v7453_v26 = vpop.f32.mrf.mxu0  ;;  %v10000_v52 = vor.u32 %v13066_v34, %v9997_v60  ;;  %v10384_v33 = vor.u32 %v13162_v50, %v10381_v1  ;;  %v10109_v54 = vld [vmem:[%s20442_s1 + $0xd38] sm:$0xf0]  ;;  %v13126_v41 = vld [vmem:[%s20442_s1 + $0xe2c] sm:$0xf] }
 0x37e   :  { %7743 = vmatpush.bf16.msrb.mxu3 %v10432_v35  ;;  %v10256_v35 = vor.u32 %v13130_v3, %v10253_v49  ;;  %v10237_v42 = vld [vmem:[%s20442_s1 + $0xe38] sm:$0xf0]  ;;  %v10112_v15 = vor.u32 %v13094_v32, %v10109_v54  ;;  %v13122_v63 = vld [vmem:[%s20442_s1 + $0xe0c] sm:$0xf] }
 0x37f   :  { %v10365_v57 = vld [vmem:[%s20442_s1 + $0xf38] sm:$0xf0]  ;;  %v10240_v14 = vor.u32 %v13126_v41, %v10237_v42  ;;  %v13154_v47 = vld [vmem:[%s20442_s1 + $0xf0c] sm:$0xf] }
 0x380   :  { %7705 = vmatpush.bf16.msrb.mxu0 %v10032_v56  ;;  %v13158_v56 = vld [vmem:[%s20442_s1 + $0xf2c] sm:$0xf]  ;;  %v9965_v10 = vld [vmem:[%s20442_s1 + $0xc18] sm:$0xf0] }
 0x381   :  { %7718 = vmatpush.bf16.msrb.mxu1 %v10160_v44  ;;  %7731 = vmatpush.bf16.msrb.mxu2 %v10288_v9  ;;  %v9984_v44 = vor.u32 %v13062_v38, %v9981_v27  ;;  %v13058_v9 = vld [vmem:[%s20442_s1 + $0xc0c] sm:$0xf]  ;;  %v10093_v39 = vld [vmem:[%s20442_s1 + $0xd18] sm:$0xf0]  ;;  %v10368_v53 = vor.u32 %v13158_v56, %v10365_v57 }
 0x382   :  { %7744 = vmatpush.bf16.msrb.mxu3 %v10416_v4  ;;  %v13090_v4 = vld [vmem:[%s20442_s1 + $0xd0c] sm:$0xf]  ;;  %v10221_v20 = vld [vmem:[%s20442_s1 + $0xe18] sm:$0xf0]  ;;  %v7492_v60 = vpop.f32.mrf.mxu3  ;;  %v9968_v62 = vor.u32 %v13058_v9, %v9965_v10 }
 0x383   :  { %v10349_v23 = vld [vmem:[%s20442_s1 + $0xf18] sm:$0xf0]  ;;  %v13246_v34 = vld [vmem:[%s20442_s1 + $0x11ec] sm:$0xf]  ;;  %v10096_v3 = vor.u32 %v13090_v4, %v10093_v39  ;;  %v10224_v49 = vor.u32 %v13122_v63, %v10221_v20 }
 0x384   :  { %7706 = vmatpush.bf16.msrb.mxu0 %v10016_v29  ;;  %v7479_v29 = vpop.f32.mrf.mxu2  ;;  %v13278_v48 = vld [vmem:[%s20442_s1 + $0x12ec] sm:$0xf]  ;;  %v10845_v58 = vld [vmem:[%s20442_s1 + $0x12f8] sm:$0xf0]  ;;  %v10352_v50 = vor.u32 %v13154_v47, %v10349_v23 }
 0x385   :  { %7719 = vmatpush.bf16.msrb.mxu1 %v10144_v31  ;;  %7732 = vmatpush.bf16.msrb.mxu2 %v10272_v21  ;;  %v13214_v31 = vld [vmem:[%s20442_s1 + $0x10ec] sm:$0xf]  ;;  %v10589_v21 = vld [vmem:[%s20442_s1 + $0x10f8] sm:$0xf0] }
 0x386   :  { %7745 = vmatpush.bf16.msrb.mxu3 %v10400_v43  ;;  %v10717_v43 = vld [vmem:[%s20442_s1 + $0x11f8] sm:$0xf0]  ;;  %v13310_v46 = vld [vmem:[%s20442_s1 + $0x13ec] sm:$0xf]  ;;  %v10592_v1 = vor.u32 %v13214_v31, %v10589_v21 }
 0x387   :  { %v10973_v24 = vld [vmem:[%s20442_s1 + $0x13f8] sm:$0xf0]  ;;  %v10720_v26 = vor.u32 %v13246_v34, %v10717_v43  ;;  %v13210_v30 = vld [vmem:[%s20442_s1 + $0x10cc] sm:$0xf] }
 0x388   :  { %7707 = vmatpush.bf16.msrb.mxu0 %v10000_v52  ;;  %v10848_v52 = vor.u32 %v13278_v48, %v10845_v58  ;;  %v10976_v38 = vor.u32 %v13310_v46, %v10973_v24  ;;  %v10701_v27 = vld [vmem:[%s20442_s1 + $0x11d8] sm:$0xf0]  ;;  %v13274_v32 = vld [vmem:[%s20442_s1 + $0x12cc] sm:$0xf] }
 0x389   :  { %7720 = vmatpush.bf16.msrb.mxu1 %v10128_v13  ;;  %7733 = vmatpush.bf16.msrb.mxu2 %v10256_v35  ;;  %v10573_v13 = vld [vmem:[%s20442_s1 + $0x10d8] sm:$0xf0]  ;;  %v13242_v35 = vld [vmem:[%s20442_s1 + $0x11cc] sm:$0xf] }
 0x38a   :  { %7746 = vmatpush.bf16.msrb.mxu3 %v10384_v33  ;;  %v10829_v33 = vld [vmem:[%s20442_s1 + $0x12d8] sm:$0xf0]  ;;  %v13306_v54 = vld [vmem:[%s20442_s1 + $0x13cc] sm:$0xf]  ;;  %v10576_v42 = vor.u32 %v13210_v30, %v10573_v13  ;;  %v10704_v56 = vor.u32 %v13242_v35, %v10701_v27 }
 0x38b   :  { %v10957_v41 = vld [vmem:[%s20442_s1 + $0x13d8] sm:$0xf0]  ;;  %v10832_v57 = vor.u32 %v13274_v32, %v10829_v33  ;;  %v13238_v10 = vld [vmem:[%s20442_s1 + $0x11ac] sm:$0xf] }
 0x38c   :  { %7708 = vmatpush.bf16.msrb.mxu0 %v9984_v44  ;;  %v13206_v44 = vld [vmem:[%s20442_s1 + $0x10ac] sm:$0xf]  ;;  %v10557_v9 = vld [vmem:[%s20442_s1 + $0x10b8] sm:$0xf0] }
 0x38d   :  { %7721 = vmatpush.bf16.msrb.mxu1 %v10112_v15  ;;  %7734 = vmatpush.bf16.msrb.mxu2 %v10240_v14  ;;  %v10960_v15 = vor.u32 %v13306_v54, %v10957_v41  ;;  %v10685_v14 = vld [vmem:[%s20442_s1 + $0x11b8] sm:$0xf0]  ;;  %v13270_v4 = vld [vmem:[%s20442_s1 + $0x12ac] sm:$0xf] }
 0x38e   :  { %7747 = vmatpush.bf16.msrb.mxu3 %v10368_v53  ;;  %v10813_v39 = vld [vmem:[%s20442_s1 + $0x12b8] sm:$0xf0]  ;;  %v10560_v53 = vor.u32 %v13206_v44, %v10557_v9  ;;  %v10688_v20 = vor.u32 %v13238_v10, %v10685_v14  ;;  %v13234_v23 = vld [vmem:[%s20442_s1 + $0x118c] sm:$0xf] }
 0x38f   :  { %v10941_v63 = vld [vmem:[%s20442_s1 + $0x13b8] sm:$0xf0]  ;;  %v10816_v47 = vor.u32 %v13270_v4, %v10813_v39  ;;  %v13266_v31 = vld [vmem:[%s20442_s1 + $0x128c] sm:$0xf] }
 0x390   :  { %7709 = vmatpush.bf16.msrb.mxu0 %v9968_v62  ;;  %v10669_v29 = vld [vmem:[%s20442_s1 + $0x1198] sm:$0xf0]  ;;  %v7503_v34 = vpop.f32.mrf.mxu0  ;;  %v13298_v60 = vld [vmem:[%s20442_s1 + $0x138c] sm:$0xf] }
 0x391   :  { %7722 = vmatpush.bf16.msrb.mxu1 %v10096_v3  ;;  %7735 = vmatpush.bf16.msrb.mxu2 %v10224_v49  ;;  %v10797_v21 = vld [vmem:[%s20442_s1 + $0x1298] sm:$0xf0]  ;;  %v7504_v43 = vadd.f32 %v7503_v34, %v19438_v18  ;;  %v10672_v3 = vor.u32 %v13234_v23, %v10669_v29  ;;  %v13198_v46 = vld [vmem:[%s20442_s1 + $0x106c] sm:$0xf] }
 0x392   :  { %7748 = vmatpush.bf16.msrb.mxu3 %v10352_v50  ;;  %v10925_v62 = vld [vmem:[%s20442_s1 + $0x1398] sm:$0xf0]  ;;  %v10800_v49 = vor.u32 %v13266_v31, %v10797_v21  ;;  %v13230_v50 = vld [vmem:[%s20442_s1 + $0x116c] sm:$0xf] }
 0x393   :  { %7710 = vmatmul.bf16.vlgmr.msrb.gmra.mxu0 %v14699_v28  ;;  %v13302_v28 = vld [vmem:[%s20442_s1 + $0x13ac] sm:$0xf]  ;;  %v7516_v58 = vpop.f32.mrf.mxu1  ;;  %v10525_v24 = vld [vmem:[%s20442_s1 + $0x1078] sm:$0xf0]  ;;  %v10928_v18 = vor.u32 %v13298_v60, %v10925_v62 }
 0x394   :  { %7754 = vmatpush.bf16.msra.mxu0 %v10592_v1  ;;  %7736 = vmatmul.bf16.vlgmr.msrb.gmra.mxu2 %v14712_v19  ;;  %v13202_v19 = vld [vmem:[%s20442_s1 + $0x108c] sm:$0xf]  ;;  %v7517_v1 = vadd.f32 %v7516_v58, %v7504_v43  ;;  %v10781_v30 = vld [vmem:[%s20442_s1 + $0x1278] sm:$0xf0] }
 0x395   :  { %7767 = vmatpush.bf16.msra.mxu1 %v10720_v26  ;;  %7780 = vmatpush.bf16.msra.mxu2 %v10848_v52  ;;  %v10653_v26 = vld [vmem:[%s20442_s1 + $0x1178] sm:$0xf0]  ;;  %v13262_v52 = vld [vmem:[%s20442_s1 + $0x126c] sm:$0xf] }
 0x396   :  { %7793 = vmatpush.bf16.msra.mxu3 %v10976_v38  ;;  %7723 = vmatmul.bf16.vlgmr.msrb.gmra.mxu1 %v14716_v59  ;;  %v10541_v59 = vld [vmem:[%s20442_s1 + $0x1098] sm:$0xf0]  ;;  %v13294_v13 = vld [vmem:[%s20442_s1 + $0x136c] sm:$0xf]  ;;  %v10528_v38 = vor.u32 %v13198_v46, %v10525_v24  ;;  %v10656_v27 = vor.u32 %v13230_v50, %v10653_v26  ;;  %v10784_v32 = vor.u32 %v13262_v52, %v10781_v30 }
 0x397   :  { %7749 = vmatmul.bf16.vlgmr.msrb.gmra.mxu3 %v14726_v37  ;;  %v10944_v37 = vor.u32 %v13302_v28, %v10941_v63  ;;  %v10544_v48 = vor.u32 %v13202_v19, %v10541_v59  ;;  %v10909_v35 = vld [vmem:[%s20442_s1 + $0x1378] sm:$0xf0]  ;;  %v13194_v33 = vld [vmem:[%s20442_s1 + $0x104c] sm:$0xf] }
 0x398   :  { %7755 = vmatpush.bf16.msra.mxu0 %v10576_v42  ;;  %v10509_v54 = vld [vmem:[%s20442_s1 + $0x1058] sm:$0xf0]  ;;  %v13226_v41 = vld [vmem:[%s20442_s1 + $0x114c] sm:$0xf]  ;;  %v10912_v42 = vor.u32 %v13294_v13, %v10909_v35  ;;  %v7505_v39 = vpop.f32.mrf.mxu0 }
 0x399   :  { %7768 = vmatpush.bf16.msra.mxu1 %v10704_v56  ;;  %7781 = vmatpush.bf16.msra.mxu2 %v10832_v57  ;;  %v7529_v56 = vpop.f32.mrf.mxu2  ;;  %v10637_v57 = vld [vmem:[%s20442_s1 + $0x1158] sm:$0xf0]  ;;  %v13258_v44 = vld [vmem:[%s20442_s1 + $0x124c] sm:$0xf]  ;;  %v10512_v28 = vor.u32 %v13194_v33, %v10509_v54 }
 0x39a   :  { %7794 = vmatpush.bf16.msra.mxu3 %v10960_v15  ;;  %v10765_v9 = vld [vmem:[%s20442_s1 + $0x1258] sm:$0xf0]  ;;  %v7530_v10 = vadd.f32 %v7529_v56, %v7517_v1  ;;  %v7542_v15 = vpop.f32.mrf.mxu3  ;;  %v13290_v14 = vld [vmem:[%s20442_s1 + $0x134c] sm:$0xf] }
 0x39b   :  { %v10893_v4 = vld [vmem:[%s20442_s1 + $0x1358] sm:$0xf0]  ;;  %v7518_v63 = vpop.f32.mrf.mxu1  ;;  %v13190_v19 = vld [vmem:[%s20442_s1 + $0x102c] sm:$0xf] }
 0x39c   :  { %7756 = vmatpush.bf16.msra.mxu0 %v10560_v53  ;;  %v19637_v53 = vadd.f32 %v7542_v15, %v7530_v10  ;;  %v10493_v59 = vld [vmem:[%s20442_s1 + $0x1038] sm:$0xf0]  ;;  %v13222_v23 = vld [vmem:[%s20442_s1 + $0x112c] sm:$0xf] }
 0x39d   :  { %7769 = vmatpush.bf16.msra.mxu1 %v10688_v20  ;;  %7782 = vmatpush.bf16.msra.mxu2 %v10816_v47  ;;  %v10640_v20 = vor.u32 %v13226_v41, %v10637_v57  ;;  %v10768_v47 = vor.u32 %v13258_v44, %v10765_v9  ;;  %v10621_v29 = vld [vmem:[%s20442_s1 + $0x1138] sm:$0xf0]  ;;  %v13254_v31 = vld [vmem:[%s20442_s1 + $0x122c] sm:$0xf]  ;;  %v10496_v62 = vor.u32 %v13190_v19, %v10493_v59 }
 0x39e   :  { %7795 = vmatpush.bf16.msra.mxu3 %v10944_v37  ;;  %v10896_v37 = vor.u32 %v13290_v14, %v10893_v4  ;;  %v10749_v21 = vld [vmem:[%s20442_s1 + $0x1238] sm:$0xf0]  ;;  %v13286_v34 = vld [vmem:[%s20442_s1 + $0x132c] sm:$0xf]  ;;  %v10624_v58 = vor.u32 %v13222_v23, %v10621_v29 }
 0x39f   :  { %v10877_v60 = vld [vmem:[%s20442_s1 + $0x1338] sm:$0xf0]  ;;  %v13186_v43 = vld [vmem:[%s20442_s1 + $0x100c] sm:$0xf] }
 0x3a0   :  { %7757 = vmatpush.bf16.msra.mxu0 %v10544_v48  ;;  %v10477_v48 = vld [vmem:[%s20442_s1 + $0x1018] sm:$0xf0]  ;;  %v13250_v24 = vld [vmem:[%s20442_s1 + $0x120c] sm:$0xf]  ;;  %v10880_v50 = vor.u32 %v13286_v34, %v10877_v60 }
 0x3a1   :  { %7770 = vmatpush.bf16.msra.mxu1 %v10672_v3  ;;  %7783 = vmatpush.bf16.msra.mxu2 %v10800_v49  ;;  %v10752_v3 = vor.u32 %v13254_v31, %v10749_v21  ;;  %v13218_v49 = vld [vmem:[%s20442_s1 + $0x110c] sm:$0xf]  ;;  %v10605_v46 = vld [vmem:[%s20442_s1 + $0x1118] sm:$0xf0]  ;;  %v7531_v52 = vpop.f32.mrf.mxu2 }
 0x3a2   :  { %7796 = vmatpush.bf16.msra.mxu3 %v10928_v18  ;;  %v10733_v18 = vld [vmem:[%s20442_s1 + $0x1218] sm:$0xf0]  ;;  %v13282_v1 = vld [vmem:[%s20442_s1 + $0x130c] sm:$0xf]  ;;  %v10608_v41 = vor.u32 %v13218_v49, %v10605_v46 }
 0x3a3   :  { %v10861_v26 = vld [vmem:[%s20442_s1 + $0x1318] sm:$0xf0]  ;;  %v13342_v30 = vld [vmem:[%s20442_s1 + $0x14ec] sm:$0xf] }
 0x3a4   :  { %7758 = vmatpush.bf16.msra.mxu0 %v10528_v38  ;;  %v11101_v13 = vld [vmem:[%s20442_s1 + $0x14f8] sm:$0xf0]  ;;  %v13374_v35 = vld [vmem:[%s20442_s1 + $0x15ec] sm:$0xf]  ;;  %v7544_v38 = vpop.f32.mrf.mxu3  ;;  %v10864_v44 = vor.u32 %v13282_v1, %v10861_v26 }
 0x3a5   :  { %7771 = vmatpush.bf16.msra.mxu1 %v10656_v27  ;;  %7784 = vmatpush.bf16.msra.mxu2 %v10784_v32  ;;  %v10480_v27 = vor.u32 %v13186_v43, %v10477_v48  ;;  %v11229_v32 = vld [vmem:[%s20442_s1 + $0x15f8] sm:$0xf0]  ;;  %v13406_v33 = vld [vmem:[%s20442_s1 + $0x16ec] sm:$0xf]  ;;  %v11104_v9 = vor.u32 %v13342_v30, %v11101_v13 }
 0x3a6   :  { %7797 = vmatpush.bf16.msra.mxu3 %v10912_v42  ;;  %v11357_v54 = vld [vmem:[%s20442_s1 + $0x16f8] sm:$0xf0]  ;;  %v10736_v42 = vor.u32 %v13250_v24, %v10733_v18  ;;  %v13438_v56 = vld [vmem:[%s20442_s1 + $0x17ec] sm:$0xf]  ;;  %v11232_v10 = vor.u32 %v13374_v35, %v11229_v32 }
 0x3a7   :  { %v11485_v57 = vld [vmem:[%s20442_s1 + $0x17f8] sm:$0xf0]  ;;  %v11360_v15 = vor.u32 %v13406_v33, %v11357_v54  ;;  %v13338_v14 = vld [vmem:[%s20442_s1 + $0x14cc] sm:$0xf] }
 0x3a8   :  { %7759 = vmatpush.bf16.msra.mxu0 %v10512_v28  ;;  %v11085_v4 = vld [vmem:[%s20442_s1 + $0x14d8] sm:$0xf0]  ;;  %v13370_v39 = vld [vmem:[%s20442_s1 + $0x15cc] sm:$0xf]  ;;  %v11488_v28 = vor.u32 %v13438_v56, %v11485_v57 }
 0x3a9   :  { %7772 = vmatpush.bf16.msra.mxu1 %v10640_v20  ;;  %7785 = vmatpush.bf16.msra.mxu2 %v10768_v47  ;;  %v11213_v63 = vld [vmem:[%s20442_s1 + $0x15d8] sm:$0xf0]  ;;  %v13402_v20 = vld [vmem:[%s20442_s1 + $0x16cc] sm:$0xf]  ;;  %v11088_v23 = vor.u32 %v13338_v14, %v11085_v4 }
 0x3aa   :  { %7798 = vmatpush.bf16.msra.mxu3 %v10896_v37  ;;  %v11341_v47 = vld [vmem:[%s20442_s1 + $0x16d8] sm:$0xf0]  ;;  %v13434_v19 = vld [vmem:[%s20442_s1 + $0x17cc] sm:$0xf]  ;;  %v11216_v37 = vor.u32 %v13370_v39, %v11213_v63 }
 0x3ab   :  { %v11469_v59 = vld [vmem:[%s20442_s1 + $0x17d8] sm:$0xf0]  ;;  %v11344_v29 = vor.u32 %v13402_v20, %v11341_v47  ;;  %v13334_v31 = vld [vmem:[%s20442_s1 + $0x14ac] sm:$0xf] }
 0x3ac   :  { %7760 = vmatpush.bf16.msra.mxu0 %v10496_v62  ;;  %v11069_v21 = vld [vmem:[%s20442_s1 + $0x14b8] sm:$0xf0]  ;;  %v13366_v34 = vld [vmem:[%s20442_s1 + $0x15ac] sm:$0xf]  ;;  %v11472_v60 = vor.u32 %v13434_v19, %v11469_v59 }
 0x3ad   :  { %7773 = vmatpush.bf16.msra.mxu1 %v10624_v58  ;;  %7786 = vmatpush.bf16.msra.mxu2 %v10752_v3  ;;  %v11197_v62 = vld [vmem:[%s20442_s1 + $0x15b8] sm:$0xf0]  ;;  %v13398_v43 = vld [vmem:[%s20442_s1 + $0x16ac] sm:$0xf]  ;;  %v11072_v3 = vor.u32 %v13334_v31, %v11069_v21 }
 0x3ae   :  { %7799 = vmatpush.bf16.msra.mxu3 %v10880_v50  ;;  %v11325_v48 = vld [vmem:[%s20442_s1 + $0x16b8] sm:$0xf0]  ;;  %v11200_v49 = vor.u32 %v13366_v34, %v11197_v62  ;;  %v13362_v24 = vld [vmem:[%s20442_s1 + $0x158c] sm:$0xf] }
 0x3af   :  { %v11453_v58 = vld [vmem:[%s20442_s1 + $0x17b8] sm:$0xf0]  ;;  %v11328_v46 = vor.u32 %v13398_v43, %v11325_v48  ;;  %v13394_v18 = vld [vmem:[%s20442_s1 + $0x168c] sm:$0xf] }
 0x3b0   :  { %7761 = vmatpush.bf16.msra.mxu0 %v10480_v27  ;;  %v11181_v50 = vld [vmem:[%s20442_s1 + $0x1598] sm:$0xf0]  ;;  %v13426_v26 = vld [vmem:[%s20442_s1 + $0x178c] sm:$0xf]  ;;  %v7555_v13 = vpop.f32.mrf.mxu0 }
 0x3b1   :  { %7774 = vmatpush.bf16.msra.mxu1 %v10608_v41  ;;  %7787 = vmatpush.bf16.msra.mxu2 %v10736_v42  ;;  %v11309_v1 = vld [vmem:[%s20442_s1 + $0x1698] sm:$0xf0]  ;;  %v11184_v35 = vor.u32 %v13362_v24, %v11181_v50  ;;  %v13326_v27 = vld [vmem:[%s20442_s1 + $0x146c] sm:$0xf] }
 0x3b2   :  { %7800 = vmatpush.bf16.msra.mxu3 %v10864_v44  ;;  %v11437_v52 = vld [vmem:[%s20442_s1 + $0x1798] sm:$0xf0]  ;;  %v11312_v38 = vor.u32 %v13394_v18, %v11309_v1  ;;  %v13358_v33 = vld [vmem:[%s20442_s1 + $0x156c] sm:$0xf] }
 0x3b3   :  { %7762 = vmatmul.bf16.vlgmr.msra.gmra.mxu0 %v14909_v36  ;;  %v13430_v36 = vld [vmem:[%s20442_s1 + $0x17ac] sm:$0xf]  ;;  %v11037_v32 = vld [vmem:[%s20442_s1 + $0x1478] sm:$0xf0]  ;;  %v7568_v54 = vpop.f32.mrf.mxu1  ;;  %v11440_v41 = vor.u32 %v13426_v26, %v11437_v52 }
 0x3b4   :  { %7806 = vmatpush.bf16.msrb.mxu0 %v11104_v9  ;;  %7788 = vmatmul.bf16.vlgmr.msra.gmra.mxu2 %v14920_v40  ;;  %v13330_v40 = vld [vmem:[%s20442_s1 + $0x148c] sm:$0xf]  ;;  %v11165_v42 = vld [vmem:[%s20442_s1 + $0x1578] sm:$0xf0]  ;;  %v7569_v44 = vadd.f32 %v7568_v54, %v7555_v13 }
 0x3b5   :  { %7819 = vmatpush.bf16.msrb.mxu1 %v11232_v10  ;;  %7832 = vmatpush.bf16.msrb.mxu2 %v11360_v15  ;;  %v13390_v56 = vld [vmem:[%s20442_s1 + $0x166c] sm:$0xf]  ;;  %v11293_v57 = vld [vmem:[%s20442_s1 + $0x1678] sm:$0xf0]  ;;  %v11040_v15 = vor.u32 %v13326_v27, %v11037_v32  ;;  %v11168_v14 = vor.u32 %v13358_v33, %v11165_v42 }
 0x3b6   :  { %7845 = vmatpush.bf16.msrb.mxu3 %v11488_v28  ;;  %7775 = vmatmul.bf16.vlgmr.msra.gmra.mxu1 %v14922_v22  ;;  %v11053_v22 = vld [vmem:[%s20442_s1 + $0x1498] sm:$0xf0]  ;;  %v13422_v9 = vld [vmem:[%s20442_s1 + $0x176c] sm:$0xf]  ;;  %v11296_v4 = vor.u32 %v13390_v56, %v11293_v57 }
 0x3b7   :  { %7801 = vmatmul.bf16.vlgmr.msra.gmra.mxu3 %v14930_v45  ;;  %v11456_v45 = vor.u32 %v13430_v36, %v11453_v58  ;;  %v11056_v30 = vor.u32 %v13330_v40, %v11053_v22  ;;  %v11421_v10 = vld [vmem:[%s20442_s1 + $0x1778] sm:$0xf0]  ;;  %v13322_v39 = vld [vmem:[%s20442_s1 + $0x144c] sm:$0xf]  ;;  %v7581_v20 = vpop.f32.mrf.mxu2 }
 0x3b8   :  { %7807 = vmatpush.bf16.msrb.mxu0 %v11088_v23  ;;  %v11021_v28 = vld [vmem:[%s20442_s1 + $0x1458] sm:$0xf0]  ;;  %v13354_v63 = vld [vmem:[%s20442_s1 + $0x154c] sm:$0xf]  ;;  %v11424_v47 = vor.u32 %v13422_v9, %v11421_v10  ;;  %v7557_v62 = vpop.f32.mrf.mxu0 }
 0x3b9   :  { %7820 = vmatpush.bf16.msrb.mxu1 %v11216_v37  ;;  %7833 = vmatpush.bf16.msrb.mxu2 %v11344_v29  ;;  %v11149_v19 = vld [vmem:[%s20442_s1 + $0x1558] sm:$0xf0]  ;;  %v13386_v59 = vld [vmem:[%s20442_s1 + $0x164c] sm:$0xf]  ;;  %v7582_v37 = vadd.f32 %v7581_v20, %v7569_v44  ;;  %v11024_v34 = vor.u32 %v13322_v39, %v11021_v28 }
 0x3ba   :  { %7846 = vmatpush.bf16.msrb.mxu3 %v11472_v60  ;;  %v11277_v23 = vld [vmem:[%s20442_s1 + $0x1658] sm:$0xf0]  ;;  %v7594_v29 = vpop.f32.mrf.mxu3  ;;  %v13418_v31 = vld [vmem:[%s20442_s1 + $0x174c] sm:$0xf]  ;;  %v11152_v43 = vor.u32 %v13354_v63, %v11149_v19 }
 0x3bb   :  { %v11405_v21 = vld [vmem:[%s20442_s1 + $0x1758] sm:$0xf0]  ;;  %v19835_v60 = vadd.f32 %v7594_v29, %v7582_v37  ;;  %v11280_v48 = vor.u32 %v13386_v59, %v11277_v23  ;;  %v13318_v36 = vld [vmem:[%s20442_s1 + $0x142c] sm:$0xf] }
 0x3bc   :  { %7808 = vmatpush.bf16.msrb.mxu0 %v11072_v3  ;;  %v11005_v58 = vld [vmem:[%s20442_s1 + $0x1438] sm:$0xf0]  ;;  %v13350_v3 = vld [vmem:[%s20442_s1 + $0x152c] sm:$0xf] }
 0x3bd   :  { %7821 = vmatpush.bf16.msrb.mxu1 %v11200_v49  ;;  %7834 = vmatpush.bf16.msrb.mxu2 %v11328_v46  ;;  %v7570_v49 = vpop.f32.mrf.mxu1  ;;  %v11408_v46 = vor.u32 %v13418_v31, %v11405_v21  ;;  %v11133_v40 = vld [vmem:[%s20442_s1 + $0x1538] sm:$0xf0]  ;;  %v13382_v22 = vld [vmem:[%s20442_s1 + $0x162c] sm:$0xf]  ;;  %v11008_v18 = vor.u32 %v13318_v36, %v11005_v58 }
 0x3be   :  { %7847 = vmatpush.bf16.msrb.mxu3 %v11456_v45  ;;  %v11261_v24 = vld [vmem:[%s20442_s1 + $0x1638] sm:$0xf0]  ;;  %v13414_v45 = vld [vmem:[%s20442_s1 + $0x172c] sm:$0xf]  ;;  %v11136_v52 = vor.u32 %v13350_v3, %v11133_v40 }
 0x3bf   :  { %v11389_v50 = vld [vmem:[%s20442_s1 + $0x1738] sm:$0xf0]  ;;  %v13314_v1 = vld [vmem:[%s20442_s1 + $0x140c] sm:$0xf]  ;;  %v7583_v27 = vpop.f32.mrf.mxu2 }
 0x3c0   :  { %7809 = vmatpush.bf16.msrb.mxu0 %v11056_v30  ;;  %v10989_v26 = vld [vmem:[%s20442_s1 + $0x1418] sm:$0xf0]  ;;  %v11264_v30 = vor.u32 %v13382_v22, %v11261_v24  ;;  %v13346_v13 = vld [vmem:[%s20442_s1 + $0x150c] sm:$0xf]  ;;  %v11392_v32 = vor.u32 %v13414_v45, %v11389_v50 }
 0x3c1   :  { %7822 = vmatpush.bf16.msrb.mxu1 %v11184_v35  ;;  %7835 = vmatpush.bf16.msrb.mxu2 %v11312_v38  ;;  %v11117_v35 = vld [vmem:[%s20442_s1 + $0x1518] sm:$0xf0]  ;;  %v13378_v38 = vld [vmem:[%s20442_s1 + $0x160c] sm:$0xf]  ;;  %v10992_v9 = vor.u32 %v13314_v1, %v10989_v26 }
 0x3c2   :  { %7848 = vmatpush.bf16.msrb.mxu3 %v11440_v41  ;;  %v11245_v33 = vld [vmem:[%s20442_s1 + $0x1618] sm:$0xf0]  ;;  %v13410_v54 = vld [vmem:[%s20442_s1 + $0x170c] sm:$0xf]  ;;  %v7596_v42 = vpop.f32.mrf.mxu3 }
 0x3c3   :  { %v11373_v41 = vld [vmem:[%s20442_s1 + $0x1718] sm:$0xf0]  ;;  %v13470_v56 = vld [vmem:[%s20442_s1 + $0x18ec] sm:$0xf]  ;;  %v11248_v39 = vor.u32 %v13378_v38, %v11245_v33 }
 0x3c4   :  { %7810 = vmatpush.bf16.msrb.mxu0 %v11040_v15  ;;  %v11613_v57 = vld [vmem:[%s20442_s1 + $0x18f8] sm:$0xf0]  ;;  %v13502_v44 = vld [vmem:[%s20442_s1 + $0x19ec] sm:$0xf]  ;;  %v11376_v20 = vor.u32 %v13410_v54, %v11373_v41 }
 0x3c5   :  { %7823 = vmatpush.bf16.msrb.mxu1 %v11168_v14  ;;  %7836 = vmatpush.bf16.msrb.mxu2 %v11296_v4  ;;  %v11741_v10 = vld [vmem:[%s20442_s1 + $0x19f8] sm:$0xf0]  ;;  %v13534_v15 = vld [vmem:[%s20442_s1 + $0x1aec] sm:$0xf]  ;;  %v11120_v4 = vor.u32 %v13346_v13, %v11117_v35 }
 0x3c6   :  { %7849 = vmatpush.bf16.msrb.mxu3 %v11424_v47  ;;  %v11869_v14 = vld [vmem:[%s20442_s1 + $0x1af8] sm:$0xf0]  ;;  %v13566_v28 = vld [vmem:[%s20442_s1 + $0x1bec] sm:$0xf]  ;;  %v11616_v47 = vor.u32 %v13470_v56, %v11613_v57  ;;  %v11744_v19 = vor.u32 %v13502_v44, %v11741_v10 }
 0x3c7   :  { %v11997_v63 = vld [vmem:[%s20442_s1 + $0x1bf8] sm:$0xf0]  ;;  %v11872_v59 = vor.u32 %v13534_v15, %v11869_v14  ;;  %v13466_v23 = vld [vmem:[%s20442_s1 + $0x18cc] sm:$0xf] }
 0x3c8   :  { %7811 = vmatpush.bf16.msrb.mxu0 %v11024_v34  ;;  %v11597_v37 = vld [vmem:[%s20442_s1 + $0x18d8] sm:$0xf0]  ;;  %v13498_v29 = vld [vmem:[%s20442_s1 + $0x19cc] sm:$0xf]  ;;  %v12000_v31 = vor.u32 %v13566_v28, %v11997_v63 }
 0x3c9   :  { %7824 = vmatpush.bf16.msrb.mxu1 %v11152_v43  ;;  %7837 = vmatpush.bf16.msrb.mxu2 %v11280_v48  ;;  %v11725_v21 = vld [vmem:[%s20442_s1 + $0x19d8] sm:$0xf0]  ;;  %v13530_v34 = vld [vmem:[%s20442_s1 + $0x1acc] sm:$0xf]  ;;  %v11600_v36 = vor.u32 %v13466_v23, %v11597_v37 }
 0x3ca   :  { %7850 = vmatpush.bf16.msrb.mxu3 %v11408_v46  ;;  %v11853_v62 = vld [vmem:[%s20442_s1 + $0x1ad8] sm:$0xf0]  ;;  %v13562_v43 = vld [vmem:[%s20442_s1 + $0x1bcc] sm:$0xf]  ;;  %v11728_v58 = vor.u32 %v13498_v29, %v11725_v21 }
 0x3cb   :  { %v11981_v48 = vld [vmem:[%s20442_s1 + $0x1bd8] sm:$0xf0]  ;;  %v11856_v3 = vor.u32 %v13530_v34, %v11853_v62  ;;  %v13462_v49 = vld [vmem:[%s20442_s1 + $0x18ac] sm:$0xf] }
 0x3cc   :  { %7812 = vmatpush.bf16.msrb.mxu0 %v11008_v18  ;;  %v11581_v46 = vld [vmem:[%s20442_s1 + $0x18b8] sm:$0xf0]  ;;  %v13494_v40 = vld [vmem:[%s20442_s1 + $0x19ac] sm:$0xf]  ;;  %v11984_v22 = vor.u32 %v13562_v43, %v11981_v48 }
 0x3cd   :  { %7825 = vmatpush.bf16.msrb.mxu1 %v11136_v52  ;;  %7838 = vmatpush.bf16.msrb.mxu2 %v11264_v30  ;;  %v11709_v24 = vld [vmem:[%s20442_s1 + $0x19b8] sm:$0xf0]  ;;  %v13526_v45 = vld [vmem:[%s20442_s1 + $0x1aac] sm:$0xf]  ;;  %v11584_v1 = vor.u32 %v13462_v49, %v11581_v46 }
 0x3ce   :  { %7851 = vmatpush.bf16.msrb.mxu3 %v11392_v32  ;;  %v11837_v50 = vld [vmem:[%s20442_s1 + $0x1ab8] sm:$0xf0]  ;;  %v11712_v26 = vor.u32 %v13494_v40, %v11709_v24  ;;  %v13490_v30 = vld [vmem:[%s20442_s1 + $0x198c] sm:$0xf] }
 0x3cf   :  { %v11965_v18 = vld [vmem:[%s20442_s1 + $0x1bb8] sm:$0xf0]  ;;  %v11840_v52 = vor.u32 %v13526_v45, %v11837_v50  ;;  %v13522_v35 = vld [vmem:[%s20442_s1 + $0x1a8c] sm:$0xf] }
 0x3d0   :  { %7813 = vmatpush.bf16.msrb.mxu0 %v10992_v9  ;;  %v11693_v13 = vld [vmem:[%s20442_s1 + $0x1998] sm:$0xf0]  ;;  %v13554_v27 = vld [vmem:[%s20442_s1 + $0x1b8c] sm:$0xf]  ;;  %v7607_v54 = vpop.f32.mrf.mxu0 }
 0x3d1   :  { %7826 = vmatpush.bf16.msrb.mxu1 %v11120_v4  ;;  %7839 = vmatpush.bf16.msrb.mxu2 %v11248_v39  ;;  %v11821_v38 = vld [vmem:[%s20442_s1 + $0x1a98] sm:$0xf0]  ;;  %v11696_v41 = vor.u32 %v13490_v30, %v11693_v13  ;;  %v13454_v56 = vld [vmem:[%s20442_s1 + $0x186c] sm:$0xf]  ;;  %v7608_v9 = vadd.f32 %v7607_v54, %v19835_v60 }
 0x3d2   :  { %7852 = vmatpush.bf16.msrb.mxu3 %v11376_v20  ;;  %v11949_v32 = vld [vmem:[%s20442_s1 + $0x1b98] sm:$0xf0]  ;;  %v11824_v42 = vor.u32 %v13522_v35, %v11821_v38  ;;  %v13486_v44 = vld [vmem:[%s20442_s1 + $0x196c] sm:$0xf] }
 0x3d3   :  { %7814 = vmatmul.bf16.vlgmr.msrb.gmra.mxu0 %v15118_v2  ;;  %v13558_v2 = vld [vmem:[%s20442_s1 + $0x1bac] sm:$0xf]  ;;  %v11549_v57 = vld [vmem:[%s20442_s1 + $0x1878] sm:$0xf0]  ;;  %v7620_v10 = vpop.f32.mrf.mxu1  ;;  %v11952_v15 = vor.u32 %v13554_v27, %v11949_v32 }
 0x3d4   :  { %7858 = vmatpush.bf16.msra.mxu0 %v11616_v47  ;;  %7840 = vmatmul.bf16.vlgmr.msrb.gmra.mxu2 %v15129_v7  ;;  %v13458_v7 = vld [vmem:[%s20442_s1 + $0x188c] sm:$0xf]  ;;  %v11677_v14 = vld [vmem:[%s20442_s1 + $0x1978] sm:$0xf0]  ;;  %v7621_v63 = vadd.f32 %v7620_v10, %v7608_v9  ;;  %v11552_v20 = vor.u32 %v13454_v56, %v11549_v57 }
 0x3d5   :  { %7871 = vmatpush.bf16.msra.mxu1 %v11744_v19  ;;  %7884 = vmatpush.bf16.msra.mxu2 %v11872_v59  ;;  %v13518_v4 = vld [vmem:[%s20442_s1 + $0x1a6c] sm:$0xf]  ;;  %v11805_v39 = vld [vmem:[%s20442_s1 + $0x1a78] sm:$0xf0]  ;;  %v11680_v47 = vor.u32 %v13486_v44, %v11677_v14 }
 0x3d6   :  { %7897 = vmatpush.bf16.msra.mxu3 %v12000_v31  ;;  %7827 = vmatmul.bf16.vlgmr.msrb.gmra.mxu1 %v15131_v8  ;;  %v11565_v8 = vld [vmem:[%s20442_s1 + $0x1898] sm:$0xf0]  ;;  %v13550_v28 = vld [vmem:[%s20442_s1 + $0x1b6c] sm:$0xf]  ;;  %v11808_v19 = vor.u32 %v13518_v4, %v11805_v39 }
 0x3d7   :  { %7853 = vmatmul.bf16.vlgmr.msrb.gmra.mxu3 %v15139_v11  ;;  %v11968_v11 = vor.u32 %v13558_v2, %v11965_v18  ;;  %v11568_v33 = vor.u32 %v13458_v7, %v11565_v8  ;;  %v11933_v60 = vld [vmem:[%s20442_s1 + $0x1b78] sm:$0xf0]  ;;  %v13450_v59 = vld [vmem:[%s20442_s1 + $0x184c] sm:$0xf]  ;;  %v7633_v29 = vpop.f32.mrf.mxu2 }
 0x3d8   :  { %7859 = vmatpush.bf16.msra.mxu0 %v11600_v36  ;;  %v11533_v23 = vld [vmem:[%s20442_s1 + $0x1858] sm:$0xf0]  ;;  %v13482_v37 = vld [vmem:[%s20442_s1 + $0x194c] sm:$0xf]  ;;  %v11936_v31 = vor.u32 %v13550_v28, %v11933_v60  ;;  %v7634_v43 = vadd.f32 %v7633_v29, %v7621_v63  ;;  %v7609_v46 = vpop.f32.mrf.mxu0 }
 0x3d9   :  { %7872 = vmatpush.bf16.msra.mxu1 %v11728_v58  ;;  %7885 = vmatpush.bf16.msra.mxu2 %v11856_v3  ;;  %v11661_v21 = vld [vmem:[%s20442_s1 + $0x1958] sm:$0xf0]  ;;  %v13514_v34 = vld [vmem:[%s20442_s1 + $0x1a4c] sm:$0xf]  ;;  %v11536_v3 = vor.u32 %v13450_v59, %v11533_v23 }
 0x3da   :  { %7898 = vmatpush.bf16.msra.mxu3 %v11984_v22  ;;  %v11789_v62 = vld [vmem:[%s20442_s1 + $0x1a58] sm:$0xf0]  ;;  %v7646_v48 = vpop.f32.mrf.mxu3  ;;  %v13546_v36 = vld [vmem:[%s20442_s1 + $0x1b4c] sm:$0xf]  ;;  %v11664_v40 = vor.u32 %v13482_v37, %v11661_v21 }
 0x3db   :  { %v11917_v58 = vld [vmem:[%s20442_s1 + $0x1b58] sm:$0xf0]  ;;  %v20034_v49 = vadd.f32 %v7646_v48, %v7634_v43  ;;  %v11792_v22 = vor.u32 %v13514_v34, %v11789_v62  ;;  %v13446_v24 = vld [vmem:[%s20442_s1 + $0x182c] sm:$0xf]  ;;  %v7622_v2 = vpop.f32.mrf.mxu1 }
 0x3dc   :  { %7860 = vmatpush.bf16.msra.mxu0 %v11584_v1  ;;  %v11517_v45 = vld [vmem:[%s20442_s1 + $0x1838] sm:$0xf0]  ;;  %v13478_v50 = vld [vmem:[%s20442_s1 + $0x192c] sm:$0xf]  ;;  %v11920_v18 = vor.u32 %v13546_v36, %v11917_v58 }
 0x3dd   :  { %7873 = vmatpush.bf16.msra.mxu1 %v11712_v26  ;;  %7886 = vmatpush.bf16.msra.mxu2 %v11840_v52  ;;  %v11645_v1 = vld [vmem:[%s20442_s1 + $0x1938] sm:$0xf0]  ;;  %v13510_v26 = vld [vmem:[%s20442_s1 + $0x1a2c] sm:$0xf]  ;;  %v11520_v30 = vor.u32 %v13446_v24, %v11517_v45 }
 0x3de   :  { %7899 = vmatpush.bf16.msra.mxu3 %v11968_v11  ;;  %v11773_v52 = vld [vmem:[%s20442_s1 + $0x1a38] sm:$0xf0]  ;;  %v13542_v7 = vld [vmem:[%s20442_s1 + $0x1b2c] sm:$0xf]  ;;  %v11648_v35 = vor.u32 %v13478_v50, %v11645_v1 }
 0x3df   :  { %v11901_v8 = vld [vmem:[%s20442_s1 + $0x1b38] sm:$0xf0]  ;;  %v13442_v11 = vld [vmem:[%s20442_s1 + $0x180c] sm:$0xf]  ;;  %v11776_v38 = vor.u32 %v13510_v26, %v11773_v52  ;;  %v7635_v54 = vpop.f32.mrf.mxu2 }
 0x3e0   :  { %7861 = vmatpush.bf16.msra.mxu0 %v11568_v33  ;;  %v11501_v13 = vld [vmem:[%s20442_s1 + $0x1818] sm:$0xf0]  ;;  %v13474_v27 = vld [vmem:[%s20442_s1 + $0x190c] sm:$0xf] }
 0x3e1   :  { %7874 = vmatpush.bf16.msra.mxu1 %v11696_v41  ;;  %7887 = vmatpush.bf16.msra.mxu2 %v11824_v42  ;;  %v11629_v32 = vld [vmem:[%s20442_s1 + $0x1918] sm:$0xf0]  ;;  %v13506_v33 = vld [vmem:[%s20442_s1 + $0x1a0c] sm:$0xf]  ;;  %v11904_v41 = vor.u32 %v13542_v7, %v11901_v8  ;;  %v11504_v14 = vor.u32 %v13442_v11, %v11501_v13 }
 0x3e2   :  { %7900 = vmatpush.bf16.msra.mxu3 %v11952_v15  ;;  %v11757_v42 = vld [vmem:[%s20442_s1 + $0x1a18] sm:$0xf0]  ;;  %v13538_v56 = vld [vmem:[%s20442_s1 + $0x1b0c] sm:$0xf]  ;;  %v7648_v44 = vpop.f32.mrf.mxu3  ;;  %v11632_v60 = vor.u32 %v13474_v27, %v11629_v32 }
 0x3e3   :  { %v11885_v57 = vld [vmem:[%s20442_s1 + $0x1b18] sm:$0xf0]  ;;  %v13598_v9 = vld [vmem:[%s20442_s1 + $0x1cec] sm:$0xf]  ;;  %v11760_v63 = vor.u32 %v13506_v33, %v11757_v42 }
 0x3e4   :  { %7862 = vmatpush.bf16.msra.mxu0 %v11552_v20  ;;  %v12125_v10 = vld [vmem:[%s20442_s1 + $0x1cf8] sm:$0xf0]  ;;  %v13630_v15 = vld [vmem:[%s20442_s1 + $0x1dec] sm:$0xf] }
 0x3e5   :  { %7875 = vmatpush.bf16.msra.mxu1 %v11680_v47  ;;  %7888 = vmatpush.bf16.msra.mxu2 %v11808_v19  ;;  %v12253_v4 = vld [vmem:[%s20442_s1 + $0x1df8] sm:$0xf0]  ;;  %v13662_v39 = vld [vmem:[%s20442_s1 + $0x1eec] sm:$0xf]  ;;  %v11888_v19 = vor.u32 %v13538_v56, %v11885_v57  ;;  %v12128_v59 = vor.u32 %v13598_v9, %v12125_v10 }
 0x3e6   :  { %7901 = vmatpush.bf16.msra.mxu3 %v11936_v31  ;;  %v12381_v28 = vld [vmem:[%s20442_s1 + $0x1ef8] sm:$0xf0]  ;;  %v13694_v20 = vld [vmem:[%s20442_s1 + $0x1fec] sm:$0xf]  ;;  %v12256_v23 = vor.u32 %v13630_v15, %v12253_v4 }
 0x3e7   :  { %v12509_v47 = vld [vmem:[%s20442_s1 + $0x1ff8] sm:$0xf0]  ;;  %v12384_v37 = vor.u32 %v13662_v39, %v12381_v28  ;;  %v13594_v29 = vld [vmem:[%s20442_s1 + $0x1ccc] sm:$0xf] }
 0x3e8   :  { %7863 = vmatpush.bf16.msra.mxu0 %v11536_v3  ;;  %v12109_v31 = vld [vmem:[%s20442_s1 + $0x1cd8] sm:$0xf0]  ;;  %v13626_v21 = vld [vmem:[%s20442_s1 + $0x1dcc] sm:$0xf]  ;;  %v12512_v34 = vor.u32 %v13694_v20, %v12509_v47 }
 0x3e9   :  { %7876 = vmatpush.bf16.msra.mxu1 %v11664_v40  ;;  %7889 = vmatpush.bf16.msra.mxu2 %v11792_v22  ;;  %v12237_v62 = vld [vmem:[%s20442_s1 + $0x1dd8] sm:$0xf0]  ;;  %v13658_v43 = vld [vmem:[%s20442_s1 + $0x1ecc] sm:$0xf]  ;;  %v12112_v3 = vor.u32 %v13594_v29, %v12109_v31 }
 0x3ea   :  { %7902 = vmatpush.bf16.msra.mxu3 %v11920_v18  ;;  %v12365_v48 = vld [vmem:[%s20442_s1 + $0x1ed8] sm:$0xf0]  ;;  %v13690_v36 = vld [vmem:[%s20442_s1 + $0x1fcc] sm:$0xf]  ;;  %v12240_v46 = vor.u32 %v13626_v21, %v12237_v62 }
 0x3eb   :  { %v12493_v58 = vld [vmem:[%s20442_s1 + $0x1fd8] sm:$0xf0]  ;;  %v12368_v40 = vor.u32 %v13658_v43, %v12365_v48  ;;  %v13590_v22 = vld [vmem:[%s20442_s1 + $0x1cac] sm:$0xf] }
 0x3ec   :  { %7864 = vmatpush.bf16.msra.mxu0 %v11520_v30  ;;  %v12093_v24 = vld [vmem:[%s20442_s1 + $0x1cb8] sm:$0xf0]  ;;  %v13622_v45 = vld [vmem:[%s20442_s1 + $0x1dac] sm:$0xf]  ;;  %v12496_v50 = vor.u32 %v13690_v36, %v12493_v58 }
 0x3ed   :  { %7877 = vmatpush.bf16.msra.mxu1 %v11648_v35  ;;  %7890 = vmatpush.bf16.msra.mxu2 %v11776_v38  ;;  %v12221_v2 = vld [vmem:[%s20442_s1 + $0x1db8] sm:$0xf0]  ;;  %v13654_v18 = vld [vmem:[%s20442_s1 + $0x1eac] sm:$0xf]  ;;  %v12096_v52 = vor.u32 %v13590_v22, %v12093_v24 }
 0x3ee   :  { %7903 = vmatpush.bf16.msra.mxu3 %v11904_v41  ;;  %v12349_v1 = vld [vmem:[%s20442_s1 + $0x1eb8] sm:$0xf0]  ;;  %v12224_v7 = vor.u32 %v13622_v45, %v12221_v2  ;;  %v13618_v30 = vld [vmem:[%s20442_s1 + $0x1d8c] sm:$0xf] }
 0x3ef   :  { %v12477_v26 = vld [vmem:[%s20442_s1 + $0x1fb8] sm:$0xf0]  ;;  %v12352_v8 = vor.u32 %v13654_v18, %v12349_v1  ;;  %v13650_v13 = vld [vmem:[%s20442_s1 + $0x1e8c] sm:$0xf] }
 0x3f0   :  { %7865 = vmatpush.bf16.msra.mxu0 %v11504_v14  ;;  %v12205_v11 = vld [vmem:[%s20442_s1 + $0x1d98] sm:$0xf0]  ;;  %v7659_v38 = vpop.f32.mrf.mxu0  ;;  %v13682_v27 = vld [vmem:[%s20442_s1 + $0x1f8c] sm:$0xf] }
 0x3f1   :  { %7878 = vmatpush.bf16.msra.mxu1 %v11632_v60  ;;  %7891 = vmatpush.bf16.msra.mxu2 %v11760_v63  ;;  %v12333_v35 = vld [vmem:[%s20442_s1 + $0x1e98] sm:$0xf0]  ;;  %v7660_v33 = vadd.f32 %v7659_v38, %v20034_v49  ;;  %v12208_v42 = vor.u32 %v13618_v30, %v12205_v11  ;;  %v13582_v57 = vld [vmem:[%s20442_s1 + $0x1c6c] sm:$0xf] }
 0x3f2   :  { %7904 = vmatpush.bf16.msra.mxu3 %v11888_v19  ;;  %v12461_v32 = vld [vmem:[%s20442_s1 + $0x1f98] sm:$0xf0]  ;;  %v12336_v56 = vor.u32 %v13650_v13, %v12333_v35  ;;  %v13614_v9 = vld [vmem:[%s20442_s1 + $0x1d6c] sm:$0xf] }
 0x3f3   :  { %7866 = vmatmul.bf16.vlgmr.msra.gmra.mxu0 %v15328_v0  ;;  %v13686_v0 = vld [vmem:[%s20442_s1 + $0x1fac] sm:$0xf]  ;;  %v7672_v41 = vpop.f32.mrf.mxu1  ;;  %v12061_v44 = vld [vmem:[%s20442_s1 + $0x1c78] sm:$0xf0]  ;;  %v12464_v49 = vor.u32 %v13682_v27, %v12461_v32 }
 0x3f4   :  { %7910 = vmatpush.bf16.msrb.mxu0 %v12128_v59  ;;  %7892 = vmatmul.bf16.vlgmr.msra.gmra.mxu2 %v15339_v5  ;;  %v13586_v5 = vld [vmem:[%s20442_s1 + $0x1c8c] sm:$0xf]  ;;  %v7673_v10 = vadd.f32 %v7672_v41, %v7660_v33  ;;  %v12189_v15 = vld [vmem:[%s20442_s1 + $0x1d78] sm:$0xf0]  ;;  %v12064_v60 = vor.u32 %v13582_v57, %v12061_v44 }
 0x3f5   :  { %7923 = vmatpush.bf16.msrb.mxu1 %v12256_v23  ;;  %7936 = vmatpush.bf16.msrb.mxu2 %v12384_v37  ;;  %v13646_v14 = vld [vmem:[%s20442_s1 + $0x1e6c] sm:$0xf]  ;;  %v12317_v4 = vld [vmem:[%s20442_s1 + $0x1e78] sm:$0xf0]  ;;  %v12192_v63 = vor.u32 %v13614_v9, %v12189_v15  ;;  %v13711_v15 = vld [vmem:[%s20445_s4 + $0x70] sm:$0xff] }
 0x3f6   :  { %7949 = vmatpush.bf16.msrb.mxu3 %v12512_v34  ;;  %7879 = vmatmul.bf16.vlgmr.msra.gmra.mxu1 %v15341_v6  ;;  %v12077_v6 = vld [vmem:[%s20442_s1 + $0x1c98] sm:$0xf0]  ;;  %v13678_v39 = vld [vmem:[%s20442_s1 + $0x1f6c] sm:$0xf]  ;;  %v12320_v20 = vor.u32 %v13646_v14, %v12317_v4  ;;  %v13719_v14 = vld [vmem:[%s20445_s4 + $0xb0] sm:$0xff] }
 0x3f7   :  { %7905 = vmatmul.bf16.vlgmr.msra.gmra.mxu3 %v15349_v12  ;;  %v12480_v12 = vor.u32 %v13686_v0, %v12477_v26  ;;  %v12080_v54 = vor.u32 %v13586_v5, %v12077_v6  ;;  %v12445_v28 = vld [vmem:[%s20442_s1 + $0x1f78] sm:$0xf0]  ;;  %v13578_v47 = vld [vmem:[%s20442_s1 + $0x1c4c] sm:$0xf]  ;;  %v7685_v37 = vpop.f32.mrf.mxu2 }
 0x3f8   :  { %7911 = vmatpush.bf16.msrb.mxu0 %v12112_v3  ;;  %v12045_v19 = vld [vmem:[%s20442_s1 + $0x1c58] sm:$0xf0]  ;;  %v13610_v59 = vld [vmem:[%s20442_s1 + $0x1d4c] sm:$0xf]  ;;  %v12448_v23 = vor.u32 %v13678_v39, %v12445_v28  ;;  %v7686_v34 = vadd.f32 %v7685_v37, %v7673_v10  ;;  %v7661_v36 = vpop.f32.mrf.mxu0  ;;  %v13703_v10 = vld [vmem:[%s20445_s4 + $0x30] sm:$0xff] }
 0x3f9   :  { %7924 = vmatpush.bf16.msrb.mxu1 %v12240_v46  ;;  %7937 = vmatpush.bf16.msrb.mxu2 %v12368_v40  ;;  %v12173_v29 = vld [vmem:[%s20442_s1 + $0x1d58] sm:$0xf0]  ;;  %v13642_v31 = vld [vmem:[%s20442_s1 + $0x1e4c] sm:$0xf]  ;;  %v12048_v58 = vor.u32 %v13578_v47, %v12045_v19  ;;  %v13699_v36 = vld [vmem:[%s20445_s4 + $0x10] sm:$0xff] }
 0x3fa   :  { %7950 = vmatpush.bf16.msrb.mxu3 %v12496_v50  ;;  %v12301_v21 = vld [vmem:[%s20442_s1 + $0x1e58] sm:$0xf0]  ;;  %v7698_v62 = vpop.f32.mrf.mxu3  ;;  %v13674_v43 = vld [vmem:[%s20442_s1 + $0x1f4c] sm:$0xf]  ;;  %v12176_v40 = vor.u32 %v13610_v59, %v12173_v29  ;;  %v20342_v29 = vld [vmem:[%s20444_s3] sm:$0xf] }
 0x3fb   :  { %v12429_v48 = vld [vmem:[%s20442_s1 + $0x1f58] sm:$0xf0]  ;;  %v7674_v3 = vpop.f32.mrf.mxu1  ;;  %v20233_v46 = vadd.f32 %v7698_v62, %v7686_v34  ;;  %v12304_v22 = vor.u32 %v13642_v31, %v12301_v21  ;;  %v13574_v24 = vld [vmem:[%s20442_s1 + $0x1c2c] sm:$0xf] }
 0x3fc   :  { %7912 = vmatpush.bf16.msrb.mxu0 %v12096_v52  ;;  %v12029_v45 = vld [vmem:[%s20442_s1 + $0x1c38] sm:$0xf0]  ;;  %v13606_v50 = vld [vmem:[%s20442_s1 + $0x1d2c] sm:$0xf]  ;;  %v12432_v2 = vor.u32 %v13674_v43, %v12429_v48 }
 0x3fd   :  { %7925 = vmatpush.bf16.msrb.mxu1 %v12224_v7  ;;  %7938 = vmatpush.bf16.msrb.mxu2 %v12352_v8  ;;  %v12157_v18 = vld [vmem:[%s20442_s1 + $0x1d38] sm:$0xf0]  ;;  %v13638_v1 = vld [vmem:[%s20442_s1 + $0x1e2c] sm:$0xf]  ;;  %v12032_v7 = vor.u32 %v13574_v24, %v12029_v45  ;;  %v13715_v24 = vld [vmem:[%s20445_s4 + $0x90] sm:$0xff] }
 0x3fe   :  { %7951 = vmatpush.bf16.msrb.mxu3 %v12480_v12  ;;  %v12285_v0 = vld [vmem:[%s20442_s1 + $0x1e38] sm:$0xf0]  ;;  %v13670_v26 = vld [vmem:[%s20442_s1 + $0x1f2c] sm:$0xf]  ;;  %v12160_v8 = vor.u32 %v13606_v50, %v12157_v18  ;;  %v7979_v50 = vperm.slane %v20342_v29, 1 }
 0x3ff   :  { %v12413_v52 = vld [vmem:[%s20442_s1 + $0x1f38] sm:$0xf0]  ;;  %v12288_v5 = vor.u32 %v13638_v1, %v12285_v0  ;;  %v13570_v6 = vld [vmem:[%s20442_s1 + $0x1c0c] sm:$0xf]  ;;  %v7687_v27 = vpop.f32.mrf.mxu2 }
 0x400   :  { %7913 = vmatpush.bf16.msrb.mxu0 %v12080_v54  ;;  %v12013_v30 = vld [vmem:[%s20442_s1 + $0x1c18] sm:$0xf0]  ;;  %v13602_v12 = vld [vmem:[%s20442_s1 + $0x1d0c] sm:$0xf]  ;;  %v12416_v11 = vor.u32 %v13670_v26, %v12413_v52 }
 0x401   :  { %7926 = vmatpush.bf16.msrb.mxu1 %v12208_v42  ;;  %7939 = vmatpush.bf16.msrb.mxu2 %v12336_v56  ;;  %v12141_v13 = vld [vmem:[%s20442_s1 + $0x1d18] sm:$0xf0]  ;;  %v13634_v35 = vld [vmem:[%s20442_s1 + $0x1e0c] sm:$0xf]  ;;  %v12016_v41 = vor.u32 %v13570_v6, %v12013_v30  ;;  %v13705_v6 = vld [vmem:[%s20445_s4 + $0x40] sm:$0xff] }
 0x402   :  { %7952 = vmatpush.bf16.msrb.mxu3 %v12464_v49  ;;  %v12269_v38 = vld [vmem:[%s20442_s1 + $0x1e18] sm:$0xf0]  ;;  %v13666_v32 = vld [vmem:[%s20442_s1 + $0x1f0c] sm:$0xf]  ;;  %v7700_v54 = vpop.f32.mrf.mxu3  ;;  %v12144_v42 = vor.u32 %v13602_v12, %v12141_v13  ;;  %v13713_v30 = vld [vmem:[%s20445_s4 + $0x80] sm:$0xff] }
 0x403   :  { %v12397_v33 = vld [vmem:[%s20442_s1 + $0x1f18] sm:$0xf0]  ;;  %v12272_v56 = vor.u32 %v13634_v35, %v12269_v38  ;;  %v13702_v4 = vld [vmem:[%s20445_s4 + $0x28] sm:$0xff] }
 0x404   :  { %7914 = vmatpush.bf16.msrb.mxu0 %v12064_v60  ;;  %v12400_v57 = vor.u32 %v13666_v32, %v12397_v33  ;;  %v13704_v44 = vld [vmem:[%s20445_s4 + $0x38] sm:$0xff]  ;;  %v13710_v39 = vld [vmem:[%s20445_s4 + $0x68] sm:$0xff]  ;;  %v13709_v60 = vld [vmem:[%s20445_s4 + $0x60] sm:$0xff] }
 0x405   :  { %7927 = vmatpush.bf16.msrb.mxu1 %v12192_v63  ;;  %7940 = vmatpush.bf16.msrb.mxu2 %v12320_v20  ;;  %v13712_v9 = vld [vmem:[%s20445_s4 + $0x78] sm:$0xff]  ;;  %v13717_v63 = vld [vmem:[%s20445_s4 + $0xa0] sm:$0xff]  ;;  %v13698_v18 = vld [vmem:[%s20445_s4 + $0x8] sm:$0xff] }
 0x406   :  { %7953 = vmatpush.bf16.msrb.mxu3 %v12448_v23  ;;  %v13720_v49 = vld [vmem:[%s20445_s4 + $0xb8] sm:$0xff]  ;;  %v20327_v20 = vld [vmem:[%s20443_s2] sm:$0xf]  ;;  %v13706_v0 = vld [vmem:[%s20445_s4 + $0x48] sm:$0xff] }
 0x407   :  { %v13700_v19 = vld [vmem:[%s20445_s4 + $0x18] sm:$0xff]  ;;  %v7964_v59 = vperm.slane %v20327_v20, 0  ;;  %v7965_v31 = vperm.slane %v20327_v20, 1  ;;  %v7966_v21 = vperm.slane %v20327_v20, 2 }
 0x408   :  { %7915 = vmatpush.bf16.msrb.mxu0 %v12048_v58  ;;  %v13708_v23 = vld [vmem:[%s20445_s4 + $0x58] sm:$0xff] }
 0x409   :  { %7928 = vmatpush.bf16.msrb.mxu1 %v12176_v40  ;;  %7941 = vmatpush.bf16.msrb.mxu2 %v12304_v22  ;;  %v13716_v37 = vld [vmem:[%s20445_s4 + $0x98] sm:$0xff]  ;;  %v7972_v3 = vmul.f32 %v7964_v59, %v16455_v55  ;;  %v13707_v22 = vld [vmem:[%s20445_s4 + $0x50] sm:$0xff]  ;;  %v7973_v45 = vmul.f32 %v7965_v31, %v18046_v51  ;;  %v7980_v55 = vperm.slane %v20342_v29, 2  ;;  %v13714_v51 = vld [vmem:[%s20445_s4 + $0x88] sm:$0xff] }
 0x40a   :  { %7954 = vmatpush.bf16.msrb.mxu3 %v12432_v2  ;;  %v7974_v2 = vmul.f32 %v7966_v21, %v19637_v53 }
 0x40b   :  { %v7987_v26 = vadd.f32 %v7979_v50, %v7973_v45 }
 0x40c   :  { %7916 = vmatpush.bf16.msrb.mxu0 %v12032_v7  ;;  %v7988_v53 = vadd.f32 %v7980_v55, %v7974_v2 }
 0x40d   :  { %7929 = vmatpush.bf16.msrb.mxu1 %v12160_v8  ;;  %7942 = vmatpush.bf16.msrb.mxu2 %v12288_v5  ;;  %v13697_v8 = vld [vmem:[%s20445_s4] sm:$0xff]  ;;  %v7991_v12 = vmax.f32 %v7987_v26, 0.0 }
 0x40e   :  { %7955 = vmatpush.bf16.msrb.mxu3 %v12416_v11  ;;  %v7992_v11 = vmax.f32 %v7988_v53, 0.0 }
 0x40f   :  { %v7995_v35 = vpack.c.bf16 %v7991_v12, %v7991_v12  ;;  %v13736_v12 = vld [vmem:[%s20448_s7 + $0x38] sm:$0xff] }
 0x410   :  { %7917 = vmatpush.bf16.msrb.mxu0 %v12016_v41  ;;  %v7996_v38 = vpack.c.bf16 %v7992_v11, %v7992_v11 }
 0x411   :  { %7930 = vmatpush.bf16.msrb.mxu1 %v12144_v42  ;;  %7943 = vmatpush.bf16.msrb.mxu2 %v12272_v56 }
 0x412   :  { %7956 = vmatpush.bf16.msrb.mxu3 %v12400_v57 }
 0x413   :  { %7918 = vmatmul.bf16.vlgmr.msrb.gmra.mxu0 %v15535_v61  ;;  %v13718_v61 = vld [vmem:[%s20445_s4 + $0xa8] sm:$0xff]  ;;  %v7724_v28 = vpop.f32.mrf.mxu1 }
 0x414   :  { %8254 = vmatpush.bf16.msra.mxu0 %v13704_v44  ;;  %7931 = vmatmul.bf16.vlgmr.msrb.gmra.mxu1 %v15548_v17  ;;  %v7711_v17 = vpop.f32.mrf.mxu0 }
 0x415   :  { %8267 = vmatpush.bf16.msra.mxu1 %v13712_v9  ;;  %8280 = vmatpush.bf16.msra.mxu2 %v13720_v49 }
 0x416   :  { %7944 = vmatmul.bf16.vlgmr.msrb.gmra.mxu2 %v15546_v16  ;;  %7957 = vmatmul.bf16.vlgmr.msrb.gmra.mxu3 %v15556_v25  ;;  %v7712_v16 = vadd.f32 %v7711_v17, %v20233_v46  ;;  %v13701_v25 = vld [vmem:[%s20445_s4 + $0x20] sm:$0xff]  ;;  %v7978_v46 = vperm.slane %v20342_v29, 0  ;;  %v13728_v17 = vld [vmem:[%s20445_s4 + $0xf8] sm:$0xff] }
 0x417   :  { %v7737_v34 = vpop.f32.mrf.mxu2  ;;  %8293 = vmatpush.bf16.msra.mxu3 %v13728_v17  ;;  %v13739_v17 = vld [vmem:[%s20447_s6] ss:$0 sm:$0xff] }
 0x418   :  { %8255 = vmatpush.bf16.msra.mxu0 %v13703_v10  ;;  %v7725_v47 = vadd.f32 %v7724_v28, %v7712_v16  ;;  %v7986_v1 = vadd.f32 %v7978_v46, %v7972_v3 }
 0x419   :  { %8268 = vmatpush.bf16.msra.mxu1 %v13711_v15  ;;  %8281 = vmatpush.bf16.msra.mxu2 %v13719_v14 }
 0x41a   :  { %v7738_v62 = vadd.f32 %v7737_v34, %v7725_v47  ;;  %v7750_v43 = vpop.f32.mrf.mxu3  ;;  %v7990_v5 = vmax.f32 %v7986_v1, 0.0  ;;  %v13725_v47 = vld [vmem:[%s20445_s4 + $0xe0] sm:$0xff] }
 0x41b   :  { %v7726_v58 = vpop.f32.mrf.mxu1 }
 0x41c   :  { %8256 = vmatpush.bf16.msra.mxu0 %v13702_v4  ;;  %v7713_v48 = vpop.f32.mrf.mxu0  ;;  %v7751_v40 = vadd.f32 %v7750_v43, %v7738_v62  ;;  %v7994_v13 = vpack.c.bf16 %v7990_v5, %v7990_v5  ;;  %v13721_v58 = vld [vmem:[%s20445_s4 + $0xc0] sm:$0xff] }
 0x41d   :  { %8269 = vmatpush.bf16.msra.mxu1 %v13710_v39  ;;  %8282 = vmatpush.bf16.msra.mxu2 %v13718_v61  ;;  %v13722_v48 = vld [vmem:[%s20445_s4 + $0xc8] sm:$0xff] }
 0x41f   :  { %v7739_v52 = vpop.f32.mrf.mxu2 }
 0x420   :  { %8257 = vmatpush.bf16.msra.mxu0 %v13701_v25  ;;  %v13727_v25 = vld [vmem:[%s20445_s4 + $0xf0] sm:$0xff]  ;;  %v7967_v52 = vperm.slane %v20327_v20, 3 }
 0x421   :  { %8270 = vmatpush.bf16.msra.mxu1 %v13709_v60  ;;  %8283 = vmatpush.bf16.msra.mxu2 %v13717_v63  ;;  %v13726_v63 = vld [vmem:[%s20445_s4 + $0xe8] sm:$0xff] }
 0x422   :  { %v7752_v7 = vpop.f32.mrf.mxu3  ;;  %8294 = vmatpush.bf16.msra.mxu3 %v13727_v25 }
 0x424   :  { %8258 = vmatpush.bf16.msra.mxu0 %v13700_v19 }
 0x425   :  { %8271 = vmatpush.bf16.msra.mxu1 %v13708_v23  ;;  %8284 = vmatpush.bf16.msra.mxu2 %v13716_v37  ;;  %v13724_v23 = vld [vmem:[%s20445_s4 + $0xd8] sm:$0xff]  ;;  %v13723_v37 = vld [vmem:[%s20445_s4 + $0xd0] sm:$0xff] }
 0x426   :  { %8295 = vmatpush.bf16.msra.mxu3 %v13726_v63 }
 0x428   :  { %8259 = vmatpush.bf16.msra.mxu0 %v13699_v36 }
 0x429   :  { %8272 = vmatpush.bf16.msra.mxu1 %v13707_v22  ;;  %8285 = vmatpush.bf16.msra.mxu2 %v13715_v24 }
 0x42a   :  { %8296 = vmatpush.bf16.msra.mxu3 %v13725_v47  ;;  %v13740_v47 = vld [vmem:[%s20449_s8] ss:$0 sm:$0xff] }
 0x42c   :  { %8260 = vmatpush.bf16.msra.mxu0 %v13698_v18 }
 0x42d   :  { %8273 = vmatpush.bf16.msra.mxu1 %v13706_v0  ;;  %8286 = vmatpush.bf16.msra.mxu2 %v13714_v51 }
 0x42e   :  { %8297 = vmatpush.bf16.msra.mxu3 %v13724_v23 }
 0x430   :  { %8261 = vmatpush.bf16.msra.mxu0 %v13697_v8  ;;  %v7763_v27 = vpop.f32.mrf.mxu0 }
 0x431   :  { %8274 = vmatpush.bf16.msra.mxu1 %v13705_v6  ;;  %8287 = vmatpush.bf16.msra.mxu2 %v13713_v30  ;;  %v7764_v32 = vadd.f32 %v7763_v27, %v7751_v40  ;;  %v7981_v6 = vperm.slane %v20342_v29, 3  ;;  %v13734_v29 = vld [vmem:[%s20448_s7 + $0x28] sm:$0xff] }
 0x432   :  { %8298 = vmatpush.bf16.msra.mxu3 %v13723_v37 }
 0x433   :  { %8262 = vmatmul.bf16.vlgmr.msra.gmra.mxu0 %v7994_v13  ;;  %v7776_v33 = vpop.f32.mrf.mxu1  ;;  %v13735_v13 = vld [vmem:[%s20448_s7 + $0x30] sm:$0xff] }
 0x434   :  { %8275 = vmatmul.bf16.vlgmr.msra.gmra.mxu1 %v7995_v35  ;;  %8288 = vmatmul.bf16.vlgmr.msra.gmra.mxu2 %v7996_v38  ;;  %v7777_v54 = vadd.f32 %v7776_v33, %v7764_v32  ;;  %v13733_v32 = vld [vmem:[%s20448_s7 + $0x20] sm:$0xff]  ;;  %v13732_v33 = vld [vmem:[%s20448_s7 + $0x18] sm:$0xff] }
 0x435   :  { %8386 = vmatpush.bf16.msrb.mxu0 %v13736_v12 }
 0x436   :  { %8299 = vmatpush.bf16.msra.mxu3 %v13722_v48 }
 0x437   :  { %v7789_v41 = vpop.f32.mrf.mxu2 }
 0x438   :  { %v7790_v42 = vadd.f32 %v7789_v41, %v7777_v54  ;;  %v7765_v57 = vpop.f32.mrf.mxu0 }
 0x439   :  { %8387 = vmatpush.bf16.msrb.mxu0 %v13735_v13 }
 0x43a   :  { %v7802_v56 = vpop.f32.mrf.mxu3  ;;  %8300 = vmatpush.bf16.msra.mxu3 %v13721_v58 }
 0x43b   :  { %v7778_v44 = vpop.f32.mrf.mxu1  ;;  %v7803_v9 = vadd.f32 %v7802_v56, %v7790_v42 }
 0x43d   :  { %8388 = vmatpush.bf16.msrb.mxu0 %v13734_v29 }
 0x43f   :  { %v7791_v49 = vpop.f32.mrf.mxu2 }
 0x441   :  { %8389 = vmatpush.bf16.msrb.mxu0 %v13733_v32 }
 0x442   :  { %v7804_v10 = vpop.f32.mrf.mxu3 }
 0x443   :  { %v13731_v10 = vld [vmem:[%s20448_s7 + $0x10] sm:$0xff] }
 0x445   :  { %8390 = vmatpush.bf16.msrb.mxu0 %v13732_v33 }
 0x449   :  { %8391 = vmatpush.bf16.msrb.mxu0 %v13731_v10 }
 0x450   :  { %v7815_v15 = vpop.f32.mrf.mxu0 }
 0x451   :  { %v7816_v21 = vadd.f32 %v7815_v15, %v7803_v9  ;;  %v13730_v15 = vld [vmem:[%s20448_s7 + $0x8] sm:$0xff] }
 0x452   :  { %8392 = vmatpush.bf16.msrb.mxu0 %v13730_v15 }
 0x453   :  { %v7828_v14 = vpop.f32.mrf.mxu1 }
 0x454   :  { %v7829_v36 = vadd.f32 %v7828_v14, %v7816_v21  ;;  %v13729_v14 = vld [vmem:[%s20448_s7] sm:$0xff]  ;;  %s13767_s7 = smov [#allocation2]  }
 0x455   :  { %s8406_s19 = sshll.u32 %s13767_s7, 4  ;;  %s8407_s19 = int_to_ptr.vmem [resolvable:$true] %s8406_s19 }
 0x456   :  { %8393 = vmatpush.bf16.msrb.mxu0 %v13729_v14 }
 0x457   :  { %v7841_v4 = vpop.f32.mrf.mxu2 }
 0x458   :  { %v7817_v61 = vpop.f32.mrf.mxu0  ;;  %v7842_v3 = vadd.f32 %v7841_v4, %v7829_v36  ;;  %v13738_v4 = vld [vmem:[%s20446_s5] ss:$0 sm:$0xff] }
 0x45a   :  { %v7854_v39 = vpop.f32.mrf.mxu3 }
 0x45b   :  { %v7830_v16 = vpop.f32.mrf.mxu1  ;;  %v7855_v22 = vadd.f32 %v7854_v39, %v7842_v3 }
 0x45f   :  { %v7843_v28 = vpop.f32.mrf.mxu2 }
 0x462   :  { %v7856_v60 = vpop.f32.mrf.mxu3 }
 0x470   :  { %v7867_v19 = vpop.f32.mrf.mxu0 }
 0x471   :  { %v7868_v24 = vadd.f32 %v7867_v19, %v7855_v22 }
 0x473   :  { %v7880_v59 = vpop.f32.mrf.mxu1 }
 0x474   :  { %v7881_v45 = vadd.f32 %v7880_v59, %v7868_v24 }
 0x477   :  { %v7893_v31 = vpop.f32.mrf.mxu2 }
 0x478   :  { %v7869_v62 = vpop.f32.mrf.mxu0  ;;  %v7894_v50 = vadd.f32 %v7893_v31, %v7881_v45 }
 0x47a   :  { %v7906_v34 = vpop.f32.mrf.mxu3 }
 0x47b   :  { %v7882_v43 = vpop.f32.mrf.mxu1  ;;  %v7907_v2 = vadd.f32 %v7906_v34, %v7894_v50 }
 0x47f   :  { %v7895_v46 = vpop.f32.mrf.mxu2 }
 0x482   :  { %v7908_v40 = vpop.f32.mrf.mxu3 }
 0x490   :  { %v7919_v55 = vpop.f32.mrf.mxu0 }
 0x491   :  { %v7932_v18 = vpop.f32.mrf.mxu1  ;;  %v7920_v1 = vadd.f32 %v7919_v55, %v7907_v2 }
 0x493   :  { %v7933_v0 = vadd.f32 %v7932_v18, %v7920_v1 }
 0x498   :  { %v7921_v7 = vpop.f32.mrf.mxu0 }
 0x499   :  { %v7945_v51 = vpop.f32.mrf.mxu2  ;;  %v7958_v26 = vpop.f32.mrf.mxu3 }
 0x49a   :  { %v7946_v53 = vadd.f32 %v7945_v51, %v7933_v0  ;;  %v7934_v8 = vpop.f32.mrf.mxu1 }
 0x49c   :  { %v7959_v5 = vadd.f32 %v7958_v26, %v7946_v53 }
 0x49e   :  { %v7975_v30 = vmul.f32 %v7967_v52, %v7959_v5 }
 0x4a0   :  { %v7989_v11 = vadd.f32 %v7981_v6, %v7975_v30 }
 0x4a1   :  { %v7947_v35 = vpop.f32.mrf.mxu2  ;;  %v7960_v38 = vpop.f32.mrf.mxu3 }
 0x4a2   :  { %v7993_v27 = vmax.f32 %v7989_v11, 0.0 }
 0x4a4   :  { %v7997_v20 = vpack.c.bf16 %v7993_v27, %v7993_v27 }
 0x4a6   :  { %8301 = vmatmul.bf16.vlgmr.msra.gmra.mxu3 %v7997_v20 }
 0x4b0   :  { %v8263_v54 = vpop.f32.mrf.mxu0 }
 0x4b1   :  { %v8276_v41 = vpop.f32.mrf.mxu1 }
 0x4b2   :  { %v8277_v42 = vadd.f32 %v8276_v41, %v8263_v54 }
 0x4b7   :  { %v8289_v56 = vpop.f32.mrf.mxu2 }
 0x4b8   :  { %v8290_v57 = vadd.f32 %v8289_v56, %v8277_v42  ;;  %v8265_v44 = vpop.f32.mrf.mxu0 }
 0x4b9   :  { %v8278_v9 = vpop.f32.mrf.mxu1 }
 0x4bf   :  { %v8291_v49 = vpop.f32.mrf.mxu2 }
 0x529   :  { %v8302_v39 = vpop.f32.mrf.mxu3 }
 0x52a   :  { %v8303_v61 = vadd.f32 %v8302_v39, %v8290_v57 }
 0x52c   :  { %v8310_v16 = vmul.f32 %v13738_v4, %v8303_v61 }
 0x52e   :  { %v8315_v25 = vadd.f32 %v13739_v17, %v8310_v16 }
 0x530   :  { %v8316_v28 = vmax.f32 %v8315_v25, 0.0 }
 0x531   :  { %v8304_v60 = vpop.f32.mrf.mxu3 }
 0x532   :  { %v8317_v63 = vpack.c.bf16 %v8316_v28, %v8316_v28 }
 0x534   :  { %8394 = vmatmul.bf16.vlgmr.msrb.gmra.mxu0 %v8317_v63 }
 0x5b1   :  { %v8395_v19 = vpop.f32.mrf.mxu0 }
 0x5b2   :  { %v8396_v59 = vadd.f32 %v13740_v47, %v8395_v19 }
 0x5b4   :  { %8400 = vst.msk [vmem:[#allocation2] sm:$0x3] %vm8399_vm0, %v8396_v59 }
 0x5b5   :  { %8411 = dma.vmem_to_hbm [thread:$0]  %s8407_s19, 32, %s8409_s21, [#allocation3]  }
 0x5b9   :  { %v8397_v23 = vpop.f32.mrf.mxu0 }
 0x5ba   :  { %13765 = dma.done.wait [#allocation3], 32  }
 0x5bb   :  { %13766 = vsyncadd [#allocation3], 4294967264 }
 0x5bc   :  { %8416 = vsyncpa [#allocation3], 1 }

</bundles_post_ra>
